<compile_context>
chip_gen: v5e
topology: v5e:2x2
jax: 0.10.0
libtpu: 0.0.40
codegen_flags: <defaults>
</compile_context>

<pallas_src>
import functools
import math

import jax
import jax.numpy as jnp
from jax.experimental import pallas as pl
from jax.experimental.pallas import tpu as pltpu


def _encoder_kernel(obs_ref, goal_ref, pe_ref, sel_ref,
                    wc_ref, bc_ref, wg_ref, bg_ref,
                    wqkv_ref, bqkv_ref, wout_ref, bout_ref,
                    ln1g_ref, ln1b_ref, wff1_ref, bff1_ref,
                    wff2_ref, bff2_ref, ln2g_ref, ln2b_ref,
                    out_ref,
                    *, context_size, feat_dim, num_layers, block_b):
    """One grid step == TB batch elements of VisionEncoder.forward."""
    f32 = jnp.float32
    bf16 = jnp.bfloat16
    TB = block_b
    CTX = context_size
    F = feat_dim
    S = CTX + 1
    D = out_ref.shape[-1]

    def dot(a, b):                                    # bf16 MXU dot, f32 accumulation
        return jnp.dot(a.astype(bf16), b, preferred_element_type=f32)

    def layernorm(x, g, b, eps=1e-5):                 # PyTorch LayerNorm (biased var)
        mu = jnp.mean(x, axis=-1, keepdims=True)
        var = jnp.mean((x - mu) ** 2, axis=-1, keepdims=True)
        return (x - mu) * jax.lax.rsqrt(var + eps) * g + b

    wc = wc_ref[...]
    bc = bc_ref[...]
    sel = sel_ref[...]        # [D, D] block-diagonal head selector (bf16)

    # ---- compress_obs_enc + positional encoding ----
    # Frame c is the aligned lane slice [c*F, (c+1)*F) of the obs block: no
    # staging copy, one [TB, F]@[F, D] MXU dot per frame (token-major slabs).
    toks = [dot(obs_ref[:, pl.ds(c * F, F)], wc) + bc + pe_ref[pl.ds(c, 1), :]
            for c in range(CTX)]

    # ---- goal_encoder: K=2 -> two VPU broadcast mul-adds, no tiny MXU pass ----
    goal = goal_ref[...]
    wg = wg_ref[...]
    goal_tok = (goal[:, 0:1] * wg[0:1, :] + goal[:, 1:2] * wg[1:2, :]
                + bg_ref[...] + pe_ref[pl.ds(CTX, 1), :])
    toks.append(goal_tok)

    # Token-position-major slab [S*TB, D]; every dense op below is one big,
    # lane-dense matmul / vector op.
    x = jnp.concatenate(toks, axis=0)

    # ---- 2-layer TransformerEncoder (post-LN, batch_first, gelu) ----
    for l in range(num_layers):
        # Fused q/k/v projection (N = 3D fills the MXU); the 1/sqrt(hd) softmax
        # scale was folded into the q weights/bias host-side.
        qkv = dot(x, wqkv_ref[l]) + bqkv_ref[l]                       # [S*TB, 3D]
        q_t = [qkv[t * TB:(t + 1) * TB, 0:D] for t in range(S)]
        k_t = [qkv[t * TB:(t + 1) * TB, D:2 * D] for t in range(S)]
        v_t = [qkv[t * TB:(t + 1) * TB, 2 * D:3 * D] for t in range(S)]

        o_t = []
        for i in range(S):
            # Per-head scores, broadcast across each head's lanes by the
            # block-diagonal selector matmul -> zero XLU reductions, no masks,
            # small live set (scores for one query only).
            s_j = [dot(q_t[i] * k_t[j], sel) for j in range(S)]       # S x [TB, D]
            m = s_j[0]
            for j in range(1, S):
                m = jnp.maximum(m, s_j[j])
            denom = None
            acc = None
            for j in range(S):
                e = jnp.exp(s_j[j] - m)                               # EUP
                denom = e if denom is None else denom + e
                ev = e * v_t[j]
                acc = ev if acc is None else acc + ev
            o_t.append(acc * pl.reciprocal(denom, approx=True))       # EUP slot

        attn = jnp.concatenate(o_t, axis=0)                           # [S*TB, D]
        attn = dot(attn, wout_ref[l]) + bout_ref[l]                   # single out-proj dot
        x = layernorm(x + attn, ln1g_ref[l], ln1b_ref[l])

        # feed forward
        h1 = dot(x, wff1_ref[l]) + bff1_ref[l]
        # TODO(synk): PyTorch activation='gelu' is exact-erf; tanh approximation used here.
        h1 = jax.nn.gelu(h1, approximate=True)
        ff = dot(h1, wff2_ref[l]) + bff2_ref[l]
        x = layernorm(x + ff, ln2g_ref[l], ln2b_ref[l])

    # torch.mean(context_token, dim=1): average the S token slabs per sample
    acc = x[0:TB, :]
    for t in range(1, S):
        acc = acc + x[t * TB:(t + 1) * TB, :]
    out_ref[...] = acc * (1.0 / S)


def _round_up(x, m):
    return (x + m - 1) // m * m


def _pick_block_b(B, requested):
    TB = requested if requested is not None else 128
    TB = max(16, min(_round_up(TB, 16), _round_up(B, 16)))
    # v7x has 2 TensorCores: make sure the "parallel" grid axis has >= 2 steps
    # whenever the batch allows it.
    if _round_up(B, TB) // TB < 2:
        half = (_round_up(B, 16) // 2) // 16 * 16
        if half >= 16:
            TB = min(TB, half)
    return TB


def vision_encoder_pallas(obs_feat, goal_vec, params, *, num_heads=2, block_b=None):
    B, CTX, F = obs_feat.shape
    D = params["wc"].shape[1]
    L = params["wq"].shape[0]
    S = CTX + 1
    assert D % num_heads == 0
    hd = D // num_heads
    scale = 1.0 / math.sqrt(hd)

    # ---- batch blocking ----
    TB = _pick_block_b(B, block_b)
    B_pad = _round_up(B, TB)
    if B_pad != B:
        obs_feat = jnp.pad(obs_feat, ((0, B_pad - B), (0, 0), (0, 0)))
        goal_vec = jnp.pad(goal_vec, ((0, B_pad - B), (0, 0)))

    # Single HBM pass over the big tensor: reshape (free) + bf16 cast. No transpose.
    obs2d = obs_feat.reshape(B_pad, CTX * F).astype(jnp.bfloat16)     # [B_pad, CTX*F]
    goal = goal_vec.astype(jnp.float32)
    pe = params["pe"].astype(jnp.float32)

    bf = lambda a: a.astype(jnp.bfloat16)
    fp = lambda a: a.astype(jnp.float32)

    # Fused QKV weights, softmax scale folded into the q third.
    wqkv = jnp.concatenate([params["wq"] * scale, params["wk"], params["wv"]], axis=-1)
    bqkv = jnp.concatenate([params["bq"] * scale, params["bk"], params["bv"]], axis=-1)

    # Block-diagonal head selector: sel[d, e] = 1 iff lanes d,e belong to the same head.
    head_of = jnp.arange(D) // hd
    sel = (head_of[:, None] == head_of[None, :]).astype(jnp.bfloat16)

    weights = [
        ("wc", bf(params["wc"])), ("bc", fp(params["bc"])),
        ("wg", fp(params["wg"])), ("bg", fp(params["bg"])),
        ("wqkv", bf(wqkv)), ("bqkv", fp(bqkv)),
        ("wout", bf(params["wout"])), ("bout", fp(params["bout"])),
        ("ln1g", fp(params["ln1g"])), ("ln1b", fp(params["ln1b"])),
        ("wff1", bf(params["wff1"])), ("bff1", fp(params["bff1"])),
        ("wff2", bf(params["wff2"])), ("bff2", fp(params["bff2"])),
        ("ln2g", fp(params["ln2g"])), ("ln2b", fp(params["ln2b"])),
    ]

    def full_spec(arr):
        return pl.BlockSpec(arr.shape, lambda b, _nd=arr.ndim: (0,) * _nd)

    in_specs = [
        pl.BlockSpec((TB, CTX * F), lambda b: (b, 0)),   # pooled obs features
        pl.BlockSpec((TB, 2), lambda b: (b, 0)),         # goal vectors
        full_spec(pe),
        full_spec(sel),
    ] + [full_spec(a) for _, a in weights]

    kernel = functools.partial(_encoder_kernel, context_size=CTX, feat_dim=F,
                               num_layers=L, block_b=TB)

    flops = int(2 * B_pad * CTX * F * D                          # compress matmuls
                + 2 * B_pad * S * L * 12 * D * D                 # qkv + out + ff1/ff2
                + 2 * B_pad * L * S * S * D * D)                 # head-selector score dots
    transcend = int(B_pad * L * (S * S * D + S * 5 * D) + 4 * B_pad * S * L)
    bytes_acc = int(obs2d.size * 2 + goal.size * 4 + pe.size * 4 + sel.size * 2
                    + B_pad * D * 4
                    + sum(a.size * a.dtype.itemsize for _, a in weights))

    out = pl.pallas_call(
        kernel,
        out_shape=jax.ShapeDtypeStruct((B_pad, D), jnp.float32),
        grid=(B_pad // TB,),
        in_specs=in_specs,
        out_specs=pl.BlockSpec((TB, D), lambda b: (b, 0)),
        compiler_params=pltpu.CompilerParams(
            dimension_semantics=("parallel",),          # independent batch blocks
            vmem_limit_bytes=32 * 1024 * 1024),         # ~6 MiB used at TB=128
        cost_estimate=pl.CostEstimate(flops=flops, transcendentals=transcend,
                                      bytes_accessed=bytes_acc),
    )(obs2d, goal, pe, sel, *[a for _, a in weights])
    return out[:B]


def init_params(key, enc_dim, context_size, feat_dim, num_layers):
    """Deterministic synthetic parameters (shapes follow the PyTorch module)."""
    d = enc_dim
    max_len = context_size + 1
    ks = jax.random.split(key, 16)

    def w(k, shape, scale=0.02):
        return scale * jax.random.normal(k, shape, jnp.float32)

    params = dict(
        wc=w(ks[0], (feat_dim, d)),             # compress_obs_enc (1920 -> D), [in,out]
        bc=w(ks[1], (1, d), 0.01),
        wg=w(ks[2], (2, d)),                    # goal_encoder (2 -> D), [in,out]
        bg=w(ks[3], (1, d), 0.01),
        wq=w(ks[4], (num_layers, d, d)),        # MHA in_proj split into q/k/v, [in,out]
        wk=w(ks[5], (num_layers, d, d)),
        wv=w(ks[6], (num_layers, d, d)),
        bq=w(ks[7], (num_layers, 1, d), 0.01),
        bk=w(ks[8], (num_layers, 1, d), 0.01),
        bv=w(ks[9], (num_layers, 1, d), 0.01),
        wout=w(ks[10], (num_layers, d, d)),     # MHA out_proj, [in,out]
        bout=w(ks[11], (num_layers, 1, d), 0.01),
        ln1g=jnp.ones((num_layers, 1, d), jnp.float32),
        ln1b=jnp.zeros((num_layers, 1, d), jnp.float32),
        wff1=w(ks[12], (num_layers, d, 4 * d)),
        bff1=w(ks[13], (num_layers, 1, 4 * d), 0.01),
        wff2=w(ks[14], (num_layers, 4 * d, d)),
        bff2=w(ks[15], (num_layers, 1, d), 0.01),
        ln2g=jnp.ones((num_layers, 1, d), jnp.float32),
        ln2b=jnp.zeros((num_layers, 1, d), jnp.float32),
    )
    # PositionalEncoding buffer, exactly as in the PyTorch __init__
    position = jnp.arange(max_len, dtype=jnp.float32)[:, None]
    div_term = jnp.exp(jnp.arange(0, d, 2, dtype=jnp.float32) * (-math.log(10000.0) / d))
    pe = jnp.zeros((max_len, d), jnp.float32)
    pe = pe.at[:, 0::2].set(jnp.sin(position * div_term))
    pe = pe.at[:, 1::2].set(jnp.cos(position * div_term))
    params["pe"] = pe
    return params


def vision_encoder_reference(obs_feat, goal_vec, params, *, num_heads=2):
    """Pure-JAX (f32) mirror of the module math, for a numerical sanity check."""
    B, CTX, F = obs_feat.shape
    D = params["wc"].shape[1]
    L = params["wq"].shape[0]
    S = CTX + 1
    hd = D // num_heads
    scale = 1.0 / math.sqrt(hd)

    def ln(x, g, b, eps=1e-5):
        mu = x.mean(-1, keepdims=True)
        var = ((x - mu) ** 2).mean(-1, keepdims=True)
        return (x - mu) / jnp.sqrt(var + eps) * g + b

    obs_enc = (obs_feat.reshape(B * CTX, F) @ params["wc"] + params["bc"]).reshape(B, CTX, D)
    goal_enc = (goal_vec @ params["wg"] + params["bg"])[:, None, :]
    x = jnp.concatenate([obs_enc, goal_enc], axis=1) + params["pe"][None]

    for l in range(L):
        q = (x @ params["wq"][l] + params["bq"][l]) * scale
        k = x @ params["wk"][l] + params["bk"][l]
        v = x @ params["wv"][l] + params["bv"][l]
        q = q.reshape(B, S, num_heads, hd).transpose(0, 2, 1, 3)
        k = k.reshape(B, S, num_heads, hd).transpose(0, 2, 1, 3)
        v = v.reshape(B, S, num_heads, hd).transpose(0, 2, 1, 3)
        p = jax.nn.softmax(jnp.einsum("bhqd,bhkd->bhqk", q, k), axis=-1)
        o = jnp.einsum("bhqk,bhkd->bhqd", p, v).transpose(0, 2, 1, 3).reshape(B, S, D)
        attn = o @ params["wout"][l] + params["bout"][l]
        x = ln(x + attn, params["ln1g"][l], params["ln1b"][l])
        h1 = jax.nn.gelu(x @ params["wff1"][l] + params["bff1"][l], approximate=True)
        ff = h1 @ params["wff2"][l] + params["bff2"][l]
        x = ln(x + ff, params["ln2g"][l], params["ln2b"][l])
    return x.mean(axis=1)


if __name__ == "__main__":
    ENC_DIM = 128         # d_model (module default 256; lane-aligned small size here)
    CONTEXT_SIZE = 2      # module default
    FEAT_DIM = 1920       # EfficientNet-b0 pooled feature dim (fixed by module)
    NUM_LAYERS = 2        # TransformerEncoder num_layers
    NUM_HEADS = 2         # nhead
    B = 32

    key = jax.random.PRNGKey(0)
    k_obs, k_goal, k_par = jax.random.split(key, 3)
    obs_feat = jax.random.normal(k_obs, (B, CONTEXT_SIZE, FEAT_DIM), jnp.float32)
    goal_vec = jax.random.normal(k_goal, (B, 2), jnp.float32)
    params = init_params(k_par, ENC_DIM, CONTEXT_SIZE, FEAT_DIM, NUM_LAYERS)

    out = vision_encoder_pallas(obs_feat, goal_vec, params, num_heads=NUM_HEADS)
    out = jax.block_until_ready(out)   # default TB logic -> TB=16, grid of 2 blocks

    ref = vision_encoder_reference(obs_feat, goal_vec, params, num_heads=NUM_HEADS)
    assert out.shape == (B, ENC_DIM), out.shape
    max_err = float(jnp.max(jnp.abs(out - ref)))
    assert jnp.allclose(out, ref, rtol=3e-2, atol=3e-2), max_err
    print("KERNEL_OK")
</pallas_src>

<mosaic_0001>
module attributes {stable_mosaic.version = 11 : i64} {
  func.func @_encoder_kernel(%arg0: i32, %arg1: memref<16x3840xbf16, #tpu.memory_space<vmem>>, %arg2: memref<16x2xf32, #tpu.memory_space<vmem>>, %arg3: memref<3x128xf32, #tpu.memory_space<vmem>>, %arg4: memref<128x128xbf16, #tpu.memory_space<vmem>>, %arg5: memref<1920x128xbf16, #tpu.memory_space<vmem>>, %arg6: memref<1x128xf32, #tpu.memory_space<vmem>>, %arg7: memref<2x128xf32, #tpu.memory_space<vmem>>, %arg8: memref<1x128xf32, #tpu.memory_space<vmem>>, %arg9: memref<2x128x384xbf16, #tpu.memory_space<vmem>>, %arg10: memref<2x1x384xf32, #tpu.memory_space<vmem>>, %arg11: memref<2x128x128xbf16, #tpu.memory_space<vmem>>, %arg12: memref<2x1x128xf32, #tpu.memory_space<vmem>>, %arg13: memref<2x1x128xf32, #tpu.memory_space<vmem>>, %arg14: memref<2x1x128xf32, #tpu.memory_space<vmem>>, %arg15: memref<2x128x512xbf16, #tpu.memory_space<vmem>>, %arg16: memref<2x1x512xf32, #tpu.memory_space<vmem>>, %arg17: memref<2x512x128xbf16, #tpu.memory_space<vmem>>, %arg18: memref<2x1x128xf32, #tpu.memory_space<vmem>>, %arg19: memref<2x1x128xf32, #tpu.memory_space<vmem>>, %arg20: memref<2x1x128xf32, #tpu.memory_space<vmem>>, %arg21: memref<16x128xf32, #tpu.memory_space<vmem>>) attributes {dimension_semantics = [#tpu.dimension_semantics<parallel>], iteration_bounds = array<i64: 2>, scalar_prefetch = 0 : i64, scratch_operands = 0 : i64, tpu.core_type = #tpu.core_type<tc>, window_params = [{transform_indices = @transform_0, window_bounds = array<i64: 16, 3840>}, {transform_indices = @transform_1, window_bounds = array<i64: 16, 2>}, {pipeline_mode = #tpu.pipeline_mode<synchronous>, transform_indices = @transform_2, window_bounds = array<i64: 3, 128>}, {pipeline_mode = #tpu.pipeline_mode<synchronous>, transform_indices = @transform_3, window_bounds = array<i64: 128, 128>}, {pipeline_mode = #tpu.pipeline_mode<synchronous>, transform_indices = @transform_4, window_bounds = array<i64: 1920, 128>}, {pipeline_mode = #tpu.pipeline_mode<synchronous>, transform_indices = @transform_5, window_bounds = array<i64: 1, 128>}, {pipeline_mode = #tpu.pipeline_mode<synchronous>, transform_indices = @transform_6, window_bounds = array<i64: 2, 128>}, {pipeline_mode = #tpu.pipeline_mode<synchronous>, transform_indices = @transform_7, window_bounds = array<i64: 1, 128>}, {pipeline_mode = #tpu.pipeline_mode<synchronous>, transform_indices = @transform_8, window_bounds = array<i64: 2, 128, 384>}, {pipeline_mode = #tpu.pipeline_mode<synchronous>, transform_indices = @transform_9, window_bounds = array<i64: 2, 1, 384>}, {pipeline_mode = #tpu.pipeline_mode<synchronous>, transform_indices = @transform_10, window_bounds = array<i64: 2, 128, 128>}, {pipeline_mode = #tpu.pipeline_mode<synchronous>, transform_indices = @transform_11, window_bounds = array<i64: 2, 1, 128>}, {pipeline_mode = #tpu.pipeline_mode<synchronous>, transform_indices = @transform_12, window_bounds = array<i64: 2, 1, 128>}, {pipeline_mode = #tpu.pipeline_mode<synchronous>, transform_indices = @transform_13, window_bounds = array<i64: 2, 1, 128>}, {pipeline_mode = #tpu.pipeline_mode<synchronous>, transform_indices = @transform_14, window_bounds = array<i64: 2, 128, 512>}, {pipeline_mode = #tpu.pipeline_mode<synchronous>, transform_indices = @transform_15, window_bounds = array<i64: 2, 1, 512>}, {pipeline_mode = #tpu.pipeline_mode<synchronous>, transform_indices = @transform_16, window_bounds = array<i64: 2, 512, 128>}, {pipeline_mode = #tpu.pipeline_mode<synchronous>, transform_indices = @transform_17, window_bounds = array<i64: 2, 1, 128>}, {pipeline_mode = #tpu.pipeline_mode<synchronous>, transform_indices = @transform_18, window_bounds = array<i64: 2, 1, 128>}, {pipeline_mode = #tpu.pipeline_mode<synchronous>, transform_indices = @transform_19, window_bounds = array<i64: 2, 1, 128>}, {transform_indices = @transform_20, window_bounds = array<i64: 16, 128>}]} {
    %c0 = arith.constant 0 : index
    %c0_0 = arith.constant 0 : index
    %0 = vector.load %arg5[%c0, %c0_0] : memref<1920x128xbf16, #tpu.memory_space<vmem>>, vector<1920x128xbf16>
    %c0_1 = arith.constant 0 : index
    %c0_2 = arith.constant 0 : index
    %1 = vector.load %arg6[%c0_1, %c0_2] : memref<1x128xf32, #tpu.memory_space<vmem>>, vector<1x128xf32>
    %c0_3 = arith.constant 0 : index
    %c0_4 = arith.constant 0 : index
    %2 = vector.load %arg4[%c0_3, %c0_4] : memref<128x128xbf16, #tpu.memory_space<vmem>>, vector<128x128xbf16>
    %c0_5 = arith.constant 0 : index
    %c0_6 = arith.constant 0 : index
    %3 = vector.load %arg1[%c0_5, %c0_6] : memref<16x3840xbf16, #tpu.memory_space<vmem>>, vector<16x1920xbf16>
    %cst = arith.constant dense<0.000000e+00> : vector<16x128xf32>
    %4 = tpu.matmul %3, %0, %cst {dimension_numbers = #tpu.dot_dimension_numbers<[1], [0], [0], [1], [0, 0, 1, 1], [], []>} : vector<16x1920xbf16>, vector<1920x128xbf16>, vector<16x128xf32> -> vector<16x128xf32>
    %5 = vector.broadcast %1 : vector<1x128xf32> to vector<16x128xf32>
    %6 = arith.addf %4, %5 : vector<16x128xf32>
    %c0_7 = arith.constant 0 : index
    %c0_8 = arith.constant 0 : index
    %7 = vector.load %arg3[%c0_7, %c0_8] : memref<3x128xf32, #tpu.memory_space<vmem>>, vector<1x128xf32>
    %8 = vector.broadcast %7 : vector<1x128xf32> to vector<16x128xf32>
    %9 = arith.addf %6, %8 : vector<16x128xf32>
    %c0_9 = arith.constant 0 : index
    %c1920 = arith.constant 1920 : index
    %10 = vector.load %arg1[%c0_9, %c1920] : memref<16x3840xbf16, #tpu.memory_space<vmem>>, vector<16x1920xbf16>
    %cst_10 = arith.constant dense<0.000000e+00> : vector<16x128xf32>
    %11 = tpu.matmul %10, %0, %cst_10 {dimension_numbers = #tpu.dot_dimension_numbers<[1], [0], [0], [1], [0, 0, 1, 1], [], []>} : vector<16x1920xbf16>, vector<1920x128xbf16>, vector<16x128xf32> -> vector<16x128xf32>
    %12 = vector.broadcast %1 : vector<1x128xf32> to vector<16x128xf32>
    %13 = arith.addf %11, %12 : vector<16x128xf32>
    %c1 = arith.constant 1 : index
    %c0_11 = arith.constant 0 : index
    %14 = vector.load %arg3[%c1, %c0_11] : memref<3x128xf32, #tpu.memory_space<vmem>>, vector<1x128xf32>
    %15 = vector.broadcast %14 : vector<1x128xf32> to vector<16x128xf32>
    %16 = arith.addf %13, %15 : vector<16x128xf32>
    %c0_12 = arith.constant 0 : index
    %c0_13 = arith.constant 0 : index
    %17 = vector.load %arg2[%c0_12, %c0_13] : memref<16x2xf32, #tpu.memory_space<vmem>>, vector<16x2xf32>
    %c0_14 = arith.constant 0 : index
    %c0_15 = arith.constant 0 : index
    %18 = vector.load %arg7[%c0_14, %c0_15] : memref<2x128xf32, #tpu.memory_space<vmem>>, vector<2x128xf32>
    %19 = vector.extract_strided_slice %17 {offsets = [0, 0], sizes = [16, 1], strides = [1, 1]} : vector<16x2xf32> to vector<16x1xf32>
    %20 = vector.extract_strided_slice %18 {offsets = [0, 0], sizes = [1, 128], strides = [1, 1]} : vector<2x128xf32> to vector<1x128xf32>
    %21 = vector.broadcast %19 : vector<16x1xf32> to vector<16x128xf32>
    %22 = vector.broadcast %20 : vector<1x128xf32> to vector<16x128xf32>
    %23 = arith.mulf %21, %22 : vector<16x128xf32>
    %24 = vector.extract_strided_slice %17 {offsets = [0, 1], sizes = [16, 1], strides = [1, 1]} : vector<16x2xf32> to vector<16x1xf32>
    %25 = vector.extract_strided_slice %18 {offsets = [1, 0], sizes = [1, 128], strides = [1, 1]} : vector<2x128xf32> to vector<1x128xf32>
    %26 = vector.broadcast %24 : vector<16x1xf32> to vector<16x128xf32>
    %27 = vector.broadcast %25 : vector<1x128xf32> to vector<16x128xf32>
    %28 = arith.mulf %26, %27 : vector<16x128xf32>
    %29 = arith.addf %23, %28 : vector<16x128xf32>
    %c0_16 = arith.constant 0 : index
    %c0_17 = arith.constant 0 : index
    %30 = vector.load %arg8[%c0_16, %c0_17] : memref<1x128xf32, #tpu.memory_space<vmem>>, vector<1x128xf32>
    %31 = vector.broadcast %30 : vector<1x128xf32> to vector<16x128xf32>
    %32 = arith.addf %29, %31 : vector<16x128xf32>
    %c2 = arith.constant 2 : index
    %c0_18 = arith.constant 0 : index
    %33 = vector.load %arg3[%c2, %c0_18] : memref<3x128xf32, #tpu.memory_space<vmem>>, vector<1x128xf32>
    %34 = vector.broadcast %33 : vector<1x128xf32> to vector<16x128xf32>
    %35 = arith.addf %32, %34 : vector<16x128xf32>
    %36 = tpu.concatenate %9, %16, %35 in 0 : vector<16x128xf32>, vector<16x128xf32>, vector<16x128xf32> -> vector<48x128xf32>
    %c0_19 = arith.constant 0 : index
    %c0_20 = arith.constant 0 : index
    %c0_21 = arith.constant 0 : index
    %37 = vector.load %arg9[%c0_19, %c0_20, %c0_21] : memref<2x128x384xbf16, #tpu.memory_space<vmem>>, vector<1x128x384xbf16>
    %38 = vector.shape_cast %37 : vector<1x128x384xbf16> to vector<128x384xbf16>
    %39 = arith.truncf %36 : vector<48x128xf32> to vector<48x128xbf16>
    %cst_22 = arith.constant dense<0.000000e+00> : vector<48x384xf32>
    %40 = tpu.matmul %39, %38, %cst_22 {dimension_numbers = #tpu.dot_dimension_numbers<[1], [0], [0], [1], [0, 0, 1, 1], [], []>} : vector<48x128xbf16>, vector<128x384xbf16>, vector<48x384xf32> -> vector<48x384xf32>
    %c0_23 = arith.constant 0 : index
    %c0_24 = arith.constant 0 : index
    %c0_25 = arith.constant 0 : index
    %41 = vector.load %arg10[%c0_23, %c0_24, %c0_25] : memref<2x1x384xf32, #tpu.memory_space<vmem>>, vector<1x1x384xf32>
    %42 = vector.shape_cast %41 : vector<1x1x384xf32> to vector<1x384xf32>
    %43 = vector.broadcast %42 : vector<1x384xf32> to vector<48x384xf32>
    %44 = arith.addf %40, %43 : vector<48x384xf32>
    %45 = vector.extract_strided_slice %44 {offsets = [0, 0], sizes = [16, 128], strides = [1, 1]} : vector<48x384xf32> to vector<16x128xf32>
    %46 = vector.extract_strided_slice %44 {offsets = [16, 0], sizes = [16, 128], strides = [1, 1]} : vector<48x384xf32> to vector<16x128xf32>
    %47 = vector.extract_strided_slice %44 {offsets = [32, 0], sizes = [16, 128], strides = [1, 1]} : vector<48x384xf32> to vector<16x128xf32>
    %48 = vector.extract_strided_slice %44 {offsets = [0, 128], sizes = [16, 128], strides = [1, 1]} : vector<48x384xf32> to vector<16x128xf32>
    %49 = vector.extract_strided_slice %44 {offsets = [16, 128], sizes = [16, 128], strides = [1, 1]} : vector<48x384xf32> to vector<16x128xf32>
    %50 = vector.extract_strided_slice %44 {offsets = [32, 128], sizes = [16, 128], strides = [1, 1]} : vector<48x384xf32> to vector<16x128xf32>
    %51 = vector.extract_strided_slice %44 {offsets = [0, 256], sizes = [16, 128], strides = [1, 1]} : vector<48x384xf32> to vector<16x128xf32>
    %52 = vector.extract_strided_slice %44 {offsets = [16, 256], sizes = [16, 128], strides = [1, 1]} : vector<48x384xf32> to vector<16x128xf32>
    %53 = vector.extract_strided_slice %44 {offsets = [32, 256], sizes = [16, 128], strides = [1, 1]} : vector<48x384xf32> to vector<16x128xf32>
    %54 = arith.mulf %45, %48 : vector<16x128xf32>
    %55 = arith.truncf %54 : vector<16x128xf32> to vector<16x128xbf16>
    %cst_26 = arith.constant dense<0.000000e+00> : vector<16x128xf32>
    %56 = tpu.matmul %55, %2, %cst_26 {dimension_numbers = #tpu.dot_dimension_numbers<[1], [0], [0], [1], [0, 0, 1, 1], [], []>} : vector<16x128xbf16>, vector<128x128xbf16>, vector<16x128xf32> -> vector<16x128xf32>
    %57 = arith.mulf %45, %49 : vector<16x128xf32>
    %58 = arith.truncf %57 : vector<16x128xf32> to vector<16x128xbf16>
    %cst_27 = arith.constant dense<0.000000e+00> : vector<16x128xf32>
    %59 = tpu.matmul %58, %2, %cst_27 {dimension_numbers = #tpu.dot_dimension_numbers<[1], [0], [0], [1], [0, 0, 1, 1], [], []>} : vector<16x128xbf16>, vector<128x128xbf16>, vector<16x128xf32> -> vector<16x128xf32>
    %60 = arith.mulf %45, %50 : vector<16x128xf32>
    %61 = arith.truncf %60 : vector<16x128xf32> to vector<16x128xbf16>
    %cst_28 = arith.constant dense<0.000000e+00> : vector<16x128xf32>
    %62 = tpu.matmul %61, %2, %cst_28 {dimension_numbers = #tpu.dot_dimension_numbers<[1], [0], [0], [1], [0, 0, 1, 1], [], []>} : vector<16x128xbf16>, vector<128x128xbf16>, vector<16x128xf32> -> vector<16x128xf32>
    %63 = arith.maximumf %56, %59 : vector<16x128xf32>
    %64 = arith.maximumf %63, %62 : vector<16x128xf32>
    %65 = arith.subf %56, %64 : vector<16x128xf32>
    %66 = math.exp %65 : vector<16x128xf32>
    %67 = arith.mulf %66, %51 : vector<16x128xf32>
    %68 = arith.subf %59, %64 : vector<16x128xf32>
    %69 = math.exp %68 : vector<16x128xf32>
    %70 = arith.addf %66, %69 : vector<16x128xf32>
    %71 = arith.mulf %69, %52 : vector<16x128xf32>
    %72 = arith.addf %67, %71 : vector<16x128xf32>
    %73 = arith.subf %62, %64 : vector<16x128xf32>
    %74 = math.exp %73 : vector<16x128xf32>
    %75 = arith.addf %70, %74 : vector<16x128xf32>
    %76 = arith.mulf %74, %53 : vector<16x128xf32>
    %77 = arith.addf %72, %76 : vector<16x128xf32>
    %78 = tpu.reciprocal %75 {approx = true} : vector<16x128xf32> -> vector<16x128xf32>
    %79 = arith.mulf %77, %78 : vector<16x128xf32>
    %80 = arith.mulf %46, %48 : vector<16x128xf32>
    %81 = arith.truncf %80 : vector<16x128xf32> to vector<16x128xbf16>
    %cst_29 = arith.constant dense<0.000000e+00> : vector<16x128xf32>
    %82 = tpu.matmul %81, %2, %cst_29 {dimension_numbers = #tpu.dot_dimension_numbers<[1], [0], [0], [1], [0, 0, 1, 1], [], []>} : vector<16x128xbf16>, vector<128x128xbf16>, vector<16x128xf32> -> vector<16x128xf32>
    %83 = arith.mulf %46, %49 : vector<16x128xf32>
    %84 = arith.truncf %83 : vector<16x128xf32> to vector<16x128xbf16>
    %cst_30 = arith.constant dense<0.000000e+00> : vector<16x128xf32>
    %85 = tpu.matmul %84, %2, %cst_30 {dimension_numbers = #tpu.dot_dimension_numbers<[1], [0], [0], [1], [0, 0, 1, 1], [], []>} : vector<16x128xbf16>, vector<128x128xbf16>, vector<16x128xf32> -> vector<16x128xf32>
    %86 = arith.mulf %46, %50 : vector<16x128xf32>
    %87 = arith.truncf %86 : vector<16x128xf32> to vector<16x128xbf16>
    %cst_31 = arith.constant dense<0.000000e+00> : vector<16x128xf32>
    %88 = tpu.matmul %87, %2, %cst_31 {dimension_numbers = #tpu.dot_dimension_numbers<[1], [0], [0], [1], [0, 0, 1, 1], [], []>} : vector<16x128xbf16>, vector<128x128xbf16>, vector<16x128xf32> -> vector<16x128xf32>
    %89 = arith.maximumf %82, %85 : vector<16x128xf32>
    %90 = arith.maximumf %89, %88 : vector<16x128xf32>
    %91 = arith.subf %82, %90 : vector<16x128xf32>
    %92 = math.exp %91 : vector<16x128xf32>
    %93 = arith.mulf %92, %51 : vector<16x128xf32>
    %94 = arith.subf %85, %90 : vector<16x128xf32>
    %95 = math.exp %94 : vector<16x128xf32>
    %96 = arith.addf %92, %95 : vector<16x128xf32>
    %97 = arith.mulf %95, %52 : vector<16x128xf32>
    %98 = arith.addf %93, %97 : vector<16x128xf32>
    %99 = arith.subf %88, %90 : vector<16x128xf32>
    %100 = math.exp %99 : vector<16x128xf32>
    %101 = arith.addf %96, %100 : vector<16x128xf32>
    %102 = arith.mulf %100, %53 : vector<16x128xf32>
    %103 = arith.addf %98, %102 : vector<16x128xf32>
    %104 = tpu.reciprocal %101 {approx = true} : vector<16x128xf32> -> vector<16x128xf32>
    %105 = arith.mulf %103, %104 : vector<16x128xf32>
    %106 = arith.mulf %47, %48 : vector<16x128xf32>
    %107 = arith.truncf %106 : vector<16x128xf32> to vector<16x128xbf16>
    %cst_32 = arith.constant dense<0.000000e+00> : vector<16x128xf32>
    %108 = tpu.matmul %107, %2, %cst_32 {dimension_numbers = #tpu.dot_dimension_numbers<[1], [0], [0], [1], [0, 0, 1, 1], [], []>} : vector<16x128xbf16>, vector<128x128xbf16>, vector<16x128xf32> -> vector<16x128xf32>
    %109 = arith.mulf %47, %49 : vector<16x128xf32>
    %110 = arith.truncf %109 : vector<16x128xf32> to vector<16x128xbf16>
    %cst_33 = arith.constant dense<0.000000e+00> : vector<16x128xf32>
    %111 = tpu.matmul %110, %2, %cst_33 {dimension_numbers = #tpu.dot_dimension_numbers<[1], [0], [0], [1], [0, 0, 1, 1], [], []>} : vector<16x128xbf16>, vector<128x128xbf16>, vector<16x128xf32> -> vector<16x128xf32>
    %112 = arith.mulf %47, %50 : vector<16x128xf32>
    %113 = arith.truncf %112 : vector<16x128xf32> to vector<16x128xbf16>
    %cst_34 = arith.constant dense<0.000000e+00> : vector<16x128xf32>
    %114 = tpu.matmul %113, %2, %cst_34 {dimension_numbers = #tpu.dot_dimension_numbers<[1], [0], [0], [1], [0, 0, 1, 1], [], []>} : vector<16x128xbf16>, vector<128x128xbf16>, vector<16x128xf32> -> vector<16x128xf32>
    %115 = arith.maximumf %108, %111 : vector<16x128xf32>
    %116 = arith.maximumf %115, %114 : vector<16x128xf32>
    %117 = arith.subf %108, %116 : vector<16x128xf32>
    %118 = math.exp %117 : vector<16x128xf32>
    %119 = arith.mulf %118, %51 : vector<16x128xf32>
    %120 = arith.subf %111, %116 : vector<16x128xf32>
    %121 = math.exp %120 : vector<16x128xf32>
    %122 = arith.addf %118, %121 : vector<16x128xf32>
    %123 = arith.mulf %121, %52 : vector<16x128xf32>
    %124 = arith.addf %119, %123 : vector<16x128xf32>
    %125 = arith.subf %114, %116 : vector<16x128xf32>
    %126 = math.exp %125 : vector<16x128xf32>
    %127 = arith.addf %122, %126 : vector<16x128xf32>
    %128 = arith.mulf %126, %53 : vector<16x128xf32>
    %129 = arith.addf %124, %128 : vector<16x128xf32>
    %130 = tpu.reciprocal %127 {approx = true} : vector<16x128xf32> -> vector<16x128xf32>
    %131 = arith.mulf %129, %130 : vector<16x128xf32>
    %132 = tpu.concatenate %79, %105, %131 in 0 : vector<16x128xf32>, vector<16x128xf32>, vector<16x128xf32> -> vector<48x128xf32>
    %c0_35 = arith.constant 0 : index
    %c0_36 = arith.constant 0 : index
    %c0_37 = arith.constant 0 : index
    %133 = vector.load %arg11[%c0_35, %c0_36, %c0_37] : memref<2x128x128xbf16, #tpu.memory_space<vmem>>, vector<1x128x128xbf16>
    %134 = vector.shape_cast %133 : vector<1x128x128xbf16> to vector<128x128xbf16>
    %135 = arith.truncf %132 : vector<48x128xf32> to vector<48x128xbf16>
    %cst_38 = arith.constant dense<0.000000e+00> : vector<48x128xf32>
    %136 = tpu.matmul %135, %134, %cst_38 {dimension_numbers = #tpu.dot_dimension_numbers<[1], [0], [0], [1], [0, 0, 1, 1], [], []>} : vector<48x128xbf16>, vector<128x128xbf16>, vector<48x128xf32> -> vector<48x128xf32>
    %c0_39 = arith.constant 0 : index
    %c0_40 = arith.constant 0 : index
    %c0_41 = arith.constant 0 : index
    %137 = vector.load %arg12[%c0_39, %c0_40, %c0_41] : memref<2x1x128xf32, #tpu.memory_space<vmem>>, vector<1x1x128xf32>
    %138 = vector.shape_cast %137 : vector<1x1x128xf32> to vector<1x128xf32>
    %139 = vector.broadcast %138 : vector<1x128xf32> to vector<48x128xf32>
    %140 = arith.addf %136, %139 : vector<48x128xf32>
    %141 = arith.addf %36, %140 : vector<48x128xf32>
    %c0_42 = arith.constant 0 : index
    %c0_43 = arith.constant 0 : index
    %c0_44 = arith.constant 0 : index
    %142 = vector.load %arg13[%c0_42, %c0_43, %c0_44] : memref<2x1x128xf32, #tpu.memory_space<vmem>>, vector<1x1x128xf32>
    %143 = vector.shape_cast %142 : vector<1x1x128xf32> to vector<1x128xf32>
    %c0_45 = arith.constant 0 : index
    %c0_46 = arith.constant 0 : index
    %c0_47 = arith.constant 0 : index
    %144 = vector.load %arg14[%c0_45, %c0_46, %c0_47] : memref<2x1x128xf32, #tpu.memory_space<vmem>>, vector<1x1x128xf32>
    %145 = vector.shape_cast %144 : vector<1x1x128xf32> to vector<1x128xf32>
    %cst_48 = arith.constant dense<0.000000e+00> : vector<48xf32>
    %146 = vector.multi_reduction <add>, %141, %cst_48 [1] : vector<48x128xf32> to vector<48xf32>
    %147 = vector.shape_cast %146 : vector<48xf32> to vector<48x1xf32>
    %cst_49 = arith.constant 1.280000e+02 : f32
    %148 = vector.broadcast %cst_49 : f32 to vector<48x1xf32>
    %149 = arith.divf %147, %148 : vector<48x1xf32>
    %150 = vector.broadcast %149 : vector<48x1xf32> to vector<48x128xf32>
    %151 = arith.subf %141, %150 : vector<48x128xf32>
    %152 = arith.mulf %151, %151 : vector<48x128xf32>
    %cst_50 = arith.constant dense<0.000000e+00> : vector<48xf32>
    %153 = vector.multi_reduction <add>, %152, %cst_50 [1] : vector<48x128xf32> to vector<48xf32>
    %154 = vector.shape_cast %153 : vector<48xf32> to vector<48x1xf32>
    %cst_51 = arith.constant 1.280000e+02 : f32
    %155 = vector.broadcast %cst_51 : f32 to vector<48x1xf32>
    %156 = arith.divf %154, %155 : vector<48x1xf32>
    %157 = vector.broadcast %149 : vector<48x1xf32> to vector<48x128xf32>
    %158 = arith.subf %141, %157 : vector<48x128xf32>
    %cst_52 = arith.constant 9.99999974E-6 : f32
    %159 = vector.broadcast %cst_52 : f32 to vector<48x1xf32>
    %160 = arith.addf %156, %159 : vector<48x1xf32>
    %161 = math.rsqrt %160 : vector<48x1xf32>
    %162 = vector.broadcast %161 : vector<48x1xf32> to vector<48x128xf32>
    %163 = arith.mulf %158, %162 : vector<48x128xf32>
    %164 = vector.broadcast %143 : vector<1x128xf32> to vector<48x128xf32>
    %165 = arith.mulf %163, %164 : vector<48x128xf32>
    %166 = vector.broadcast %145 : vector<1x128xf32> to vector<48x128xf32>
    %167 = arith.addf %165, %166 : vector<48x128xf32>
    %c0_53 = arith.constant 0 : index
    %c0_54 = arith.constant 0 : index
    %c0_55 = arith.constant 0 : index
    %168 = vector.load %arg15[%c0_53, %c0_54, %c0_55] : memref<2x128x512xbf16, #tpu.memory_space<vmem>>, vector<1x128x512xbf16>
    %169 = vector.shape_cast %168 : vector<1x128x512xbf16> to vector<128x512xbf16>
    %170 = arith.truncf %167 : vector<48x128xf32> to vector<48x128xbf16>
    %cst_56 = arith.constant dense<0.000000e+00> : vector<48x512xf32>
    %171 = tpu.matmul %170, %169, %cst_56 {dimension_numbers = #tpu.dot_dimension_numbers<[1], [0], [0], [1], [0, 0, 1, 1], [], []>} : vector<48x128xbf16>, vector<128x512xbf16>, vector<48x512xf32> -> vector<48x512xf32>
    %c0_57 = arith.constant 0 : index
    %c0_58 = arith.constant 0 : index
    %c0_59 = arith.constant 0 : index
    %172 = vector.load %arg16[%c0_57, %c0_58, %c0_59] : memref<2x1x512xf32, #tpu.memory_space<vmem>>, vector<1x1x512xf32>
    %173 = vector.shape_cast %172 : vector<1x1x512xf32> to vector<1x512xf32>
    %174 = vector.broadcast %173 : vector<1x512xf32> to vector<48x512xf32>
    %175 = arith.addf %171, %174 : vector<48x512xf32>
    %176 = arith.mulf %175, %175 : vector<48x512xf32>
    %177 = arith.mulf %175, %176 : vector<48x512xf32>
    %cst_60 = arith.constant 4.471500e-02 : f32
    %178 = vector.broadcast %cst_60 : f32 to vector<48x512xf32>
    %179 = arith.mulf %178, %177 : vector<48x512xf32>
    %180 = arith.addf %175, %179 : vector<48x512xf32>
    %cst_61 = arith.constant 0.797884583 : f32
    %181 = vector.broadcast %cst_61 : f32 to vector<48x512xf32>
    %182 = arith.mulf %181, %180 : vector<48x512xf32>
    %183 = math.tanh %182 : vector<48x512xf32>
    %cst_62 = arith.constant 1.000000e+00 : f32
    %184 = vector.broadcast %cst_62 : f32 to vector<48x512xf32>
    %185 = arith.addf %184, %183 : vector<48x512xf32>
    %cst_63 = arith.constant 5.000000e-01 : f32
    %186 = vector.broadcast %cst_63 : f32 to vector<48x512xf32>
    %187 = arith.mulf %186, %185 : vector<48x512xf32>
    %188 = arith.mulf %175, %187 : vector<48x512xf32>
    %c0_64 = arith.constant 0 : index
    %c0_65 = arith.constant 0 : index
    %c0_66 = arith.constant 0 : index
    %189 = vector.load %arg17[%c0_64, %c0_65, %c0_66] : memref<2x512x128xbf16, #tpu.memory_space<vmem>>, vector<1x512x128xbf16>
    %190 = vector.shape_cast %189 : vector<1x512x128xbf16> to vector<512x128xbf16>
    %191 = arith.truncf %188 : vector<48x512xf32> to vector<48x512xbf16>
    %cst_67 = arith.constant dense<0.000000e+00> : vector<48x128xf32>
    %192 = tpu.matmul %191, %190, %cst_67 {dimension_numbers = #tpu.dot_dimension_numbers<[1], [0], [0], [1], [0, 0, 1, 1], [], []>} : vector<48x512xbf16>, vector<512x128xbf16>, vector<48x128xf32> -> vector<48x128xf32>
    %c0_68 = arith.constant 0 : index
    %c0_69 = arith.constant 0 : index
    %c0_70 = arith.constant 0 : index
    %193 = vector.load %arg18[%c0_68, %c0_69, %c0_70] : memref<2x1x128xf32, #tpu.memory_space<vmem>>, vector<1x1x128xf32>
    %194 = vector.shape_cast %193 : vector<1x1x128xf32> to vector<1x128xf32>
    %195 = vector.broadcast %194 : vector<1x128xf32> to vector<48x128xf32>
    %196 = arith.addf %192, %195 : vector<48x128xf32>
    %197 = arith.addf %167, %196 : vector<48x128xf32>
    %c0_71 = arith.constant 0 : index
    %c0_72 = arith.constant 0 : index
    %c0_73 = arith.constant 0 : index
    %198 = vector.load %arg19[%c0_71, %c0_72, %c0_73] : memref<2x1x128xf32, #tpu.memory_space<vmem>>, vector<1x1x128xf32>
    %199 = vector.shape_cast %198 : vector<1x1x128xf32> to vector<1x128xf32>
    %c0_74 = arith.constant 0 : index
    %c0_75 = arith.constant 0 : index
    %c0_76 = arith.constant 0 : index
    %200 = vector.load %arg20[%c0_74, %c0_75, %c0_76] : memref<2x1x128xf32, #tpu.memory_space<vmem>>, vector<1x1x128xf32>
    %201 = vector.shape_cast %200 : vector<1x1x128xf32> to vector<1x128xf32>
    %cst_77 = arith.constant dense<0.000000e+00> : vector<48xf32>
    %202 = vector.multi_reduction <add>, %197, %cst_77 [1] : vector<48x128xf32> to vector<48xf32>
    %203 = vector.shape_cast %202 : vector<48xf32> to vector<48x1xf32>
    %cst_78 = arith.constant 1.280000e+02 : f32
    %204 = vector.broadcast %cst_78 : f32 to vector<48x1xf32>
    %205 = arith.divf %203, %204 : vector<48x1xf32>
    %206 = vector.broadcast %205 : vector<48x1xf32> to vector<48x128xf32>
    %207 = arith.subf %197, %206 : vector<48x128xf32>
    %208 = arith.mulf %207, %207 : vector<48x128xf32>
    %cst_79 = arith.constant dense<0.000000e+00> : vector<48xf32>
    %209 = vector.multi_reduction <add>, %208, %cst_79 [1] : vector<48x128xf32> to vector<48xf32>
    %210 = vector.shape_cast %209 : vector<48xf32> to vector<48x1xf32>
    %cst_80 = arith.constant 1.280000e+02 : f32
    %211 = vector.broadcast %cst_80 : f32 to vector<48x1xf32>
    %212 = arith.divf %210, %211 : vector<48x1xf32>
    %213 = vector.broadcast %205 : vector<48x1xf32> to vector<48x128xf32>
    %214 = arith.subf %197, %213 : vector<48x128xf32>
    %cst_81 = arith.constant 9.99999974E-6 : f32
    %215 = vector.broadcast %cst_81 : f32 to vector<48x1xf32>
    %216 = arith.addf %212, %215 : vector<48x1xf32>
    %217 = math.rsqrt %216 : vector<48x1xf32>
    %218 = vector.broadcast %217 : vector<48x1xf32> to vector<48x128xf32>
    %219 = arith.mulf %214, %218 : vector<48x128xf32>
    %220 = vector.broadcast %199 : vector<1x128xf32> to vector<48x128xf32>
    %221 = arith.mulf %219, %220 : vector<48x128xf32>
    %222 = vector.broadcast %201 : vector<1x128xf32> to vector<48x128xf32>
    %223 = arith.addf %221, %222 : vector<48x128xf32>
    %c1_82 = arith.constant 1 : index
    %c0_83 = arith.constant 0 : index
    %c0_84 = arith.constant 0 : index
    %224 = vector.load %arg9[%c1_82, %c0_83, %c0_84] : memref<2x128x384xbf16, #tpu.memory_space<vmem>>, vector<1x128x384xbf16>
    %225 = vector.shape_cast %224 : vector<1x128x384xbf16> to vector<128x384xbf16>
    %226 = arith.truncf %223 : vector<48x128xf32> to vector<48x128xbf16>
    %cst_85 = arith.constant dense<0.000000e+00> : vector<48x384xf32>
    %227 = tpu.matmul %226, %225, %cst_85 {dimension_numbers = #tpu.dot_dimension_numbers<[1], [0], [0], [1], [0, 0, 1, 1], [], []>} : vector<48x128xbf16>, vector<128x384xbf16>, vector<48x384xf32> -> vector<48x384xf32>
    %c1_86 = arith.constant 1 : index
    %c0_87 = arith.constant 0 : index
    %c0_88 = arith.constant 0 : index
    %228 = vector.load %arg10[%c1_86, %c0_87, %c0_88] : memref<2x1x384xf32, #tpu.memory_space<vmem>>, vector<1x1x384xf32>
    %229 = vector.shape_cast %228 : vector<1x1x384xf32> to vector<1x384xf32>
    %230 = vector.broadcast %229 : vector<1x384xf32> to vector<48x384xf32>
    %231 = arith.addf %227, %230 : vector<48x384xf32>
    %232 = vector.extract_strided_slice %231 {offsets = [0, 0], sizes = [16, 128], strides = [1, 1]} : vector<48x384xf32> to vector<16x128xf32>
    %233 = vector.extract_strided_slice %231 {offsets = [16, 0], sizes = [16, 128], strides = [1, 1]} : vector<48x384xf32> to vector<16x128xf32>
    %234 = vector.extract_strided_slice %231 {offsets = [32, 0], sizes = [16, 128], strides = [1, 1]} : vector<48x384xf32> to vector<16x128xf32>
    %235 = vector.extract_strided_slice %231 {offsets = [0, 128], sizes = [16, 128], strides = [1, 1]} : vector<48x384xf32> to vector<16x128xf32>
    %236 = vector.extract_strided_slice %231 {offsets = [16, 128], sizes = [16, 128], strides = [1, 1]} : vector<48x384xf32> to vector<16x128xf32>
    %237 = vector.extract_strided_slice %231 {offsets = [32, 128], sizes = [16, 128], strides = [1, 1]} : vector<48x384xf32> to vector<16x128xf32>
    %238 = vector.extract_strided_slice %231 {offsets = [0, 256], sizes = [16, 128], strides = [1, 1]} : vector<48x384xf32> to vector<16x128xf32>
    %239 = vector.extract_strided_slice %231 {offsets = [16, 256], sizes = [16, 128], strides = [1, 1]} : vector<48x384xf32> to vector<16x128xf32>
    %240 = vector.extract_strided_slice %231 {offsets = [32, 256], sizes = [16, 128], strides = [1, 1]} : vector<48x384xf32> to vector<16x128xf32>
    %241 = arith.mulf %232, %235 : vector<16x128xf32>
    %242 = arith.truncf %241 : vector<16x128xf32> to vector<16x128xbf16>
    %cst_89 = arith.constant dense<0.000000e+00> : vector<16x128xf32>
    %243 = tpu.matmul %242, %2, %cst_89 {dimension_numbers = #tpu.dot_dimension_numbers<[1], [0], [0], [1], [0, 0, 1, 1], [], []>} : vector<16x128xbf16>, vector<128x128xbf16>, vector<16x128xf32> -> vector<16x128xf32>
    %244 = arith.mulf %232, %236 : vector<16x128xf32>
    %245 = arith.truncf %244 : vector<16x128xf32> to vector<16x128xbf16>
    %cst_90 = arith.constant dense<0.000000e+00> : vector<16x128xf32>
    %246 = tpu.matmul %245, %2, %cst_90 {dimension_numbers = #tpu.dot_dimension_numbers<[1], [0], [0], [1], [0, 0, 1, 1], [], []>} : vector<16x128xbf16>, vector<128x128xbf16>, vector<16x128xf32> -> vector<16x128xf32>
    %247 = arith.mulf %232, %237 : vector<16x128xf32>
    %248 = arith.truncf %247 : vector<16x128xf32> to vector<16x128xbf16>
    %cst_91 = arith.constant dense<0.000000e+00> : vector<16x128xf32>
    %249 = tpu.matmul %248, %2, %cst_91 {dimension_numbers = #tpu.dot_dimension_numbers<[1], [0], [0], [1], [0, 0, 1, 1], [], []>} : vector<16x128xbf16>, vector<128x128xbf16>, vector<16x128xf32> -> vector<16x128xf32>
    %250 = arith.maximumf %243, %246 : vector<16x128xf32>
    %251 = arith.maximumf %250, %249 : vector<16x128xf32>
    %252 = arith.subf %243, %251 : vector<16x128xf32>
    %253 = math.exp %252 : vector<16x128xf32>
    %254 = arith.mulf %253, %238 : vector<16x128xf32>
    %255 = arith.subf %246, %251 : vector<16x128xf32>
    %256 = math.exp %255 : vector<16x128xf32>
    %257 = arith.addf %253, %256 : vector<16x128xf32>
    %258 = arith.mulf %256, %239 : vector<16x128xf32>
    %259 = arith.addf %254, %258 : vector<16x128xf32>
    %260 = arith.subf %249, %251 : vector<16x128xf32>
    %261 = math.exp %260 : vector<16x128xf32>
    %262 = arith.addf %257, %261 : vector<16x128xf32>
    %263 = arith.mulf %261, %240 : vector<16x128xf32>
    %264 = arith.addf %259, %263 : vector<16x128xf32>
    %265 = tpu.reciprocal %262 {approx = true} : vector<16x128xf32> -> vector<16x128xf32>
    %266 = arith.mulf %264, %265 : vector<16x128xf32>
    %267 = arith.mulf %233, %235 : vector<16x128xf32>
    %268 = arith.truncf %267 : vector<16x128xf32> to vector<16x128xbf16>
    %cst_92 = arith.constant dense<0.000000e+00> : vector<16x128xf32>
    %269 = tpu.matmul %268, %2, %cst_92 {dimension_numbers = #tpu.dot_dimension_numbers<[1], [0], [0], [1], [0, 0, 1, 1], [], []>} : vector<16x128xbf16>, vector<128x128xbf16>, vector<16x128xf32> -> vector<16x128xf32>
    %270 = arith.mulf %233, %236 : vector<16x128xf32>
    %271 = arith.truncf %270 : vector<16x128xf32> to vector<16x128xbf16>
    %cst_93 = arith.constant dense<0.000000e+00> : vector<16x128xf32>
    %272 = tpu.matmul %271, %2, %cst_93 {dimension_numbers = #tpu.dot_dimension_numbers<[1], [0], [0], [1], [0, 0, 1, 1], [], []>} : vector<16x128xbf16>, vector<128x128xbf16>, vector<16x128xf32> -> vector<16x128xf32>
    %273 = arith.mulf %233, %237 : vector<16x128xf32>
    %274 = arith.truncf %273 : vector<16x128xf32> to vector<16x128xbf16>
    %cst_94 = arith.constant dense<0.000000e+00> : vector<16x128xf32>
    %275 = tpu.matmul %274, %2, %cst_94 {dimension_numbers = #tpu.dot_dimension_numbers<[1], [0], [0], [1], [0, 0, 1, 1], [], []>} : vector<16x128xbf16>, vector<128x128xbf16>, vector<16x128xf32> -> vector<16x128xf32>
    %276 = arith.maximumf %269, %272 : vector<16x128xf32>
    %277 = arith.maximumf %276, %275 : vector<16x128xf32>
    %278 = arith.subf %269, %277 : vector<16x128xf32>
    %279 = math.exp %278 : vector<16x128xf32>
    %280 = arith.mulf %279, %238 : vector<16x128xf32>
    %281 = arith.subf %272, %277 : vector<16x128xf32>
    %282 = math.exp %281 : vector<16x128xf32>
    %283 = arith.addf %279, %282 : vector<16x128xf32>
    %284 = arith.mulf %282, %239 : vector<16x128xf32>
    %285 = arith.addf %280, %284 : vector<16x128xf32>
    %286 = arith.subf %275, %277 : vector<16x128xf32>
    %287 = math.exp %286 : vector<16x128xf32>
    %288 = arith.addf %283, %287 : vector<16x128xf32>
    %289 = arith.mulf %287, %240 : vector<16x128xf32>
    %290 = arith.addf %285, %289 : vector<16x128xf32>
    %291 = tpu.reciprocal %288 {approx = true} : vector<16x128xf32> -> vector<16x128xf32>
    %292 = arith.mulf %290, %291 : vector<16x128xf32>
    %293 = arith.mulf %234, %235 : vector<16x128xf32>
    %294 = arith.truncf %293 : vector<16x128xf32> to vector<16x128xbf16>
    %cst_95 = arith.constant dense<0.000000e+00> : vector<16x128xf32>
    %295 = tpu.matmul %294, %2, %cst_95 {dimension_numbers = #tpu.dot_dimension_numbers<[1], [0], [0], [1], [0, 0, 1, 1], [], []>} : vector<16x128xbf16>, vector<128x128xbf16>, vector<16x128xf32> -> vector<16x128xf32>
    %296 = arith.mulf %234, %236 : vector<16x128xf32>
    %297 = arith.truncf %296 : vector<16x128xf32> to vector<16x128xbf16>
    %cst_96 = arith.constant dense<0.000000e+00> : vector<16x128xf32>
    %298 = tpu.matmul %297, %2, %cst_96 {dimension_numbers = #tpu.dot_dimension_numbers<[1], [0], [0], [1], [0, 0, 1, 1], [], []>} : vector<16x128xbf16>, vector<128x128xbf16>, vector<16x128xf32> -> vector<16x128xf32>
    %299 = arith.mulf %234, %237 : vector<16x128xf32>
    %300 = arith.truncf %299 : vector<16x128xf32> to vector<16x128xbf16>
    %cst_97 = arith.constant dense<0.000000e+00> : vector<16x128xf32>
    %301 = tpu.matmul %300, %2, %cst_97 {dimension_numbers = #tpu.dot_dimension_numbers<[1], [0], [0], [1], [0, 0, 1, 1], [], []>} : vector<16x128xbf16>, vector<128x128xbf16>, vector<16x128xf32> -> vector<16x128xf32>
    %302 = arith.maximumf %295, %298 : vector<16x128xf32>
    %303 = arith.maximumf %302, %301 : vector<16x128xf32>
    %304 = arith.subf %295, %303 : vector<16x128xf32>
    %305 = math.exp %304 : vector<16x128xf32>
    %306 = arith.mulf %305, %238 : vector<16x128xf32>
    %307 = arith.subf %298, %303 : vector<16x128xf32>
    %308 = math.exp %307 : vector<16x128xf32>
    %309 = arith.addf %305, %308 : vector<16x128xf32>
    %310 = arith.mulf %308, %239 : vector<16x128xf32>
    %311 = arith.addf %306, %310 : vector<16x128xf32>
    %312 = arith.subf %301, %303 : vector<16x128xf32>
    %313 = math.exp %312 : vector<16x128xf32>
    %314 = arith.addf %309, %313 : vector<16x128xf32>
    %315 = arith.mulf %313, %240 : vector<16x128xf32>
    %316 = arith.addf %311, %315 : vector<16x128xf32>
    %317 = tpu.reciprocal %314 {approx = true} : vector<16x128xf32> -> vector<16x128xf32>
    %318 = arith.mulf %316, %317 : vector<16x128xf32>
    %319 = tpu.concatenate %266, %292, %318 in 0 : vector<16x128xf32>, vector<16x128xf32>, vector<16x128xf32> -> vector<48x128xf32>
    %c1_98 = arith.constant 1 : index
    %c0_99 = arith.constant 0 : index
    %c0_100 = arith.constant 0 : index
    %320 = vector.load %arg11[%c1_98, %c0_99, %c0_100] : memref<2x128x128xbf16, #tpu.memory_space<vmem>>, vector<1x128x128xbf16>
    %321 = vector.shape_cast %320 : vector<1x128x128xbf16> to vector<128x128xbf16>
    %322 = arith.truncf %319 : vector<48x128xf32> to vector<48x128xbf16>
    %cst_101 = arith.constant dense<0.000000e+00> : vector<48x128xf32>
    %323 = tpu.matmul %322, %321, %cst_101 {dimension_numbers = #tpu.dot_dimension_numbers<[1], [0], [0], [1], [0, 0, 1, 1], [], []>} : vector<48x128xbf16>, vector<128x128xbf16>, vector<48x128xf32> -> vector<48x128xf32>
    %c1_102 = arith.constant 1 : index
    %c0_103 = arith.constant 0 : index
    %c0_104 = arith.constant 0 : index
    %324 = vector.load %arg12[%c1_102, %c0_103, %c0_104] : memref<2x1x128xf32, #tpu.memory_space<vmem>>, vector<1x1x128xf32>
    %325 = vector.shape_cast %324 : vector<1x1x128xf32> to vector<1x128xf32>
    %326 = vector.broadcast %325 : vector<1x128xf32> to vector<48x128xf32>
    %327 = arith.addf %323, %326 : vector<48x128xf32>
    %328 = arith.addf %223, %327 : vector<48x128xf32>
    %c1_105 = arith.constant 1 : index
    %c0_106 = arith.constant 0 : index
    %c0_107 = arith.constant 0 : index
    %329 = vector.load %arg13[%c1_105, %c0_106, %c0_107] : memref<2x1x128xf32, #tpu.memory_space<vmem>>, vector<1x1x128xf32>
    %330 = vector.shape_cast %329 : vector<1x1x128xf32> to vector<1x128xf32>
    %c1_108 = arith.constant 1 : index
    %c0_109 = arith.constant 0 : index
    %c0_110 = arith.constant 0 : index
    %331 = vector.load %arg14[%c1_108, %c0_109, %c0_110] : memref<2x1x128xf32, #tpu.memory_space<vmem>>, vector<1x1x128xf32>
    %332 = vector.shape_cast %331 : vector<1x1x128xf32> to vector<1x128xf32>
    %cst_111 = arith.constant dense<0.000000e+00> : vector<48xf32>
    %333 = vector.multi_reduction <add>, %328, %cst_111 [1] : vector<48x128xf32> to vector<48xf32>
    %334 = vector.shape_cast %333 : vector<48xf32> to vector<48x1xf32>
    %cst_112 = arith.constant 1.280000e+02 : f32
    %335 = vector.broadcast %cst_112 : f32 to vector<48x1xf32>
    %336 = arith.divf %334, %335 : vector<48x1xf32>
    %337 = vector.broadcast %336 : vector<48x1xf32> to vector<48x128xf32>
    %338 = arith.subf %328, %337 : vector<48x128xf32>
    %339 = arith.mulf %338, %338 : vector<48x128xf32>
    %cst_113 = arith.constant dense<0.000000e+00> : vector<48xf32>
    %340 = vector.multi_reduction <add>, %339, %cst_113 [1] : vector<48x128xf32> to vector<48xf32>
    %341 = vector.shape_cast %340 : vector<48xf32> to vector<48x1xf32>
    %cst_114 = arith.constant 1.280000e+02 : f32
    %342 = vector.broadcast %cst_114 : f32 to vector<48x1xf32>
    %343 = arith.divf %341, %342 : vector<48x1xf32>
    %344 = vector.broadcast %336 : vector<48x1xf32> to vector<48x128xf32>
    %345 = arith.subf %328, %344 : vector<48x128xf32>
    %cst_115 = arith.constant 9.99999974E-6 : f32
    %346 = vector.broadcast %cst_115 : f32 to vector<48x1xf32>
    %347 = arith.addf %343, %346 : vector<48x1xf32>
    %348 = math.rsqrt %347 : vector<48x1xf32>
    %349 = vector.broadcast %348 : vector<48x1xf32> to vector<48x128xf32>
    %350 = arith.mulf %345, %349 : vector<48x128xf32>
    %351 = vector.broadcast %330 : vector<1x128xf32> to vector<48x128xf32>
    %352 = arith.mulf %350, %351 : vector<48x128xf32>
    %353 = vector.broadcast %332 : vector<1x128xf32> to vector<48x128xf32>
    %354 = arith.addf %352, %353 : vector<48x128xf32>
    %c1_116 = arith.constant 1 : index
    %c0_117 = arith.constant 0 : index
    %c0_118 = arith.constant 0 : index
    %355 = vector.load %arg15[%c1_116, %c0_117, %c0_118] : memref<2x128x512xbf16, #tpu.memory_space<vmem>>, vector<1x128x512xbf16>
    %356 = vector.shape_cast %355 : vector<1x128x512xbf16> to vector<128x512xbf16>
    %357 = arith.truncf %354 : vector<48x128xf32> to vector<48x128xbf16>
    %cst_119 = arith.constant dense<0.000000e+00> : vector<48x512xf32>
    %358 = tpu.matmul %357, %356, %cst_119 {dimension_numbers = #tpu.dot_dimension_numbers<[1], [0], [0], [1], [0, 0, 1, 1], [], []>} : vector<48x128xbf16>, vector<128x512xbf16>, vector<48x512xf32> -> vector<48x512xf32>
    %c1_120 = arith.constant 1 : index
    %c0_121 = arith.constant 0 : index
    %c0_122 = arith.constant 0 : index
    %359 = vector.load %arg16[%c1_120, %c0_121, %c0_122] : memref<2x1x512xf32, #tpu.memory_space<vmem>>, vector<1x1x512xf32>
    %360 = vector.shape_cast %359 : vector<1x1x512xf32> to vector<1x512xf32>
    %361 = vector.broadcast %360 : vector<1x512xf32> to vector<48x512xf32>
    %362 = arith.addf %358, %361 : vector<48x512xf32>
    %363 = arith.mulf %362, %362 : vector<48x512xf32>
    %364 = arith.mulf %362, %363 : vector<48x512xf32>
    %cst_123 = arith.constant 4.471500e-02 : f32
    %365 = vector.broadcast %cst_123 : f32 to vector<48x512xf32>
    %366 = arith.mulf %365, %364 : vector<48x512xf32>
    %367 = arith.addf %362, %366 : vector<48x512xf32>
    %cst_124 = arith.constant 0.797884583 : f32
    %368 = vector.broadcast %cst_124 : f32 to vector<48x512xf32>
    %369 = arith.mulf %368, %367 : vector<48x512xf32>
    %370 = math.tanh %369 : vector<48x512xf32>
    %cst_125 = arith.constant 1.000000e+00 : f32
    %371 = vector.broadcast %cst_125 : f32 to vector<48x512xf32>
    %372 = arith.addf %371, %370 : vector<48x512xf32>
    %cst_126 = arith.constant 5.000000e-01 : f32
    %373 = vector.broadcast %cst_126 : f32 to vector<48x512xf32>
    %374 = arith.mulf %373, %372 : vector<48x512xf32>
    %375 = arith.mulf %362, %374 : vector<48x512xf32>
    %c1_127 = arith.constant 1 : index
    %c0_128 = arith.constant 0 : index
    %c0_129 = arith.constant 0 : index
    %376 = vector.load %arg17[%c1_127, %c0_128, %c0_129] : memref<2x512x128xbf16, #tpu.memory_space<vmem>>, vector<1x512x128xbf16>
    %377 = vector.shape_cast %376 : vector<1x512x128xbf16> to vector<512x128xbf16>
    %378 = arith.truncf %375 : vector<48x512xf32> to vector<48x512xbf16>
    %cst_130 = arith.constant dense<0.000000e+00> : vector<48x128xf32>
    %379 = tpu.matmul %378, %377, %cst_130 {dimension_numbers = #tpu.dot_dimension_numbers<[1], [0], [0], [1], [0, 0, 1, 1], [], []>} : vector<48x512xbf16>, vector<512x128xbf16>, vector<48x128xf32> -> vector<48x128xf32>
    %c1_131 = arith.constant 1 : index
    %c0_132 = arith.constant 0 : index
    %c0_133 = arith.constant 0 : index
    %380 = vector.load %arg18[%c1_131, %c0_132, %c0_133] : memref<2x1x128xf32, #tpu.memory_space<vmem>>, vector<1x1x128xf32>
    %381 = vector.shape_cast %380 : vector<1x1x128xf32> to vector<1x128xf32>
    %382 = vector.broadcast %381 : vector<1x128xf32> to vector<48x128xf32>
    %383 = arith.addf %379, %382 : vector<48x128xf32>
    %384 = arith.addf %354, %383 : vector<48x128xf32>
    %c1_134 = arith.constant 1 : index
    %c0_135 = arith.constant 0 : index
    %c0_136 = arith.constant 0 : index
    %385 = vector.load %arg19[%c1_134, %c0_135, %c0_136] : memref<2x1x128xf32, #tpu.memory_space<vmem>>, vector<1x1x128xf32>
    %386 = vector.shape_cast %385 : vector<1x1x128xf32> to vector<1x128xf32>
    %c1_137 = arith.constant 1 : index
    %c0_138 = arith.constant 0 : index
    %c0_139 = arith.constant 0 : index
    %387 = vector.load %arg20[%c1_137, %c0_138, %c0_139] : memref<2x1x128xf32, #tpu.memory_space<vmem>>, vector<1x1x128xf32>
    %388 = vector.shape_cast %387 : vector<1x1x128xf32> to vector<1x128xf32>
    %cst_140 = arith.constant dense<0.000000e+00> : vector<48xf32>
    %389 = vector.multi_reduction <add>, %384, %cst_140 [1] : vector<48x128xf32> to vector<48xf32>
    %390 = vector.shape_cast %389 : vector<48xf32> to vector<48x1xf32>
    %cst_141 = arith.constant 1.280000e+02 : f32
    %391 = vector.broadcast %cst_141 : f32 to vector<48x1xf32>
    %392 = arith.divf %390, %391 : vector<48x1xf32>
    %393 = vector.broadcast %392 : vector<48x1xf32> to vector<48x128xf32>
    %394 = arith.subf %384, %393 : vector<48x128xf32>
    %395 = arith.mulf %394, %394 : vector<48x128xf32>
    %cst_142 = arith.constant dense<0.000000e+00> : vector<48xf32>
    %396 = vector.multi_reduction <add>, %395, %cst_142 [1] : vector<48x128xf32> to vector<48xf32>
    %397 = vector.shape_cast %396 : vector<48xf32> to vector<48x1xf32>
    %cst_143 = arith.constant 1.280000e+02 : f32
    %398 = vector.broadcast %cst_143 : f32 to vector<48x1xf32>
    %399 = arith.divf %397, %398 : vector<48x1xf32>
    %400 = vector.broadcast %392 : vector<48x1xf32> to vector<48x128xf32>
    %401 = arith.subf %384, %400 : vector<48x128xf32>
    %cst_144 = arith.constant 9.99999974E-6 : f32
    %402 = vector.broadcast %cst_144 : f32 to vector<48x1xf32>
    %403 = arith.addf %399, %402 : vector<48x1xf32>
    %404 = math.rsqrt %403 : vector<48x1xf32>
    %405 = vector.broadcast %404 : vector<48x1xf32> to vector<48x128xf32>
    %406 = arith.mulf %401, %405 : vector<48x128xf32>
    %407 = vector.broadcast %386 : vector<1x128xf32> to vector<48x128xf32>
    %408 = arith.mulf %406, %407 : vector<48x128xf32>
    %409 = vector.broadcast %388 : vector<1x128xf32> to vector<48x128xf32>
    %410 = arith.addf %408, %409 : vector<48x128xf32>
    %411 = vector.extract_strided_slice %410 {offsets = [0, 0], sizes = [16, 128], strides = [1, 1]} : vector<48x128xf32> to vector<16x128xf32>
    %412 = vector.extract_strided_slice %410 {offsets = [16, 0], sizes = [16, 128], strides = [1, 1]} : vector<48x128xf32> to vector<16x128xf32>
    %413 = arith.addf %411, %412 : vector<16x128xf32>
    %414 = vector.extract_strided_slice %410 {offsets = [32, 0], sizes = [16, 128], strides = [1, 1]} : vector<48x128xf32> to vector<16x128xf32>
    %415 = arith.addf %413, %414 : vector<16x128xf32>
    %cst_145 = arith.constant 0.333333343 : f32
    %416 = vector.broadcast %cst_145 : f32 to vector<16x128xf32>
    %417 = arith.mulf %415, %416 : vector<16x128xf32>
    %c0_146 = arith.constant 0 : index
    %c0_147 = arith.constant 0 : index
    %418 = vector.load %arg21[%c0_146, %c0_147] : memref<16x128xf32, #tpu.memory_space<vmem>>, vector<16x128xf32>
    tpu.vector_store %arg21[%c0_146, %c0_147], %417 {strides = array<i32>} : memref<16x128xf32, #tpu.memory_space<vmem>>, vector<16x128xf32>,
    return
  }
  func.func @transform_0(%arg0: i32) -> (i32, i32) {
    %c0_i32 = arith.constant 0 : i32
    %c0_i32_0 = arith.constant 0 : i32
    return %arg0, %c0_i32 : i32, i32
  }
  func.func @transform_1(%arg0: i32) -> (i32, i32) {
    %c0_i32 = arith.constant 0 : i32
    %c0_i32_0 = arith.constant 0 : i32
    return %arg0, %c0_i32 : i32, i32
  }
  func.func @transform_2(%arg0: i32) -> (i32, i32) {
    %c0_i32 = arith.constant 0 : i32
    %c0_i32_0 = arith.constant 0 : i32
    %c0_i32_1 = arith.constant 0 : i32
    return %c0_i32, %c0_i32_0 : i32, i32
  }
  func.func @transform_3(%arg0: i32) -> (i32, i32) {
    %c0_i32 = arith.constant 0 : i32
    %c0_i32_0 = arith.constant 0 : i32
    %c0_i32_1 = arith.constant 0 : i32
    return %c0_i32, %c0_i32_0 : i32, i32
  }
  func.func @transform_4(%arg0: i32) -> (i32, i32) {
    %c0_i32 = arith.constant 0 : i32
    %c0_i32_0 = arith.constant 0 : i32
    %c0_i32_1 = arith.constant 0 : i32
    return %c0_i32, %c0_i32_0 : i32, i32
  }
  func.func @transform_5(%arg0: i32) -> (i32, i32) {
    %c0_i32 = arith.constant 0 : i32
    %c0_i32_0 = arith.constant 0 : i32
    %c0_i32_1 = arith.constant 0 : i32
    return %c0_i32, %c0_i32_0 : i32, i32
  }
  func.func @transform_6(%arg0: i32) -> (i32, i32) {
    %c0_i32 = arith.constant 0 : i32
    %c0_i32_0 = arith.constant 0 : i32
    %c0_i32_1 = arith.constant 0 : i32
    return %c0_i32, %c0_i32_0 : i32, i32
  }
  func.func @transform_7(%arg0: i32) -> (i32, i32) {
    %c0_i32 = arith.constant 0 : i32
    %c0_i32_0 = arith.constant 0 : i32
    %c0_i32_1 = arith.constant 0 : i32
    return %c0_i32, %c0_i32_0 : i32, i32
  }
  func.func @transform_8(%arg0: i32) -> (i32, i32, i32) {
    %c0_i32 = arith.constant 0 : i32
    %c0_i32_0 = arith.constant 0 : i32
    %c0_i32_1 = arith.constant 0 : i32
    %c0_i32_2 = arith.constant 0 : i32
    return %c0_i32, %c0_i32_0, %c0_i32_1 : i32, i32, i32
  }
  func.func @transform_9(%arg0: i32) -> (i32, i32, i32) {
    %c0_i32 = arith.constant 0 : i32
    %c0_i32_0 = arith.constant 0 : i32
    %c0_i32_1 = arith.constant 0 : i32
    %c0_i32_2 = arith.constant 0 : i32
    return %c0_i32, %c0_i32_0, %c0_i32_1 : i32, i32, i32
  }
  func.func @transform_10(%arg0: i32) -> (i32, i32, i32) {
    %c0_i32 = arith.constant 0 : i32
    %c0_i32_0 = arith.constant 0 : i32
    %c0_i32_1 = arith.constant 0 : i32
    %c0_i32_2 = arith.constant 0 : i32
    return %c0_i32, %c0_i32_0, %c0_i32_1 : i32, i32, i32
  }
  func.func @transform_11(%arg0: i32) -> (i32, i32, i32) {
    %c0_i32 = arith.constant 0 : i32
    %c0_i32_0 = arith.constant 0 : i32
    %c0_i32_1 = arith.constant 0 : i32
    %c0_i32_2 = arith.constant 0 : i32
    return %c0_i32, %c0_i32_0, %c0_i32_1 : i32, i32, i32
  }
  func.func @transform_12(%arg0: i32) -> (i32, i32, i32) {
    %c0_i32 = arith.constant 0 : i32
    %c0_i32_0 = arith.constant 0 : i32
    %c0_i32_1 = arith.constant 0 : i32
    %c0_i32_2 = arith.constant 0 : i32
    return %c0_i32, %c0_i32_0, %c0_i32_1 : i32, i32, i32
  }
  func.func @transform_13(%arg0: i32) -> (i32, i32, i32) {
    %c0_i32 = arith.constant 0 : i32
    %c0_i32_0 = arith.constant 0 : i32
    %c0_i32_1 = arith.constant 0 : i32
    %c0_i32_2 = arith.constant 0 : i32
    return %c0_i32, %c0_i32_0, %c0_i32_1 : i32, i32, i32
  }
  func.func @transform_14(%arg0: i32) -> (i32, i32, i32) {
    %c0_i32 = arith.constant 0 : i32
    %c0_i32_0 = arith.constant 0 : i32
    %c0_i32_1 = arith.constant 0 : i32
    %c0_i32_2 = arith.constant 0 : i32
    return %c0_i32, %c0_i32_0, %c0_i32_1 : i32, i32, i32
  }
  func.func @transform_15(%arg0: i32) -> (i32, i32, i32) {
    %c0_i32 = arith.constant 0 : i32
    %c0_i32_0 = arith.constant 0 : i32
    %c0_i32_1 = arith.constant 0 : i32
    %c0_i32_2 = arith.constant 0 : i32
    return %c0_i32, %c0_i32_0, %c0_i32_1 : i32, i32, i32
  }
  func.func @transform_16(%arg0: i32) -> (i32, i32, i32) {
    %c0_i32 = arith.constant 0 : i32
    %c0_i32_0 = arith.constant 0 : i32
    %c0_i32_1 = arith.constant 0 : i32
    %c0_i32_2 = arith.constant 0 : i32
    return %c0_i32, %c0_i32_0, %c0_i32_1 : i32, i32, i32
  }
  func.func @transform_17(%arg0: i32) -> (i32, i32, i32) {
    %c0_i32 = arith.constant 0 : i32
    %c0_i32_0 = arith.constant 0 : i32
    %c0_i32_1 = arith.constant 0 : i32
    %c0_i32_2 = arith.constant 0 : i32
    return %c0_i32, %c0_i32_0, %c0_i32_1 : i32, i32, i32
  }
  func.func @transform_18(%arg0: i32) -> (i32, i32, i32) {
    %c0_i32 = arith.constant 0 : i32
    %c0_i32_0 = arith.constant 0 : i32
    %c0_i32_1 = arith.constant 0 : i32
    %c0_i32_2 = arith.constant 0 : i32
    return %c0_i32, %c0_i32_0, %c0_i32_1 : i32, i32, i32
  }
  func.func @transform_19(%arg0: i32) -> (i32, i32, i32) {
    %c0_i32 = arith.constant 0 : i32
    %c0_i32_0 = arith.constant 0 : i32
    %c0_i32_1 = arith.constant 0 : i32
    %c0_i32_2 = arith.constant 0 : i32
    return %c0_i32, %c0_i32_0, %c0_i32_1 : i32, i32, i32
  }
  func.func @transform_20(%arg0: i32) -> (i32, i32) {
    %c0_i32 = arith.constant 0 : i32
    %c0_i32_0 = arith.constant 0 : i32
    return %arg0, %c0_i32 : i32, i32
  }
}

</mosaic_0001>

<bundles_post_ra>
// kernel: tpu_custom_call.1
= control target key start
LH: loop header
LB: loop body
LE: loop exit
PB: predicated region body
PF: predicated region fallthrough
CT: control target
= control target key end

     0   :  { %s10761_s0 = inlined_call_operand.hbm [shape: bf16[32,3840], index: 0, kind: input, shape index: {}]   ;;  %s10762_s1 = inlined_call_operand.vmem [shape: f32[32,2], index: 1, kind: input, shape index: {}]   ;;  %s10763_s2 = inlined_call_operand.vmem [shape: f32[3,128], index: 2, kind: input, shape index: {}]   ;;  %s10764_s3 = inlined_call_operand.hbm [shape: bf16[128,128], index: 3, kind: input, shape index: {}]   ;;  %s10765_s4 = inlined_call_operand.hbm [shape: bf16[1920,128], index: 4, kind: input, shape index: {}]   ;;  %s10766_s5 = inlined_call_operand.vmem [shape: f32[1,128], index: 5, kind: input, shape index: {}]   ;;  %s10767_s6 = inlined_call_operand.vmem [shape: f32[2,128], index: 6, kind: input, shape index: {}]   ;;  %s10768_s7 = inlined_call_operand.vmem [shape: f32[1,128], index: 7, kind: input, shape index: {}]   ;;  %s10769_s8 = inlined_call_operand.hbm [shape: bf16[2,128,384], index: 8, kind: input, shape index: {}]   ;;  %s10770_s9 = inlined_call_operand.vmem [shape: f32[2,1,384], index: 9, kind: input, shape index: {}]   ;;  %s10771_s10 = inlined_call_operand.hbm [shape: bf16[2,128,128], index: 10, kind: input, shape index: {}]   ;;  %s10772_s11 = inlined_call_operand.vmem [shape: f32[2,1,128], index: 11, kind: input, shape index: {}]   ;;  %s10773_s12 = inlined_call_operand.vmem [shape: f32[2,1,128], index: 12, kind: input, shape index: {}]   ;;  %s10774_s13 = inlined_call_operand.vmem [shape: f32[2,1,128], index: 13, kind: input, shape index: {}]   ;;  %s10775_s14 = inlined_call_operand.hbm [shape: bf16[2,128,512], index: 14, kind: input, shape index: {}]   ;;  %s10776_s15 = inlined_call_operand.vmem [shape: f32[2,1,512], index: 15, kind: input, shape index: {}]   ;;  %s10777_s16 = inlined_call_operand.hbm [shape: bf16[2,512,128], index: 16, kind: input, shape index: {}]   ;;  %s10778_s17 = inlined_call_operand.vmem [shape: f32[2,1,128], index: 17, kind: input, shape index: {}]   ;;  %s10779_s18 = inlined_call_operand.vmem [shape: f32[2,1,128], index: 18, kind: input, shape index: {}]   ;;  %s10780_s19 = inlined_call_operand.vmem [shape: f32[2,1,128], index: 19, kind: input, shape index: {}]   ;;  %s10781_s20 = inlined_call_operand.hbm [shape: f32[32,128], index: 20, kind: output, shape index: {}]  }
   0x1   :  { %10854 = sst [smem:[#allocation81_spill]] %s10761_s0 }
   0x2   :  { %10855 = sst [smem:[#allocation82_spill]] %s10762_s1 }
   0x3   :  { %10856 = sst [smem:[#allocation83_spill]] %s10763_s2 }
   0x4   :  { %10857 = sst [smem:[#allocation84_spill]] %s10764_s3 }
   0x5   :  { %10858 = sst [smem:[#allocation85_spill]] %s10765_s4 }
   0x6   :  { %10859 = sst [smem:[#allocation86_spill]] %s10766_s5 }
   0x7   :  { %10860 = sst [smem:[#allocation87_spill]] %s10767_s6 }
   0x8   :  { %10861 = sst [smem:[#allocation88_spill]] %s10768_s7 }
   0x9   :  { %10862 = sst [smem:[#allocation89_spill]] %s10769_s8 }
   0xa   :  { %10863 = sst [smem:[#allocation90_spill]] %s10771_s10 }
   0xb   :  { %10864 = sst [smem:[#allocation91_spill]] %s10772_s11 }
   0xc   :  { %10865 = sst [smem:[#allocation92_spill]] %s10773_s12 }
   0xd   :  { %10866 = sst [smem:[#allocation93_spill]] %s10774_s13 }
   0xe   :  { %10867 = sst [smem:[#allocation94_spill]] %s10775_s14 }
   0xf   :  { %10868 = sst [smem:[#allocation95_spill]] %s10776_s15 }
  0x10   :  { %10869 = sst [smem:[#allocation96_spill]] %s10777_s16 }
  0x11   :  { %10870 = sst [smem:[#allocation97_spill]] %s10778_s17 }
  0x12   :  { %10871 = sst [smem:[#allocation98_spill]] %s10779_s18 }
  0x13   :  { %10872 = sst [smem:[#allocation99_spill]] %s10780_s19 }
  0x14   :  { %10873 = sst [smem:[#allocation100_spill]] %s10781_s20 }
  0x15   :  { %25 = vsyncpa [#allocation3], 0 }
  0x16   :  { %27 = vsyncpa [#allocation3 + $0x1], 0 }
  0x17   :  { %28 = vsyncpa [#allocation6], 0 }
  0x18   :  { %29 = vsyncpa [#allocation9], 0 }
  0x19   :  { %30 = vsyncpa [#allocation12], 0 }
  0x1a   :  { %31 = vsyncpa [#allocation4], 0 }
  0x1b   :  { %33 = vsyncpa [#allocation4 + $0x1], 0  ;;  %s8823_s1 = smov 0   ;;  %s8825_s22 = smov 0  }
  0x1c   :  { %s8827_s23 = smov 0   ;;  %s8829_s24 = smov 0  }
  0x1d LB: > { %s10874_s3 = sld [smem:[#allocation84_spill]]  ;;  %s8847_s27 = sadd.s32 4294967295, %s8697_s24   ;;  %s8697_s24 = sphi %s8829_s24, %s11031_s24   ;;  %s8693_s23 = sphi %s8827_s23, %s11030_s23   ;;  %s8689_s22 = sphi %s8825_s22, %s11029_s22   ;;  %s8685_s1 = sphi %s8823_s1, %s11028_s1  }
  0x1e   : > { %p6215_p0 = scmp.ge.s32.totalorder %s8697_s24, 1  ;;  %p60_p1 = scmp.eq.s32.totalorder %s8847_s27, 0 }
  0x1f   : > { %p500_p2 = scmp.lt.s32.totalorder %s8697_s24, 3  ;;  %s8699_s4 = smov [#allocation5]  }
  0x20   : > { %s516_s29 = sshll.u32 %s8699_s4, 4  ;;  %s10876_s8 = sld [smem:[#allocation89_spill]]  ;;  %s517_s29 = int_to_ptr.vmem [resolvable:$true] %s516_s29 }
  0x21   : > { %p8852_p3 = pnand %p6215_p0, %p500_p2  ;;  %s8700_s25 = smov [#allocation8]  }
  0x22   : > { %s8701_s4 = smov 64   ;;  %s8702_s20 = smov 4  }
  0x23   : > { %s514_s26 = sshll.u32 %s10874_s3, 4  ;;  %p8039_p4 = pneg %p8852_p3  ;;  %s515_s26 = int_to_ptr.hbm [resolvable:$true] %s514_s26 }
  0x24   : > { %s553_s3 = sshll.u32 %s8700_s25, 4  ;;  %s8703_s30 = smov 192   ;;  %s554_s3 = int_to_ptr.vmem [resolvable:$true] %s553_s3 }
  0x25   : > { %p8864_p6 = pnand %p8039_p4, %p60_p1  ;;  %s8704_s0 = smov 12  }
  0x26   : > { %s551_s21 = sshll.u32 %s10876_s8, 4  ;;  %s10878_s14 = sld [smem:[#allocation94_spill]]  ;;  %s552_s21 = int_to_ptr.hbm [resolvable:$true] %s551_s21 }
  0x27   : > { %8042 = dma.hbm_to_vmem [thread:$0]  (!%p8864_p6), %s515_s26, 1024, %s517_s29, [#allocation6], %s8701_s4, %s8701_s4, %s8702_s20  }
  0x28   : > { %8048 = dma.hbm_to_vmem [thread:$0]  (!%p8864_p6), %s552_s21, 6144, %s554_s3, [#allocation9], %s8703_s30, %s8703_s30, %s8704_s0  }
  0x29   : > { %s8705_s25 = smov [#allocation11]   ;;  %s10879_s12 = sld [smem:[#allocation85_spill]] }
  0x2a   : > { %s593_s17 = sshll.u32 %s8705_s25, 4  ;;  %s8706_s26 = smov 256   ;;  %s594_s17 = int_to_ptr.vmem [resolvable:$true] %s593_s17 }
  0x2b   : > { %s8707_s29 = smov 16   ;;  %s8708_s21 = smov [#allocation7]  }
  0x2c   : > { %s591_s18 = sshll.u32 %s10878_s14, 4  ;;  %s530_s8 = sshll.u32 %s8708_s21, 4  ;;  %s592_s18 = int_to_ptr.hbm [resolvable:$true] %s591_s18  ;;  %s531_s8 = int_to_ptr.vmem [resolvable:$true] %s530_s8 }
  0x2d   : > { %8054 = dma.hbm_to_vmem [thread:$0]  (!%p8864_p6), %s592_s18, 8192, %s594_s17, [#allocation12], %s8706_s26, %s8706_s26, %s8707_s29  }
  0x2e   : > { %s10880_s10 = sld [smem:[#allocation90_spill]]  ;;  %s8709_s17 = smov [#allocation10]  }
  0x2f   : > { %s528_s11 = sshll.u32 %s10879_s12, 4  ;;  %s10881_s16 = sld [smem:[#allocation96_spill]]  ;;  %s529_s11 = int_to_ptr.hbm [resolvable:$true] %s528_s11 }
  0x30   : > { %8045 = dma.hbm_to_vmem [thread:$0]  (!%p8864_p6), %s529_s11, 15360, %s531_s8, [#allocation6], %s8701_s4, %s8701_s4, %s8702_s20  }
  0x31   : > { %s570_s18 = sshll.u32 %s8709_s17, 4  ;;  %s8710_s11 = smov [#allocation13]   ;;  %s571_s18 = int_to_ptr.vmem [resolvable:$true] %s570_s18 }
  0x32   : > { %s610_s0 = sshll.u32 %s8710_s11, 4  ;;  %s6214_s25 = sadd.s32 4294967294, %s8697_s24   ;;  %s611_s0 = int_to_ptr.vmem [resolvable:$true] %s610_s0 }
  0x33   : > { %s8906_s26 = sadd.s32 1, %s8697_s24   ;;  %s46_s21 = sadd.s32 1, %s8693_s23 }
  0x34   : > { %s568_s30 = sshll.u32 %s10880_s10, 4  ;;  %s43_s29 = ssub.s32 %s8697_s24, %s8906_s26  ;;  %s569_s30 = int_to_ptr.hbm [resolvable:$true] %s568_s30 }
  0x35   : > { %s608_s15 = sshll.u32 %s10881_s16, 4  ;;  %p44_p7 = scmp.eq.s32.totalorder %s43_s29, 0  ;;  %s609_s15 = int_to_ptr.hbm [resolvable:$true] %s608_s15 }
  0x36   : > { %8051 = dma.hbm_to_vmem [thread:$0]  (!%p8864_p6), %s569_s30, 2048, %s571_s18, [#allocation9], %s8701_s4, %s8701_s4, %s8702_s20  }
  0x37   : > { %8057 = dma.hbm_to_vmem [thread:$0]  (!%p8864_p6), %s609_s15, 8192, %s611_s0, [#allocation12], %s8701_s4, %s8701_s4, %s8702_s20  }
  0x38   : > { %p53_p8 = scmp.ne.s32.totalorder %s8693_s23, %s8689_s22  ;;  %p54_p9 = scmp.eq.s32.totalorder %s8697_s24, 0 }
  0x39   : > { %p59_p10 = scmp.ne.s32.totalorder %s8689_s22, %s8685_s1  ;;  %p487_p13 = scmp.eq.s32.totalorder %s8847_s27, 1 }
  0x3a   : > { %s8917_s8 = scalar_select %p44_p7, %s8693_s23, %s46_s21  }
  0x3b   : > { %p55_p11 = por %p54_p9, %p53_p8  ;;  %p8921_p12 = por %p60_p1, %p59_p10 }
  0x3c   : > { %p493_p0 = scmp.eq.s32.totalorder %s6214_s25, 1  ;;  %p8072_p2 = scmp.lt.s32.totalorder %s8697_s24, 2 }
  0x3d   : > { %s633_s20 = sand.u32 1, %s8693_s23   ;;  %p8928_p4 = por %p487_p13, %p53_p8 }
  0x3e   : > { %p8932_p6 = por %p493_p0, %p59_p10  ;;  %s8008_s3 = smul.u32 240, %s633_s20 }
  0x3f   : > { %s8009_s30 = smul.u32 240, %s8697_s24  ;;  %p8937_p7 = pnand %p8072_p2, %p55_p11 }
  0x40   : > { %s10886_s17 = sld [smem:[#allocation81_spill]]  ;;  %s637_s11 = scalar_lea.vmem [#allocation2], %s8008_s3 }
  0x41   : > { %s646_s0 = sshll.u32 %s637_s11, 4  ;;  %s634_s29 = scalar_lea.sflag [#allocation3], %s633_s20  ;;  %s647_s0 = int_to_ptr.vmem [resolvable:$true] %s646_s0 }
  0x42   : > { %p8593_p9 = pneg %p8937_p7 }
  0x46   : > { %s643_s18 = scalar_lea.hbm %s10886_s17, %s8009_s30  ;;  %s8596_s13 = scalar_lea.hbm %s10886_s17, 480 }
  0x47   : > { %s644_s25 = sshll.u32 %s643_s18, 4  ;;  %s645_s25 = int_to_ptr.hbm [resolvable:$true] %s644_s25 }
  0x48   : > { %s8589_s21 = sshra.s32 %s645_s25, 4  ;;  %s8590_s21 = int_to_ptr.hbm [resolvable:$true] %s8589_s21 }
  0x49   : > { %s8591_s10 = scalar_lea.hbm %s8590_s21, 240  ;;  %p8597_p13 = scmp.lt.s32.totalorder %s8590_s21, %s10886_s17 }
  0x4a   : > { %p8592_p8 = scmp.ne.s32.totalorder %s8590_s21, %s8591_s10  ;;  %p8598_p0 = scmp.lt.s32.totalorder %s8596_s13, %s8591_s10 }
  0x4c   : > { %p8594_p10 = pnand %p8593_p9, %p8592_p8  ;;  %p8599_p2 = por %p8598_p0, %p8597_p13 }
  0x4e   : > { %p8595_p11 = pneg %p8594_p10 }
  0x50   : > { %p8600_p5 = pnand %p8599_p2, %p8595_p11 }
  0x52   : > { %8603 = shalt.err (!%p8600_p5)
}
  0x53   : > { %s8711_s20 = smov 1920   ;;  %s8712_s3 = smov 120  }
  0x54   : > { %8061 = dma.hbm_to_vmem [thread:$0]  (!%p8937_p7), %s645_s25, 3840, %s647_s0, %s634_s29, %s8711_s20, %s8711_s20, %s8712_s3  }
  0x55   : > { %667 = sbr.rel (%p8852_p3) target bundleno = 3222 (0xc96), region = 100 }
  0x5a   : > { %s8957_s14 = sand.u32 1, %s8689_s22  }
  0x5b   : > { %s8010_s16 = smul.u32 240, %s8957_s14  ;;  %s670_s18 = scalar_lea.sflag [#allocation3], %s8957_s14 }
  0x5d   : > { %s8961_s10 = scalar_lea.vmem [#allocation2], %s8010_s16 }
  0x5e   : > { %8664 = dma.done.wait (%p8921_p12), %s670_s18, 3840  }
  0x5f   : > { %8666 = vsyncadd (%p8921_p12), %s670_s18, 4294963456 }
  0x60   : > { %8668 = dma.done.wait (%p60_p1), [#allocation6], 16384  }
  0x61   : > { %8670 = vsyncadd (%p60_p1), [#allocation6], 4294950912 }
  0x62   : > { %8672 = dma.done.wait (%p60_p1), [#allocation9], 8192  }
  0x63   : > { %8674 = vsyncadd (%p60_p1), [#allocation9], 4294959104 }
  0x64   : > { %8676 = dma.done.wait (%p60_p1), [#allocation12], 16384  }
  0x65   : > { %8678 = vsyncadd (%p60_p1), [#allocation12], 4294950912  ;;  %v8979_v0 = vld [vmem:[#allocation7 + $0x38] sm:$0xff]  ;;  %v8989_v4 = vld [vmem:[#allocation7 + $0x30] sm:$0xff]  ;;  %s10997_s5 = sld [smem:[#allocation86_spill]]  ;;  %s6234_s12 = sshll.u32 %s8847_s27, 1 }
  0x66   : > { %v8981_v1 = vld [vmem:[#allocation7 + $0x78] sm:$0xff]  ;;  %1846 = vmatpush.bf16.msra.mxu0 %v8979_v0  ;;  %v8991_v5 = vld [vmem:[#allocation7 + $0x70] sm:$0xff]  ;;  %v9001_v8 = vld [vmem:[#allocation7 + $0x28] sm:$0xff]  ;;  %p9521_p1 = scmp.lt.s32.totalorder %s6234_s12, 3  ;;  %s11005_s21 = sld [smem:[#allocation82_spill]] }
  0x67   : > { %v8983_v2 = vld [vmem:[#allocation7 + $0xb8] sm:$0xff]  ;;  %1860 = vmatpush.bf16.msra.mxu1 %v8981_v1  ;;  %v8995_v6 = vld [vmem:[#allocation7 + $0xb0] sm:$0xff]  ;;  %v9003_v9 = vld [vmem:[#allocation7 + $0x68] sm:$0xff]  ;;  %s11012_s20 = sld [smem:[#allocation83_spill]]  ;;  %s7999_s28 = sshll.u32 %s8847_s27, 4 }
  0x68   : > { %v8985_v3 = vld [vmem:[#allocation7 + $0xf8] sm:$0xff]  ;;  %1874 = vmatpush.bf16.msra.mxu2 %v8983_v2  ;;  %v8997_v7 = vld [vmem:[#allocation7 + $0xf0] sm:$0xff]  ;;  %v9007_v10 = vld [vmem:[#allocation7 + $0xa8] sm:$0xff]  ;;  %s11033_s12 = smov (!%p9521_p1, %s6234_s12), 3  ;;  %s11013_s6 = sld [smem:[#allocation87_spill]] }
  0x69   : > { %1888 = vmatpush.bf16.msra.mxu3 %v8985_v3  ;;  %v9009_v11 = vld [vmem:[#allocation7 + $0xe8] sm:$0xff]  ;;  %v9013_v12 = vld [vmem:[#allocation7 + $0x20] sm:$0xff]  ;;  %v9025_v16 = vld [vmem:[#allocation7 + $0x18] sm:$0xff]  ;;  %s6235_s0 = sshll.u32 %s11033_s12, 3  ;;  %s11014_s7 = sld [smem:[#allocation88_spill]] }
  0x6a   : > { %1847 = vmatpush.bf16.msra.mxu0 %v8989_v4  ;;  %v9015_v13 = vld [vmem:[#allocation7 + $0x60] sm:$0xff]  ;;  %v9027_v17 = vld [vmem:[#allocation7 + $0x58] sm:$0xff]  ;;  %v9037_v20 = vld [vmem:[#allocation7 + $0x10] sm:$0xff]  ;;  %s11016_s3 = sld [smem:[#allocation92_spill]]  ;;  %s6233_s2 = sshll.u32 %s8957_s14, 4 }
  0x6b   : > { %1861 = vmatpush.bf16.msra.mxu1 %v8991_v5  ;;  %v9019_v14 = vld [vmem:[#allocation7 + $0xa0] sm:$0xff]  ;;  %v9031_v18 = vld [vmem:[#allocation7 + $0x98] sm:$0xff]  ;;  %v9039_v21 = vld [vmem:[#allocation7 + $0x50] sm:$0xff]  ;;  %s11018_s12 = sld [smem:[#allocation95_spill]]  ;;  %s765_s27 = scalar_lea.vmem [#allocation14], %s6233_s2 }
  0x6c   : > { %1875 = vmatpush.bf16.msra.mxu2 %v8995_v6  ;;  %v9021_v15 = vld [vmem:[#allocation7 + $0xe0] sm:$0xff]  ;;  %v9033_v19 = vld [vmem:[#allocation7 + $0xd8] sm:$0xff]  ;;  %v9043_v22 = vld [vmem:[#allocation7 + $0x90] sm:$0xff]  ;;  %s9550_s13 = scalar_lea.vmem %s11005_s21, %s6235_s0  ;;  %s11019_s25 = sld [smem:[#allocation97_spill]] }
  0x6d   : > { %1889 = vmatpush.bf16.msra.mxu3 %v8997_v7  ;;  %v9045_v23 = vld [vmem:[#allocation7 + $0xd0] sm:$0xff]  ;;  %v9047_v24 = vld [vmem:[#allocation7 + $0x8] sm:$0xff]  ;;  %v9059_v28 = vld [vmem:[#allocation7] sm:$0xff]  ;;  %s11020_s15 = sld [smem:[#allocation98_spill]]  ;;  %s6069_s30 = sshll.u32 %s765_s27, 4  ;;  %s6070_s30 = int_to_ptr.vmem [resolvable:$true] %s6069_s30 }
  0x6e   : > { %1848 = vmatpush.bf16.msra.mxu0 %v9001_v8  ;;  %v9051_v25 = vld [vmem:[#allocation7 + $0x48] sm:$0xff]  ;;  %v9061_v29 = vld [vmem:[#allocation7 + $0x40] sm:$0xff]  ;;  %v9065_v31 = vld [vmem:[#allocation7 + $0x138] sm:$0xff]  ;;  %s11021_s18 = sld [smem:[#allocation99_spill]] }
  0x6f   : > { %1862 = vmatpush.bf16.msra.mxu1 %v9003_v9  ;;  %v9053_v26 = vld [vmem:[#allocation7 + $0x88] sm:$0xff]  ;;  %v9063_v30 = vld [vmem:[#allocation7 + $0x80] sm:$0xff]  ;;  %v9069_v32 = vld [vmem:[#allocation7 + $0x178] sm:$0xff]  ;;  %s11026_s29 = sld [smem:[#allocation100_spill]] }
  0x70   : > { %1876 = vmatpush.bf16.msra.mxu2 %v9007_v10  ;;  %v9055_v27 = vld [vmem:[#allocation7 + $0xc8] sm:$0xff]  ;;  %v9071_v33 = vld [vmem:[#allocation7 + $0x1b8] sm:$0xff]  ;;  %v6238_v34 = vld [vmem:[%s8961_s10] sm:$0xf] }
  0x71   : > { %1890 = vmatpush.bf16.msra.mxu3 %v9009_v11  ;;  %v7784_v35 = vld [vmem:[%s8961_s10 + $0x74] sm:$0xf0]  ;;  %v6246_v36 = vld [vmem:[%s8961_s10 + $0x8] sm:$0xf]  ;;  %v7785_v37 = vld [vmem:[%s8961_s10 + $0x7c] sm:$0xf0] }
  0x72   : > { %1849 = vmatpush.bf16.msra.mxu0 %v9013_v12  ;;  %v7777_v38 = vld [vmem:[%s8961_s10 + $0x4] sm:$0xf]  ;;  %v6240_v39 = vld [vmem:[%s8961_s10 + $0x78] sm:$0xf0]  ;;  %v6239_v41 = vor.u32 %v7784_v35, %v6238_v34  ;;  %v6247_v43 = vor.u32 %v7785_v37, %v6246_v36  ;;  %v7778_v44 = vld [vmem:[%s8961_s10 + $0xc] sm:$0xf] }
  0x73   : > { %1863 = vmatpush.bf16.msra.mxu1 %v9015_v13  ;;  %v9081_v40 = vld [vmem:[#allocation7 + $0xc0] sm:$0xff]  ;;  %v9085_v42 = vld [vmem:[#allocation7 + $0x1f8] sm:$0xff]  ;;  %v9091_v46 = vld [vmem:[#allocation7 + $0x130] sm:$0xff]  ;;  %v6243_v47 = vor.u32 %v7777_v38, %v6240_v39 }
  0x74   : > { %1877 = vmatpush.bf16.msra.mxu2 %v9019_v14  ;;  %v6248_v45 = vld [vmem:[%s8961_s10 + $0x80] sm:$0xf0]  ;;  %v9104_v52 = vld [vmem:[#allocation7 + $0x128] sm:$0xff]  ;;  %v9128_v60 = vld [vmem:[#allocation7 + $0x118] sm:$0xff] }
  0x75   : > { %1891 = vmatpush.bf16.msra.mxu3 %v9021_v15  ;;  %v9095_v48 = vld [vmem:[#allocation7 + $0x170] sm:$0xff]  ;;  %v6251_v50 = vor.u32 %v7778_v44, %v6248_v45  ;;  %v9108_v53 = vld [vmem:[#allocation7 + $0x168] sm:$0xff]  ;;  %v9116_v56 = vld [vmem:[#allocation7 + $0x120] sm:$0xff]  ;;  %s6068_s21 = scalar_lea.hbm %s11026_s29, %s7999_s28  ;;  %s8639_s2 = scalar_lea.hbm %s11026_s29, 32 }
  0x76   : > { %1850 = vmatpush.bf16.msra.mxu0 %v9025_v16  ;;  %10887 = vst [vmem:[#allocation20_spill] sm:$0xff] %v9095_v48  ;;  %v9097_v49 = vld [vmem:[#allocation7 + $0x1b0] sm:$0xff]  ;;  %v9110_v54 = vld [vmem:[#allocation7 + $0x1a8] sm:$0xff]  ;;  %v9120_v57 = vld [vmem:[#allocation7 + $0x160] sm:$0xff]  ;;  %s6071_s16 = sshll.u32 %s6068_s21, 4  ;;  %s6072_s16 = int_to_ptr.hbm [resolvable:$true] %s6071_s16 }
  0x77   : > { %1864 = vmatpush.bf16.msra.mxu1 %v9027_v17  ;;  %10888 = vst [vmem:[#allocation21_spill] sm:$0xff] %v9097_v49  ;;  %v9101_v51 = vld [vmem:[#allocation7 + $0x1f0] sm:$0xff]  ;;  %v9113_v55 = vld [vmem:[#allocation7 + $0x1e8] sm:$0xff]  ;;  %v9122_v58 = vld [vmem:[#allocation7 + $0x1a0] sm:$0xff]  ;;  %s8633_s11 = sshra.s32 %s6072_s16, 4  ;;  %s8634_s11 = int_to_ptr.hbm [resolvable:$true] %s8633_s11 }
  0x78   : > { %1878 = vmatpush.bf16.msra.mxu2 %v9031_v18  ;;  %10889 = vst [vmem:[#allocation22_spill] sm:$0xff] %v9101_v51  ;;  %v9125_v59 = vld [vmem:[#allocation7 + $0x1e0] sm:$0xff]  ;;  %v9132_v61 = vld [vmem:[#allocation7 + $0x158] sm:$0xff]  ;;  %v9140_v34 = vld [vmem:[#allocation7 + $0x110] sm:$0xff]  ;;  %s8635_s28 = scalar_lea.hbm %s8634_s11, 16  ;;  %p8640_p7 = scmp.lt.s32.totalorder %s8634_s11, %s11026_s29 }
  0x79   : > { %1892 = vmatpush.bf16.msra.mxu3 %v9033_v19  ;;  %10890 = vst [vmem:[#allocation23_spill] sm:$0xff] %v9108_v53  ;;  %v9134_v62 = vld [vmem:[#allocation7 + $0x198] sm:$0xff]  ;;  %v9144_v35 = vld [vmem:[#allocation7 + $0x150] sm:$0xff]  ;;  %v9152_v38 = vld [vmem:[#allocation7 + $0x108] sm:$0xff]  ;;  %p8636_p3 = scmp.ne.s32.totalorder %s8634_s11, %s8635_s28  ;;  %p8641_p8 = scmp.lt.s32.totalorder %s8639_s2, %s8635_s28 }
  0x7a   : > { %1851 = vmatpush.bf16.msra.mxu0 %v9037_v20  ;;  %10891 = vst [vmem:[#allocation24_spill] sm:$0xff] %v9110_v54  ;;  %v9137_v63 = vld [vmem:[#allocation7 + $0x1d8] sm:$0xff]  ;;  %v9146_v36 = vld [vmem:[#allocation7 + $0x190] sm:$0xff]  ;;  %v9156_v39 = vld [vmem:[#allocation7 + $0x148] sm:$0xff] }
  0x7b   : > { %1865 = vmatpush.bf16.msra.mxu1 %v9039_v21  ;;  %10892 = vst [vmem:[#allocation25_spill] sm:$0xff] %v9113_v55  ;;  %v9149_v37 = vld [vmem:[#allocation7 + $0x1d0] sm:$0xff]  ;;  %v9163_v44 = vld [vmem:[#allocation7 + $0x100] sm:$0xff]  ;;  %p8637_p5 = pnand %p8636_p3, %p8928_p4  ;;  %p8642_p9 = por %p8641_p8, %p8640_p7 }
  0x7c   : > { %1879 = vmatpush.bf16.msra.mxu2 %v9043_v22  ;;  %10893 = vst [vmem:[#allocation26_spill] sm:$0xff] %v9120_v57  ;;  %v9165_v45 = vld [vmem:[#allocation7 + $0x140] sm:$0xff] }
  0x7d   : > { %1893 = vmatpush.bf16.msra.mxu3 %v9045_v23  ;;  %10894 = vst [vmem:[#allocation27_spill] sm:$0xff] %v9122_v58  ;;  %p8638_p12 = pneg %p8637_p5 }
  0x7e   : > { %1852 = vmatpush.bf16.msra.mxu0 %v9047_v24  ;;  %10895 = vst [vmem:[#allocation28_spill] sm:$0xff] %v9125_v59 }
  0x7f   : > { %1866 = vmatpush.bf16.msra.mxu1 %v9051_v25  ;;  %10896 = vst [vmem:[#allocation29_spill] sm:$0xff] %v9132_v61  ;;  %p8643_p10 = pnand %p8642_p9, %p8638_p12 }
  0x80   : > { %1880 = vmatpush.bf16.msra.mxu2 %v9053_v26  ;;  %10897 = vst [vmem:[#allocation30_spill] sm:$0xff] %v9134_v62 }
  0x81   : > { %1894 = vmatpush.bf16.msra.mxu3 %v9055_v27  ;;  %10898 = vst [vmem:[#allocation31_spill] sm:$0xff] %v9137_v63 }
  0x82   : > { %1853 = vmatpush.bf16.msra.mxu0 %v9059_v28  ;;  %10899 = vst [vmem:[#allocation32_spill] sm:$0xff] %v9144_v35 }
  0x83   : > { %1867 = vmatpush.bf16.msra.mxu1 %v9061_v29  ;;  %10900 = vst [vmem:[#allocation33_spill] sm:$0xff] %v9146_v36 }
  0x84   : > { %1881 = vmatpush.bf16.msra.mxu2 %v9063_v30  ;;  %10901 = vst [vmem:[#allocation34_spill] sm:$0xff] %v9149_v37 }
  0x85   : > { %1895 = vmatpush.bf16.msra.mxu3 %v9081_v40  ;;  %1854 = vmatmul.bf16.vlgmr.msra.gmra.mxu0 %v6239_v41  ;;  %10902 = vst [vmem:[#allocation35_spill] sm:$0xff] %v9156_v39  ;;  %v9158_v41 = vld [vmem:[#allocation7 + $0x188] sm:$0xff] }
  0x86   : > { %1902 = vmatpush.bf16.msrb.mxu0 %v9065_v31  ;;  %1868 = vmatmul.bf16.vlgmr.msra.gmra.mxu1 %v6243_v47  ;;  %10903 = vst [vmem:[#allocation36_spill] sm:$0xff] %v9158_v41  ;;  %v9167_v47 = vld [vmem:[#allocation7 + $0x180] sm:$0xff] }
  0x87   : > { %1916 = vmatpush.bf16.msrb.mxu1 %v9069_v32  ;;  %1882 = vmatmul.bf16.vlgmr.msra.gmra.mxu2 %v6247_v43  ;;  %v9160_v43 = vld [vmem:[#allocation7 + $0x1c8] sm:$0xff]  ;;  %10905 = vst [vmem:[#allocation38_spill] sm:$0xff] %v9165_v45 }
  0x88   : > { %1930 = vmatpush.bf16.msrb.mxu2 %v9071_v33  ;;  %1896 = vmatmul.bf16.vlgmr.msra.gmra.mxu3 %v6251_v50  ;;  %10904 = vst [vmem:[#allocation37_spill] sm:$0xff] %v9160_v43  ;;  %v9170_v50 = vld [vmem:[#allocation7 + $0x238] sm:$0xff] }
  0x89   : > { %1944 = vmatpush.bf16.msrb.mxu3 %v9085_v42  ;;  %10906 = vst [vmem:[#allocation39_spill] sm:$0xff] %v9167_v47 }
  0x8a   : > { %1903 = vmatpush.bf16.msrb.mxu0 %v9091_v46  ;;  %10907 = vst [vmem:[#allocation40_spill] sm:$0xff] %v9170_v50 }
  0x8b   : > { %1917 = vmatpush.bf16.msrb.mxu1 %v9095_v48 }
  0x8c   : > { %1931 = vmatpush.bf16.msrb.mxu2 %v9097_v49  ;;  %v9196_v49 = vld [vmem:[#allocation7 + $0x230] sm:$0xff] }
  0x8d   : > { %1945 = vmatpush.bf16.msrb.mxu3 %v9101_v51  ;;  %10912 = vst [vmem:[#allocation45_spill] sm:$0xff] %v9196_v49 }
  0x8e   : > { %1904 = vmatpush.bf16.msrb.mxu0 %v9104_v52 }
  0x8f   : > { %1918 = vmatpush.bf16.msrb.mxu1 %v9108_v53 }
  0x90   : > { %1932 = vmatpush.bf16.msrb.mxu2 %v9110_v54  ;;  %v6264_v54 = vld [vmem:[%s8961_s10 + $0x90] sm:$0xf0] }
  0x91   : > { %1946 = vmatpush.bf16.msrb.mxu3 %v9113_v55  ;;  %v7780_v55 = vld [vmem:[%s8961_s10 + $0x1c] sm:$0xf] }
  0x92   : > { %1905 = vmatpush.bf16.msrb.mxu0 %v9116_v56 }
  0x93   : > { %1919 = vmatpush.bf16.msrb.mxu1 %v9120_v57  ;;  %v9185_v57 = vld [vmem:[#allocation7 + $0x1c0] sm:$0xff] }
  0x94   : > { %1933 = vmatpush.bf16.msrb.mxu2 %v9122_v58  ;;  %v6256_v58 = vld [vmem:[%s8961_s10 + $0x88] sm:$0xf0]  ;;  %10910 = vst [vmem:[#allocation43_spill] sm:$0xff] %v9185_v57 }
  0x95   : > { %1947 = vmatpush.bf16.msrb.mxu3 %v9125_v59  ;;  %v7779_v59 = vld [vmem:[%s8961_s10 + $0x14] sm:$0xf] }
  0x96   : > { %1906 = vmatpush.bf16.msrb.mxu0 %v9128_v60 }
  0x97   : > { %1920 = vmatpush.bf16.msrb.mxu1 %v9132_v61  ;;  %v9180_v61 = vld [vmem:[#allocation7 + $0x2b8] sm:$0xff] }
  0x98   : > { %1934 = vmatpush.bf16.msrb.mxu2 %v9134_v62  ;;  %v7787_v62 = vld [vmem:[%s8961_s10 + $0x8c] sm:$0xf0]  ;;  %10909 = vst [vmem:[#allocation42_spill] sm:$0xff] %v9180_v61 }
  0x99   : > { %1948 = vmatpush.bf16.msrb.mxu3 %v9137_v63  ;;  %v6262_v63 = vld [vmem:[%s8961_s10 + $0x18] sm:$0xf] }
  0x9a   : > { %1907 = vmatpush.bf16.msrb.mxu0 %v9140_v34  ;;  %v6263_v51 = vor.u32 %v7787_v62, %v6262_v63  ;;  %v9202_v62 = vld [vmem:[#allocation7 + $0x2b0] sm:$0xff]  ;;  %v9224_v63 = vld [vmem:[#allocation7 + $0x260] sm:$0xff] }
  0x9b   : > { %1921 = vmatpush.bf16.msrb.mxu1 %v9144_v35  ;;  %v6254_v35 = vld [vmem:[%s8961_s10 + $0x10] sm:$0xf]  ;;  %10914 = vst [vmem:[#allocation47_spill] sm:$0xff] %v9202_v62 }
  0x9c   : > { %1935 = vmatpush.bf16.msrb.mxu2 %v9146_v36  ;;  %v9172_v36 = vld [vmem:[#allocation7 + $0x278] sm:$0xff]  ;;  %10921 = vst [vmem:[#allocation54_spill] sm:$0xff] %v9224_v63 }
  0x9d   : > { %1949 = vmatpush.bf16.msrb.mxu3 %v9149_v37  ;;  %10908 = vst [vmem:[#allocation41_spill] sm:$0xff] %v9172_v36  ;;  %v7786_v37 = vld [vmem:[%s8961_s10 + $0x84] sm:$0xf0] }
  0x9e   : > { %1908 = vmatpush.bf16.msrb.mxu0 %v9152_v38  ;;  %v6255_v53 = vor.u32 %v7786_v37, %v6254_v35  ;;  %v9200_v35 = vld [vmem:[#allocation7 + $0x270] sm:$0xff]  ;;  %v9226_v37 = vld [vmem:[#allocation7 + $0x2a0] sm:$0xff] }
  0x9f   : > { %1922 = vmatpush.bf16.msrb.mxu1 %v9156_v39  ;;  %v6259_v39 = vor.u32 %v7779_v59, %v6256_v58  ;;  %10913 = vst [vmem:[#allocation46_spill] sm:$0xff] %v9200_v35  ;;  %v9205_v58 = vld [vmem:[#allocation7 + $0x2f0] sm:$0xff]  ;;  %v9214_v59 = vld [vmem:[#allocation7 + $0x2a8] sm:$0xff] }
  0xa0   : > { %1936 = vmatpush.bf16.msrb.mxu2 %v9158_v41  ;;  %v9192_v41 = vld [vmem:[#allocation7 + $0x2f8] sm:$0xff]  ;;  %10915 = vst [vmem:[#allocation48_spill] sm:$0xff] %v9205_v58 }
  0xa1   : > { %1950 = vmatpush.bf16.msrb.mxu3 %v9160_v43  ;;  %10911 = vst [vmem:[#allocation44_spill] sm:$0xff] %v9192_v41  ;;  %v6267_v43 = vor.u32 %v7780_v55, %v6264_v54  ;;  %v9208_v54 = vld [vmem:[#allocation7 + $0x228] sm:$0xff] }
  0xa2   : > { %1909 = vmatpush.bf16.msrb.mxu0 %v9163_v44  ;;  %10916 = vst [vmem:[#allocation49_spill] sm:$0xff] %v9208_v54  ;;  %v9212_v55 = vld [vmem:[#allocation7 + $0x268] sm:$0xff] }
  0xa3   : > { %1923 = vmatpush.bf16.msrb.mxu1 %v9165_v45  ;;  %10917 = vst [vmem:[#allocation50_spill] sm:$0xff] %v9212_v55  ;;  %v9284_v45 = vld [vmem:[#allocation7 + $0x3b8] sm:$0xff] }
  0xa4   : > { %1937 = vmatpush.bf16.msrb.mxu2 %v9167_v47  ;;  %10918 = vst [vmem:[#allocation51_spill] sm:$0xff] %v9214_v59  ;;  %v7789_v47 = vld [vmem:[%s8961_s10 + $0x9c] sm:$0xf0] }
  0xa5   : > { %1951 = vmatpush.bf16.msrb.mxu3 %v9185_v57  ;;  %1910 = vmatmul.bf16.vlgmr.msrb.gmra.mxu0 %v6255_v53  ;;  %v9220_v53 = vld [vmem:[#allocation7 + $0x220] sm:$0xff]  ;;  %10922 = vst [vmem:[#allocation55_spill] sm:$0xff] %v9226_v37  ;;  %v6278_v57 = vld [vmem:[%s8961_s10 + $0x28] sm:$0xf] }
  0xa6   : > { %1958 = vmatpush.bf16.msra.mxu0 %v9170_v50  ;;  %1924 = vmatmul.bf16.vlgmr.msrb.gmra.mxu1 %v6259_v39  ;;  %10920 = vst [vmem:[#allocation53_spill] sm:$0xff] %v9220_v53  ;;  %v9229_v39 = vld [vmem:[#allocation7 + $0x2e0] sm:$0xff]  ;;  %v6279_v48 = vor.u32 %v7789_v47, %v6278_v57  ;;  %v9298_v50 = vld [vmem:[#allocation7 + $0x330] sm:$0xff]  ;;  %v9308_v57 = vld [vmem:[#allocation7 + $0x328] sm:$0xff] }
  0xa7   : > { %1972 = vmatpush.bf16.msra.mxu1 %v9172_v36  ;;  %1938 = vmatmul.bf16.vlgmr.msrb.gmra.mxu2 %v6263_v51  ;;  %v9217_v51 = vld [vmem:[#allocation7 + $0x2e8] sm:$0xff]  ;;  %10923 = vst [vmem:[#allocation56_spill] sm:$0xff] %v9229_v39  ;;  %v6270_v36 = vld [vmem:[%s8961_s10 + $0x20] sm:$0xf] }
  0xa8   : > { %1986 = vmatpush.bf16.msra.mxu2 %v9180_v61  ;;  %1952 = vmatmul.bf16.vlgmr.msrb.gmra.mxu3 %v6267_v43  ;;  %10919 = vst [vmem:[#allocation52_spill] sm:$0xff] %v9217_v51  ;;  %v9232_v43 = vld [vmem:[#allocation7 + $0x218] sm:$0xff]  ;;  %v9312_v47 = vld [vmem:[#allocation7 + $0x368] sm:$0xff] }
  0xa9   : > { %2000 = vmatpush.bf16.msra.mxu3 %v9192_v41  ;;  %10924 = vst [vmem:[#allocation57_spill] sm:$0xff] %v9232_v43  ;;  %v9269_v41 = vld [vmem:[#allocation7 + $0x240] sm:$0xff]  ;;  %v9276_v61 = vld [vmem:[#allocation7 + $0x378] sm:$0xff] }
  0xaa   : > { %1959 = vmatpush.bf16.msra.mxu0 %v9196_v49  ;;  %10936 = vst [vmem:[#allocation69_spill] sm:$0xff] %v9284_v45 }
  0xab   : > { %1973 = vmatpush.bf16.msra.mxu1 %v9200_v35  ;;  %v9267_v35 = vld [vmem:[#allocation7 + $0x200] sm:$0xff]  ;;  %10939 = vst [vmem:[#allocation72_spill] sm:$0xff] %v9312_v47 }
  0xac   : > { %1987 = vmatpush.bf16.msra.mxu2 %v9202_v62  ;;  %v9248_v62 = vld [vmem:[#allocation7 + $0x250] sm:$0xff] }
  0xad   : > { %2001 = vmatpush.bf16.msra.mxu3 %v9205_v58  ;;  %v9236_v58 = vld [vmem:[#allocation7 + $0x258] sm:$0xff]  ;;  %10929 = vst [vmem:[#allocation62_spill] sm:$0xff] %v9248_v62 }
  0xae   : > { %1960 = vmatpush.bf16.msra.mxu0 %v9208_v54  ;;  %10925 = vst [vmem:[#allocation58_spill] sm:$0xff] %v9236_v58  ;;  %v6280_v54 = vld [vmem:[%s8961_s10 + $0xa0] sm:$0xf0] }
  0xaf   : > { %1974 = vmatpush.bf16.msra.mxu1 %v9212_v55  ;;  %v9238_v55 = vld [vmem:[#allocation7 + $0x298] sm:$0xff] }
  0xb0   : > { %1988 = vmatpush.bf16.msra.mxu2 %v9214_v59  ;;  %10926 = vst [vmem:[#allocation59_spill] sm:$0xff] %v9238_v55  ;;  %v9241_v59 = vld [vmem:[#allocation7 + $0x2d8] sm:$0xff] }
  0xb1   : > { %2002 = vmatpush.bf16.msra.mxu3 %v9217_v51  ;;  %10927 = vst [vmem:[#allocation60_spill] sm:$0xff] %v9241_v59  ;;  %v9244_v51 = vld [vmem:[#allocation7 + $0x210] sm:$0xff] }
  0xb2   : > { %1961 = vmatpush.bf16.msra.mxu0 %v9220_v53  ;;  %10928 = vst [vmem:[#allocation61_spill] sm:$0xff] %v9244_v51  ;;  %v9289_v53 = vld [vmem:[#allocation7 + $0x2c0] sm:$0xff] }
  0xb3   : > { %1975 = vmatpush.bf16.msra.mxu1 %v9224_v63  ;;  %v9250_v63 = vld [vmem:[#allocation7 + $0x290] sm:$0xff] }
  0xb4   : > { %1989 = vmatpush.bf16.msra.mxu2 %v9226_v37  ;;  %10930 = vst [vmem:[#allocation63_spill] sm:$0xff] %v9250_v63  ;;  %v9253_v37 = vld [vmem:[#allocation7 + $0x2d0] sm:$0xff] }
  0xb5   : > { %2003 = vmatpush.bf16.msra.mxu3 %v9229_v39  ;;  %10931 = vst [vmem:[#allocation64_spill] sm:$0xff] %v9253_v37  ;;  %v9256_v39 = vld [vmem:[#allocation7 + $0x208] sm:$0xff] }
  0xb6   : > { %1962 = vmatpush.bf16.msra.mxu0 %v9232_v43  ;;  %10932 = vst [vmem:[#allocation65_spill] sm:$0xff] %v9256_v39  ;;  %v6272_v43 = vld [vmem:[%s8961_s10 + $0x98] sm:$0xf0] }
  0xb7   : > { %1976 = vmatpush.bf16.msra.mxu1 %v9236_v58  ;;  %v9262_v58 = vld [vmem:[#allocation7 + $0x288] sm:$0xff] }
  0xb8   : > { %1990 = vmatpush.bf16.msra.mxu2 %v9238_v55  ;;  %v9260_v55 = vld [vmem:[#allocation7 + $0x248] sm:$0xff]  ;;  %10934 = vst [vmem:[#allocation67_spill] sm:$0xff] %v9262_v58 }
  0xb9   : > { %2004 = vmatpush.bf16.msra.mxu3 %v9241_v59  ;;  %10933 = vst [vmem:[#allocation66_spill] sm:$0xff] %v9260_v55  ;;  %v9264_v59 = vld [vmem:[#allocation7 + $0x2c8] sm:$0xff] }
  0xba   : > { %1963 = vmatpush.bf16.msra.mxu0 %v9244_v51  ;;  %10935 = vst [vmem:[#allocation68_spill] sm:$0xff] %v9264_v59  ;;  %v7781_v51 = vld [vmem:[%s8961_s10 + $0x24] sm:$0xf] }
  0xbb   : > { %1977 = vmatpush.bf16.msra.mxu1 %v9248_v62  ;;  %v9271_v62 = vld [vmem:[#allocation7 + $0x280] sm:$0xff] }
  0xbc   : > { %1991 = vmatpush.bf16.msra.mxu2 %v9250_v63  ;;  %v9274_v63 = vld [vmem:[#allocation7 + $0x338] sm:$0xff] }
  0xbd   : > { %2005 = vmatpush.bf16.msra.mxu3 %v9253_v37  ;;  %v7788_v37 = vld [vmem:[%s8961_s10 + $0x94] sm:$0xf0] }
  0xbe   : > { %1964 = vmatpush.bf16.msra.mxu0 %v9256_v39  ;;  %v7782_v39 = vld [vmem:[%s8961_s10 + $0x2c] sm:$0xf]  ;;  %v6271_v49 = vor.u32 %v7788_v37, %v6270_v36  ;;  %v9304_v36 = vld [vmem:[#allocation7 + $0x3b0] sm:$0xff] }
  0xbf   : > { %1978 = vmatpush.bf16.msra.mxu1 %v9260_v55  ;;  %v6283_v55 = vor.u32 %v7782_v39, %v6280_v54  ;;  %10938 = vst [vmem:[#allocation71_spill] sm:$0xff] %v9304_v36  ;;  %v9314_v54 = vld [vmem:[#allocation7 + $0x3a8] sm:$0xff]  ;;  %v9344_v37 = vld [vmem:[#allocation7 + $0x390] sm:$0xff] }
  0xc0   : > { %1992 = vmatpush.bf16.msra.mxu2 %v9262_v58  ;;  %v6275_v58 = vor.u32 %v7781_v51, %v6272_v43  ;;  %10940 = vst [vmem:[#allocation73_spill] sm:$0xff] %v9314_v54  ;;  %v9338_v51 = vld [vmem:[#allocation7 + $0x310] sm:$0xff]  ;;  %v9352_v39 = vld [vmem:[#allocation7 + $0x348] sm:$0xff] }
  0xc1   : > { %2006 = vmatpush.bf16.msra.mxu3 %v9264_v59  ;;  %v9302_v59 = vld [vmem:[#allocation7 + $0x370] sm:$0xff]  ;;  %10946 = vst [vmem:[#allocation79_spill] sm:$0xff] %v9344_v37  ;;  %v9354_v43 = vld [vmem:[#allocation7 + $0x388] sm:$0xff] }
  0xc2   : > { %1965 = vmatpush.bf16.msra.mxu0 %v9267_v35  ;;  %10937 = vst [vmem:[#allocation70_spill] sm:$0xff] %v9302_v59 }
  0xc3   : > { %1979 = vmatpush.bf16.msra.mxu1 %v9269_v41  ;;  %10947 = vst [vmem:[#allocation80_spill] sm:$0xff] %v9352_v39 }
  0xc4   : > { %1993 = vmatpush.bf16.msra.mxu2 %v9271_v62 }
  0xc5   : > { %2007 = vmatpush.bf16.msra.mxu3 %v9289_v53  ;;  %1966 = vmatmul.bf16.vlgmr.msra.gmra.mxu0 %v6271_v49  ;;  %v9324_v49 = vld [vmem:[#allocation7 + $0x3a0] sm:$0xff] }
  0xc6   : > { %2014 = vmatpush.bf16.msrb.mxu0 %v9274_v63  ;;  %1980 = vmatmul.bf16.vlgmr.msra.gmra.mxu1 %v6275_v58  ;;  %10942 = vst [vmem:[#allocation75_spill] sm:$0xff] %v9324_v49  ;;  %v9328_v58 = vld [vmem:[#allocation7 + $0x318] sm:$0xff] }
  0xc7   : > { %2028 = vmatpush.bf16.msrb.mxu1 %v9276_v61  ;;  %1994 = vmatmul.bf16.vlgmr.msra.gmra.mxu2 %v6279_v48  ;;  %v9318_v48 = vld [vmem:[#allocation7 + $0x320] sm:$0xff] }
  0xc8   : > { %2042 = vmatpush.bf16.msrb.mxu2 %v9284_v45  ;;  %2008 = vmatmul.bf16.vlgmr.msra.gmra.mxu3 %v6283_v55  ;;  %v9334_v55 = vld [vmem:[#allocation7 + $0x398] sm:$0xff]  ;;  %v7799_v45 = vld [vmem:[%s8961_s10 + $0xb0] sm:$0xf0] }
  0xc9   : > { %2152 = vmatpush.bf16.msrb.mxu3 %v8979_v0  ;;  %v9322_v0 = vld [vmem:[#allocation7 + $0x360] sm:$0xff]  ;;  %10944 = vst [vmem:[#allocation77_spill] sm:$0xff] %v9334_v55 }
  0xca   : > { %2015 = vmatpush.bf16.msrb.mxu0 %v9298_v50  ;;  %10941 = vst [vmem:[#allocation74_spill] sm:$0xff] %v9322_v0 }
  0xcb   : > { %2029 = vmatpush.bf16.msrb.mxu1 %v9302_v59  ;;  %v6778_v59 = vld [vmem:[%s8961_s10 + $0x3c] sm:$0xf] }
  0xcc   : > { %2043 = vmatpush.bf16.msrb.mxu2 %v9304_v36 }
  0xcd   : > { %2153 = vmatpush.bf16.msrb.mxu3 %v8989_v4  ;;  %v9332_v4 = vld [vmem:[#allocation7 + $0x358] sm:$0xff] }
  0xce   : > { %2016 = vmatpush.bf16.msrb.mxu0 %v9308_v57  ;;  %10943 = vst [vmem:[#allocation76_spill] sm:$0xff] %v9332_v4 }
  0xcf   : > { %2030 = vmatpush.bf16.msrb.mxu1 %v9312_v47 }
  0xd0   : > { %2044 = vmatpush.bf16.msrb.mxu2 %v9314_v54  ;;  %v7783_v54 = vld [vmem:[%s8961_s10 + $0x34] sm:$0xf] }
  0xd1   : > { %2154 = vmatpush.bf16.msrb.mxu3 %v9001_v8  ;;  %v9342_v8 = vld [vmem:[#allocation7 + $0x350] sm:$0xff] }
  0xd2   : > { %2017 = vmatpush.bf16.msrb.mxu0 %v9318_v48  ;;  %10945 = vst [vmem:[#allocation78_spill] sm:$0xff] %v9342_v8 }
  0xd3   : > { %2031 = vmatpush.bf16.msrb.mxu1 %v9322_v0  ;;  %v7791_v0 = vld [vmem:[%s8961_s10 + $0xac] sm:$0xf0] }
  0xd4   : > { %2045 = vmatpush.bf16.msrb.mxu2 %v9324_v49  ;;  %v6294_v49 = vld [vmem:[%s8961_s10 + $0x38] sm:$0xf] }
  0xd5   : > { %2155 = vmatpush.bf16.msrb.mxu3 %v9013_v12  ;;  %v9348_v12 = vld [vmem:[#allocation7 + $0x308] sm:$0xff]  ;;  %v6295_v36 = vor.u32 %v7791_v0, %v6294_v49 }
  0xd6   : > { %2018 = vmatpush.bf16.msrb.mxu0 %v9328_v58  ;;  %v7802_v0 = vld [vmem:[%s8961_s10 + $0xc8] sm:$0xf0] }
  0xd7   : > { %2032 = vmatpush.bf16.msrb.mxu1 %v9332_v4  ;;  %v9362_v4 = vld [vmem:[#allocation7 + $0x380] sm:$0xff]  ;;  %v10972_v49 = vld [vmem:[#allocation65_spill] sm:$0xff] }
  0xd8   : > { %2046 = vmatpush.bf16.msrb.mxu2 %v9334_v55  ;;  %v9357_v55 = vld [vmem:[#allocation7 + $0x300] sm:$0xff] }
  0xd9   : > { %2156 = vmatpush.bf16.msrb.mxu3 %v9025_v16  ;;  %v9360_v16 = vld [vmem:[#allocation7 + $0x340] sm:$0xff] }
  0xda   : > { %2019 = vmatpush.bf16.msrb.mxu0 %v9338_v51 }
  0xdb   : > { %2033 = vmatpush.bf16.msrb.mxu1 %v9342_v8  ;;  %v6286_v8 = vld [vmem:[%s8961_s10 + $0x30] sm:$0xf] }
  0xdc   : > { %2047 = vmatpush.bf16.msrb.mxu2 %v9344_v37  ;;  %v7790_v37 = vld [vmem:[%s8961_s10 + $0xa4] sm:$0xf0] }
  0xdd   : > { %2157 = vmatpush.bf16.msrb.mxu3 %v9037_v20  ;;  %v6288_v20 = vld [vmem:[%s8961_s10 + $0xa8] sm:$0xf0]  ;;  %v6287_v47 = vor.u32 %v7790_v37, %v6286_v8  ;;  %v6810_v8 = vld [vmem:[%s8961_s10 + $0x5c] sm:$0xf]  ;;  %v7803_v37 = vld [vmem:[%s8961_s10 + $0xd0] sm:$0xf0] }
  0xde   : > { %2020 = vmatpush.bf16.msrb.mxu0 %v9348_v12 }
  0xdf   : > { %2034 = vmatpush.bf16.msrb.mxu1 %v9352_v39  ;;  %v6291_v39 = vor.u32 %v7783_v54, %v6288_v20  ;;  %v6802_v54 = vld [vmem:[%s8961_s10 + $0x54] sm:$0xf] }
  0xe0   : > { %2048 = vmatpush.bf16.msrb.mxu2 %v9354_v43 }
  0xe1   : > { %2158 = vmatpush.bf16.msrb.mxu3 %v9047_v24  ;;  %v6779_v24 = vor.u32 %v7799_v45, %v6778_v59  ;;  %v10971_v45 = vld [vmem:[#allocation37_spill] sm:$0xff] }
  0xe2   : > { %2021 = vmatpush.bf16.msrb.mxu0 %v9357_v55  ;;  %v6796_v59 = vld [vmem:[%s8961_s10 + $0xc4] sm:$0xf0] }
  0xe3   : > { %2035 = vmatpush.bf16.msrb.mxu1 %v9360_v16 }
  0xe4   : > { %2049 = vmatpush.bf16.msrb.mxu2 %v9362_v4 }
  0xe5   : > { %2159 = vmatpush.bf16.msrb.mxu3 %v9059_v28  ;;  %2022 = vmatmul.bf16.vlgmr.msrb.gmra.mxu0 %v6287_v47  ;;  %v10957_v28 = vld [vmem:[#allocation26_spill] sm:$0xff] }
  0xe6   : > { %2166 = vmatpush.bf16.msra.mxu0 %v8981_v1  ;;  %2036 = vmatmul.bf16.vlgmr.msrb.gmra.mxu1 %v6291_v39  ;;  %v7792_v1 = vld [vmem:[%s8961_s10 + $0x40] sm:$0xf]  ;;  %v6804_v47 = vld [vmem:[%s8961_s10 + $0xcc] sm:$0xf0] }
  0xe7   : > { %2180 = vmatpush.bf16.msra.mxu1 %v8983_v2  ;;  %2050 = vmatmul.bf16.vlgmr.msrb.gmra.mxu2 %v6295_v36  ;;  %v6780_v2 = vld [vmem:[%s8961_s10 + $0xb4] sm:$0xf0]  ;;  %v10973_v39 = vld [vmem:[#allocation38_spill] sm:$0xff] }
  0xe8   : > { %2194 = vmatpush.bf16.msra.mxu2 %v8985_v3  ;;  %2160 = vmatmul.bf16.vlgmr.msrb.gmra.mxu3 %v6779_v24  ;;  %v7793_v3 = vld [vmem:[%s8961_s10 + $0x48] sm:$0xf]  ;;  %v7795_v36 = vld [vmem:[%s8961_s10 + $0x58] sm:$0xf] }
  0xe9   : > { %2208 = vmatpush.bf16.msra.mxu3 %v9065_v31  ;;  %v10960_v31 = vld [vmem:[#allocation53_spill] sm:$0xff]  ;;  %v6807_v24 = vor.u32 %v7795_v36, %v6804_v47 }
  0xea   : > { %2167 = vmatpush.bf16.msra.mxu0 %v8991_v5  ;;  %v6788_v5 = vld [vmem:[%s8961_s10 + $0xbc] sm:$0xf0] }
  0xeb   : > { %2181 = vmatpush.bf16.msra.mxu1 %v8995_v6  ;;  %v6786_v6 = vld [vmem:[%s8961_s10 + $0x44] sm:$0xf] }
  0xec   : > { %2195 = vmatpush.bf16.msra.mxu2 %v8997_v7  ;;  %v7800_v7 = vld [vmem:[%s8961_s10 + $0xb8] sm:$0xf0] }
  0xed   : > { %2209 = vmatpush.bf16.msra.mxu3 %v9091_v46  ;;  %v10965_v46 = vld [vmem:[#allocation32_spill] sm:$0xff] }
  0xee   : > { %2168 = vmatpush.bf16.msra.mxu0 %v9003_v9  ;;  %v6783_v9 = vor.u32 %v7792_v1, %v6780_v2  ;;  %v10974_v1 = vld [vmem:[#allocation39_spill] sm:$0xff] }
  0xef   : > { %2182 = vmatpush.bf16.msra.mxu1 %v9007_v10  ;;  %v6791_v10 = vor.u32 %v7793_v3, %v6788_v5  ;;  %v10975_v2 = vld [vmem:[#allocation43_spill] sm:$0xff]  ;;  %v6803_v3 = vor.u32 %v7802_v0, %v6802_v54  ;;  %v10976_v5 = vld [vmem:[#allocation41_spill] sm:$0xff] }
  0xf0   : > { %2196 = vmatpush.bf16.msra.mxu2 %v9009_v11  ;;  %v6794_v11 = vld [vmem:[%s8961_s10 + $0x4c] sm:$0xf] }
  0xf1   : > { %2210 = vmatpush.bf16.msra.mxu3 %v9104_v52  ;;  %v10966_v52 = vld [vmem:[#allocation33_spill] sm:$0xff] }
  0xf2   : > { %2169 = vmatpush.bf16.msra.mxu0 %v9015_v13  ;;  %v7801_v13 = vld [vmem:[%s8961_s10 + $0xc0] sm:$0xf0] }
  0xf3   : > { %2183 = vmatpush.bf16.msra.mxu1 %v9019_v14  ;;  %v6787_v14 = vor.u32 %v7800_v7, %v6786_v6  ;;  %v10977_v6 = vld [vmem:[#allocation42_spill] sm:$0xff]  ;;  %v6811_v7 = vor.u32 %v7803_v37, %v6810_v8 }
  0xf4   : > { %2197 = vmatpush.bf16.msra.mxu2 %v9021_v15  ;;  %v6795_v15 = vor.u32 %v7801_v13, %v6794_v11  ;;  %v10980_v11 = vld [vmem:[#allocation47_spill] sm:$0xff]  ;;  %v10981_v13 = vld [vmem:[#allocation48_spill] sm:$0xff]  ;;  %v6910_v37 = vld [vmem:[#allocation8 + $0x90] sm:$0xf] }
  0xf5   : > { %2211 = vmatpush.bf16.msra.mxu3 %v9116_v56  ;;  %v10967_v56 = vld [vmem:[#allocation34_spill] sm:$0xff] }
  0xf6   : > { %2170 = vmatpush.bf16.msra.mxu0 %v9027_v17  ;;  %v10948_v17 = vld [vmem:[#allocation40_spill] sm:$0xff] }
  0xf7   : > { %2184 = vmatpush.bf16.msra.mxu1 %v9031_v18  ;;  %v10949_v18 = vld [vmem:[#allocation20_spill] sm:$0xff] }
  0xf8   : > { %2198 = vmatpush.bf16.msra.mxu2 %v9033_v19  ;;  %v10950_v19 = vld [vmem:[#allocation21_spill] sm:$0xff] }
  0xf9   : > { %2212 = vmatpush.bf16.msra.mxu3 %v9128_v60  ;;  %v10968_v60 = vld [vmem:[#allocation61_spill] sm:$0xff] }
  0xfa   : > { %2171 = vmatpush.bf16.msra.mxu0 %v9039_v21  ;;  %v10951_v21 = vld [vmem:[#allocation22_spill] sm:$0xff] }
  0xfb   : > { %2185 = vmatpush.bf16.msra.mxu1 %v9043_v22  ;;  %v10952_v22 = vld [vmem:[#allocation45_spill] sm:$0xff] }
  0xfc   : > { %2199 = vmatpush.bf16.msra.mxu2 %v9045_v23  ;;  %v10953_v23 = vld [vmem:[#allocation23_spill] sm:$0xff] }
  0xfd   : > { %2213 = vmatpush.bf16.msra.mxu3 %v9140_v34  ;;  %v10969_v34 = vld [vmem:[#allocation35_spill] sm:$0xff] }
  0xfe   : > { %2172 = vmatpush.bf16.msra.mxu0 %v9051_v25  ;;  %v10954_v25 = vld [vmem:[#allocation24_spill] sm:$0xff] }
  0xff   : > { %2186 = vmatpush.bf16.msra.mxu1 %v9053_v26  ;;  %v10955_v26 = vld [vmem:[#allocation25_spill] sm:$0xff] }
 0x100   : > { %2200 = vmatpush.bf16.msra.mxu2 %v9055_v27  ;;  %v10956_v27 = vld [vmem:[#allocation49_spill] sm:$0xff] }
 0x101   : > { %2214 = vmatpush.bf16.msra.mxu3 %v9152_v38  ;;  %v7794_v38 = vld [vmem:[%s8961_s10 + $0x50] sm:$0xf] }
 0x102   : > { %2173 = vmatpush.bf16.msra.mxu0 %v9061_v29  ;;  %v10958_v29 = vld [vmem:[#allocation27_spill] sm:$0xff]  ;;  %v6799_v20 = vor.u32 %v7794_v38, %v6796_v59  ;;  %v9508_v59 = vld [vmem:[%s10997_s5] ss:$0 sm:$0xff] }
 0x103   : > { %2187 = vmatpush.bf16.msra.mxu1 %v9063_v30  ;;  %v10959_v30 = vld [vmem:[#allocation28_spill] sm:$0xff]  ;;  %v6826_v38 = vld [vmem:[%s8961_s10 + $0x6c] sm:$0xf] }
 0x104   : > { %2201 = vmatpush.bf16.msra.mxu2 %v9081_v40  ;;  %v10963_v40 = vld [vmem:[#allocation31_spill] sm:$0xff] }
 0x105   : > { %2215 = vmatpush.bf16.msra.mxu3 %v9163_v44  ;;  %2174 = vmatmul.bf16.vlgmr.msra.gmra.mxu0 %v6783_v9  ;;  %v10970_v44 = vld [vmem:[#allocation36_spill] sm:$0xff] }
 0x106   : > { %2222 = vmatpush.bf16.msrb.mxu0 %v9069_v32  ;;  %2188 = vmatmul.bf16.vlgmr.msra.gmra.mxu1 %v6787_v14  ;;  %v10961_v32 = vld [vmem:[#allocation29_spill] sm:$0xff]  ;;  %v10978_v9 = vld [vmem:[#allocation44_spill] sm:$0xff]  ;;  %v10982_v14 = vld [vmem:[#allocation50_spill] sm:$0xff] }
 0x107   : > { %2236 = vmatpush.bf16.msrb.mxu1 %v9071_v33  ;;  %2202 = vmatmul.bf16.vlgmr.msra.gmra.mxu2 %v6791_v10  ;;  %v10962_v33 = vld [vmem:[#allocation30_spill] sm:$0xff] }
 0x108   : > { %2250 = vmatpush.bf16.msrb.mxu2 %v9085_v42  ;;  %2216 = vmatmul.bf16.vlgmr.msra.gmra.mxu3 %v6795_v15  ;;  %v10964_v42 = vld [vmem:[#allocation57_spill] sm:$0xff]  ;;  %v10979_v10 = vld [vmem:[#allocation46_spill] sm:$0xff]  ;;  %v10983_v15 = vld [vmem:[#allocation51_spill] sm:$0xff] }
 0x109   : > { %2264 = vmatpush.bf16.msrb.mxu3 %v10948_v17  ;;  %v10984_v17 = vld [vmem:[#allocation52_spill] sm:$0xff] }
 0x10a   : > { %2223 = vmatpush.bf16.msrb.mxu0 %v10949_v18  ;;  %v9472_v18 = vpop.f32.mrf.mxu1 }
 0x10b   : > { %2237 = vmatpush.bf16.msrb.mxu1 %v10950_v19  ;;  %v10986_v19 = vld [vmem:[#allocation55_spill] sm:$0xff] }
 0x10c   : > { %2251 = vmatpush.bf16.msrb.mxu2 %v10951_v21  ;;  %v10987_v21 = vld [vmem:[#allocation56_spill] sm:$0xff] }
 0x10d   : > { %2265 = vmatpush.bf16.msrb.mxu3 %v10952_v22  ;;  %v10989_v22 = vld [vmem:[#allocation59_spill] sm:$0xff] }
 0x10e   : > { %2224 = vmatpush.bf16.msrb.mxu0 %v10953_v23  ;;  %v10990_v23 = vld [vmem:[#allocation60_spill] sm:$0xff] }
 0x10f   : > { %2238 = vmatpush.bf16.msrb.mxu1 %v10954_v25  ;;  %v10991_v25 = vld [vmem:[#allocation62_spill] sm:$0xff] }
 0x110   : > { %2252 = vmatpush.bf16.msrb.mxu2 %v10955_v26  ;;  %v10992_v26 = vld [vmem:[#allocation63_spill] sm:$0xff] }
 0x111   : > { %2266 = vmatpush.bf16.msrb.mxu3 %v10956_v27  ;;  %v10993_v27 = vld [vmem:[#allocation64_spill] sm:$0xff] }
 0x112   : > { %2225 = vmatpush.bf16.msrb.mxu0 %v10957_v28  ;;  %v9488_v28 = vpop.f32.mrf.mxu1 }
 0x113   : > { %2239 = vmatpush.bf16.msrb.mxu1 %v10958_v29  ;;  %v9491_v29 = vpop.f32.mrf.mxu3 }
 0x114   : > { %2253 = vmatpush.bf16.msrb.mxu2 %v10959_v30  ;;  %v10994_v30 = vld [vmem:[#allocation66_spill] sm:$0xff] }
 0x115   : > { %2267 = vmatpush.bf16.msrb.mxu3 %v10960_v31  ;;  %v6812_v31 = vld [vmem:[%s8961_s10 + $0xd4] sm:$0xf0] }
 0x116   : > { %2226 = vmatpush.bf16.msrb.mxu0 %v10961_v32  ;;  %v7797_v32 = vld [vmem:[%s8961_s10 + $0x68] sm:$0xf] }
 0x117   : > { %2240 = vmatpush.bf16.msrb.mxu1 %v10962_v33  ;;  %v10995_v33 = vld [vmem:[#allocation67_spill] sm:$0xff] }
 0x118   : > { %2254 = vmatpush.bf16.msrb.mxu2 %v10963_v40  ;;  %v10996_v40 = vld [vmem:[#allocation68_spill] sm:$0xff] }
 0x119   : > { %2268 = vmatpush.bf16.msrb.mxu3 %v10964_v42  ;;  %v6820_v42 = vld [vmem:[%s8961_s10 + $0xdc] sm:$0xf0] }
 0x11a   : > { %2227 = vmatpush.bf16.msrb.mxu0 %v10965_v46  ;;  %v6818_v46 = vld [vmem:[%s8961_s10 + $0x64] sm:$0xf]  ;;  %v6823_v47 = vor.u32 %v7797_v32, %v6820_v42  ;;  %v6876_v32 = vld [vmem:[#allocation8 + $0x54] sm:$0xf0] }
 0x11b   : > { %2241 = vmatpush.bf16.msrb.mxu1 %v10966_v52  ;;  %v7804_v52 = vld [vmem:[%s8961_s10 + $0xd8] sm:$0xf0] }
 0x11c   : > { %2255 = vmatpush.bf16.msrb.mxu2 %v10967_v56  ;;  %v6922_v56 = vld [vmem:[#allocation8 + $0xa8] sm:$0xf]  ;;  %v6819_v54 = vor.u32 %v7804_v52, %v6818_v46  ;;  %v2366_v52 = vld [vmem:[%s9550_s13] sm:$0xff] }
 0x11d   : > { %2269 = vmatpush.bf16.msrb.mxu3 %v10968_v60  ;;  %v7829_v60 = vld [vmem:[#allocation8 + $0xb0] sm:$0xf0] }
 0x11e   : > { %2228 = vmatpush.bf16.msrb.mxu0 %v10969_v34 }
 0x11f   : > { %2242 = vmatpush.bf16.msrb.mxu1 %v10970_v44  ;;  %v7805_v44 = vld [vmem:[%s8961_s10 + $0xe0] sm:$0xf0] }
 0x120   : > { %2256 = vmatpush.bf16.msrb.mxu2 %v10971_v45  ;;  %v6924_v45 = vld [vmem:[#allocation8 + $0xb4] sm:$0xf0]  ;;  %v6827_v8 = vor.u32 %v7805_v44, %v6826_v38  ;;  %v11008_v44 = vld [vmem:[#allocation77_spill] sm:$0xff] }
 0x121   : > { %2270 = vmatpush.bf16.msrb.mxu3 %v10972_v49  ;;  %v10998_v49 = vld [vmem:[#allocation69_spill] sm:$0xff] }
 0x122   : > { %2229 = vmatpush.bf16.msrb.mxu0 %v10973_v39  ;;  %v7826_v39 = vld [vmem:[#allocation8 + $0x98] sm:$0xf0] }
 0x123   : > { %2243 = vmatpush.bf16.msrb.mxu1 %v10974_v1  ;;  %v6898_v1 = vld [vmem:[#allocation8 + $0x78] sm:$0xf] }
 0x124   : > { %2257 = vmatpush.bf16.msrb.mxu2 %v10975_v2  ;;  %v9530_v2 = vpop.f32.mrf.mxu3 }
 0x125   : > { %2271 = vmatpush.bf16.msrb.mxu3 %v9267_v35  ;;  %2230 = vmatmul.bf16.vlgmr.msrb.gmra.mxu0 %v6799_v20  ;;  %v1855_v35 = vpop.f32.mrf.mxu0  ;;  %v7825_v20 = vld [vmem:[#allocation8 + $0x94] sm:$0xf] }
 0x126   : > { %2278 = vmatpush.bf16.msra.mxu0 %v10976_v5  ;;  %2244 = vmatmul.bf16.vlgmr.msrb.gmra.mxu1 %v6803_v3  ;;  %v11000_v3 = vld [vmem:[#allocation70_spill] sm:$0xff]  ;;  %v7823_v5 = vld [vmem:[#allocation8 + $0x80] sm:$0xf0] }
 0x127   : > { %2292 = vmatpush.bf16.msra.mxu1 %v10977_v6  ;;  %2258 = vmatmul.bf16.vlgmr.msrb.gmra.mxu2 %v6807_v24  ;;  %v7822_v6 = vld [vmem:[#allocation8 + $0x7c] sm:$0xf] }
 0x128   : > { %2306 = vmatpush.bf16.msra.mxu2 %v10978_v9  ;;  %2272 = vmatmul.bf16.vlgmr.msrb.gmra.mxu3 %v6811_v7  ;;  %v6900_v7 = vld [vmem:[#allocation8 + $0x84] sm:$0xf0]  ;;  %v11001_v9 = vld [vmem:[#allocation71_spill] sm:$0xff] }
 0x129   : > { %2320 = vmatpush.bf16.msra.mxu3 %v9274_v63  ;;  %v10985_v63 = vld [vmem:[#allocation54_spill] sm:$0xff] }
 0x12a   : > { %2279 = vmatpush.bf16.msra.mxu0 %v10979_v10 }
 0x12b   : > { %2293 = vmatpush.bf16.msra.mxu1 %v10980_v11  ;;  %v6899_v11 = vor.u32 %v7823_v5, %v6898_v1  ;;  %v7830_v1 = vld [vmem:[#allocation8 + $0xb8] sm:$0xf0]  ;;  %v7798_v5 = vld [vmem:[%s8961_s10 + $0x70] sm:$0xf] }
 0x12c   : > { %2307 = vmatpush.bf16.msra.mxu2 %v10981_v13  ;;  %v6903_v13 = vor.u32 %v7822_v6, %v6900_v7  ;;  %v6828_v6 = vld [vmem:[%s8961_s10 + $0xe4] sm:$0xf0]  ;;  %v6834_v7 = vld [vmem:[%s8961_s10 + $0x74] sm:$0xf] }
 0x12d   : > { %2321 = vmatpush.bf16.msra.mxu3 %v9298_v50  ;;  %v10988_v50 = vld [vmem:[#allocation58_spill] sm:$0xff] }
 0x12e   : > { %2280 = vmatpush.bf16.msra.mxu0 %v10982_v14 }
 0x12f   : > { %2294 = vmatpush.bf16.msra.mxu1 %v10983_v15  ;;  %v11002_v15 = vld [vmem:[#allocation72_spill] sm:$0xff] }
 0x130   : > { %2308 = vmatpush.bf16.msra.mxu2 %v10984_v17  ;;  %v6886_v17 = vld [vmem:[#allocation8 + $0x60] sm:$0xf] }
 0x131   : > { %2322 = vmatpush.bf16.msra.mxu3 %v9308_v57  ;;  %v9480_v57 = vpop.f32.mrf.mxu2 }
 0x132   : > { %2281 = vmatpush.bf16.msra.mxu0 %v10985_v63  ;;  %v7819_v63 = vld [vmem:[#allocation8 + $0x64] sm:$0xf] }
 0x133   : > { %2295 = vmatpush.bf16.msra.mxu1 %v10986_v19 }
 0x134   : > { %2309 = vmatpush.bf16.msra.mxu2 %v10987_v21  ;;  %v11003_v21 = vld [vmem:[#allocation73_spill] sm:$0xff] }
 0x135   : > { %2323 = vmatpush.bf16.msra.mxu3 %v9318_v48  ;;  %v9486_v48 = vpop.f32.mrf.mxu0 }
 0x136   : > { %2282 = vmatpush.bf16.msra.mxu0 %v10988_v50  ;;  %v1858_v19 = vadd.f32 %v9508_v59, %v9486_v48  ;;  %v6888_v50 = vld [vmem:[#allocation8 + $0x6c] sm:$0xf0] }
 0x137   : > { %2296 = vmatpush.bf16.msra.mxu1 %v10989_v22 }
 0x138   : > { %2310 = vmatpush.bf16.msra.mxu2 %v10990_v23  ;;  %v6891_v23 = vor.u32 %v7819_v63, %v6888_v50  ;;  %v1872_v48 = vadd.f32 %v9488_v28, %v1858_v19  ;;  %v6862_v28 = vld [vmem:[#allocation8 + $0x30] sm:$0xf]  ;;  %v7807_v63 = vld [vmem:[#allocation8 + $0x4] sm:$0xf] }
 0x139   : > { %2324 = vmatpush.bf16.msra.mxu3 %v9328_v58  ;;  %v7796_v58 = vld [vmem:[%s8961_s10 + $0x60] sm:$0xf]  ;;  %v9510_v36 = vpop.f32.mrf.mxu2 }
 0x13a   : > { %2283 = vmatpush.bf16.msra.mxu0 %v10991_v25  ;;  %v6815_v34 = vor.u32 %v7796_v58, %v6812_v31  ;;  %v7816_v58 = vld [vmem:[#allocation8 + $0x4c] sm:$0xf]  ;;  %v1886_v38 = vadd.f32 %v9510_v36, %v1872_v48  ;;  %v6850_v36 = vld [vmem:[#allocation8 + $0x18] sm:$0xf]  ;;  %v6840_v19 = vld [vmem:[#allocation8 + $0xc] sm:$0xf0] }
 0x13b   : > { %2297 = vmatpush.bf16.msra.mxu1 %v10992_v26  ;;  %v11004_v26 = vld [vmem:[#allocation74_spill] sm:$0xff]  ;;  %v6879_v46 = vor.u32 %v7816_v58, %v6876_v32  ;;  %v6906_v48 = vld [vmem:[#allocation8 + $0x80] sm:$0xf] }
 0x13c   : > { %2311 = vmatpush.bf16.msra.mxu2 %v10993_v27  ;;  %v6874_v27 = vld [vmem:[#allocation8 + $0x48] sm:$0xf] }
 0x13d   : > { %2325 = vmatpush.bf16.msra.mxu3 %v9338_v51  ;;  %v7828_v51 = vld [vmem:[#allocation8 + $0xac] sm:$0xf] }
 0x13e   : > { %2284 = vmatpush.bf16.msra.mxu0 %v10994_v30  ;;  %v6927_v0 = vor.u32 %v7828_v51, %v6924_v45  ;;  %v7817_v30 = vld [vmem:[#allocation8 + $0x50] sm:$0xf0]  ;;  %v7814_v51 = vld [vmem:[#allocation8 + $0x38] sm:$0xf0]  ;;  %v6864_v45 = vld [vmem:[#allocation8 + $0x3c] sm:$0xf0] }
 0x13f   : > { %2298 = vmatpush.bf16.msra.mxu1 %v10995_v33  ;;  %v6875_v42 = vor.u32 %v7817_v30, %v6874_v27  ;;  %v6843_v27 = vor.u32 %v7807_v63, %v6840_v19 }
 0x140   : > { %2312 = vmatpush.bf16.msra.mxu2 %v10996_v40  ;;  %v9557_v40 = vpop.f32.mrf.mxu3 }
 0x141   : > { %2326 = vmatpush.bf16.msra.mxu3 %v9348_v12  ;;  %v6923_v12 = vor.u32 %v7829_v60, %v6922_v56  ;;  %v9539_v14 = vpop.f32.mrf.mxu2  ;;  %v11007_v56 = vld [vmem:[#allocation76_spill] sm:$0xff]  ;;  %v8713_v60 = vmov 1  }
 0x142   : > { %2285 = vmatpush.bf16.msra.mxu0 %v9269_v41  ;;  %v6912_v41 = vld [vmem:[#allocation8 + $0x9c] sm:$0xf0]  ;;  %8132 = vset.pattern.permute.xlu1 %v8713_v60 }
 0x143   : > { %2299 = vmatpush.bf16.msra.mxu1 %v9271_v62  ;;  %v1856_v62 = vadd.f32 %v9508_v59, %v1855_v35  ;;  %v6915_v24 = vor.u32 %v7825_v20, %v6912_v41  ;;  %v7820_v35 = vld [vmem:[#allocation8 + $0x68] sm:$0xf0]  ;;  %2383 = vperm.xlu1 %8132, %v2366_v52   ;;  %v1900_v20 = vadd.f32 %v9530_v2, %v1886_v38  ;;  %v11011_v2 = vld [vmem:[#allocation80_spill] sm:$0xff]  ;;  %v6882_v38 = vld [vmem:[#allocation8 + $0x50] sm:$0xf] }
 0x144   : > { %2313 = vmatpush.bf16.msra.mxu2 %v9289_v53  ;;  %v9526_v53 = vpop.f32.mrf.mxu0  ;;  %v6887_v22 = vor.u32 %v7820_v35, %v6886_v17  ;;  %v7808_v17 = vld [vmem:[#allocation8 + $0x8] sm:$0xf0] }
 0x145   : > { %2327 = vmatpush.bf16.msra.mxu3 %v9357_v55  ;;  %2286 = vmatmul.bf16.vlgmr.msra.gmra.mxu0 %v6815_v34  ;;  %v6911_v55 = vor.u32 %v7826_v39, %v6910_v37  ;;  %v1870_v10 = vadd.f32 %v9472_v18, %v1856_v62  ;;  %v7813_v34 = vld [vmem:[#allocation8 + $0x34] sm:$0xf]  ;;  %v7811_v37 = vld [vmem:[#allocation8 + $0x20] sm:$0xf0]  ;;  %v7810_v39 = vld [vmem:[#allocation8 + $0x1c] sm:$0xf] }
 0x146   : > { %2334 = vmatpush.bf16.msrb.mxu0 %v9276_v61  ;;  %2300 = vmatmul.bf16.vlgmr.msra.gmra.mxu1 %v6819_v54  ;;  %v9528_v61 = vpop.f32.mrf.mxu1  ;;  %v11010_v62 = vld [vmem:[#allocation79_spill] sm:$0xff] }
 0x147   : > { %2348 = vmatpush.bf16.msrb.mxu1 %v10998_v49  ;;  %2314 = vmatmul.bf16.vlgmr.msra.gmra.mxu2 %v6823_v47  ;;  %v1884_v18 = vadd.f32 %v9480_v57, %v1870_v10  ;;  %v11006_v57 = vld [vmem:[#allocation75_spill] sm:$0xff] }
 0x148   : > { %2576 = vmatpush.bf16.msrb.mxu2 %v6923_v12  ;;  %2328 = vmatmul.bf16.vlgmr.msra.gmra.mxu3 %v6827_v8  ;;  %v6863_v12 = vor.u32 %v7814_v51, %v6862_v28  ;;  %v11009_v8 = vld [vmem:[#allocation78_spill] sm:$0xff]  ;;  %v7806_v35 = vld [vmem:[%s8961_s10 + $0xe8] sm:$0xf0]  ;;  %s11017_s10 = sld [smem:[#allocation93_spill]] }
 0x149   : > { %2600 = vmatpush.bf16.msrb.mxu3 %v6927_v0  ;;  %v1898_v33 = vadd.f32 %v9491_v29, %v1884_v18  ;;  %v8714_v29 = vmov 0   ;;  %v1941_v54 = vpop.f32.mrf.mxu2  ;;  %v6867_v0 = vor.u32 %v7813_v34, %v6864_v45  ;;  %v6918_v18 = vld [vmem:[#allocation8 + $0x98] sm:$0xf] }
 0x14a   : > { %2335 = vmatpush.bf16.msrb.mxu0 %v11000_v3  ;;  %8131 = vset.pattern.permute.xlu0 %v8714_v29 }
 0x14b   : > { %2349 = vmatpush.bf16.msrb.mxu1 %v11001_v9  ;;  %v1912_v47 = vadd.f32 %v9526_v53, %v1898_v33  ;;  %2371 = vperm.xlu0 %8131, %v2366_v52   ;;  %v6852_v53 = vld [vmem:[#allocation8 + $0x24] sm:$0xf0]  ;;  %v6851_v9 = vor.u32 %v7811_v37, %v6850_v36 }
 0x14c   : > { %2577 = vmatpush.bf16.msrb.mxu2 %v6911_v55  ;;  %v1913_v25 = vpop.f32.mrf.mxu0  ;;  %v6855_v10 = vor.u32 %v7810_v39, %v6852_v53  ;;  %v6894_v52 = vld [vmem:[#allocation8 + $0x68] sm:$0xf]  ;;  %v7812_v53 = vld [vmem:[#allocation8 + $0x28] sm:$0xf0] }
 0x14d   : > { %2601 = vmatpush.bf16.msrb.mxu3 %v6915_v24  ;;  %v1926_v55 = vadd.f32 %v9528_v61, %v1912_v47  ;;  %v6930_v24 = vld [vmem:[#allocation8 + $0xb0] sm:$0xf]  ;;  %v1914_v3 = vadd.f32 %v1913_v25, %v1900_v20  ;;  %v6831_v25 = vor.u32 %v7798_v5, %v6828_v6  ;;  %v6846_v5 = vld [vmem:[#allocation8 + $0x8] sm:$0xf]  ;;  %v7809_v6 = vld [vmem:[#allocation8 + $0x10] sm:$0xf0] }
 0x14e   : > { %2336 = vmatpush.bf16.msrb.mxu0 %v11002_v15  ;;  %v9553_v31 = vpop.f32.mrf.mxu1  ;;  %v6838_v15 = vld [vmem:[#allocation8] sm:$0xf]  ;;  %v6931_v61 = vor.u32 %v7830_v1, %v6930_v24 }
 0x14f   : > { %2350 = vmatpush.bf16.msrb.mxu1 %v11003_v21  ;;  %v1940_v21 = vadd.f32 %v9539_v14, %v1926_v55 }
 0x150   : > { %2578 = vmatpush.bf16.msrb.mxu2 %v6899_v11  ;;  %v1955_v11 = vpop.f32.mrf.mxu3 }
 0x151   : > { %2602 = vmatpush.bf16.msrb.mxu3 %v6903_v13  ;;  %v2367_v13 = vld [vmem:[%s9550_s13 + $0x8] sm:$0xff]  ;;  %v1995_v50 = vpop.f32.mrf.mxu2  ;;  %v1954_v32 = vadd.f32 %v9557_v40, %v1940_v21  ;;  %s11015_s13 = sld [smem:[#allocation91_spill]] }
 0x152   : > { %2337 = vmatpush.bf16.msrb.mxu0 %v11004_v26  ;;  %2387 = vperm.xlu1 %8132, %v2367_v13   ;;  %v6839_v26 = vor.u32 %v7808_v17, %v6838_v15 }
 0x153   : > { %2351 = vmatpush.bf16.msrb.mxu1 %v11006_v57  ;;  %2376 = vperm.xlu0 %8131, %v2367_v13   ;;  %v7824_v57 = vld [vmem:[#allocation8 + $0x88] sm:$0xf0]  ;;  %v6847_v13 = vor.u32 %v7809_v6, %v6846_v5 }
 0x154   : > { %2579 = vmatpush.bf16.msrb.mxu2 %v6887_v22  ;;  %v1967_v49 = vpop.f32.mrf.mxu0  ;;  %v7827_v22 = vld [vmem:[#allocation8 + $0xa0] sm:$0xf0] }
 0x155   : > { %2603 = vmatpush.bf16.msrb.mxu3 %v6891_v23  ;;  %v1928_v23 = vadd.f32 %v9553_v31, %v1914_v3  ;;  %v6919_v14 = vor.u32 %v7827_v22, %v6918_v18 }
 0x156   : > { %2338 = vmatpush.bf16.msrb.mxu0 %v11007_v56  ;;  %v1981_v41 = vpop.f32.mrf.mxu1  ;;  %v7821_v56 = vld [vmem:[#allocation8 + $0x70] sm:$0xf0] }
 0x157   : > { %2352 = vmatpush.bf16.msrb.mxu1 %v11008_v44  ;;  %v1942_v30 = vadd.f32 %v1941_v54, %v1928_v23  ;;  %v6895_v34 = vor.u32 %v7821_v56, %v6894_v52  ;;  %v7818_v44 = vld [vmem:[#allocation8 + $0x58] sm:$0xf0] }
 0x158   : > { %2580 = vmatpush.bf16.msrb.mxu2 %v6875_v42  ;;  %v2009_v31 = vpop.f32.mrf.mxu3 }
 0x159   : > { %2604 = vmatpush.bf16.msrb.mxu3 %v6879_v46  ;;  %v1956_v42 = vadd.f32 %v1955_v11, %v1942_v30  ;;  %v6907_v46 = vor.u32 %v7824_v57, %v6906_v48  ;;  %v1997_v28 = vpop.f32.mrf.mxu2 }
 0x15a   : > { %2339 = vmatpush.bf16.msrb.mxu0 %v11009_v8  ;;  %v7815_v8 = vld [vmem:[#allocation8 + $0x40] sm:$0xf0] }
 0x15b   : > { %2353 = vmatpush.bf16.msrb.mxu1 %v11010_v62  ;;  %8133 = vset.pattern.permute.xlu0 %v8713_v60  ;;  %v6858_v62 = vld [vmem:[#allocation8 + $0x20] sm:$0xf] }
 0x15c   : > { %2581 = vmatpush.bf16.msrb.mxu2 %v6863_v12  ;;  %v1969_v58 = vpop.f32.mrf.mxu0  ;;  %v6883_v12 = vor.u32 %v7818_v44, %v6882_v38  ;;  %v6859_v3 = vor.u32 %v7812_v53, %v6858_v62  ;;  %v9611_v53 = vld [vmem:[#allocation5 + $0x20] sm:$0xff] }
 0x15d   : > { %2605 = vmatpush.bf16.msrb.mxu3 %v6867_v0 }
 0x15e   : > { %2340 = vmatpush.bf16.msrb.mxu0 %v11011_v2  ;;  %v1983_v33 = vpop.f32.mrf.mxu1 }
 0x15f   : > { %2354 = vmatpush.bf16.msrb.mxu1 %v9354_v43  ;;  %v6835_v43 = vor.u32 %v7806_v35, %v6834_v7 }
 0x160   : > { %2582 = vmatpush.bf16.msrb.mxu2 %v6851_v9  ;;  %v2011_v0 = vpop.f32.mrf.mxu3  ;;  %v8135_v9 = vld [vmem:[%s11012_s20] ss:$0 sm:$0xff] }
 0x161   : > { %2606 = vmatpush.bf16.msrb.mxu3 %v6855_v10 }
 0x162   : > { %2341 = vmatpush.bf16.msrb.mxu0 %v9360_v16  ;;  %v1968_v16 = vadd.f32 %v1967_v49, %v1954_v32  ;;  %v6870_v49 = vld [vmem:[#allocation8 + $0x38] sm:$0xf] }
 0x163   : > { %2355 = vmatpush.bf16.msrb.mxu1 %v9362_v4  ;;  %v1970_v4 = vadd.f32 %v1969_v58, %v1956_v42  ;;  %v6871_v20 = vor.u32 %v7815_v8, %v6870_v49 }
 0x164   : > { %2583 = vmatpush.bf16.msrb.mxu2 %v6839_v26  ;;  %v1982_v51 = vadd.f32 %v1981_v41, %v1968_v16  ;;  %v2023_v40 = vpop.f32.mrf.mxu0 }
 0x165   : > { %2342 = vmatmul.bf16.vlgmr.msrb.gmra.mxu0 %v6831_v25  ;;  %2607 = vmatpush.bf16.msrb.mxu3 %v6843_v27  ;;  %v1984_v45 = vadd.f32 %v1983_v33, %v1970_v4 }
 0x166   : > { %2624 = vmatpush.bf16.msra.mxu0 %v6931_v61  ;;  %2356 = vmatmul.bf16.vlgmr.msrb.gmra.mxu1 %v6835_v43  ;;  %v1996_v29 = vadd.f32 %v1995_v50, %v1982_v51  ;;  %v2037_v47 = vpop.f32.mrf.mxu1 }
 0x167   : > { %v1998_v54 = vadd.f32 %v1997_v28, %v1984_v45  ;;  %v9593_v45 = vld [vmem:[#allocation5 + $0x38] sm:$0xff] }
 0x168   : > { %v2010_v36 = vadd.f32 %v2009_v31, %v1996_v29  ;;  %2699 = vmatpush.bf16.msra.mxu1 %v9593_v45  ;;  %2716 = vmatpush.bf16.msra.mxu2 %v9593_v45 }
 0x169   : > { %v2012_v60 = vadd.f32 %v2011_v0, %v1998_v54  ;;  %2733 = vmatpush.bf16.msra.mxu3 %v9593_v45 }
 0x16a   : > { %2625 = vmatpush.bf16.msra.mxu0 %v6919_v14  ;;  %v2051_v37 = vpop.f32.mrf.mxu2  ;;  %v2024_v39 = vadd.f32 %v2023_v40, %v2010_v36  ;;  %v9602_v36 = vld [vmem:[#allocation5 + $0x28] sm:$0xff] }
 0x16b   : > { %v2161_v35 = vpop.f32.mrf.mxu3 }
 0x16c   : > { %v2025_v41 = vpop.f32.mrf.mxu0  ;;  %v2038_v1 = vadd.f32 %v2037_v47, %v2024_v39  ;;  %v2162_v25 = vadd.f32 %v9508_v59, %v2161_v35  ;;  %v9596_v47 = vld [vmem:[#allocation5 + $0x30] sm:$0xff] }
 0x16d   : > { %v2026_v55 = vadd.f32 %v2025_v41, %v2012_v60  ;;  %2700 = vmatpush.bf16.msra.mxu1 %v9596_v47  ;;  %2717 = vmatpush.bf16.msra.mxu2 %v9596_v47 }
 0x16e   : > { %2626 = vmatpush.bf16.msra.mxu0 %v6907_v46  ;;  %v2039_v24 = vpop.f32.mrf.mxu1  ;;  %v2052_v7 = vadd.f32 %v2051_v37, %v2038_v1  ;;  %2734 = vmatpush.bf16.msra.mxu3 %v9596_v47 }
 0x16f   : > { %v2040_v10 = vadd.f32 %v2039_v24, %v2026_v55 }
 0x170   : > { %v9585_v15 = vadd.f32 %v8135_v9, %v2052_v7 }
 0x171   : > { %2701 = vmatpush.bf16.msra.mxu1 %v9602_v36  ;;  %2718 = vmatpush.bf16.msra.mxu2 %v9602_v36 }
 0x172   : > { %2627 = vmatpush.bf16.msra.mxu0 %v6895_v34  ;;  %v2053_v11 = vpop.f32.mrf.mxu2  ;;  %2735 = vmatpush.bf16.msra.mxu3 %v9602_v36 }
 0x173   : > { %v2054_v2 = vadd.f32 %v2053_v11, %v2040_v10  ;;  %v2163_v21 = vpop.f32.mrf.mxu3  ;;  %v9617_v11 = vld [vmem:[#allocation5 + $0x18] sm:$0xff] }
 0x174   : > { %v2164_v58 = vadd.f32 %v9508_v59, %v2163_v21 }
 0x175   : > { %v9587_v17 = vadd.f32 %v8135_v9, %v2054_v2  ;;  %2702 = vmatpush.bf16.msra.mxu1 %v9611_v53  ;;  %2719 = vmatpush.bf16.msra.mxu2 %v9611_v53 }
 0x176   : > { %2628 = vmatpush.bf16.msra.mxu0 %v6883_v12  ;;  %2736 = vmatpush.bf16.msra.mxu3 %v9611_v53 }
 0x177   : > { %v2437_v61 = vpack.c.bf16 %v9587_v17, %v9585_v15 }
 0x179   : > { %2584 = vmatmul.bf16.vlgmr.msrb.gmra.mxu2 %v2437_v61  ;;  %2608 = vmatmul.bf16.vlgmr.msrb.gmra.mxu3 %v2437_v61 }
 0x17a   : > { %2629 = vmatpush.bf16.msra.mxu0 %v6871_v20  ;;  %2703 = vmatpush.bf16.msra.mxu1 %v9617_v11 }
 0x17b   : > { %2720 = vmatpush.bf16.msra.mxu2 %v9617_v11  ;;  %2737 = vmatpush.bf16.msra.mxu3 %v9617_v11 }
 0x17e   : > { %2630 = vmatpush.bf16.msra.mxu0 %v6859_v3 }
 0x182   : > { %2631 = vmatpush.bf16.msra.mxu0 %v6847_v13  ;;  %v2175_v63 = vpop.f32.mrf.mxu0 }
 0x183   : > { %v2189_v19 = vpop.f32.mrf.mxu1  ;;  %v2176_v43 = vadd.f32 %v2175_v63, %v2162_v25  ;;  %v2368_v63 = vld [vmem:[%s11013_s6] sm:$0x3] }
 0x184   : > { %v2379_v25 = vperm.slane %v2368_v63, 0 }
 0x185   : > { %2632 = vmatmul.bf16.vlgmr.msra.gmra.mxu0 %v2437_v61  ;;  %v2190_v48 = vadd.f32 %v2189_v19, %v2176_v43  ;;  %v9621_v61 = vld [vmem:[#allocation5 + $0x10] sm:$0xff]  ;;  %v9635_v43 = vld [vmem:[#allocation5 + $0x8] sm:$0xff] }
 0x186   : > { %2807 = vmatpush.bf16.msrb.mxu0 %v9593_v45  ;;  %2704 = vmatpush.bf16.msra.mxu1 %v9621_v61 }
 0x187   : > { %2721 = vmatpush.bf16.msra.mxu2 %v9621_v61  ;;  %2738 = vmatpush.bf16.msra.mxu3 %v9621_v61 }
 0x18a   : > { %v2203_v50 = vpop.f32.mrf.mxu2  ;;  %v2177_v18 = vpop.f32.mrf.mxu0  ;;  %2808 = vmatpush.bf16.msrb.mxu0 %v9596_v47  ;;  %2705 = vmatpush.bf16.msra.mxu1 %v9635_v43 }
 0x18b   : > { %v2191_v22 = vpop.f32.mrf.mxu1  ;;  %v2217_v23 = vpop.f32.mrf.mxu3  ;;  %v2204_v57 = vadd.f32 %v2203_v50, %v2190_v48  ;;  %v2178_v32 = vadd.f32 %v2177_v18, %v2164_v58  ;;  %v8136_v50 = vld [vmem:[%s11012_s20 + $0x1] ss:$0 sm:$0xff]  ;;  %2722 = vmatpush.bf16.msra.mxu2 %v9635_v43  ;;  %2739 = vmatpush.bf16.msra.mxu3 %v9635_v43 }
 0x18d   : > { %v2218_v42 = vadd.f32 %v2217_v23, %v2204_v57  ;;  %v2192_v16 = vadd.f32 %v2191_v22, %v2178_v32  ;;  %v2390_v22 = vperm.slane %v2368_v63, 1  ;;  %v9643_v57 = vld [vmem:[#allocation5] sm:$0xff] }
 0x18e   : > { %2809 = vmatpush.bf16.msrb.mxu0 %v9602_v36  ;;  %2706 = vmatpush.bf16.msra.mxu1 %v9643_v57 }
 0x18f   : > { %2723 = vmatpush.bf16.msra.mxu2 %v9643_v57  ;;  %2740 = vmatpush.bf16.msra.mxu3 %v9643_v57 }
 0x192   : > { %v2205_v26 = vpop.f32.mrf.mxu2  ;;  %2810 = vmatpush.bf16.msrb.mxu0 %v9611_v53  ;;  %2790 = vmatpush.bf16.msrb.mxu1 %v9593_v45 }
 0x193   : > { %v2219_v14 = vpop.f32.mrf.mxu3  ;;  %v2206_v56 = vadd.f32 %v2205_v26, %v2192_v16  ;;  %v8137_v16 = vld [vmem:[%s11014_s7] ss:$0 sm:$0xff]  ;;  %2824 = vmatpush.bf16.msrb.mxu2 %v9593_v45  ;;  %2881 = vmatpush.bf16.msrb.mxu3 %v9593_v45 }
 0x195   : > { %v2220_v34 = vadd.f32 %v2219_v14, %v2206_v56 }
 0x196   : > { %2811 = vmatpush.bf16.msrb.mxu0 %v9617_v11  ;;  %2791 = vmatpush.bf16.msrb.mxu1 %v9596_v47 }
 0x197   : > { %2825 = vmatpush.bf16.msrb.mxu2 %v9596_v47  ;;  %2882 = vmatpush.bf16.msrb.mxu3 %v9596_v47 }
 0x19a   : > { %2812 = vmatpush.bf16.msrb.mxu0 %v9621_v61  ;;  %2792 = vmatpush.bf16.msrb.mxu1 %v9602_v36 }
 0x19b   : > { %2826 = vmatpush.bf16.msrb.mxu2 %v9602_v36  ;;  %2883 = vmatpush.bf16.msrb.mxu3 %v9602_v36 }
 0x19e   : > { %2813 = vmatpush.bf16.msrb.mxu0 %v9635_v43  ;;  %2793 = vmatpush.bf16.msrb.mxu1 %v9611_v53 }
 0x19f   : > { %2827 = vmatpush.bf16.msrb.mxu2 %v9611_v53  ;;  %2884 = vmatpush.bf16.msrb.mxu3 %v9611_v53 }
 0x1a2   : > { %v2231_v27 = vpop.f32.mrf.mxu0  ;;  %2814 = vmatpush.bf16.msrb.mxu0 %v9643_v57  ;;  %2794 = vmatpush.bf16.msrb.mxu1 %v9617_v11 }
 0x1a3   : > { %v2245_v30 = vpop.f32.mrf.mxu1  ;;  %v2232_v4 = vadd.f32 %v2231_v27, %v2218_v42  ;;  %2828 = vmatpush.bf16.msrb.mxu2 %v9617_v11  ;;  %2885 = vmatpush.bf16.msrb.mxu3 %v9617_v11 }
 0x1a5   : > { %v2246_v40 = vadd.f32 %v2245_v30, %v2232_v4 }
 0x1a6   : > { %2915 = vmatpush.bf16.msra.mxu0 %v9593_v45  ;;  %2795 = vmatpush.bf16.msrb.mxu1 %v9621_v61 }
 0x1a7   : > { %2829 = vmatpush.bf16.msrb.mxu2 %v9621_v61  ;;  %2886 = vmatpush.bf16.msrb.mxu3 %v9621_v61 }
 0x1aa   : > { %v2259_v33 = vpop.f32.mrf.mxu2  ;;  %v2233_v31 = vpop.f32.mrf.mxu0  ;;  %2916 = vmatpush.bf16.msra.mxu0 %v9596_v47  ;;  %2796 = vmatpush.bf16.msrb.mxu1 %v9635_v43 }
 0x1ab   : > { %v2247_v46 = vpop.f32.mrf.mxu1  ;;  %v2273_v52 = vpop.f32.mrf.mxu3  ;;  %v2234_v44 = vadd.f32 %v2233_v31, %v2220_v34  ;;  %v2260_v59 = vadd.f32 %v2259_v33, %v2246_v40  ;;  %2830 = vmatpush.bf16.msrb.mxu2 %v9635_v43  ;;  %2887 = vmatpush.bf16.msrb.mxu3 %v9635_v43 }
 0x1ad   : > { %v2248_v54 = vadd.f32 %v2247_v46, %v2234_v44  ;;  %v2274_v0 = vadd.f32 %v2273_v52, %v2260_v59 }
 0x1ae   : > { %2917 = vmatpush.bf16.msra.mxu0 %v9602_v36  ;;  %2797 = vmatpush.bf16.msrb.mxu1 %v9643_v57 }
 0x1af   : > { %2831 = vmatpush.bf16.msrb.mxu2 %v9643_v57  ;;  %2888 = vmatpush.bf16.msrb.mxu3 %v9643_v57 }
 0x1b2   : > { %v2261_v28 = vpop.f32.mrf.mxu2  ;;  %2918 = vmatpush.bf16.msra.mxu0 %v9611_v53 }
 0x1b3   : > { %v2275_v29 = vpop.f32.mrf.mxu3  ;;  %v2262_v49 = vadd.f32 %v2261_v28, %v2248_v54  ;;  %v8138_v28 = vld [vmem:[%s11012_s20 + $0x2] ss:$0 sm:$0xff] }
 0x1b5   : > { %v2276_v20 = vadd.f32 %v2275_v29, %v2262_v49  ;;  %v2384_v6 = vpop.permute.xlu1 %2383  ;;  %v9685_v29 = vld [vmem:[%s10770_s9] sm:$0x7] }
 0x1b6   : > { %v2391_v48 = vmul.f32 %v2390_v22, %v2384_v6  ;;  %v2442_v59 = vperm.slane %v9685_v29, 0  ;;  %v2443_v54 = vperm.slane %v9685_v29, 1  ;;  %2919 = vmatpush.bf16.msra.mxu0 %v9617_v11 }
 0x1ba   : > { %2920 = vmatpush.bf16.msra.mxu0 %v9621_v61 }
 0x1bd   : > { %v2372_v7 = vpop.permute.xlu0 %2371 }
 0x1be   : > { %v2380_v32 = vmul.f32 %v2379_v25, %v2372_v7  ;;  %2921 = vmatpush.bf16.msra.mxu0 %v9635_v43 }
 0x1c0   : > { %v2393_v46 = vadd.f32 %v2391_v48, %v2380_v32 }
 0x1c2   : > { %v2287_v51 = vpop.f32.mrf.mxu0  ;;  %v2399_v56 = vadd.f32 %v8137_v16, %v2393_v46  ;;  %2922 = vmatpush.bf16.msra.mxu0 %v9643_v57 }
 0x1c3   : > { %v2301_v38 = vpop.f32.mrf.mxu1  ;;  %v2288_v37 = vadd.f32 %v2287_v51, %v2274_v0 }
 0x1c4   : > { %v2388_v27 = vpop.permute.xlu1 %2387  ;;  %v9667_v51 = vadd.f32 %v8138_v28, %v2399_v56 }
 0x1c5   : > { %v2302_v41 = vadd.f32 %v2301_v38, %v2288_v37  ;;  %v2377_v30 = vpop.permute.xlu0 %2376  ;;  %v2392_v33 = vmul.f32 %v2390_v22, %v2388_v27 }
 0x1c6   : > { %v2381_v31 = vmul.f32 %v2379_v25, %v2377_v30 }
 0x1c8   : > { %v2394_v52 = vadd.f32 %v2392_v33, %v2381_v31 }
 0x1ca   : > { %v2315_v12 = vpop.f32.mrf.mxu2  ;;  %v2289_v8 = vpop.f32.mrf.mxu0  ;;  %v2400_v4 = vadd.f32 %v8137_v16, %v2394_v52 }
 0x1cb   : > { %v2303_v60 = vpop.f32.mrf.mxu1  ;;  %v2329_v39 = vpop.f32.mrf.mxu3  ;;  %v2290_v62 = vadd.f32 %v2289_v8, %v2276_v20  ;;  %v2316_v55 = vadd.f32 %v2315_v12, %v2302_v41 }
 0x1cc   : > { %v9669_v34 = vadd.f32 %v8138_v28, %v2400_v4 }
 0x1cd   : > { %v2304_v3 = vadd.f32 %v2303_v60, %v2290_v62  ;;  %v2330_v9 = vadd.f32 %v2329_v39, %v2316_v55 }
 0x1ce   : > { %v2439_v40 = vpack.c.bf16 %v9669_v34, %v9667_v51 }
 0x1d2   : > { %v2317_v24 = vpop.f32.mrf.mxu2 }
 0x1d3   : > { %v2318_v10 = vadd.f32 %v2317_v24, %v2304_v3  ;;  %v2331_v2 = vpop.f32.mrf.mxu3 }
 0x1d5   : > { %v2332_v35 = vadd.f32 %v2331_v2, %v2318_v10 }
 0x1e2   : > { %v2343_v1 = vpop.f32.mrf.mxu0 }
 0x1e3   : > { %v2357_v5 = vpop.f32.mrf.mxu1  ;;  %v2344_v13 = vadd.f32 %v2343_v1, %v2330_v9 }
 0x1e5   : > { %v2358_v21 = vadd.f32 %v2357_v5, %v2344_v13 }
 0x1e7   : > { %v9637_v14 = vadd.f32 %v8136_v50, %v2358_v21 }
 0x1ea   : > { %v2345_v19 = vpop.f32.mrf.mxu0 }
 0x1eb   : > { %v2346_v18 = vadd.f32 %v2345_v19, %v2332_v35  ;;  %v2359_v23 = vpop.f32.mrf.mxu1 }
 0x1ed   : > { %v2360_v26 = vadd.f32 %v2359_v23, %v2346_v18 }
 0x1ef   : > { %v9639_v58 = vadd.f32 %v8136_v50, %v2360_v26 }
 0x1f1   : > { %v2438_v42 = vpack.c.bf16 %v9639_v58, %v9637_v14 }
 0x1f3   : > { %2589 = vmatmul.bf16.gmra.mxu2 %v2438_v42  ;;  %2613 = vmatmul.bf16.gmra.mxu3 %v2438_v42 }
 0x1f4   : > { %2637 = vmatmul.bf16.gmra.mxu0 %v2438_v42 }
 0x1fc   : > { %v2585_v38 = vpop.f32.mrf.mxu2  ;;  %v2609_v44 = vpop.f32.mrf.mxu3 }
 0x1fd   : > { %v2586_v12 = vadd.f32 %v2585_v38, %v2442_v59  ;;  %v9694_v0 = vadd.f32 %v2609_v44, %v2443_v54 }
 0x1ff   : > { %v2648_v39 = vmul.f32 %v9694_v0, %v2586_v12 }
 0x202   : > { %v9722_v56 = vpop.f32.mrf.mxu0 }
 0x203   : > { %2594 = vmatmul.bf16.gmra.mxu2 %v2439_v40  ;;  %2618 = vmatmul.bf16.gmra.mxu3 %v2439_v40 }
 0x204   : > { %2642 = vmatmul.bf16.gmra.mxu0 %v2439_v40  ;;  %v2587_v49 = vpop.f32.mrf.mxu2  ;;  %v2611_v8 = vpop.f32.mrf.mxu3 }
 0x205   : > { %v2588_v37 = vadd.f32 %v2587_v49, %v2442_v59  ;;  %v9697_v60 = vadd.f32 %v2611_v8, %v2443_v54  ;;  %v7836_v8 = vld [vmem:[#allocation10 + $0x28] sm:$0xff] }
 0x207   : > { %v2649_v20 = vmul.f32 %v9697_v60, %v2588_v37 }
 0x209   : > { %v2650_v41 = vpack.c.bf16 %v2649_v20, %v2648_v39 }
 0x20a   : > { %v9724_v4 = vpop.f32.mrf.mxu0 }
 0x20b   : > { %2707 = vmatmul.bf16.vlgmr.msra.gmra.mxu1 %v2650_v41  ;;  %v7834_v41 = vld [vmem:[#allocation10 + $0x18] sm:$0xff] }
 0x20c   : > { %2898 = vmatpush.bf16.msra.mxu1 %v9593_v45 }
 0x210   : > { %2899 = vmatpush.bf16.msra.mxu1 %v9596_v47 }
 0x214   : > { %2900 = vmatpush.bf16.msra.mxu1 %v9602_v36 }
 0x218   : > { %2901 = vmatpush.bf16.msra.mxu1 %v9611_v53 }
 0x21c   : > { %2902 = vmatpush.bf16.msra.mxu1 %v9617_v11 }
 0x220   : > { %2903 = vmatpush.bf16.msra.mxu1 %v9621_v61 }
 0x224   : > { %2904 = vmatpush.bf16.msra.mxu1 %v9635_v43 }
 0x228   : > { %2905 = vmatpush.bf16.msra.mxu1 %v9643_v57 }
 0x271   : > { %v9726_v28 = vpop.f32.mrf.mxu0 }
 0x276   : > { %v2590_v62 = vpop.f32.mrf.mxu2  ;;  %v2614_v45 = vpop.f32.mrf.mxu3 }
 0x277   : > { %v2591_v55 = vadd.f32 %v2590_v62, %v2442_v59  ;;  %v2615_v24 = vadd.f32 %v2614_v45, %v2443_v54  ;;  %v7833_v62 = vld [vmem:[#allocation10 + $0x10] sm:$0xff] }
 0x279   : > { %v2787_v36 = vmul.f32 %v9694_v0, %v2591_v55  ;;  %v2713_v6 = vmul.f32 %v2615_v24, %v2586_v12  ;;  %v2804_v53 = vmul.f32 %v2615_v24, %v2591_v55  ;;  %v9728_v40 = vpop.f32.mrf.mxu0 }
 0x27e   : > { %v2592_v1 = vpop.f32.mrf.mxu2  ;;  %v2616_v3 = vpop.f32.mrf.mxu3 }
 0x27f   : > { %v2593_v5 = vadd.f32 %v2592_v1, %v2442_v59  ;;  %v2617_v47 = vadd.f32 %v2616_v3, %v2443_v54  ;;  %v7832_v3 = vld [vmem:[#allocation10 + $0x8] sm:$0xff] }
 0x281   : > { %v2788_v7 = vmul.f32 %v9697_v60, %v2593_v5  ;;  %v2714_v9 = vmul.f32 %v2617_v47, %v2588_v37  ;;  %v2805_v10 = vmul.f32 %v2617_v47, %v2593_v5  ;;  %v9730_v38 = vpop.f32.mrf.mxu0 }
 0x283   : > { %v2715_v11 = vpack.c.bf16 %v2714_v9, %v2713_v6  ;;  %v2789_v2 = vpack.c.bf16 %v2788_v7, %v2787_v36  ;;  %v2806_v13 = vpack.c.bf16 %v2805_v10, %v2804_v53 }
 0x285   : > { %2724 = vmatmul.bf16.vlgmr.msra.gmra.mxu2 %v2715_v11  ;;  %2798 = vmatmul.bf16.vlgmr.msrb.gmra.mxu1 %v2789_v2 }
 0x286   : > { %2815 = vmatmul.bf16.vlgmr.msrb.gmra.mxu0 %v2806_v13  ;;  %v2595_v61 = vpop.f32.mrf.mxu2  ;;  %v2619_v35 = vpop.f32.mrf.mxu3  ;;  %v7831_v13 = vld [vmem:[#allocation10] sm:$0xff] }
 0x287   : > { %v2596_v63 = vadd.f32 %v2595_v61, %v2442_v59  ;;  %v2620_v19 = vadd.f32 %v2619_v35, %v2443_v54 }
 0x288   : > { %v2708_v44 = vpop.f32.mrf.mxu1 }
 0x289   : > { %v2895_v23 = vmul.f32 %v2615_v24, %v2596_v63  ;;  %v2730_v25 = vmul.f32 %v2620_v19, %v2586_v12  ;;  %v2821_v26 = vmul.f32 %v2620_v19, %v2591_v55  ;;  %v2912_v48 = vmul.f32 %v2620_v19, %v2596_v63  ;;  %v9732_v49 = vpop.f32.mrf.mxu0 }
 0x28a   : > { %v2878_v46 = vmul.f32 %v9694_v0, %v2596_v63 }
 0x28e   : > { %v2597_v21 = vpop.f32.mrf.mxu2  ;;  %v2621_v50 = vpop.f32.mrf.mxu3 }
 0x28f   : > { %v2598_v18 = vadd.f32 %v2597_v21, %v2442_v59  ;;  %v2622_v22 = vadd.f32 %v2621_v50, %v2443_v54  ;;  %v7838_v59 = vld [vmem:[#allocation10 + $0x38] sm:$0xff]  ;;  %v7837_v54 = vld [vmem:[#allocation10 + $0x30] sm:$0xff] }
 0x290   : > { %3040 = vmatpush.bf16.msra.mxu2 %v7838_v59  ;;  %v2710_v0 = vpop.f32.mrf.mxu1 }
 0x291   : > { %v2896_v43 = vmul.f32 %v2617_v47, %v2598_v18  ;;  %v2731_v27 = vmul.f32 %v2622_v22, %v2588_v37  ;;  %v2822_v30 = vmul.f32 %v2622_v22, %v2593_v5  ;;  %v2913_v57 = vmul.f32 %v2622_v22, %v2598_v18  ;;  %v7835_v37 = vld [vmem:[#allocation10 + $0x20] sm:$0xff] }
 0x292   : > { %v2879_v16 = vmul.f32 %v9697_v60, %v2598_v18 }
 0x293   : > { %v2732_v32 = vpack.c.bf16 %v2731_v27, %v2730_v25  ;;  %v2823_v33 = vpack.c.bf16 %v2822_v30, %v2821_v26  ;;  %v2897_v31 = vpack.c.bf16 %v2896_v43, %v2895_v23  ;;  %v2914_v42 = vpack.c.bf16 %v2913_v57, %v2912_v48 }
 0x294   : > { %v2880_v52 = vpack.c.bf16 %v2879_v16, %v2878_v46  ;;  %3041 = vmatpush.bf16.msra.mxu2 %v7837_v54 }
 0x295   : > { %2741 = vmatmul.bf16.vlgmr.msra.gmra.mxu3 %v2732_v32  ;;  %2832 = vmatmul.bf16.vlgmr.msrb.gmra.mxu2 %v2823_v33 }
 0x296   : > { %2906 = vmatmul.bf16.vlgmr.msra.gmra.mxu1 %v2897_v31  ;;  %2923 = vmatmul.bf16.vlgmr.msra.gmra.mxu0 %v2914_v42 }
 0x298   : > { %3042 = vmatpush.bf16.msra.mxu2 %v7836_v8 }
 0x29c   : > { %3043 = vmatpush.bf16.msra.mxu2 %v7835_v37 }
 0x2a0   : > { %3044 = vmatpush.bf16.msra.mxu2 %v7834_v41 }
 0x2a4   : > { %3045 = vmatpush.bf16.msra.mxu2 %v7833_v62 }
 0x2a5   : > { %2889 = vmatmul.bf16.vlgmr.msrb.gmra.mxu3 %v2880_v52  ;;  %v2444_v52 = vperm.slane %v9685_v29, 2 }
 0x2a7   : > { %v9750_v62 = vadd.f32 %v9726_v28, %v2444_v52 }
 0x2a8   : > { %3046 = vmatpush.bf16.msra.mxu2 %v7832_v3 }
 0x2ac   : > { %3047 = vmatpush.bf16.msra.mxu2 %v7831_v13  ;;  %v9765_v13 = vadd.f32 %v9732_v49, %v2444_v52 }
 0x302   : > { %v2799_v39 = vpop.f32.mrf.mxu1 }
 0x303   : > { %v2816_v20 = vpop.f32.mrf.mxu0 }
 0x304   : > { %v2838_v9 = vmax.f32 %v2799_v39, %v2816_v20 }
 0x308   : > { %v2725_v12 = vpop.f32.mrf.mxu2 }
 0x309   : > { %v2747_v45 = vmax.f32 %v2708_v44, %v2725_v12 }
 0x30a   : > { %v2801_v36 = vpop.f32.mrf.mxu1 }
 0x30b   : > { %v2818_v6 = vpop.f32.mrf.mxu0 }
 0x30c   : > { %v2839_v11 = vmax.f32 %v2801_v36, %v2818_v6 }
 0x310   : > { %v2727_v60 = vpop.f32.mrf.mxu2 }
 0x311   : > { %v2748_v2 = vmax.f32 %v2710_v0, %v2727_v60 }
 0x313   : > { %v9737_v57 = vpop.f32.mrf.mxu1  ;;  %v9739_v42 = vpop.f32.mrf.mxu0 }
 0x318   : > { %v2742_v55 = vpop.f32.mrf.mxu3  ;;  %v9734_v24 = vpop.f32.mrf.mxu2 }
 0x319   : > { %v2749_v1 = vmax.f32 %v2747_v45, %v2742_v55  ;;  %v2840_v61 = vmax.f32 %v2838_v9, %v9734_v24  ;;  %v9753_v45 = vadd.f32 %v9728_v40, %v2444_v52 }
 0x31b   : > { %v2751_v5 = vsub.f32 %v2708_v44, %v2749_v1  ;;  %v2759_v47 = vsub.f32 %v2725_v12, %v2749_v1  ;;  %v2771_v10 = vsub.f32 %v2742_v55, %v2749_v1  ;;  %v2842_v25 = vsub.f32 %v2799_v39, %v2840_v61 }
 0x31c   : > { %v2850_v31 = vsub.f32 %v2816_v20, %v2840_v61  ;;  %v9744_v39 = vadd.f32 %v9722_v56, %v2444_v52  ;;  %v9747_v20 = vadd.f32 %v9724_v4, %v2444_v52  ;;  %v2862_v55 = vsub.f32 %v9734_v24, %v2840_v61 }
 0x31d   : > { %v2753_v53 = vmul.f32 1.442695, %v2751_v5  ;;  %v2761_v7 = vmul.f32 1.442695, %v2759_v47  ;;  %v2773_v50 = vmul.f32 1.442695, %v2771_v10  ;;  %v2909_v47 = vpop.f32.mrf.mxu1  ;;  %v2926_v10 = vpop.f32.mrf.mxu0 }
 0x31e   : > { %v2844_v16 = vmul.f32 1.442695, %v2842_v25  ;;  %v2852_v12 = vmul.f32 1.442695, %v2850_v31  ;;  %v2864_v9 = vmul.f32 1.442695, %v2862_v55 }
 0x31f   : > { %8151 = vpow2.f32 %v2753_v53 }
 0x320   : > { %8153 = vpow2.f32 %v2761_v7  ;;  %v2744_v35 = vpop.f32.mrf.mxu3  ;;  %v2835_v63 = vpop.f32.mrf.mxu2 }
 0x321   : > { %v2750_v19 = vmax.f32 %v2748_v2, %v2744_v35  ;;  %v2841_v21 = vmax.f32 %v2839_v11, %v2835_v63  ;;  %8155 = vpow2.f32 %v2773_v50  ;;  %v9762_v2 = vadd.f32 %v9730_v38, %v2444_v52 }
 0x323   : > { %v2752_v18 = vsub.f32 %v2710_v0, %v2750_v19  ;;  %v2760_v22 = vsub.f32 %v2727_v60, %v2750_v19  ;;  %v2772_v23 = vsub.f32 %v2744_v35, %v2750_v19  ;;  %v2843_v30 = vsub.f32 %v2801_v36, %v2841_v21 }
 0x324   : > { %v2851_v33 = vsub.f32 %v2818_v6, %v2841_v21  ;;  %v2863_v0 = vsub.f32 %v2835_v63, %v2841_v21 }
 0x325   : > { %v8152_v26 = vpop.eup %8151  ;;  %v2755_v43 = vmul.f32 1.442695, %v2752_v18  ;;  %v2763_v27 = vmul.f32 1.442695, %v2760_v22  ;;  %v2775_v32 = vmul.f32 1.442695, %v2772_v23 }
 0x326   : > { %v8154_v48 = vpop.eup %8153  ;;  %v2846_v59 = vmul.f32 1.442695, %v2843_v30  ;;  %v2854_v54 = vmul.f32 1.442695, %v2851_v33  ;;  %v2757_v1 = vmul.f32 %v8152_v26, %v9744_v39  ;;  %v2866_v3 = vmul.f32 1.442695, %v2863_v0 }
 0x327   : > { %8157 = vpow2.f32 %v2755_v43  ;;  %v2765_v44 = vadd.f32 %v8154_v48, %v8152_v26  ;;  %v8156_v8 = vpop.eup %8155  ;;  %v2767_v4 = vmul.f32 %v8154_v48, %v9750_v62 }
 0x328   : > { %8159 = vpow2.f32 %v2763_v27  ;;  %v2890_v46 = vpop.f32.mrf.mxu3  ;;  %v2779_v22 = vmul.f32 %v8156_v8, %v9762_v2 }
 0x329   : > { %8161 = vpow2.f32 %v2775_v32  ;;  %v2929_v37 = vmax.f32 %v2890_v46, %v9737_v57  ;;  %v2777_v41 = vadd.f32 %v8156_v8, %v2765_v44  ;;  %v2769_v63 = vadd.f32 %v2767_v4, %v2757_v1 }
 0x32a   : > { %8163 = vpow2.f32 %v2844_v16 }
 0x32b   : > { %8165 = vpow2.f32 %v2846_v59  ;;  %v2931_v6 = vmax.f32 %v2929_v37, %v9739_v42  ;;  %v2781_v43 = vadd.f32 %v2779_v22, %v2769_v63 }
 0x32c   : > { %8167 = vpow2.f32 %v2854_v54 }
 0x32d   : > { %v8158_v60 = vpop.eup %8157  ;;  %8169 = vpow2.f32 %v2852_v12  ;;  %v2933_v21 = vsub.f32 %v2890_v46, %v2931_v6  ;;  %v2941_v30 = vsub.f32 %v9737_v57, %v2931_v6  ;;  %v2953_v37 = vsub.f32 %v9739_v42, %v2931_v6 }
 0x32e   : > { %v8160_v29 = vpop.eup %8159  ;;  %v2758_v36 = vmul.f32 %v8158_v60, %v9747_v20  ;;  %8171 = vrcp.f32 %v2777_v41 }
 0x32f   : > { %v2766_v56 = vadd.f32 %v8160_v29, %v8158_v60  ;;  %v8162_v5 = vpop.eup %8161  ;;  %v2768_v28 = vmul.f32 %v8160_v29, %v9753_v45  ;;  %v2935_v27 = vmul.f32 1.442695, %v2933_v21  ;;  %v2943_v54 = vmul.f32 1.442695, %v2941_v30 }
 0x330   : > { %v2892_v40 = vpop.f32.mrf.mxu3  ;;  %v8164_v7 = vpop.eup %8163  ;;  %v2780_v23 = vmul.f32 %v8162_v5, %v9765_v13 }
 0x331   : > { %v2778_v53 = vadd.f32 %v8162_v5, %v2766_v56  ;;  %v2930_v24 = vmax.f32 %v2892_v40, %v2909_v47  ;;  %v8166_v11 = vpop.eup %8165  ;;  %v2770_v19 = vadd.f32 %v2768_v28, %v2758_v36  ;;  %v2848_v29 = vmul.f32 %v8164_v7, %v9744_v39 }
 0x332   : > { %v8168_v35 = vpop.eup %8167  ;;  %v2849_v57 = vmul.f32 %v8166_v11, %v9747_v20  ;;  %v2955_v56 = vmul.f32 1.442695, %v2953_v37 }
 0x333   : > { %8173 = vrcp.f32 %v2778_v53  ;;  %v2932_v61 = vmax.f32 %v2930_v24, %v2926_v10  ;;  %v8170_v50 = vpop.eup %8169  ;;  %v2857_v26 = vadd.f32 %v8168_v35, %v8166_v11  ;;  %v2782_v49 = vadd.f32 %v2780_v23, %v2770_v19 }
 0x334   : > { %8175 = vpow2.f32 %v2866_v3  ;;  %v8172_v38 = vpop.eup %8171  ;;  %v2856_v32 = vadd.f32 %v8170_v50, %v8164_v7  ;;  %v2859_v60 = vmul.f32 %v8168_v35, %v9753_v45  ;;  %v2858_v55 = vmul.f32 %v8170_v50, %v9750_v62 }
 0x335   : > { %v2934_v18 = vsub.f32 %v2892_v40, %v2932_v61  ;;  %8177 = vpow2.f32 %v2864_v9  ;;  %v2942_v25 = vsub.f32 %v2909_v47, %v2932_v61  ;;  %v2785_v16 = vmul.f32 %v8172_v38, %v2781_v43 }
 0x336   : > { %8179 = vpow2.f32 %v2935_v27  ;;  %v2954_v12 = vsub.f32 %v2926_v10, %v2932_v61  ;;  %v2861_v3 = vadd.f32 %v2859_v60, %v2849_v57  ;;  %v2860_v42 = vadd.f32 %v2858_v55, %v2848_v29 }
 0x337   : > { %v2937_v33 = vmul.f32 1.442695, %v2934_v18  ;;  %v2945_v46 = vmul.f32 1.442695, %v2942_v25  ;;  %v8715_v60 = vmov 128.0  }
 0x338   : > { %v2957_v41 = vmul.f32 1.442695, %v2954_v12 }
 0x339   : > { %v8174_v48 = vpop.eup %8173  ;;  %8181 = vpow2.f32 %v2937_v33 }
 0x33a   : > { %v8176_v31 = vpop.eup %8175  ;;  %v2786_v52 = vmul.f32 %v8174_v48, %v2782_v49  ;;  %8183 = vpow2.f32 %v2945_v46 }
 0x33b   : > { %v2869_v44 = vadd.f32 %v8176_v31, %v2857_v26  ;;  %v8178_v59 = vpop.eup %8177  ;;  %v2871_v47 = vmul.f32 %v8176_v31, %v9765_v13 }
 0x33c   : > { %v2985_v0 = vpack.c.bf16 %v2786_v52, %v2785_v16  ;;  %v2868_v8 = vadd.f32 %v8178_v59, %v2856_v32  ;;  %v8180_v1 = vpop.eup %8179  ;;  %v2870_v6 = vmul.f32 %v8178_v59, %v9762_v2 }
 0x33d   : > { %8185 = vrcp.f32 %v2869_v44  ;;  %v2873_v40 = vadd.f32 %v2871_v47, %v2861_v3  ;;  %v2939_v22 = vmul.f32 %v8180_v1, %v9744_v39  ;;  %v8139_v39 = vld [vmem:[%s11015_s13] ss:$0 sm:$0xff] }
 0x33e   : > { %3048 = vmatmul.bf16.vlgmr.msra.gmra.mxu2 %v2985_v0  ;;  %8187 = vpow2.f32 %v2943_v54  ;;  %v2872_v7 = vadd.f32 %v2870_v6, %v2860_v42 }
 0x33f   : > { %8189 = vrcp.f32 %v2868_v8  ;;  %v8182_v5 = vpop.eup %8181 }
 0x340   : > { %v8184_v4 = vpop.eup %8183  ;;  %8191 = vpow2.f32 %v2957_v41  ;;  %v2940_v50 = vmul.f32 %v8182_v5, %v9747_v20 }
 0x341   : > { %8193 = vpow2.f32 %v2955_v56  ;;  %v2948_v24 = vadd.f32 %v8184_v4, %v8182_v5  ;;  %v2950_v18 = vmul.f32 %v8184_v4, %v9753_v45 }
 0x343   : > { %v8186_v36 = vpop.eup %8185  ;;  %v2952_v25 = vadd.f32 %v2950_v18, %v2940_v50 }
 0x344   : > { %v8188_v28 = vpop.eup %8187  ;;  %v2877_v9 = vmul.f32 %v8186_v36, %v2873_v40  ;;  %v7868_v36 = vld [vmem:[#allocation11 + $0xec] sm:$0xf] }
 0x345   : > { %v8190_v53 = vpop.eup %8189  ;;  %v2947_v10 = vadd.f32 %v8188_v28, %v8180_v1  ;;  %v2949_v23 = vmul.f32 %v8188_v28, %v9750_v62  ;;  %v7120_v28 = vld [vmem:[#allocation11 + $0xf8] sm:$0xf0] }
 0x346   : > { %v8192_v11 = vpop.eup %8191  ;;  %v2876_v61 = vmul.f32 %v8190_v53, %v2872_v7  ;;  %v7123_v40 = vor.u32 %v7868_v36, %v7120_v28  ;;  %v7070_v36 = vld [vmem:[#allocation11 + $0x88] sm:$0xf]  ;;  %v7858_v28 = vld [vmem:[#allocation11 + $0x94] sm:$0xf0] }
 0x347   : > { %v2960_v35 = vadd.f32 %v8192_v11, %v2948_v24  ;;  %v8194_v63 = vpop.eup %8193  ;;  %v2951_v38 = vadd.f32 %v2949_v23, %v2939_v22  ;;  %v2962_v26 = vmul.f32 %v8192_v11, %v9765_v13 }
 0x348   : > { %v2986_v19 = vpack.c.bf16 %v2877_v9, %v2876_v61  ;;  %v2959_v21 = vadd.f32 %v8194_v63, %v2947_v10  ;;  %v2961_v49 = vmul.f32 %v8194_v63, %v9762_v2  ;;  %3494 = vmatpush.bf16.msrb.mxu2 %v7123_v40  ;;  %v7852_v40 = vld [vmem:[#allocation11 + $0x6c] sm:$0xf] }
 0x349   : > { %8195 = vrcp.f32 %v2960_v35  ;;  %v2964_v27 = vadd.f32 %v2962_v26, %v2952_v25  ;;  %v7110_v25 = vld [vmem:[#allocation11 + $0xe0] sm:$0xf]  ;;  %v7867_v26 = vld [vmem:[#allocation11 + $0xe4] sm:$0xf] }
 0x34a   : > { %8197 = vrcp.f32 %v2959_v21  ;;  %v2963_v48 = vadd.f32 %v2961_v49, %v2951_v38  ;;  %v7869_v38 = vld [vmem:[#allocation11 + $0xec] sm:$0xf0]  ;;  %v7112_v49 = vld [vmem:[#allocation11 + $0xf0] sm:$0xf0] }
 0x34b   : > { %8199 = vrcp.f32 %v8715_v60  ;;  %v7086_v60 = vld [vmem:[#allocation11 + $0xa8] sm:$0xf] }
 0x34e   : > { %3053 = vmatmul.bf16.gmra.mxu2 %v2986_v19 }
 0x34f   : > { %v8196_v43 = vpop.eup %8195 }
 0x350   : > { %v8198_v30 = vpop.eup %8197  ;;  %v2968_v20 = vmul.f32 %v8196_v43, %v2964_v27  ;;  %v7111_v43 = vor.u32 %v7869_v38, %v7110_v25  ;;  %v7118_v27 = vld [vmem:[#allocation11 + $0xe8] sm:$0xf]  ;;  %v7848_v25 = vld [vmem:[#allocation11 + $0x4c] sm:$0xf]  ;;  %v7040_v38 = vld [vmem:[#allocation11 + $0x58] sm:$0xf0] }
 0x351   : > { %v2967_v32 = vmul.f32 %v8198_v30, %v2963_v48  ;;  %v8200_v41 = vpop.eup %8199  ;;  %v7870_v30 = vld [vmem:[#allocation11 + $0xf4] sm:$0xf0]  ;;  %v7115_v48 = vor.u32 %v7867_v26, %v7112_v49  ;;  %v7030_v26 = vld [vmem:[#allocation11 + $0x40] sm:$0xf]  ;;  %v7849_v49 = vld [vmem:[#allocation11 + $0x4c] sm:$0xf0] }
 0x352   : > { %vm3089_vm0 = vweird.f32 %v8200_v41  ;;  %3422 = vmatpush.bf16.msra.mxu3 %v7111_v43  ;;  %v7043_v43 = vor.u32 %v7848_v25, %v7040_v38 }
 0x353   : > { %v2987_v33 = vpack.c.bf16 %v2968_v20, %v2967_v32  ;;  %v7119_v20 = vor.u32 %v7870_v30, %v7118_v27  ;;  %v7864_v32 = vld [vmem:[#allocation11 + $0xcc] sm:$0xf]  ;;  %3446 = vmatpush.bf16.msrb.mxu1 %v7115_v48  ;;  %v7847_v27 = vld [vmem:[#allocation11 + $0x44] sm:$0xf]  ;;  %v7032_v30 = vld [vmem:[#allocation11 + $0x50] sm:$0xf0] }
 0x355   : > { %3470 = vmatpush.bf16.msrb.mxu0 %v7119_v20  ;;  %v7031_v20 = vor.u32 %v7849_v49, %v7030_v26 }
 0x35e   : > { %3058 = vmatmul.bf16.gmra.mxu2 %v2987_v33  ;;  %v7104_v33 = vld [vmem:[#allocation11 + $0xd8] sm:$0xf0] }
 0x3c1   : > { %v3049_v62 = vpop.f32.mrf.mxu2 }
 0x3c2   : > { %v3050_v45 = vadd.f32 %v8139_v39, %v3049_v62  ;;  %v7107_v62 = vor.u32 %v7864_v32, %v7104_v33  ;;  %v7035_v32 = vor.u32 %v7847_v27, %v7032_v30  ;;  %v7038_v33 = vld [vmem:[#allocation11 + $0x48] sm:$0xf] }
 0x3c4   : > { %v3064_v31 = vadd.f32 %v3050_v45, %v9585_v15  ;;  %v7865_v45 = vld [vmem:[#allocation11 + $0xcc] sm:$0xf0]  ;;  %3495 = vmatpush.bf16.msrb.mxu2 %v7107_v62 }
 0x3c6   : > { %3072 = vadd.xlane.f32.xlu2 %v3064_v31 }
 0x3c9   : > { %v3051_v13 = vpop.f32.mrf.mxu2 }
 0x3ca   : > { %v3052_v16 = vadd.f32 %v8139_v39, %v3051_v13  ;;  %v7096_v13 = vld [vmem:[#allocation11 + $0xd0] sm:$0xf0] }
 0x3cc   : > { %v3065_v2 = vadd.f32 %v3052_v16, %v9587_v17 }
 0x3ce   : > { %3074 = vadd.xlane.f32.xlu2 %v3065_v2 }
 0x3d1   : > { %v3054_v46 = vpop.f32.mrf.mxu2 }
 0x3d2   : > { %v3055_v52 = vadd.f32 %v8139_v39, %v3054_v46  ;;  %v7102_v46 = vld [vmem:[#allocation11 + $0xc8] sm:$0xf] }
 0x3d4   : > { %v3066_v44 = vadd.f32 %v3055_v52, %v9637_v14  ;;  %v3085_v14 = vmul.f32 128.0, %v8200_v41  ;;  %v7866_v52 = vld [vmem:[#allocation11 + $0xd4] sm:$0xf0] }
 0x3d6   : > { %3076 = vadd.xlane.f32.xlu0 %v3066_v44  ;;  %v3086_v29 = vsub.f32 1.0, %v3085_v14 }
 0x3d8   : > { %v3087_v55 = vmul.f32 %v8200_v41, %v3086_v29  ;;  %v7856_v29 = vld [vmem:[#allocation11 + $0x8c] sm:$0xf] }
 0x3d9   : > { %v3056_v59 = vpop.f32.mrf.mxu2 }
 0x3da   : > { %v3057_v54 = vadd.f32 %v8139_v39, %v3056_v59  ;;  %v3088_v1 = vadd.f32 %v8200_v41, %v3087_v55  ;;  %v7860_v59 = vld [vmem:[#allocation11 + $0xac] sm:$0xf]  ;;  %v7072_v55 = vld [vmem:[#allocation11 + $0x98] sm:$0xf0] }
 0x3dc   : > { %v3067_v12 = vadd.f32 %v3057_v54, %v9639_v58  ;;  %v9792_v58 = vsel %vm3089_vm0, %v8200_v41, %v3088_v1  ;;  %v7088_v54 = vld [vmem:[#allocation11 + $0xb8] sm:$0xf0]  ;;  %v7862_v41 = vld [vmem:[#allocation11 + $0xb4] sm:$0xf0]  ;;  %v7062_v1 = vld [vmem:[#allocation11 + $0x80] sm:$0xf] }
 0x3dd   : > { %v7087_v14 = vor.u32 %v7862_v41, %v7086_v60  ;;  %v7000_v41 = vld [vmem:[#allocation11 + $0x10] sm:$0xf0] }
 0x3de   : > { %3078 = vadd.xlane.f32.xlu1 %v3067_v12 }
 0x3e1   : > { %v3059_v0 = vpop.f32.mrf.mxu2 }
 0x3e2   : > { %v3060_v8 = vadd.f32 %v8139_v39, %v3059_v0  ;;  %v7091_v0 = vor.u32 %v7860_v59, %v7088_v54  ;;  %v7846_v54 = vld [vmem:[#allocation11 + $0x34] sm:$0xf0] }
 0x3e4   : > { %v3068_v15 = vadd.f32 %v3060_v8, %v9667_v51  ;;  %v7861_v8 = vld [vmem:[#allocation11 + $0xac] sm:$0xf0]  ;;  %3496 = vmatpush.bf16.msrb.mxu2 %v7091_v0  ;;  %v7024_v0 = vld [vmem:[#allocation11 + $0x38] sm:$0xf0] }
 0x3e6   : > { %3080 = vadd.xlane.f32.xlu2 %v3068_v15 }
 0x3e9   : > { %v3061_v37 = vpop.f32.mrf.mxu2 }
 0x3ea   : > { %v3062_v57 = vadd.f32 %v8139_v39, %v3061_v37  ;;  %v7094_v39 = vld [vmem:[#allocation11 + $0xc0] sm:$0xf]  ;;  %v7080_v37 = vld [vmem:[#allocation11 + $0xb0] sm:$0xf0] }
 0x3eb   : > { %v7095_v16 = vor.u32 %v7865_v45, %v7094_v39  ;;  %v7850_v39 = vld [vmem:[#allocation11 + $0x54] sm:$0xf0] }
 0x3ec   : > { %v3069_v17 = vadd.f32 %v3062_v57, %v9669_v34  ;;  %v7039_v45 = vor.u32 %v7850_v39, %v7038_v33  ;;  %v9837_v33 = vld [vmem:[%s11017_s10] ss:$0 sm:$0xff] }
 0x3ed   : > { %3423 = vmatpush.bf16.msra.mxu3 %v7095_v16  ;;  %v7843_v16 = vld [vmem:[#allocation11 + $0x24] sm:$0xf] }
 0x3ee   : > { %3082 = vadd.xlane.f32.xlu2 %v3069_v17 }
 0x439   : > { %v3073_v56 = vpop.xlane.xlu2 %3072 }
 0x43a   : > { %v3091_v3 = vmul.f32 %v9792_v58, %v3073_v56  ;;  %v7075_v56 = vor.u32 %v7856_v29, %v7072_v55  ;;  %v7842_v29 = vld [vmem:[#allocation11 + $0x14] sm:$0xf0] }
 0x43c   : > { %v9795_v51 = vsub.f32 %v3064_v31, %v3091_v3  ;;  %v7863_v31 = vld [vmem:[#allocation11 + $0xc4] sm:$0xf]  ;;  %v7857_v3 = vld [vmem:[#allocation11 + $0x8c] sm:$0xf0]  ;;  %3497 = vmatpush.bf16.msrb.mxu2 %v7075_v56 }
 0x43e   : > { %v3103_v5 = vmul.f32 %v9795_v51, %v9795_v51 }
 0x440   : > { %3109 = vadd.xlane.f32.xlu2 %v3103_v5  ;;  %v7855_v5 = vld [vmem:[#allocation11 + $0x84] sm:$0xf] }
 0x441   : > { %v3075_v34 = vpop.xlane.xlu2 %3074 }
 0x442   : > { %v3092_v4 = vmul.f32 %v9792_v58, %v3075_v34  ;;  %v7064_v34 = vld [vmem:[#allocation11 + $0x90] sm:$0xf0] }
 0x444   : > { %v9800_v42 = vsub.f32 %v3065_v2, %v3092_v4  ;;  %v7099_v2 = vor.u32 %v7863_v31, %v7096_v13  ;;  %v7063_v4 = vor.u32 %v7857_v3, %v7062_v1  ;;  %v7014_v31 = vld [vmem:[#allocation11 + $0x20] sm:$0xf]  ;;  %v7845_v13 = vld [vmem:[#allocation11 + $0x2c] sm:$0xf0]  ;;  %v7840_v3 = vld [vmem:[#allocation11 + $0xc] sm:$0xf] }
 0x446   : > { %v3104_v47 = vmul.f32 %v9800_v42, %v9800_v42  ;;  %3447 = vmatpush.bf16.msrb.mxu1 %v7099_v2 }
 0x448   : > { %3111 = vadd.xlane.f32.xlu2 %v3104_v47  ;;  %v7067_v47 = vor.u32 %v7855_v5, %v7064_v34  ;;  %v7008_v5 = vld [vmem:[#allocation11 + $0x18] sm:$0xf0] }
 0x449   : > { %v3077_v6 = vpop.xlane.xlu0 %3076 }
 0x44a   : > { %v3093_v53 = vmul.f32 %v9792_v58, %v3077_v6  ;;  %v7071_v6 = vor.u32 %v7858_v28, %v7070_v36 }
 0x44c   : > { %v9805_v24 = vsub.f32 %v3066_v44, %v3093_v53  ;;  %v7103_v44 = vor.u32 %v7866_v52, %v7102_v46  ;;  %v7056_v53 = vld [vmem:[#allocation11 + $0x78] sm:$0xf0]  ;;  %v7015_v46 = vor.u32 %v7845_v13, %v7014_v31  ;;  %v7016_v52 = vld [vmem:[#allocation11 + $0x30] sm:$0xf0] }
 0x44d   : > { %v7019_v59 = vor.u32 %v7843_v16, %v7016_v52 }
 0x44e   : > { %v3105_v7 = vmul.f32 %v9805_v24, %v9805_v24  ;;  %3471 = vmatpush.bf16.msrb.mxu0 %v7103_v44  ;;  %v7022_v44 = vld [vmem:[#allocation11 + $0x28] sm:$0xf] }
 0x450   : > { %3113 = vadd.xlane.f32.xlu2 %v3105_v7  ;;  %v7046_v7 = vld [vmem:[#allocation11 + $0x60] sm:$0xf] }
 0x451   : > { %v3079_v9 = vpop.xlane.xlu1 %3078 }
 0x452   : > { %v3094_v10 = vmul.f32 %v9792_v58, %v3079_v9  ;;  %3472 = vmatpush.bf16.msrb.mxu0 %v7087_v14  ;;  %v7059_v9 = vor.u32 %v7852_v40, %v7056_v53  ;;  %v7006_v14 = vld [vmem:[#allocation11 + $0x8] sm:$0xf] }
 0x453   : > { %v7007_v56 = vor.u32 %v7842_v29, %v7006_v14 }
 0x454   : > { %v9810_v11 = vsub.f32 %v3067_v12, %v3094_v10  ;;  %v7078_v12 = vld [vmem:[#allocation11 + $0xa0] sm:$0xf]  ;;  %v7853_v10 = vld [vmem:[#allocation11 + $0x6c] sm:$0xf0]  ;;  %3498 = vmatpush.bf16.msrb.mxu2 %v7059_v9 }
 0x455   : > { %v7079_v57 = vor.u32 %v7861_v8, %v7078_v12  ;;  %v7844_v12 = vld [vmem:[#allocation11 + $0x2c] sm:$0xf]  ;;  %v7023_v8 = vor.u32 %v7846_v54, %v7022_v44 }
 0x456   : > { %v3106_v61 = vmul.f32 %v9810_v11, %v9810_v11  ;;  %3473 = vmatpush.bf16.msrb.mxu0 %v7071_v6 }
 0x457   : > { %3424 = vmatpush.bf16.msra.mxu3 %v7079_v57  ;;  %v7841_v57 = vld [vmem:[#allocation11 + $0xc] sm:$0xf0] }
 0x458   : > { %3115 = vadd.xlane.f32.xlu2 %v3106_v61  ;;  %v7851_v61 = vld [vmem:[#allocation11 + $0x64] sm:$0xf]  ;;  %3499 = vmatpush.bf16.msrb.mxu2 %v7043_v43  ;;  %v9831_v43 = vld [vmem:[%s11016_s3] ss:$0 sm:$0xff] }
 0x459   : > { %v3081_v35 = vpop.xlane.xlu2 %3080 }
 0x45a   : > { %v3095_v63 = vmul.f32 %v9792_v58, %v3081_v35  ;;  %v7048_v35 = vld [vmem:[#allocation11 + $0x70] sm:$0xf0] }
 0x45b   : > { %3425 = vmatpush.bf16.msra.mxu3 %v7063_v4  ;;  %v7011_v4 = vor.u32 %v7840_v3, %v7008_v5 }
 0x45c   : > { %v9815_v19 = vsub.f32 %v3068_v15, %v3095_v63  ;;  %v7859_v15 = vld [vmem:[#allocation11 + $0xa4] sm:$0xf]  ;;  %v7047_v63 = vor.u32 %v7853_v10, %v7046_v7 }
 0x45e   : > { %v3107_v21 = vmul.f32 %v9815_v19, %v9815_v19 }
 0x45f   : > { %3426 = vmatpush.bf16.msra.mxu3 %v7047_v63 }
 0x460   : > { %3117 = vadd.xlane.f32.xlu0 %v3107_v21  ;;  %v7051_v21 = vor.u32 %v7851_v61, %v7048_v35 }
 0x461   : > { %v3083_v50 = vpop.xlane.xlu2 %3082 }
 0x462   : > { %v3096_v18 = vmul.f32 %v9792_v58, %v3083_v50  ;;  %v7054_v50 = vld [vmem:[#allocation11 + $0x68] sm:$0xf] }
 0x463   : > { %3427 = vmatpush.bf16.msra.mxu3 %v7031_v20 }
 0x464   : > { %v9820_v22 = vsub.f32 %v3069_v17, %v3096_v18  ;;  %v7083_v17 = vor.u32 %v7859_v15, %v7080_v37  ;;  %v7854_v18 = vld [vmem:[#allocation11 + $0x74] sm:$0xf0]  ;;  %v7027_v15 = vor.u32 %v7844_v12, %v7024_v0  ;;  %v6998_v37 = vld [vmem:[#allocation11] sm:$0xf] }
 0x465   : > { %v6999_v60 = vor.u32 %v7841_v57, %v6998_v37  ;;  %v7878_v37 = vld [vmem:[#allocation13 + $0x38] sm:$0xff] }
 0x466   : > { %v3108_v23 = vmul.f32 %v9820_v22, %v9820_v22  ;;  %3448 = vmatpush.bf16.msrb.mxu1 %v7083_v17  ;;  %v7839_v17 = vld [vmem:[#allocation11 + $0x4] sm:$0xf]  ;;  %3500 = vmatpush.bf16.msrb.mxu2 %v7027_v15 }
 0x467   : > { %3428 = vmatpush.bf16.msra.mxu3 %v7015_v46  ;;  %v7003_v1 = vor.u32 %v7839_v17, %v7000_v41 }
 0x468   : > { %3119 = vadd.xlane.f32.xlu1 %v3108_v23  ;;  %v7055_v23 = vor.u32 %v7854_v18, %v7054_v50 }
 0x46a   : > { %3449 = vmatpush.bf16.msrb.mxu1 %v7067_v47  ;;  %3474 = vmatpush.bf16.msrb.mxu0 %v7055_v23 }
 0x46b   : > { %3429 = vmatpush.bf16.msra.mxu3 %v6999_v60  ;;  %3501 = vmatpush.bf16.msrb.mxu2 %v7011_v4 }
 0x46e   : > { %3450 = vmatpush.bf16.msrb.mxu1 %v7051_v21  ;;  %3475 = vmatpush.bf16.msrb.mxu0 %v7039_v45 }
 0x46f   : > { %4006 = vmatpush.bf16.msrb.mxu3 %v7878_v37 }
 0x472   : > { %3451 = vmatpush.bf16.msrb.mxu1 %v7035_v32  ;;  %3476 = vmatpush.bf16.msrb.mxu0 %v7023_v8 }
 0x476   : > { %3452 = vmatpush.bf16.msrb.mxu1 %v7019_v59  ;;  %3477 = vmatpush.bf16.msrb.mxu0 %v7007_v56 }
 0x47a   : > { %3453 = vmatpush.bf16.msrb.mxu1 %v7003_v1 }
 0x4b3   : > { %v3110_v48 = vpop.xlane.xlu2 %3109 }
 0x4b4   : > { %v3121_v62 = vmul.f32 %v3110_v48, %v9792_v58 }
 0x4b6   : > { %v3127_v2 = vadd.f32 1e-05, %v3121_v62 }
 0x4b8   : > { %8201 = vrsqrt.f32 %v3127_v2  ;;  %vm3139_vm2 = vweird.f32 %v3127_v2 }
 0x4bb   : > { %v3112_v55 = vpop.xlane.xlu2 %3111 }
 0x4bc   : > { %v3122_v34 = vmul.f32 %v3112_v55, %v9792_v58 }
 0x4be   : > { %v8202_v47 = vpop.eup %8201  ;;  %v3128_v36 = vadd.f32 1e-05, %v3122_v34 }
 0x4bf   : > { %v3134_v28 = vmul.f32 %v8202_v47, %v3127_v2  ;;  %vm3140_vm1 = vweird.f32 %v8202_v47 }
 0x4c0   : > { %8203 = vrsqrt.f32 %v3128_v36  ;;  %vm3141_vm3 = vmor %vm3139_vm2, %vm3140_vm1  ;;  %vm3149_vm5 = vweird.f32 %v3128_v36 }
 0x4c1   : > { %v3135_v6 = vmul.f32 %v8202_v47, %v3134_v28 }
 0x4c3   : > { %v3136_v40 = vmul.f32 0.5, %v3135_v6  ;;  %v3114_v53 = vpop.xlane.xlu2 %3113 }
 0x4c4   : > { %v3123_v7 = vmul.f32 %v3114_v53, %v9792_v58 }
 0x4c5   : > { %v3137_v9 = vsub.f32 1.5, %v3136_v40 }
 0x4c6   : > { %v8204_v10 = vpop.eup %8203  ;;  %v3129_v61 = vadd.f32 1e-05, %v3123_v7 }
 0x4c7   : > { %v3138_v35 = vmul.f32 %v8202_v47, %v3137_v9  ;;  %v3144_v63 = vmul.f32 %v8204_v10, %v3128_v36  ;;  %vm3150_vm4 = vweird.f32 %v8204_v10 }
 0x4c8   : > { %8205 = vrsqrt.f32 %v3129_v61  ;;  %vm3151_vm6 = vmor %vm3149_vm5, %vm3150_vm4  ;;  %vm3159_vm8 = vweird.f32 %v3129_v61 }
 0x4c9   : > { %v3145_v21 = vmul.f32 %v8204_v10, %v3144_v63  ;;  %v3142_v50 = vsel %vm3141_vm3, %v8202_v47, %v3138_v35 }
 0x4ca   : > { %v3193_v49 = vmul.f32 %v3142_v50, %v9795_v51 }
 0x4cb   : > { %v3146_v18 = vmul.f32 0.5, %v3145_v21  ;;  %v3116_v23 = vpop.xlane.xlu2 %3115 }
 0x4cc   : > { %v3124_v25 = vmul.f32 %v3116_v23, %v9792_v58  ;;  %v3202_v39 = vmul.f32 %v9831_v43, %v3193_v49  ;;  %v7893_v49 = vld [vmem:[#allocation13 + $0xb0] sm:$0xff] }
 0x4cd   : > { %v3147_v38 = vsub.f32 1.5, %v3146_v18 }
 0x4ce   : > { %v8206_v26 = vpop.eup %8205  ;;  %v3130_v27 = vadd.f32 1e-05, %v3124_v25  ;;  %v9844_v46 = vadd.f32 %v9837_v33, %v3202_v39  ;;  %v7876_v39 = vld [vmem:[#allocation13 + $0x28] sm:$0xff] }
 0x4cf   : > { %v3148_v30 = vmul.f32 %v8204_v10, %v3147_v38  ;;  %v3154_v48 = vmul.f32 %v8206_v26, %v3129_v61  ;;  %vm3160_vm7 = vweird.f32 %v8206_v26 }
 0x4d0   : > { %8207 = vrsqrt.f32 %v3130_v27  ;;  %vm3161_vm9 = vmor %vm3159_vm8, %vm3160_vm7  ;;  %vm3169_vm11 = vweird.f32 %v3130_v27 }
 0x4d1   : > { %v3152_v20 = vsel %vm3151_vm6, %v8204_v10, %v3148_v30  ;;  %v3155_v32 = vmul.f32 %v8206_v26, %v3154_v48  ;;  %v7892_v30 = vld [vmem:[#allocation13 + $0xa8] sm:$0xff]  ;;  %v7877_v48 = vld [vmem:[#allocation13 + $0x30] sm:$0xff] }
 0x4d2   : > { %v3194_v62 = vmul.f32 %v3152_v20, %v9800_v42  ;;  %v7901_v20 = vld [vmem:[#allocation13 + $0xf0] sm:$0xff]  ;;  %4007 = vmatpush.bf16.msrb.mxu3 %v7877_v48 }
 0x4d3   : > { %v3156_v45 = vmul.f32 0.5, %v3155_v32  ;;  %v3118_v31 = vpop.xlane.xlu0 %3117  ;;  %v7883_v32 = vld [vmem:[#allocation13 + $0x60] sm:$0xff] }
 0x4d4   : > { %v3203_v51 = vmul.f32 %v9831_v43, %v3194_v62  ;;  %v3125_v13 = vmul.f32 %v3118_v31, %v9792_v58  ;;  %v7900_v62 = vld [vmem:[#allocation13 + $0xe8] sm:$0xff]  ;;  %v7890_v31 = vld [vmem:[#allocation13 + $0x98] sm:$0xff] }
 0x4d5   : > { %v3157_v16 = vsub.f32 1.5, %v3156_v45  ;;  %v7882_v45 = vld [vmem:[#allocation13 + $0x58] sm:$0xff] }
 0x4d6   : > { %v8208_v2 = vpop.eup %8207  ;;  %v9847_v52 = vadd.f32 %v9837_v33, %v3203_v51  ;;  %v3131_v44 = vadd.f32 1e-05, %v3125_v13  ;;  %4008 = vmatpush.bf16.msrb.mxu3 %v7876_v39  ;;  %v3252_v51 = vld [vmem:[%s11018_s12] sm:$0xf] }
 0x4d7   : > { %v3158_v59 = vmul.f32 %v8206_v26, %v3157_v16  ;;  %v3164_v54 = vmul.f32 %v8208_v2, %v3130_v27  ;;  %vm3170_vm10 = vweird.f32 %v8208_v2  ;;  %v7884_v27 = vld [vmem:[#allocation13 + $0x68] sm:$0xff]  ;;  %v7875_v13 = vld [vmem:[#allocation13 + $0x20] sm:$0xff] }
 0x4d8   : > { %8209 = vrsqrt.f32 %v3131_v44  ;;  %v3249_v42 = vpack.c.bf16 %v9847_v52, %v9844_v46  ;;  %vm3171_vm12 = vmor %vm3169_vm11, %vm3170_vm10  ;;  %vm3179_vm14 = vweird.f32 %v3131_v44  ;;  %v7899_v16 = vld [vmem:[#allocation13 + $0xe0] sm:$0xff] }
 0x4d9   : > { %v3165_v12 = vmul.f32 %v8208_v2, %v3164_v54  ;;  %v3162_v0 = vsel %vm3161_vm9, %v8206_v26, %v3158_v59  ;;  %v7894_v26 = vld [vmem:[#allocation13 + $0xb8] sm:$0xff]  ;;  %v7881_v54 = vld [vmem:[#allocation13 + $0x50] sm:$0xff] }
 0x4da   : > { %3430 = vmatmul.bf16.vlgmr.msra.gmra.mxu3 %v3249_v42  ;;  %3454 = vmatmul.bf16.vlgmr.msrb.gmra.mxu1 %v3249_v42  ;;  %v3195_v41 = vmul.f32 %v3162_v0, %v9805_v24  ;;  %v7874_v59 = vld [vmem:[#allocation13 + $0x18] sm:$0xff] }
 0x4db   : > { %v3166_v8 = vmul.f32 0.5, %v3165_v12  ;;  %3478 = vmatmul.bf16.vlgmr.msrb.gmra.mxu0 %v3249_v42  ;;  %3502 = vmatmul.bf16.vlgmr.msrb.gmra.mxu2 %v3249_v42  ;;  %v3120_v15 = vpop.xlane.xlu1 %3119  ;;  %v7889_v42 = vld [vmem:[#allocation13 + $0x90] sm:$0xff]  ;;  %v7898_v0 = vld [vmem:[#allocation13 + $0xd8] sm:$0xff] }
 0x4dc   : > { %v3126_v57 = vmul.f32 %v3120_v15, %v9792_v58  ;;  %v3204_v5 = vmul.f32 %v9831_v43, %v3195_v41  ;;  %4054 = vmatpush.bf16.msra.mxu0 %v7894_v26  ;;  %4009 = vmatpush.bf16.msrb.mxu3 %v7875_v13  ;;  %v9891_v41 = vperm.slane %v3252_v51, 0  ;;  %v9929_v13 = vld [vmem:[#allocation5 + $0x38] sm:$0xff] }
 0x4dd   : > { %v3167_v17 = vsub.f32 1.5, %v3166_v8 }
 0x4de   : > { %v8210_v60 = vpop.eup %8209  ;;  %v3132_v14 = vadd.f32 1e-05, %v3126_v57  ;;  %v9857_v28 = vadd.f32 %v9837_v33, %v3204_v5  ;;  %v7880_v57 = vld [vmem:[#allocation13 + $0x48] sm:$0xff] }
 0x4df   : > { %v3168_v29 = vmul.f32 %v8208_v2, %v3167_v17  ;;  %v3174_v55 = vmul.f32 %v8210_v60, %v3131_v44  ;;  %vm3180_vm13 = vweird.f32 %v8210_v60  ;;  %v9881_v44 = vperm.slane %v3252_v51, 2  ;;  %v7888_v17 = vld [vmem:[#allocation13 + $0x88] sm:$0xff] }
 0x4e0   : > { %8211 = vrsqrt.f32 %v3132_v14  ;;  %vm3181_vm15 = vmor %vm3179_vm14, %vm3180_vm13  ;;  %vm3189_vm1 = vweird.f32 %v3132_v14  ;;  %4055 = vmatpush.bf16.msra.mxu0 %v7893_v49  ;;  %4010 = vmatpush.bf16.msrb.mxu3 %v7874_v59 }
 0x4e1   : > { %v3172_v1 = vsel %vm3171_vm12, %v8208_v2, %v3168_v29  ;;  %v3175_v56 = vmul.f32 %v8210_v60, %v3174_v55  ;;  %v9879_v2 = vperm.slane %v3252_v51, 1  ;;  %v9895_v29 = vperm.slane %v3252_v51, 3  ;;  %v7873_v55 = vld [vmem:[#allocation13 + $0x10] sm:$0xff] }
 0x4e2   : > { %v3196_v3 = vmul.f32 %v3172_v1, %v9810_v11  ;;  %v7897_v1 = vld [vmem:[#allocation13 + $0xd0] sm:$0xff] }
 0x4e3   : > { %v3176_v34 = vmul.f32 0.5, %v3175_v56 }
 0x4e4   : > { %v3205_v4 = vmul.f32 %v9831_v43, %v3196_v3  ;;  %4056 = vmatpush.bf16.msra.mxu0 %v7892_v30  ;;  %4011 = vmatpush.bf16.msrb.mxu3 %v7873_v55  ;;  %v7895_v30 = vld [vmem:[#allocation13 + $0xc0] sm:$0xff] }
 0x4e5   : > { %v3177_v47 = vsub.f32 1.5, %v3176_v34  ;;  %v7879_v34 = vld [vmem:[#allocation13 + $0x40] sm:$0xff] }
 0x4e6   : > { %v8212_v36 = vpop.eup %8211  ;;  %v9860_v24 = vadd.f32 %v9837_v33, %v3205_v4  ;;  %v7887_v4 = vld [vmem:[#allocation13 + $0x80] sm:$0xff] }
 0x4e7   : > { %v3178_v6 = vmul.f32 %v8210_v60, %v3177_v47  ;;  %v3184_v40 = vmul.f32 %v8212_v36, %v3132_v14  ;;  %vm3190_vm0 = vweird.f32 %v8212_v36 }
 0x4e8   : > { %v3250_v53 = vpack.c.bf16 %v9860_v24, %v9857_v28  ;;  %vm3191_vm2 = vmor %vm3189_vm1, %vm3190_vm0 }
 0x4e9   : > { %v3185_v11 = vmul.f32 %v8212_v36, %v3184_v40  ;;  %v3182_v7 = vsel %vm3181_vm15, %v8210_v60, %v3178_v6 }
 0x4ea   : > { %3435 = vmatmul.bf16.gmra.mxu3 %v3250_v53  ;;  %3459 = vmatmul.bf16.gmra.mxu1 %v3250_v53  ;;  %v3197_v61 = vmul.f32 %v3182_v7, %v9815_v19  ;;  %v7886_v19 = vld [vmem:[#allocation13 + $0x78] sm:$0xff]  ;;  %v7872_v7 = vld [vmem:[#allocation13 + $0x8] sm:$0xff] }
 0x4eb   : > { %v3186_v9 = vmul.f32 0.5, %v3185_v11  ;;  %3483 = vmatmul.bf16.gmra.mxu0 %v3250_v53  ;;  %3507 = vmatmul.bf16.gmra.mxu2 %v3250_v53 }
 0x4ec   : > { %v3206_v50 = vmul.f32 %v9831_v43, %v3197_v61  ;;  %4030 = vmatpush.bf16.msra.mxu1 %v7886_v19  ;;  %4012 = vmatpush.bf16.msrb.mxu3 %v7872_v7 }
 0x4ed   : > { %v3187_v10 = vsub.f32 1.5, %v3186_v9  ;;  %v7896_v9 = vld [vmem:[#allocation13 + $0xc8] sm:$0xff] }
 0x4ee   : > { %v9869_v23 = vadd.f32 %v9837_v33, %v3206_v50 }
 0x4ef   : > { %v3188_v35 = vmul.f32 %v8212_v36, %v3187_v10 }
 0x4f1   : > { %v3192_v63 = vsel %vm3191_vm2, %v8212_v36, %v3188_v35 }
 0x4f2   : > { %v3198_v21 = vmul.f32 %v3192_v63, %v9820_v22  ;;  %v7885_v22 = vld [vmem:[#allocation13 + $0x70] sm:$0xff] }
 0x4f3   : > { %4031 = vmatpush.bf16.msra.mxu1 %v7885_v22 }
 0x4f4   : > { %v3207_v18 = vmul.f32 %v9831_v43, %v3198_v21  ;;  %v7902_v43 = vld [vmem:[#allocation13 + $0xf8] sm:$0xff] }
 0x4f5   : > { %4078 = vmatpush.bf16.msra.mxu2 %v7902_v43 }
 0x4f6   : > { %v9872_v25 = vadd.f32 %v9837_v33, %v3207_v18  ;;  %v7891_v33 = vld [vmem:[#allocation13 + $0xa0] sm:$0xff] }
 0x4f7   : > { %4032 = vmatpush.bf16.msra.mxu1 %v7884_v27  ;;  %4057 = vmatpush.bf16.msra.mxu0 %v7891_v33  ;;  %v7871_v27 = vld [vmem:[#allocation13] sm:$0xff] }
 0x4f8   : > { %v3251_v38 = vpack.c.bf16 %v9872_v25, %v9869_v23  ;;  %4013 = vmatpush.bf16.msrb.mxu3 %v7871_v27 }
 0x4f9   : > { %4079 = vmatpush.bf16.msra.mxu2 %v7901_v20 }
 0x4fa   : > { %3440 = vmatmul.bf16.gmra.mxu3 %v3251_v38  ;;  %3464 = vmatmul.bf16.gmra.mxu1 %v3251_v38 }
 0x4fb   : > { %3488 = vmatmul.bf16.gmra.mxu0 %v3251_v38  ;;  %3512 = vmatmul.bf16.gmra.mxu2 %v3251_v38 }
 0x4fc   : > { %4033 = vmatpush.bf16.msra.mxu1 %v7883_v32  ;;  %4058 = vmatpush.bf16.msra.mxu0 %v7890_v31 }
 0x4fd   : > { %4080 = vmatpush.bf16.msra.mxu2 %v7900_v62 }
 0x500   : > { %4034 = vmatpush.bf16.msra.mxu1 %v7882_v45  ;;  %4059 = vmatpush.bf16.msra.mxu0 %v7889_v42 }
 0x501   : > { %4081 = vmatpush.bf16.msra.mxu2 %v7899_v16 }
 0x504   : > { %4035 = vmatpush.bf16.msra.mxu1 %v7881_v54  ;;  %4060 = vmatpush.bf16.msra.mxu0 %v7888_v17 }
 0x505   : > { %4082 = vmatpush.bf16.msra.mxu2 %v7898_v0 }
 0x508   : > { %4036 = vmatpush.bf16.msra.mxu1 %v7880_v57  ;;  %4061 = vmatpush.bf16.msra.mxu0 %v7887_v4  ;;  %v9951_v4 = vld [vmem:[#allocation5 + $0x30] sm:$0xff] }
 0x509   : > { %4083 = vmatpush.bf16.msra.mxu2 %v7897_v1 }
 0x50c   : > { %4037 = vmatpush.bf16.msra.mxu1 %v7879_v34 }
 0x50d   : > { %4084 = vmatpush.bf16.msra.mxu2 %v7896_v9 }
 0x511   : > { %4085 = vmatpush.bf16.msra.mxu2 %v7895_v30 }
 0x515   : > { %4496 = vmatpush.bf16.msrb.mxu2 %v9929_v13 }
 0x519   : > { %4497 = vmatpush.bf16.msrb.mxu2 %v9951_v4 }
 0x557   : > { %v3455_v12 = vpop.f32.mrf.mxu1 }
 0x558   : > { %v9884_v8 = vadd.f32 %v3455_v12, %v9879_v2  ;;  %v3479_v15 = vpop.f32.mrf.mxu0 }
 0x559   : > { %v9887_v37 = vadd.f32 %v3479_v15, %v9881_v44 }
 0x55a   : > { %v3519_v60 = vmul.f32 %v9884_v8, %v9884_v8 }
 0x55b   : > { %v3520_v14 = vmul.f32 %v9887_v37, %v9887_v37 }
 0x55c   : > { %v3543_v56 = vmul.f32 %v3519_v60, %v9884_v8 }
 0x55d   : > { %v3544_v3 = vmul.f32 %v3520_v14, %v9887_v37  ;;  %v3431_v5 = vpop.f32.mrf.mxu3 }
 0x55e   : > { %v3567_v47 = vmul.f32 0.044715, %v3543_v56  ;;  %v9900_v36 = vadd.f32 %v3431_v5, %v9891_v41  ;;  %v3503_v6 = vpop.f32.mrf.mxu2 }
 0x55f   : > { %v3568_v40 = vmul.f32 0.044715, %v3544_v3  ;;  %v9903_v53 = vadd.f32 %v3503_v6, %v9895_v29  ;;  %v3457_v11 = vpop.f32.mrf.mxu1 }
 0x560   : > { %v3591_v10 = vadd.f32 %v3567_v47, %v9884_v8  ;;  %v3518_v61 = vmul.f32 %v9900_v36, %v9900_v36  ;;  %v9909_v35 = vadd.f32 %v3457_v11, %v9879_v2  ;;  %v3481_v63 = vpop.f32.mrf.mxu0 }
 0x561   : > { %v3592_v21 = vadd.f32 %v3568_v40, %v9887_v37  ;;  %v3521_v50 = vmul.f32 %v9903_v53, %v9903_v53  ;;  %v9915_v18 = vadd.f32 %v3481_v63, %v9881_v44 }
 0x562   : > { %v3615_v38 = vmul.f32 0.7978846, %v3591_v10  ;;  %v3542_v19 = vmul.f32 %v3518_v61, %v9900_v36  ;;  %v3523_v26 = vmul.f32 %v9909_v35, %v9909_v35 }
 0x563   : > { %v3616_v22 = vmul.f32 0.7978846, %v3592_v21  ;;  %v3545_v49 = vmul.f32 %v3521_v50, %v9903_v53  ;;  %v3524_v43 = vmul.f32 %v9915_v18, %v9915_v18 }
 0x564   : > { %8213 = vtanh.f32 %v3615_v38  ;;  %v3566_v48 = vmul.f32 0.044715, %v3542_v19  ;;  %v3547_v20 = vmul.f32 %v3523_v26, %v9909_v35 }
 0x565   : > { %8215 = vtanh.f32 %v3616_v22  ;;  %v3569_v32 = vmul.f32 0.044715, %v3545_v49  ;;  %v3548_v33 = vmul.f32 %v3524_v43, %v9915_v18  ;;  %v3433_v39 = vpop.f32.mrf.mxu3  ;;  %v9962_v22 = vld [vmem:[#allocation5 + $0x28] sm:$0xff] }
 0x566   : > { %v3590_v62 = vadd.f32 %v3566_v48, %v9900_v36  ;;  %v3571_v45 = vmul.f32 0.044715, %v3547_v20  ;;  %v9927_v31 = vadd.f32 %v3433_v39, %v9891_v41  ;;  %v3505_v51 = vpop.f32.mrf.mxu2  ;;  %4498 = vmatpush.bf16.msrb.mxu2 %v9962_v22 }
 0x567   : > { %v3593_v16 = vadd.f32 %v3569_v32, %v9903_v53  ;;  %v3572_v59 = vmul.f32 0.044715, %v3548_v33  ;;  %v9934_v54 = vadd.f32 %v3505_v51, %v9895_v29  ;;  %v3460_v42 = vpop.f32.mrf.mxu1 }
 0x568   : > { %v3614_v12 = vmul.f32 0.7978846, %v3590_v62  ;;  %v3595_v0 = vadd.f32 %v3571_v45, %v9909_v35  ;;  %v3522_v15 = vmul.f32 %v9927_v31, %v9927_v31  ;;  %v9940_v57 = vadd.f32 %v3460_v42, %v9879_v2  ;;  %v3484_v17 = vpop.f32.mrf.mxu0 }
 0x569   : > { %v3617_v60 = vmul.f32 0.7978846, %v3593_v16  ;;  %v3596_v14 = vadd.f32 %v3572_v59, %v9915_v18  ;;  %v3525_v55 = vmul.f32 %v9934_v54, %v9934_v54  ;;  %v9946_v1 = vadd.f32 %v3484_v17, %v9881_v44 }
 0x56a   : > { %v8214_v56 = vpop.eup %8213  ;;  %8217 = vtanh.f32 %v3614_v12  ;;  %v3619_v3 = vmul.f32 0.7978846, %v3595_v0  ;;  %v3546_v5 = vmul.f32 %v3522_v15, %v9927_v31  ;;  %v3527_v34 = vmul.f32 %v9940_v57, %v9940_v57  ;;  %v9973_v0 = vld [vmem:[#allocation5 + $0x20] sm:$0xff] }
 0x56b   : > { %v8216_v47 = vpop.eup %8215  ;;  %8219 = vtanh.f32 %v3617_v60  ;;  %v3620_v6 = vmul.f32 0.7978846, %v3596_v14  ;;  %v3549_v40 = vmul.f32 %v3525_v55, %v9934_v54  ;;  %v3663_v11 = vadd.f32 1.0, %v8214_v56  ;;  %4499 = vmatpush.bf16.msrb.mxu2 %v9973_v0 }
 0x56c   : > { %8221 = vtanh.f32 %v3619_v3  ;;  %v3570_v7 = vmul.f32 0.044715, %v3546_v5  ;;  %v3551_v9 = vmul.f32 %v3527_v34, %v9940_v57  ;;  %v3664_v10 = vadd.f32 1.0, %v8216_v47 }
 0x56d   : > { %8223 = vtanh.f32 %v3620_v6  ;;  %v3573_v61 = vmul.f32 0.044715, %v3549_v40  ;;  %v3528_v63 = vmul.f32 %v9946_v1, %v9946_v1  ;;  %v3436_v21 = vpop.f32.mrf.mxu3  ;;  %v3687_v62 = vmul.f32 0.5, %v3663_v11 }
 0x56e   : > { %v3594_v50 = vadd.f32 %v3570_v7, %v9927_v31  ;;  %v3575_v38 = vmul.f32 0.044715, %v3551_v9  ;;  %v9960_v19 = vadd.f32 %v3436_v21, %v9891_v41  ;;  %v3508_v26 = vpop.f32.mrf.mxu2  ;;  %v3688_v45 = vmul.f32 0.5, %v3664_v10 }
 0x56f   : > { %v3597_v49 = vadd.f32 %v3573_v61, %v9934_v54  ;;  %v3552_v43 = vmul.f32 %v3528_v63, %v9946_v1  ;;  %v9968_v27 = vadd.f32 %v3508_v26, %v9895_v29  ;;  %v3462_v30 = vpop.f32.mrf.mxu1  ;;  %v3711_v3 = vmul.f32 %v3687_v62, %v9884_v8  ;;  %v9985_v61 = vld [vmem:[#allocation5 + $0x18] sm:$0xff] }
 0x570   : > { %v8218_v48 = vpop.eup %8217  ;;  %v3618_v20 = vmul.f32 0.7978846, %v3594_v50  ;;  %v3526_v32 = vmul.f32 %v9960_v19, %v9960_v19  ;;  %v3486_v33 = vpop.f32.mrf.mxu0  ;;  %v3599_v16 = vadd.f32 %v3575_v38, %v9940_v57  ;;  %v3712_v5 = vmul.f32 %v3688_v45, %v9887_v37  ;;  %4500 = vmatpush.bf16.msrb.mxu2 %v9985_v61 }
 0x571   : > { %v8220_v39 = vpop.eup %8219  ;;  %v3621_v51 = vmul.f32 0.7978846, %v3597_v49  ;;  %v3662_v42 = vadd.f32 1.0, %v8218_v48  ;;  %v3576_v12 = vmul.f32 0.044715, %v3552_v43  ;;  %v3529_v14 = vmul.f32 %v9968_v27, %v9968_v27 }
 0x572   : > { %v8222_v59 = vpop.eup %8221  ;;  %8225 = vtanh.f32 %v3618_v20  ;;  %v3550_v60 = vmul.f32 %v3526_v32, %v9960_v19  ;;  %v3665_v55 = vadd.f32 1.0, %v8220_v39  ;;  %v3623_v47 = vmul.f32 0.7978846, %v3599_v16 }
 0x573   : > { %v8224_v15 = vpop.eup %8223  ;;  %v3667_v17 = vadd.f32 1.0, %v8222_v59  ;;  %8227 = vtanh.f32 %v3621_v51  ;;  %v3686_v40 = vmul.f32 0.5, %v3662_v42  ;;  %v3600_v7 = vadd.f32 %v3576_v12, %v9946_v1  ;;  %v10003_v51 = vld [vmem:[#allocation5 + $0x10] sm:$0xff] }
 0x574   : > { %v3668_v56 = vadd.f32 1.0, %v8224_v15  ;;  %v9983_v9 = vadd.f32 %v3462_v30, %v9879_v2  ;;  %v3574_v8 = vmul.f32 0.044715, %v3550_v60  ;;  %v3553_v37 = vmul.f32 %v3529_v14, %v9968_v27  ;;  %4501 = vmatpush.bf16.msrb.mxu2 %v10003_v51 }
 0x575   : > { %v3691_v34 = vmul.f32 0.5, %v3667_v17  ;;  %v3438_v6 = vpop.f32.mrf.mxu3  ;;  %v9991_v21 = vadd.f32 %v3486_v33, %v9881_v44  ;;  %v3689_v26 = vmul.f32 0.5, %v3665_v55  ;;  %8229 = vtanh.f32 %v3623_v47 }
 0x576   : > { %v3692_v11 = vmul.f32 0.5, %v3668_v56  ;;  %v3510_v10 = vpop.f32.mrf.mxu2  ;;  %v3531_v43 = vmul.f32 %v9983_v9, %v9983_v9  ;;  %v9997_v30 = vadd.f32 %v3438_v6, %v9891_v41  ;;  %v3710_v39 = vmul.f32 %v3686_v40, %v9900_v36 }
 0x577   : > { %v3715_v63 = vmul.f32 %v3691_v34, %v9909_v35  ;;  %v3465_v50 = vpop.f32.mrf.mxu1  ;;  %v3532_v33 = vmul.f32 %v9991_v21, %v9991_v21  ;;  %v3598_v59 = vadd.f32 %v3574_v8, %v9960_v19  ;;  %v3577_v42 = vmul.f32 0.044715, %v3553_v37 }
 0x578   : > { %v8226_v38 = vpop.eup %8225  ;;  %v3716_v49 = vmul.f32 %v3692_v11, %v9915_v18  ;;  %v3489_v48 = vpop.f32.mrf.mxu0  ;;  %v3555_v18 = vmul.f32 %v3531_v43, %v9983_v9  ;;  %v3530_v12 = vmul.f32 %v9997_v30, %v9997_v30  ;;  %v10010_v36 = vadd.f32 %v3510_v10, %v9895_v29  ;;  %v10025_v10 = vld [vmem:[#allocation5 + $0x8] sm:$0xff] }
 0x579   : > { %v8228_v20 = vpop.eup %8227  ;;  %v3799_v35 = vpack.c.bf16 %v3715_v63, %v3711_v3  ;;  %v3666_v32 = vadd.f32 1.0, %v8226_v38  ;;  %v10013_v60 = vadd.f32 %v3465_v50, %v9879_v2  ;;  %v3713_v14 = vmul.f32 %v3689_v26, %v9903_v53  ;;  %4502 = vmatpush.bf16.msrb.mxu2 %v10025_v10 }
 0x57a   : > { %v3800_v62 = vpack.c.bf16 %v3716_v49, %v3712_v5  ;;  %v3669_v45 = vadd.f32 1.0, %v8228_v20  ;;  %v3579_v17 = vmul.f32 0.044715, %v3555_v18  ;;  %v3556_v56 = vmul.f32 %v3532_v33, %v9991_v21 }
 0x57b   : > { %v3690_v16 = vmul.f32 0.5, %v3666_v32  ;;  %4038 = vmatmul.bf16.vlgmr.msra.gmra.mxu1 %v3799_v35  ;;  %v3554_v3 = vmul.f32 %v3530_v12, %v9997_v30  ;;  %v3533_v6 = vmul.f32 %v10010_v36, %v10010_v36  ;;  %v3535_v40 = vmul.f32 %v10013_v60, %v10013_v60  ;;  %v8230_v53 = vpop.eup %8229 }
 0x57c   : > { %v3693_v15 = vmul.f32 0.5, %v3669_v45  ;;  %4062 = vmatmul.bf16.vlgmr.msra.gmra.mxu0 %v3800_v62  ;;  %v3603_v47 = vadd.f32 %v3579_v17, %v9983_v9  ;;  %v3624_v63 = vmul.f32 0.7978846, %v3600_v7  ;;  %v3622_v8 = vmul.f32 0.7978846, %v3598_v59  ;;  %v10051_v59 = vld [vmem:[#allocation5] sm:$0xff] }
 0x57d   : > { %v3714_v55 = vmul.f32 %v3690_v16, %v9927_v31  ;;  %v3441_v5 = vpop.f32.mrf.mxu3  ;;  %v10029_v37 = vadd.f32 %v3489_v48, %v9881_v44  ;;  %v3601_v38 = vadd.f32 %v3577_v42, %v9968_v27  ;;  %v3557_v26 = vmul.f32 %v3533_v6, %v10010_v36  ;;  %4503 = vmatpush.bf16.msrb.mxu2 %v10051_v59 }
 0x57e   : > { %v3717_v34 = vmul.f32 %v3693_v15, %v9934_v54  ;;  %v3513_v11 = vpop.f32.mrf.mxu2  ;;  %v3559_v49 = vmul.f32 %v3535_v40, %v10013_v60  ;;  %v3627_v20 = vmul.f32 0.7978846, %v3603_v47  ;;  %v3580_v35 = vmul.f32 0.044715, %v3556_v56 }
 0x57f   : > { %v3798_v31 = vpack.c.bf16 %v3714_v55, %v3710_v39  ;;  %v3467_v54 = vpop.f32.mrf.mxu1  ;;  %v3536_v32 = vmul.f32 %v10029_v37, %v10029_v37  ;;  %v10037_v7 = vadd.f32 %v3441_v5, %v9891_v41  ;;  %v3578_v48 = vmul.f32 0.044715, %v3554_v3 }
 0x580   : > { %v3801_v50 = vpack.c.bf16 %v3717_v34, %v3713_v14  ;;  %v3491_v43 = vpop.f32.mrf.mxu0  ;;  %v3583_v33 = vmul.f32 0.044715, %v3559_v49  ;;  %v10040_v39 = vadd.f32 %v3513_v11, %v9895_v29  ;;  %v10043_v62 = vadd.f32 %v3467_v54, %v9879_v2 }
 0x581   : > { %4014 = vmatmul.bf16.vlgmr.msrb.gmra.mxu3 %v3798_v31  ;;  %v3560_v45 = vmul.f32 %v3536_v32, %v10029_v37  ;;  %v3534_v18 = vmul.f32 %v10037_v7, %v10037_v7  ;;  %v10049_v16 = vadd.f32 %v3491_v43, %v9881_v44  ;;  %8231 = vtanh.f32 %v3624_v63 }
 0x582   : > { %4086 = vmatmul.bf16.vlgmr.msra.gmra.mxu2 %v3801_v50  ;;  %v3581_v42 = vmul.f32 0.044715, %v3557_v26  ;;  %v3607_v12 = vadd.f32 %v3583_v33, %v10013_v60  ;;  %v3539_v2 = vmul.f32 %v10043_v62, %v10043_v62  ;;  %v3625_v15 = vmul.f32 0.7978846, %v3601_v38 }
 0x583   : > { %4604 = vmatpush.bf16.msra.mxu2 %v9929_v13  ;;  %v3537_v17 = vmul.f32 %v10040_v39, %v10040_v39  ;;  %v3540_v44 = vmul.f32 %v10049_v16, %v10049_v16  ;;  %8233 = vtanh.f32 %v3627_v20  ;;  %v3604_v55 = vadd.f32 %v3580_v35, %v9991_v21 }
 0x584   : > { %8235 = vtanh.f32 %v3622_v8  ;;  %v3602_v56 = vadd.f32 %v3578_v48, %v9997_v30  ;;  %v3563_v3 = vmul.f32 %v3539_v2, %v10043_v62  ;;  %v3584_v34 = vmul.f32 0.044715, %v3560_v45 }
 0x585   : > { %v3443_v14 = vpop.f32.mrf.mxu3  ;;  %v3558_v47 = vmul.f32 %v3534_v18, %v10037_v7  ;;  %v3564_v6 = vmul.f32 %v3540_v44, %v10049_v16  ;;  %v3605_v11 = vadd.f32 %v3581_v42, %v10010_v36  ;;  %v3631_v31 = vmul.f32 0.7978846, %v3607_v12 }
 0x586   : > { %v3515_v5 = vpop.f32.mrf.mxu2  ;;  %v10068_v40 = vadd.f32 %v3443_v14, %v9891_v41  ;;  %v3587_v63 = vmul.f32 0.044715, %v3563_v3  ;;  %8237 = vtanh.f32 %v3625_v15  ;;  %v3561_v54 = vmul.f32 %v3537_v17, %v10040_v39 }
 0x587   : > { %v10072_v8 = vadd.f32 %v3515_v5, %v9895_v29  ;;  %4605 = vmatpush.bf16.msra.mxu2 %v9951_v4  ;;  %v3588_v50 = vmul.f32 0.044715, %v3564_v6  ;;  %v8232_v26 = vpop.eup %8231  ;;  %v3628_v49 = vmul.f32 0.7978846, %v3604_v55  ;;  %v3671_v20 = vadd.f32 1.0, %v8230_v53 }
 0x588   : > { %v3538_v38 = vmul.f32 %v10068_v40, %v10068_v40  ;;  %v3611_v41 = vadd.f32 %v3587_v63, %v10043_v62  ;;  %v3626_v29 = vmul.f32 0.7978846, %v3602_v56  ;;  %v3608_v32 = vadd.f32 %v3584_v34, %v10029_v37 }
 0x589   : > { %v3541_v43 = vmul.f32 %v10072_v8, %v10072_v8  ;;  %v8234_v35 = vpop.eup %8233  ;;  %v3582_v48 = vmul.f32 0.044715, %v3558_v47  ;;  %v3629_v18 = vmul.f32 0.7978846, %v3605_v11  ;;  %8239 = vtanh.f32 %v3631_v31 }
 0x58a   : > { %v3562_v33 = vmul.f32 %v3538_v38, %v10068_v40  ;;  %v8236_v45 = vpop.eup %8235  ;;  %v3675_v12 = vadd.f32 1.0, %v8234_v35  ;;  %v3585_v2 = vmul.f32 0.044715, %v3561_v54  ;;  %v3612_v15 = vadd.f32 %v3588_v50, %v10049_v16 }
 0x58b   : > { %v3565_v42 = vmul.f32 %v3541_v43, %v10072_v8  ;;  %4606 = vmatpush.bf16.msra.mxu2 %v9962_v22  ;;  %v3695_v53 = vmul.f32 0.5, %v3671_v20  ;;  %v3635_v44 = vmul.f32 0.7978846, %v3611_v41  ;;  %v3632_v3 = vmul.f32 0.7978846, %v3608_v32 }
 0x58c   : > { %v3586_v17 = vmul.f32 0.044715, %v3562_v33  ;;  %v3699_v55 = vmul.f32 0.5, %v3675_v12  ;;  %v8238_v56 = vpop.eup %8237  ;;  %v3606_v5 = vadd.f32 %v3582_v48, %v10037_v7  ;;  %8241 = vtanh.f32 %v3628_v49 }
 0x58d   : > { %v3589_v14 = vmul.f32 0.044715, %v3565_v42  ;;  %v3719_v6 = vmul.f32 %v3695_v53, %v9940_v57  ;;  %8243 = vtanh.f32 %v3626_v29  ;;  %v3609_v31 = vadd.f32 %v3585_v2, %v10040_v39 }
 0x58e   : > { %v3610_v34 = vadd.f32 %v3586_v17, %v10068_v40  ;;  %v3723_v11 = vmul.f32 %v3699_v55, %v9983_v9  ;;  %v3636_v63 = vmul.f32 0.7978846, %v3612_v15  ;;  %8245 = vtanh.f32 %v3629_v18 }
 0x58f   : > { %v3613_v47 = vadd.f32 %v3589_v14, %v10072_v8  ;;  %4607 = vmatpush.bf16.msra.mxu2 %v9973_v0  ;;  %v8240_v54 = vpop.eup %8239  ;;  %v3672_v41 = vadd.f32 1.0, %v8232_v26  ;;  %8247 = vtanh.f32 %v3635_v44  ;;  %v3670_v49 = vadd.f32 1.0, %v8236_v45 }
 0x590   : > { %v3634_v50 = vmul.f32 0.7978846, %v3610_v34  ;;  %v3803_v38 = vpack.c.bf16 %v3723_v11, %v3719_v6  ;;  %8249 = vtanh.f32 %v3632_v3  ;;  %v3630_v20 = vmul.f32 0.7978846, %v3606_v5 }
 0x591   : > { %v3637_v43 = vmul.f32 0.7978846, %v3613_v47  ;;  %v3673_v57 = vadd.f32 1.0, %v8238_v56  ;;  %v3633_v35 = vmul.f32 0.7978846, %v3609_v31  ;;  %8251 = vtanh.f32 %v3636_v63 }
 0x592   : > { %4043 = vmatmul.bf16.gmra.mxu1 %v3803_v38  ;;  %v8242_v9 = vpop.eup %8241  ;;  %v3696_v48 = vmul.f32 0.5, %v3672_v41  ;;  %v3679_v33 = vadd.f32 1.0, %v8240_v54  ;;  %8253 = vtanh.f32 %v3634_v50  ;;  %v3694_v26 = vmul.f32 0.5, %v3670_v49 }
 0x593   : > { %4608 = vmatpush.bf16.msra.mxu2 %v9985_v61  ;;  %v8244_v29 = vpop.eup %8243  ;;  %v3676_v32 = vadd.f32 1.0, %v8242_v9  ;;  %8255 = vtanh.f32 %v3637_v43  ;;  %v3697_v15 = vmul.f32 0.5, %v3673_v57 }
 0x594   : > { %v8246_v18 = vpop.eup %8245  ;;  %v3674_v42 = vadd.f32 1.0, %v8244_v29  ;;  %8257 = vtanh.f32 %v3630_v20  ;;  %v3720_v14 = vmul.f32 %v3696_v48, %v9946_v1  ;;  %v3703_v3 = vmul.f32 0.5, %v3679_v33 }
 0x595   : > { %v8248_v12 = vpop.eup %8247  ;;  %v3700_v45 = vmul.f32 0.5, %v3676_v32  ;;  %v3677_v2 = vadd.f32 1.0, %v8246_v18  ;;  %8259 = vtanh.f32 %v3633_v35  ;;  %v3718_v34 = vmul.f32 %v3694_v26, %v9960_v19 }
 0x596   : > { %v3698_v17 = vmul.f32 0.5, %v3674_v42  ;;  %v3683_v53 = vadd.f32 1.0, %v8248_v12  ;;  %v8250_v44 = vpop.eup %8249  ;;  %v3721_v63 = vmul.f32 %v3697_v15, %v9968_v27  ;;  %v3727_v19 = vmul.f32 %v3703_v3, %v10013_v60 }
 0x597   : > { %4609 = vmatpush.bf16.msra.mxu2 %v10003_v51  ;;  %v3724_v55 = vmul.f32 %v3700_v45, %v9991_v21  ;;  %v3701_v56 = vmul.f32 0.5, %v3677_v2  ;;  %v8252_v5 = vpop.eup %8251  ;;  %v3680_v27 = vadd.f32 1.0, %v8250_v44 }
 0x598   : > { %v3722_v47 = vmul.f32 %v3698_v17, %v9997_v30  ;;  %v3707_v6 = vmul.f32 0.5, %v3683_v53  ;;  %v8254_v11 = vpop.eup %8253  ;;  %v3684_v43 = vadd.f32 1.0, %v8252_v5 }
 0x599   : > { %v3804_v31 = vpack.c.bf16 %v3724_v55, %v3720_v14  ;;  %v3725_v54 = vmul.f32 %v3701_v56, %v10010_v36  ;;  %v8256_v50 = vpop.eup %8255  ;;  %v3682_v49 = vadd.f32 1.0, %v8254_v11 }
 0x59a   : > { %v3802_v1 = vpack.c.bf16 %v3722_v47, %v3718_v34  ;;  %v3731_v21 = vmul.f32 %v3707_v6, %v10043_v62  ;;  %v8258_v38 = vpop.eup %8257  ;;  %v3685_v57 = vadd.f32 1.0, %v8256_v50  ;;  %v3708_v9 = vmul.f32 0.5, %v3684_v43 }
 0x59b   : > { %4610 = vmatpush.bf16.msra.mxu2 %v10025_v10  ;;  %4067 = vmatmul.bf16.gmra.mxu0 %v3804_v31  ;;  %v3805_v41 = vpack.c.bf16 %v3725_v54, %v3721_v63  ;;  %v8260_v30 = vpop.eup %8259  ;;  %v3678_v36 = vadd.f32 1.0, %v8258_v38  ;;  %v3706_v29 = vmul.f32 0.5, %v3682_v49  ;;  %v3704_v62 = vmul.f32 0.5, %v3680_v27 }
 0x59c   : > { %4019 = vmatmul.bf16.gmra.mxu3 %v3802_v1  ;;  %v3807_v20 = vpack.c.bf16 %v3731_v21, %v3727_v19  ;;  %v3681_v35 = vadd.f32 1.0, %v8260_v30  ;;  %v3709_v32 = vmul.f32 0.5, %v3685_v57  ;;  %v3732_v60 = vmul.f32 %v3708_v9, %v10049_v16  ;;  %v8142_v16 = vld [vmem:[%s11019_s25] ss:$0 sm:$0xff] }
 0x59d   : > { %4091 = vmatmul.bf16.gmra.mxu2 %v3805_v41  ;;  %v3702_v48 = vmul.f32 0.5, %v3678_v36  ;;  %v3730_v18 = vmul.f32 %v3706_v29, %v10068_v40  ;;  %v3728_v42 = vmul.f32 %v3704_v62, %v10029_v37 }
 0x59e   : > { %v3705_v33 = vmul.f32 0.5, %v3681_v35  ;;  %v3733_v26 = vmul.f32 %v3709_v32, %v10072_v8 }
 0x59f   : > { %4611 = vmatpush.bf16.msra.mxu2 %v10051_v59  ;;  %v3726_v12 = vmul.f32 %v3702_v48, %v10037_v7  ;;  %v3808_v45 = vpack.c.bf16 %v3732_v60, %v3728_v42 }
 0x5a0   : > { %v3729_v2 = vmul.f32 %v3705_v33, %v10040_v39 }
 0x5a1   : > { %v3806_v15 = vpack.c.bf16 %v3730_v18, %v3726_v12 }
 0x5a2   : > { %4048 = vmatmul.bf16.gmra.mxu1 %v3807_v20  ;;  %v3809_v17 = vpack.c.bf16 %v3733_v26, %v3729_v2 }
 0x5ab   : > { %4072 = vmatmul.bf16.gmra.mxu0 %v3808_v45 }
 0x5ac   : > { %4024 = vmatmul.bf16.gmra.mxu3 %v3806_v15 }
 0x5ad   : > { %4096 = vmatmul.bf16.gmra.mxu2 %v3809_v17 }
 0x5f8   : > { %v4039_v53 = vpop.f32.mrf.mxu1 }
 0x5f9   : > { %v4063_v37 = vpop.f32.mrf.mxu0 }
 0x600   : > { %v4041_v5 = vpop.f32.mrf.mxu1 }
 0x601   : > { %v4065_v47 = vpop.f32.mrf.mxu0 }
 0x604   : > { %v4015_v40 = vpop.f32.mrf.mxu3 }
 0x605   : > { %v4016_v44 = vadd.f32 %v8142_v16, %v4015_v40  ;;  %v4087_v8 = vpop.f32.mrf.mxu2 }
 0x607   : > { %v4040_v14 = vadd.f32 %v4039_v53, %v4016_v44 }
 0x609   : > { %v4064_v55 = vadd.f32 %v4063_v37, %v4040_v14 }
 0x60b   : > { %v4088_v7 = vadd.f32 %v4087_v8, %v4064_v55 }
 0x60c   : > { %v4017_v56 = vpop.f32.mrf.mxu3 }
 0x60d   : > { %v4018_v3 = vadd.f32 %v8142_v16, %v4017_v56  ;;  %v4102_v39 = vadd.f32 %v4088_v7, %v9844_v46  ;;  %v4089_v11 = vpop.f32.mrf.mxu2  ;;  %v7341_v56 = vld [vmem:[#allocation8 + $0x174] sm:$0xf0] }
 0x60f   : > { %v4042_v34 = vadd.f32 %v4041_v5, %v4018_v3  ;;  %4110 = vadd.xlane.f32.xlu2 %v4102_v39  ;;  %v4044_v54 = vpop.f32.mrf.mxu1  ;;  %v7921_v3 = vld [vmem:[#allocation8 + $0x154] sm:$0xf] }
 0x611   : > { %v4066_v6 = vadd.f32 %v4065_v47, %v4042_v34 }
 0x613   : > { %v4090_v31 = vadd.f32 %v4089_v11, %v4066_v6 }
 0x615   : > { %v4103_v63 = vadd.f32 %v4090_v31, %v9847_v52 }
 0x617   : > { %4112 = vadd.xlane.f32.xlu0 %v4103_v63  ;;  %v4046_v43 = vpop.f32.mrf.mxu1 }
 0x618   : > { %v4068_v50 = vpop.f32.mrf.mxu0 }
 0x61f   : > { %v4020_v1 = vpop.f32.mrf.mxu3  ;;  %v4049_v35 = vpop.f32.mrf.mxu1 }
 0x620   : > { %v4021_v21 = vadd.f32 %v8142_v16, %v4020_v1  ;;  %v4092_v38 = vpop.f32.mrf.mxu2  ;;  %v4070_v46 = vpop.f32.mrf.mxu0 }
 0x622   : > { %v4045_v41 = vadd.f32 %v4044_v54, %v4021_v21 }
 0x624   : > { %v4069_v19 = vadd.f32 %v4068_v50, %v4045_v41 }
 0x626   : > { %v4093_v30 = vadd.f32 %v4092_v38, %v4069_v19 }
 0x627   : > { %v4022_v49 = vpop.f32.mrf.mxu3  ;;  %v4051_v45 = vpop.f32.mrf.mxu1 }
 0x628   : > { %v4023_v20 = vadd.f32 %v8142_v16, %v4022_v49  ;;  %v4104_v27 = vadd.f32 %v4093_v30, %v9857_v28  ;;  %v4094_v57 = vpop.f32.mrf.mxu2  ;;  %v4073_v48 = vpop.f32.mrf.mxu0 }
 0x62a   : > { %v4047_v36 = vadd.f32 %v4046_v43, %v4023_v20  ;;  %4114 = vadd.xlane.f32.xlu1 %v4104_v27  ;;  %v7339_v20 = vld [vmem:[#allocation8 + $0x168] sm:$0xf] }
 0x62c   : > { %v4071_v9 = vadd.f32 %v4070_v46, %v4047_v36 }
 0x62e   : > { %v4095_v52 = vadd.f32 %v4094_v57, %v4071_v9  ;;  %v7347_v57 = vld [vmem:[#allocation8 + $0x170] sm:$0xf]  ;;  %v7926_v9 = vld [vmem:[#allocation8 + $0x178] sm:$0xf0] }
 0x62f   : > { %v4025_v29 = vpop.f32.mrf.mxu3 }
 0x630   : > { %v4026_v62 = vadd.f32 %v8142_v16, %v4025_v29  ;;  %v4105_v32 = vadd.f32 %v4095_v52, %v9860_v24  ;;  %v4097_v33 = vpop.f32.mrf.mxu2  ;;  %v4075_v15 = vpop.f32.mrf.mxu0  ;;  %v7348_v52 = vor.u32 %v7926_v9, %v7347_v57  ;;  %v7317_v29 = vld [vmem:[#allocation8 + $0x144] sm:$0xf0]  ;;  %v7910_v57 = vld [vmem:[#allocation8 + $0xf8] sm:$0xf0] }
 0x632   : > { %v4050_v60 = vadd.f32 %v4049_v35, %v4026_v62  ;;  %4116 = vadd.xlane.f32.xlu2 %v4105_v32  ;;  %v7918_v35 = vld [vmem:[#allocation8 + $0x13c] sm:$0xf]  ;;  %4469 = vmatpush.bf16.msrb.mxu0 %v7348_v52 }
 0x633   : > { %v7320_v62 = vor.u32 %v7918_v35, %v7317_v29  ;;  %v7911_v35 = vld [vmem:[#allocation8 + $0x100] sm:$0xf0] }
 0x634   : > { %v4074_v18 = vadd.f32 %v4073_v48, %v4050_v60  ;;  %v7922_v48 = vld [vmem:[#allocation8 + $0x158] sm:$0xf0]  ;;  %v7335_v60 = vld [vmem:[#allocation8 + $0x158] sm:$0xf] }
 0x636   : > { %v4098_v42 = vadd.f32 %v4097_v33, %v4074_v18  ;;  %v7923_v18 = vld [vmem:[#allocation8 + $0x160] sm:$0xf0] }
 0x637   : > { %v4027_v26 = vpop.f32.mrf.mxu3 }
 0x638   : > { %v4028_v12 = vadd.f32 %v8142_v16, %v4027_v26  ;;  %v4106_v28 = vadd.f32 %v4098_v42, %v9869_v23  ;;  %v4099_v53 = vpop.f32.mrf.mxu2  ;;  %v7336_v42 = vor.u32 %v7923_v18, %v7335_v60  ;;  %v7907_v18 = vld [vmem:[#allocation8 + $0xe0] sm:$0xf0] }
 0x63a   : > { %v4052_v2 = vadd.f32 %v4051_v45, %v4028_v12  ;;  %4118 = vadd.xlane.f32.xlu0 %v4106_v28  ;;  %4470 = vmatpush.bf16.msrb.mxu0 %v7336_v42  ;;  %v7315_v12 = vld [vmem:[#allocation8 + $0x138] sm:$0xf]  ;;  %v7323_v45 = vld [vmem:[#allocation8 + $0x140] sm:$0xf] }
 0x63b   : > { %v7275_v42 = vld [vmem:[#allocation8 + $0xe0] sm:$0xf] }
 0x63c   : > { %v4076_v17 = vadd.f32 %v4075_v15, %v4052_v2 }
 0x63e   : > { %v4100_v40 = vadd.f32 %v4099_v53, %v4076_v17  ;;  %v7920_v17 = vld [vmem:[#allocation8 + $0x148] sm:$0xf0] }
 0x63f   : > { %v7324_v53 = vor.u32 %v7920_v17, %v7323_v45 }
 0x640   : > { %v4107_v44 = vadd.f32 %v4100_v40, %v9872_v25  ;;  %v7924_v25 = vld [vmem:[#allocation8 + $0x16c] sm:$0xf] }
 0x641   : > { %v7344_v34 = vor.u32 %v7924_v25, %v7341_v56  ;;  %4471 = vmatpush.bf16.msrb.mxu0 %v7324_v53  ;;  %v7311_v25 = vld [vmem:[#allocation8 + $0x128] sm:$0xf]  ;;  %v7917_v56 = vld [vmem:[#allocation8 + $0x130] sm:$0xf0]  ;;  %v7903_v53 = vld [vmem:[#allocation8 + $0xc4] sm:$0xf] }
 0x642   : > { %4120 = vadd.xlane.f32.xlu1 %v4107_v44 }
 0x643   : > { %4445 = vmatpush.bf16.msrb.mxu1 %v7344_v34  ;;  %v7312_v34 = vor.u32 %v7917_v56, %v7311_v25  ;;  %v7905_v25 = vld [vmem:[#allocation8 + $0xd0] sm:$0xf0] }
 0x645   : > { %4472 = vmatpush.bf16.msrb.mxu0 %v7312_v34 }
 0x682   : > { %v4111_v24 = vpop.xlane.xlu2 %4110 }
 0x683   : > { %v4122_v37 = vmul.f32 %v4111_v24, %v9792_v58  ;;  %v7305_v24 = vld [vmem:[#allocation8 + $0x12c] sm:$0xf0] }
 0x685   : > { %v10121_v14 = vsub.f32 %v4102_v39, %v4122_v37  ;;  %v7329_v39 = vld [vmem:[#allocation8 + $0x15c] sm:$0xf0] }
 0x686   : > { %v7332_v6 = vor.u32 %v7921_v3, %v7329_v39 }
 0x687   : > { %v4134_v16 = vmul.f32 %v10121_v14, %v10121_v14 }
 0x688   : > { %4446 = vmatpush.bf16.msrb.mxu1 %v7332_v6  ;;  %v7913_v6 = vld [vmem:[#allocation8 + $0x110] sm:$0xf0] }
 0x689   : > { %4140 = vadd.xlane.f32.xlu2 %v4134_v16  ;;  %v7912_v16 = vld [vmem:[#allocation8 + $0x10c] sm:$0xf] }
 0x68a   : > { %v4113_v23 = vpop.xlane.xlu0 %4112 }
 0x68b   : > { %v4123_v8 = vmul.f32 %v4113_v23, %v9792_v58  ;;  %v7293_v23 = vld [vmem:[#allocation8 + $0x114] sm:$0xf0] }
 0x68c   : > { %4447 = vmatpush.bf16.msrb.mxu1 %v7320_v62  ;;  %v7296_v3 = vor.u32 %v7912_v16, %v7293_v23  ;;  %v7904_v16 = vld [vmem:[#allocation8 + $0xc8] sm:$0xf0]  ;;  %v7263_v23 = vld [vmem:[#allocation8 + $0xc8] sm:$0xf] }
 0x68d   : > { %v10126_v55 = vsub.f32 %v4103_v63, %v4123_v8  ;;  %v7303_v8 = vld [vmem:[#allocation8 + $0x120] sm:$0xf]  ;;  %v7264_v56 = vor.u32 %v7905_v25, %v7263_v23 }
 0x68e   : > { %v10237_v23 = vld [vmem:[#allocation5 + $0x20] sm:$0xff] }
 0x68f   : > { %v4135_v7 = vmul.f32 %v10126_v55, %v10126_v55 }
 0x691   : > { %4142 = vadd.xlane.f32.xlu0 %v4135_v7  ;;  %v7916_v7 = vld [vmem:[#allocation8 + $0x128] sm:$0xf0] }
 0x69d   : > { %v4115_v5 = vpop.xlane.xlu1 %4114 }
 0x69e   : > { %v4124_v47 = vmul.f32 %v4115_v5, %v9792_v58  ;;  %v7304_v5 = vor.u32 %v7916_v7, %v7303_v8 }
 0x6a0   : > { %v10131_v11 = vsub.f32 %v4104_v27, %v4124_v47  ;;  %v7925_v27 = vld [vmem:[#allocation8 + $0x170] sm:$0xf0]  ;;  %v7291_v47 = vld [vmem:[#allocation8 + $0x108] sm:$0xf] }
 0x6a1   : > { %v7340_v36 = vor.u32 %v7925_v27, %v7339_v20  ;;  %v7279_v20 = vld [vmem:[#allocation8 + $0xf0] sm:$0xf] }
 0x6a2   : > { %v4136_v31 = vmul.f32 %v10131_v11, %v10131_v11  ;;  %v7280_v52 = vor.u32 %v7910_v57, %v7279_v20 }
 0x6a3   : > { %4421 = vmatpush.bf16.msra.mxu3 %v7340_v36  ;;  %v7287_v36 = vld [vmem:[#allocation8 + $0xf8] sm:$0xf] }
 0x6a4   : > { %4144 = vadd.xlane.f32.xlu1 %v4136_v31  ;;  %v7299_v31 = vld [vmem:[#allocation8 + $0x110] sm:$0xf]  ;;  %v7288_v29 = vor.u32 %v7911_v35, %v7287_v36 }
 0x6a5   : > { %v4117_v63 = vpop.xlane.xlu2 %4116 }
 0x6a6   : > { %v4125_v54 = vmul.f32 %v4117_v63, %v9792_v58 }
 0x6a8   : > { %v10136_v50 = vsub.f32 %v4105_v32, %v4125_v54  ;;  %v7327_v32 = vld [vmem:[#allocation8 + $0x150] sm:$0xf]  ;;  %v7292_v54 = vor.u32 %v7913_v6, %v7291_v47 }
 0x6a9   : > { %v7328_v33 = vor.u32 %v7922_v48, %v7327_v32  ;;  %v7906_v32 = vld [vmem:[#allocation8 + $0xdc] sm:$0xf]  ;;  %v7269_v48 = vld [vmem:[#allocation8 + $0xe4] sm:$0xf0] }
 0x6aa   : > { %v4137_v1 = vmul.f32 %v10136_v50, %v10136_v50  ;;  %v7272_v60 = vor.u32 %v7906_v32, %v7269_v48 }
 0x6ab   : > { %4422 = vmatpush.bf16.msra.mxu3 %v7328_v33  ;;  %v7267_v33 = vld [vmem:[#allocation8 + $0xd8] sm:$0xf] }
 0x6ac   : > { %4146 = vadd.xlane.f32.xlu2 %v4137_v1  ;;  %v7914_v1 = vld [vmem:[#allocation8 + $0x118] sm:$0xf0] }
 0x6ad   : > { %v4119_v21 = vpop.xlane.xlu0 %4118 }
 0x6ae   : > { %v4126_v38 = vmul.f32 %v4119_v21, %v9792_v58  ;;  %v7300_v21 = vor.u32 %v7914_v1, %v7299_v31 }
 0x6b0   : > { %v10141_v41 = vsub.f32 %v4106_v28, %v4126_v38  ;;  %v7919_v28 = vld [vmem:[#allocation8 + $0x140] sm:$0xf0]  ;;  %4473 = vmatpush.bf16.msrb.mxu0 %v7300_v21 }
 0x6b1   : > { %v7316_v15 = vor.u32 %v7919_v28, %v7315_v12  ;;  %v7268_v12 = vor.u32 %v7907_v18, %v7267_v33  ;;  %v7908_v28 = vld [vmem:[#allocation8 + $0xe8] sm:$0xf0] }
 0x6b2   : > { %v4138_v19 = vmul.f32 %v10141_v41, %v10141_v41 }
 0x6b3   : > { %4423 = vmatpush.bf16.msra.mxu3 %v7316_v15 }
 0x6b4   : > { %4148 = vadd.xlane.f32.xlu0 %v4138_v19  ;;  %4474 = vmatpush.bf16.msrb.mxu0 %v7288_v29 }
 0x6b5   : > { %v4121_v43 = vpop.xlane.xlu1 %4120 }
 0x6b6   : > { %v4127_v30 = vmul.f32 %v4121_v43, %v9792_v58 }
 0x6b7   : > { %4424 = vmatpush.bf16.msra.mxu3 %v7304_v5 }
 0x6b8   : > { %v10146_v46 = vsub.f32 %v4107_v44, %v4127_v30  ;;  %v7915_v44 = vld [vmem:[#allocation8 + $0x124] sm:$0xf]  ;;  %v7909_v30 = vld [vmem:[#allocation8 + $0xf4] sm:$0xf] }
 0x6b9   : > { %v7308_v37 = vor.u32 %v7915_v44, %v7305_v24  ;;  %v7257_v44 = vld [vmem:[#allocation8 + $0xcc] sm:$0xf0]  ;;  %v7255_v24 = vld [vmem:[#allocation8 + $0xc0] sm:$0xf] }
 0x6ba   : > { %v4139_v49 = vmul.f32 %v10146_v46, %v10146_v46  ;;  %v7256_v7 = vor.u32 %v7904_v16, %v7255_v24 }
 0x6bb   : > { %4448 = vmatpush.bf16.msrb.mxu1 %v7308_v37  ;;  %4425 = vmatpush.bf16.msra.mxu3 %v7292_v54  ;;  %v7260_v37 = vor.u32 %v7903_v53, %v7257_v44 }
 0x6bc   : > { %4150 = vadd.xlane.f32.xlu1 %v4139_v49  ;;  %v7281_v49 = vld [vmem:[#allocation8 + $0xfc] sm:$0xf0] }
 0x6bd   : > { %v7284_v27 = vor.u32 %v7909_v30, %v7281_v49 }
 0x6bf   : > { %4449 = vmatpush.bf16.msrb.mxu1 %v7296_v3  ;;  %4426 = vmatpush.bf16.msra.mxu3 %v7280_v52 }
 0x6c3   : > { %4450 = vmatpush.bf16.msrb.mxu1 %v7284_v27  ;;  %4427 = vmatpush.bf16.msra.mxu3 %v7268_v12 }
 0x6c7   : > { %4451 = vmatpush.bf16.msrb.mxu1 %v7272_v60  ;;  %4428 = vmatpush.bf16.msra.mxu3 %v7256_v7 }
 0x6cb   : > { %4452 = vmatpush.bf16.msrb.mxu1 %v7260_v37  ;;  %4513 = vmatpush.bf16.msrb.mxu3 %v9929_v13 }
 0x6cf   : > { %4530 = vmatpush.bf16.msra.mxu1 %v9929_v13  ;;  %4514 = vmatpush.bf16.msrb.mxu3 %v9951_v4 }
 0x6d3   : > { %4531 = vmatpush.bf16.msra.mxu1 %v9951_v4  ;;  %4515 = vmatpush.bf16.msrb.mxu3 %v9962_v22 }
 0x6d7   : > { %4532 = vmatpush.bf16.msra.mxu1 %v9962_v22  ;;  %4516 = vmatpush.bf16.msrb.mxu3 %v9973_v0 }
 0x6db   : > { %4533 = vmatpush.bf16.msra.mxu1 %v9973_v0  ;;  %4517 = vmatpush.bf16.msrb.mxu3 %v9985_v61 }
 0x6df   : > { %4534 = vmatpush.bf16.msra.mxu1 %v9985_v61  ;;  %4518 = vmatpush.bf16.msrb.mxu3 %v10003_v51 }
 0x6e3   : > { %4535 = vmatpush.bf16.msra.mxu1 %v10003_v51  ;;  %4519 = vmatpush.bf16.msrb.mxu3 %v10025_v10 }
 0x6e7   : > { %4536 = vmatpush.bf16.msra.mxu1 %v10025_v10  ;;  %4520 = vmatpush.bf16.msrb.mxu3 %v10051_v59 }
 0x6eb   : > { %4537 = vmatpush.bf16.msra.mxu1 %v10051_v59 }
 0x6fc   : > { %v4141_v26 = vpop.xlane.xlu2 %4140 }
 0x6fd   : > { %v4152_v2 = vmul.f32 %v4141_v26, %v9792_v58 }
 0x6ff   : > { %v10151_v40 = vadd.f32 1e-05, %v4152_v2  ;;  %v7276_v2 = vor.u32 %v7908_v28, %v7275_v42 }
 0x701   : > { %8261 = vrsqrt.f32 %v10151_v40  ;;  %4475 = vmatpush.bf16.msrb.mxu0 %v7276_v2  ;;  %vm4170_vm4 = vweird.f32 %v10151_v40 }
 0x704   : > { %v4143_v39 = vpop.xlane.xlu0 %4142 }
 0x705   : > { %v4153_v63 = vmul.f32 %v4143_v39, %v9792_v58  ;;  %4476 = vmatpush.bf16.msrb.mxu0 %v7264_v56 }
 0x707   : > { %v8262_v38 = vpop.eup %8261  ;;  %v10155_v19 = vadd.f32 1e-05, %v4153_v63 }
 0x708   : > { %v4165_v43 = vmul.f32 %v8262_v38, %v10151_v40  ;;  %vm4171_vm3 = vweird.f32 %v8262_v38  ;;  %v10167_v40 = vld [vmem:[%s11020_s15] ss:$0 sm:$0xff] }
 0x709   : > { %8263 = vrsqrt.f32 %v10155_v19  ;;  %vm4172_vm5 = vmor %vm4170_vm4, %vm4171_vm3  ;;  %4587 = vmatpush.bf16.msra.mxu0 %v9929_v13  ;;  %vm4180_vm7 = vweird.f32 %v10155_v19  ;;  %v10177_v13 = vld [vmem:[%s11021_s18] ss:$0 sm:$0xff] }
 0x70a   : > { %v4166_v9 = vmul.f32 %v8262_v38, %v4165_v43 }
 0x70c   : > { %v4167_v62 = vmul.f32 0.5, %v4166_v9 }
 0x70d   : > { %4588 = vmatpush.bf16.msra.mxu0 %v9951_v4 }
 0x70e   : > { %v4168_v26 = vsub.f32 1.5, %v4167_v62 }
 0x70f   : > { %v8264_v45 = vpop.eup %8263 }
 0x710   : > { %v4169_v15 = vmul.f32 %v8262_v38, %v4168_v26  ;;  %v4175_v17 = vmul.f32 %v8264_v45, %v10155_v19  ;;  %vm4181_vm6 = vweird.f32 %v8264_v45  ;;  %v10218_v26 = vld [vmem:[#allocation5 + $0x30] sm:$0xff] }
 0x711   : > { %vm4182_vm8 = vmor %vm4180_vm7, %vm4181_vm6  ;;  %4589 = vmatpush.bf16.msra.mxu0 %v9962_v22 }
 0x712   : > { %v4176_v8 = vmul.f32 %v8264_v45, %v4175_v17  ;;  %v4173_v3 = vsel %vm4172_vm5, %v8262_v38, %v4169_v15  ;;  %v10225_v17 = vld [vmem:[#allocation5 + $0x28] sm:$0xff] }
 0x713   : > { %v4224_v39 = vmul.f32 %v4173_v3, %v10121_v14 }
 0x714   : > { %v4177_v5 = vmul.f32 0.5, %v4176_v8 }
 0x715   : > { %v4233_v63 = vmul.f32 %v10167_v40, %v4224_v39  ;;  %4590 = vmatpush.bf16.msra.mxu0 %v9973_v0 }
 0x716   : > { %v4178_v34 = vsub.f32 1.5, %v4177_v5 }
 0x717   : > { %v4145_v31 = vpop.xlane.xlu1 %4144  ;;  %v10187_v4 = vadd.f32 %v10177_v13, %v4233_v63 }
 0x718   : > { %v4179_v47 = vmul.f32 %v8264_v45, %v4178_v34  ;;  %v4154_v54 = vmul.f32 %v4145_v31, %v9792_v58  ;;  %v8405_v34 = vld [vmem:[#allocation5 + $0x18] sm:$0xff]  ;;  %v8406_v31 = vld [vmem:[#allocation5 + $0x10] sm:$0xff] }
 0x719   : > { %4591 = vmatpush.bf16.msra.mxu0 %v9985_v61 }
 0x71a   : > { %v4183_v6 = vsel %vm4182_vm8, %v8264_v45, %v4179_v47  ;;  %v4160_v21 = vadd.f32 1e-05, %v4154_v54 }
 0x71b   : > { %v4225_v14 = vmul.f32 %v4183_v6, %v10126_v55 }
 0x71c   : > { %8265 = vrsqrt.f32 %v4160_v21  ;;  %vm4190_vm10 = vweird.f32 %v4160_v21 }
 0x71d   : > { %v4234_v1 = vmul.f32 %v10167_v40, %v4225_v14  ;;  %4592 = vmatpush.bf16.msra.mxu0 %v10003_v51  ;;  %v10210_v51 = vld [vmem:[#allocation5 + $0x38] sm:$0xff] }
 0x71f   : > { %v10190_v38 = vadd.f32 %v10177_v13, %v4234_v1  ;;  %v4147_v19 = vpop.xlane.xlu2 %4146  ;;  %v8407_v1 = vld [vmem:[#allocation5 + $0x8] sm:$0xff] }
 0x720   : > { %v4155_v43 = vmul.f32 %v4147_v19, %v9792_v58 }
 0x721   : > { %v4281_v55 = vpack.c.bf16 %v10190_v38, %v10187_v4  ;;  %4593 = vmatpush.bf16.msra.mxu0 %v10025_v10 }
 0x722   : > { %v8266_v22 = vpop.eup %8265  ;;  %v4161_v30 = vadd.f32 1e-05, %v4155_v43  ;;  %v10262_v43 = vld [vmem:[%s10770_s9 + $0x3] sm:$0x7] }
 0x723   : > { %4429 = vmatmul.bf16.vlgmr.msra.gmra.mxu3 %v4281_v55  ;;  %4453 = vmatmul.bf16.vlgmr.msrb.gmra.mxu1 %v4281_v55  ;;  %v4185_v49 = vmul.f32 %v8266_v22, %v4160_v21  ;;  %vm4191_vm9 = vweird.f32 %v8266_v22 }
 0x724   : > { %4477 = vmatmul.bf16.vlgmr.msrb.gmra.mxu0 %v4281_v55  ;;  %8267 = vrsqrt.f32 %v4161_v30  ;;  %vm4192_vm11 = vmor %vm4190_vm10, %vm4191_vm9  ;;  %4678 = vmatpush.bf16.msrb.mxu1 %v10210_v51  ;;  %vm4200_vm13 = vweird.f32 %v4161_v30 }
 0x725   : > { %v4186_v20 = vmul.f32 %v8266_v22, %v4185_v49  ;;  %4621 = vmatpush.bf16.msra.mxu3 %v10210_v51  ;;  %4594 = vmatpush.bf16.msra.mxu0 %v10051_v59 }
 0x727   : > { %v4187_v0 = vmul.f32 0.5, %v4186_v20  ;;  %v4149_v27 = vpop.xlane.xlu0 %4148 }
 0x728   : > { %v4156_v57 = vmul.f32 %v4149_v27, %v9792_v58  ;;  %4679 = vmatpush.bf16.msrb.mxu1 %v10218_v26 }
 0x729   : > { %v4188_v36 = vsub.f32 1.5, %v4187_v0  ;;  %4695 = vmatpush.bf16.msrb.mxu0 %v10210_v51  ;;  %4622 = vmatpush.bf16.msra.mxu3 %v10218_v26 }
 0x72a   : > { %v8268_v9 = vpop.eup %8267  ;;  %v4162_v52 = vadd.f32 1e-05, %v4156_v57 }
 0x72b   : > { %v4189_v61 = vmul.f32 %v8266_v22, %v4188_v36  ;;  %v4195_v35 = vmul.f32 %v8268_v9, %v4161_v30  ;;  %vm4201_vm12 = vweird.f32 %v8268_v9 }
 0x72c   : > { %8269 = vrsqrt.f32 %v4162_v52  ;;  %vm4202_vm14 = vmor %vm4200_vm13, %vm4201_vm12  ;;  %4680 = vmatpush.bf16.msrb.mxu1 %v10225_v17  ;;  %vm4210_vm0 = vweird.f32 %v4162_v52 }
 0x72d   : > { %v4196_v29 = vmul.f32 %v8268_v9, %v4195_v35  ;;  %v4193_v62 = vsel %vm4192_vm11, %v8266_v22, %v4189_v61  ;;  %4696 = vmatpush.bf16.msrb.mxu0 %v10218_v26  ;;  %4623 = vmatpush.bf16.msra.mxu3 %v10225_v17  ;;  %v4288_v22 = vperm.slane %v10262_v43, 1 }
 0x72e   : > { %v4226_v18 = vmul.f32 %v4193_v62, %v10131_v11 }
 0x72f   : > { %v4197_v32 = vmul.f32 0.5, %v4196_v29  ;;  %v4151_v48 = vpop.xlane.xlu1 %4150 }
 0x730   : > { %v4157_v10 = vmul.f32 %v4151_v48, %v9792_v58  ;;  %v4235_v11 = vmul.f32 %v10167_v40, %v4226_v18  ;;  %4681 = vmatpush.bf16.msrb.mxu1 %v10237_v23 }
 0x731   : > { %v4198_v60 = vsub.f32 1.5, %v4197_v32  ;;  %4697 = vmatpush.bf16.msrb.mxu0 %v10225_v17  ;;  %4624 = vmatpush.bf16.msra.mxu3 %v10237_v23 }
 0x732   : > { %v8270_v33 = vpop.eup %8269  ;;  %v4163_v42 = vadd.f32 1e-05, %v4157_v10  ;;  %v10232_v16 = vadd.f32 %v10177_v13, %v4235_v11 }
 0x733   : > { %v4199_v12 = vmul.f32 %v8268_v9, %v4198_v60  ;;  %v4205_v28 = vmul.f32 %v8270_v33, %v4162_v52  ;;  %vm4211_vm15 = vweird.f32 %v8270_v33 }
 0x734   : > { %8271 = vrsqrt.f32 %v4163_v42  ;;  %vm4212_vm1 = vmor %vm4210_vm0, %vm4211_vm15  ;;  %4682 = vmatpush.bf16.msrb.mxu1 %v8405_v34  ;;  %vm4220_vm3 = vweird.f32 %v4163_v42 }
 0x735   : > { %v4203_v45 = vsel %vm4202_vm14, %v8268_v9, %v4199_v12  ;;  %v4206_v2 = vmul.f32 %v8270_v33, %v4205_v28  ;;  %4698 = vmatpush.bf16.msrb.mxu0 %v10237_v23  ;;  %4625 = vmatpush.bf16.msra.mxu3 %v8405_v34 }
 0x736   : > { %v4227_v15 = vmul.f32 %v4203_v45, %v10136_v50 }
 0x737   : > { %v4207_v53 = vmul.f32 0.5, %v4206_v2 }
 0x738   : > { %v4236_v44 = vmul.f32 %v10167_v40, %v4227_v15  ;;  %4683 = vmatpush.bf16.msrb.mxu1 %v8406_v31  ;;  %v8408_v15 = vld [vmem:[#allocation5] sm:$0xff] }
 0x739   : > { %v4208_v24 = vsub.f32 1.5, %v4207_v53  ;;  %4699 = vmatpush.bf16.msrb.mxu0 %v8405_v34  ;;  %4626 = vmatpush.bf16.msra.mxu3 %v8406_v31 }
 0x73a   : > { %v8272_v37 = vpop.eup %8271  ;;  %v10235_v50 = vadd.f32 %v10177_v13, %v4236_v44 }
 0x73b   : > { %v4209_v8 = vmul.f32 %v8270_v33, %v4208_v24  ;;  %v4215_v7 = vmul.f32 %v8272_v37, %v4163_v42  ;;  %vm4221_vm2 = vweird.f32 %v8272_v37 }
 0x73c   : > { %v4282_v25 = vpack.c.bf16 %v10235_v50, %v10232_v16  ;;  %vm4222_vm4 = vmor %vm4220_vm3, %vm4221_vm2  ;;  %4684 = vmatpush.bf16.msrb.mxu1 %v8407_v1 }
 0x73d   : > { %v4216_v56 = vmul.f32 %v8272_v37, %v4215_v7  ;;  %v4213_v3 = vsel %vm4212_vm1, %v8270_v33, %v4209_v8  ;;  %4700 = vmatpush.bf16.msrb.mxu0 %v8406_v31  ;;  %4627 = vmatpush.bf16.msra.mxu3 %v8407_v1 }
 0x73e   : > { %4434 = vmatmul.bf16.gmra.mxu3 %v4282_v25  ;;  %4458 = vmatmul.bf16.gmra.mxu1 %v4282_v25  ;;  %v4228_v47 = vmul.f32 %v4213_v3, %v10141_v41 }
 0x73f   : > { %v4217_v5 = vmul.f32 0.5, %v4216_v56  ;;  %4482 = vmatmul.bf16.gmra.mxu0 %v4282_v25 }
 0x740   : > { %v4237_v54 = vmul.f32 %v10167_v40, %v4228_v47  ;;  %4685 = vmatpush.bf16.msrb.mxu1 %v10051_v59 }
 0x741   : > { %v4218_v39 = vsub.f32 1.5, %v4217_v5  ;;  %4701 = vmatpush.bf16.msrb.mxu0 %v8407_v1  ;;  %4628 = vmatpush.bf16.msra.mxu3 %v10051_v59 }
 0x742   : > { %v10249_v41 = vadd.f32 %v10177_v13, %v4237_v54 }
 0x743   : > { %v4219_v6 = vmul.f32 %v8272_v37, %v4218_v39 }
 0x745   : > { %v4223_v63 = vsel %vm4222_vm4, %v8272_v37, %v4219_v6  ;;  %4702 = vmatpush.bf16.msrb.mxu0 %v10051_v59 }
 0x746   : > { %v4229_v14 = vmul.f32 %v4223_v63, %v10146_v46 }
 0x748   : > { %v4238_v21 = vmul.f32 %v10167_v40, %v4229_v14 }
 0x74a   : > { %v10252_v55 = vadd.f32 %v10177_v13, %v4238_v21  ;;  %v4287_v13 = vperm.slane %v10262_v43, 0 }
 0x74c   : > { %v4283_v19 = vpack.c.bf16 %v10252_v55, %v10249_v41 }
 0x74e   : > { %4439 = vmatmul.bf16.gmra.mxu3 %v4283_v19  ;;  %4463 = vmatmul.bf16.gmra.mxu1 %v4283_v19 }
 0x74f   : > { %4487 = vmatmul.bf16.gmra.mxu0 %v4283_v19 }
 0x7a0   : > { %v4454_v46 = vpop.f32.mrf.mxu1 }
 0x7a1   : > { %v4455_v0 = vadd.f32 %v4454_v46, %v4288_v22  ;;  %v10270_v21 = vpop.f32.mrf.mxu0 }
 0x7a6   : > { %v4430_v40 = vpop.f32.mrf.mxu3 }
 0x7a7   : > { %v4431_v49 = vadd.f32 %v4430_v40, %v4287_v13 }
 0x7a8   : > { %v4456_v30 = vpop.f32.mrf.mxu1 }
 0x7a9   : > { %v4457_v27 = vadd.f32 %v4456_v30, %v4288_v22  ;;  %v4493_v57 = vmul.f32 %v4455_v0, %v4431_v49  ;;  %v10272_v19 = vpop.f32.mrf.mxu0  ;;  %v7934_v30 = vld [vmem:[#allocation10 + $0x78] sm:$0xff] }
 0x7ae   : > { %v4432_v20 = vpop.f32.mrf.mxu3 }
 0x7af   : > { %v4433_v59 = vadd.f32 %v4432_v20, %v4287_v13  ;;  %v7932_v20 = vld [vmem:[#allocation10 + $0x68] sm:$0xff] }
 0x7b1   : > { %v4494_v36 = vmul.f32 %v4457_v27, %v4433_v59 }
 0x7b3   : > { %v4495_v9 = vpack.c.bf16 %v4494_v36, %v4493_v57  ;;  %v7930_v36 = vld [vmem:[#allocation10 + $0x58] sm:$0xff] }
 0x7b5   : > { %4504 = vmatmul.bf16.vlgmr.msrb.gmra.mxu2 %v4495_v9 }
 0x7b6   : > { %4712 = vmatpush.bf16.msrb.mxu2 %v10210_v51 }
 0x7ba   : > { %4713 = vmatpush.bf16.msrb.mxu2 %v10218_v26 }
 0x7bb   : > { %v4459_v52 = vpop.f32.mrf.mxu1 }
 0x7bc   : > { %v4460_v35 = vadd.f32 %v4459_v52, %v4288_v22  ;;  %v10274_v46 = vpop.f32.mrf.mxu0 }
 0x7be   : > { %4714 = vmatpush.bf16.msrb.mxu2 %v10225_v17  ;;  %v4510_v32 = vmul.f32 %v4460_v35, %v4431_v49 }
 0x7c1   : > { %v4435_v61 = vpop.f32.mrf.mxu3 }
 0x7c2   : > { %4715 = vmatpush.bf16.msrb.mxu2 %v10237_v23  ;;  %v4436_v10 = vadd.f32 %v4435_v61, %v4287_v13  ;;  %v7929_v61 = vld [vmem:[#allocation10 + $0x50] sm:$0xff] }
 0x7c3   : > { %v4461_v29 = vpop.f32.mrf.mxu1 }
 0x7c4   : > { %v4462_v62 = vadd.f32 %v4461_v29, %v4288_v22  ;;  %v4584_v42 = vmul.f32 %v4455_v0, %v4436_v10  ;;  %v4601_v26 = vmul.f32 %v4460_v35, %v4436_v10  ;;  %v10276_v40 = vpop.f32.mrf.mxu0 }
 0x7c6   : > { %4716 = vmatpush.bf16.msrb.mxu2 %v8405_v34  ;;  %v4511_v48 = vmul.f32 %v4462_v62, %v4433_v59 }
 0x7c8   : > { %v4512_v60 = vpack.c.bf16 %v4511_v48, %v4510_v32  ;;  %v7928_v48 = vld [vmem:[#allocation10 + $0x48] sm:$0xff] }
 0x7c9   : > { %v4437_v33 = vpop.f32.mrf.mxu3 }
 0x7ca   : > { %4717 = vmatpush.bf16.msrb.mxu2 %v8406_v31  ;;  %v4438_v18 = vadd.f32 %v4437_v33, %v4287_v13  ;;  %4521 = vmatmul.bf16.vlgmr.msrb.gmra.mxu3 %v4512_v60 }
 0x7cb   : > { %v4464_v51 = vpop.f32.mrf.mxu1  ;;  %4839 = vmatpush.bf16.msrb.mxu3 %v7934_v30 }
 0x7cc   : > { %v4585_v12 = vmul.f32 %v4457_v27, %v4438_v18  ;;  %v4602_v28 = vmul.f32 %v4462_v62, %v4438_v18  ;;  %v4465_v17 = vadd.f32 %v4464_v51, %v4288_v22 }
 0x7ce   : > { %4718 = vmatpush.bf16.msrb.mxu2 %v8407_v1  ;;  %v4586_v45 = vpack.c.bf16 %v4585_v12, %v4584_v42  ;;  %v4603_v2 = vpack.c.bf16 %v4602_v28, %v4601_v26  ;;  %v4527_v24 = vmul.f32 %v4465_v17, %v4431_v49  ;;  %v4618_v37 = vmul.f32 %v4465_v17, %v4436_v10  ;;  %v7933_v49 = vld [vmem:[#allocation10 + $0x70] sm:$0xff]  ;;  %v7927_v12 = vld [vmem:[#allocation10 + $0x40] sm:$0xff] }
 0x7cf   : > { %4840 = vmatpush.bf16.msrb.mxu3 %v7933_v49 }
 0x7d0   : > { %4595 = vmatmul.bf16.vlgmr.msra.gmra.mxu0 %v4586_v45  ;;  %4612 = vmatmul.bf16.vlgmr.msra.gmra.mxu2 %v4603_v2 }
 0x7d1   : > { %v4440_v11 = vpop.f32.mrf.mxu3 }
 0x7d2   : > { %4719 = vmatpush.bf16.msrb.mxu2 %v8408_v15  ;;  %v4441_v7 = vadd.f32 %v4440_v11, %v4287_v13 }
 0x7d3   : > { %v4466_v53 = vpop.f32.mrf.mxu1  ;;  %4841 = vmatpush.bf16.msrb.mxu3 %v7932_v20 }
 0x7d4   : > { %v4467_v44 = vadd.f32 %v4466_v53, %v4288_v22  ;;  %v4692_v34 = vmul.f32 %v4460_v35, %v4441_v7  ;;  %v4709_v39 = vmul.f32 %v4465_v17, %v4441_v7  ;;  %v4675_v54 = vmul.f32 %v4455_v0, %v4441_v7 }
 0x7d6   : > { %v4528_v23 = vmul.f32 %v4467_v44, %v4433_v59  ;;  %v4619_v8 = vmul.f32 %v4467_v44, %v4438_v18  ;;  %v7931_v59 = vld [vmem:[#allocation10 + $0x60] sm:$0xff] }
 0x7d7   : > { %4842 = vmatpush.bf16.msrb.mxu3 %v7931_v59 }
 0x7d8   : > { %v4529_v25 = vpack.c.bf16 %v4528_v23, %v4527_v24  ;;  %v4620_v56 = vpack.c.bf16 %v4619_v8, %v4618_v37 }
 0x7d9   : > { %v4442_v3 = vpop.f32.mrf.mxu3 }
 0x7da   : > { %v4443_v5 = vadd.f32 %v4442_v3, %v4287_v13  ;;  %4538 = vmatmul.bf16.vlgmr.msra.gmra.mxu1 %v4529_v25  ;;  %4629 = vmatmul.bf16.vlgmr.msra.gmra.mxu3 %v4620_v56  ;;  %v10278_v13 = vpop.f32.mrf.mxu0 }
 0x7db   : > { %4843 = vmatpush.bf16.msrb.mxu3 %v7930_v36 }
 0x7dc   : > { %v4693_v47 = vmul.f32 %v4462_v62, %v4443_v5  ;;  %v4710_v6 = vmul.f32 %v4467_v44, %v4443_v5  ;;  %v4676_v14 = vmul.f32 %v4457_v27, %v4443_v5 }
 0x7de   : > { %v4694_v31 = vpack.c.bf16 %v4693_v47, %v4692_v34  ;;  %v4711_v63 = vpack.c.bf16 %v4710_v6, %v4709_v39  ;;  %v4677_v1 = vpack.c.bf16 %v4676_v14, %v4675_v54  ;;  %v4289_v14 = vperm.slane %v10262_v43, 2 }
 0x7df   : > { %4844 = vmatpush.bf16.msrb.mxu3 %v7929_v61 }
 0x7e0   : > { %4703 = vmatmul.bf16.vlgmr.msrb.gmra.mxu0 %v4694_v31  ;;  %4720 = vmatmul.bf16.vlgmr.msrb.gmra.mxu2 %v4711_v63  ;;  %v10292_v36 = vadd.f32 %v10270_v21, %v4289_v14  ;;  %v10295_v43 = vadd.f32 %v10272_v19, %v4289_v14  ;;  %v10298_v61 = vadd.f32 %v10274_v46, %v4289_v14 }
 0x7e2   : > { %v10280_v27 = vpop.f32.mrf.mxu0 }
 0x7e3   : > { %4845 = vmatpush.bf16.msrb.mxu3 %v7928_v48 }
 0x7e7   : > { %4846 = vmatpush.bf16.msrb.mxu3 %v7927_v12 }
 0x7ea   : > { %4686 = vmatmul.bf16.vlgmr.msrb.gmra.mxu1 %v4677_v1 }
 0x838   : > { %v4505_v22 = vpop.f32.mrf.mxu2 }
 0x840   : > { %v4507_v0 = vpop.f32.mrf.mxu2 }
 0x84d   : > { %v4522_v57 = vpop.f32.mrf.mxu3  ;;  %v4596_v9 = vpop.f32.mrf.mxu0 }
 0x84e   : > { %v4544_v29 = vmax.f32 %v4505_v22, %v4522_v57 }
 0x853   : > { %v4613_v52 = vpop.f32.mrf.mxu2 }
 0x854   : > { %v4635_v28 = vmax.f32 %v4596_v9, %v4613_v52 }
 0x855   : > { %v4524_v35 = vpop.f32.mrf.mxu3  ;;  %v4598_v33 = vpop.f32.mrf.mxu0 }
 0x856   : > { %v4545_v2 = vmax.f32 %v4507_v0, %v4524_v35 }
 0x857   : > { %v4539_v62 = vpop.f32.mrf.mxu1 }
 0x858   : > { %v4546_v32 = vmax.f32 %v4544_v29, %v4539_v62 }
 0x85a   : > { %v4548_v10 = vsub.f32 %v4505_v22, %v4546_v32  ;;  %v4556_v60 = vsub.f32 %v4522_v57, %v4546_v32  ;;  %v4568_v45 = vsub.f32 %v4539_v62, %v4546_v32  ;;  %v10301_v62 = vadd.f32 %v10276_v40, %v4289_v14 }
 0x85b   : > { %v4615_v42 = vpop.f32.mrf.mxu2 }
 0x85c   : > { %v4550_v18 = vmul.f32 1.442695, %v4548_v10  ;;  %v4558_v51 = vmul.f32 1.442695, %v4556_v60  ;;  %v4570_v53 = vmul.f32 1.442695, %v4568_v45  ;;  %v4636_v7 = vmax.f32 %v4598_v33, %v4615_v42 }
 0x85d   : > { %v10282_v26 = vpop.f32.mrf.mxu3  ;;  %v10285_v25 = vpop.f32.mrf.mxu0 }
 0x85e   : > { %8273 = vpow2.f32 %v4550_v18  ;;  %v4637_v11 = vmax.f32 %v4635_v28, %v10282_v26 }
 0x85f   : > { %v4541_v15 = vpop.f32.mrf.mxu1  ;;  %8275 = vpow2.f32 %v4558_v51 }
 0x860   : > { %v4547_v17 = vmax.f32 %v4545_v2, %v4541_v15  ;;  %v4639_v23 = vsub.f32 %v4596_v9, %v4637_v11  ;;  %8277 = vpow2.f32 %v4570_v53  ;;  %v4647_v47 = vsub.f32 %v4613_v52, %v4637_v11 }
 0x861   : > { %v4659_v21 = vsub.f32 %v10282_v26, %v4637_v11  ;;  %v10310_v11 = vadd.f32 %v10278_v13, %v4289_v14 }
 0x862   : > { %v4549_v44 = vsub.f32 %v4507_v0, %v4547_v17  ;;  %v4557_v24 = vsub.f32 %v4524_v35, %v4547_v17  ;;  %v4569_v37 = vsub.f32 %v4541_v15, %v4547_v17  ;;  %v4641_v54 = vmul.f32 1.442695, %v4639_v23 }
 0x863   : > { %v10287_v6 = vpop.f32.mrf.mxu2  ;;  %v4649_v49 = vmul.f32 1.442695, %v4647_v47  ;;  %v4661_v45 = vmul.f32 1.442695, %v4659_v21  ;;  %v10313_v17 = vadd.f32 %v10280_v27, %v4289_v14 }
 0x864   : > { %v8274_v8 = vpop.eup %8273  ;;  %v4552_v56 = vmul.f32 1.442695, %v4549_v44  ;;  %v4560_v3 = vmul.f32 1.442695, %v4557_v24  ;;  %v4572_v39 = vmul.f32 1.442695, %v4569_v37 }
 0x865   : > { %v4632_v5 = vpop.f32.mrf.mxu3  ;;  %v8276_v34 = vpop.eup %8275  ;;  %v4554_v32 = vmul.f32 %v8274_v8, %v10292_v36 }
 0x866   : > { %8279 = vpow2.f32 %v4552_v56  ;;  %v4638_v31 = vmax.f32 %v4636_v7, %v4632_v5  ;;  %v4562_v1 = vadd.f32 %v8276_v34, %v8274_v8  ;;  %v8278_v57 = vpop.eup %8277  ;;  %v4564_v48 = vmul.f32 %v8276_v34, %v10298_v61  ;;  %v4706_v19 = vpop.f32.mrf.mxu0 }
 0x867   : > { %v4687_v63 = vpop.f32.mrf.mxu1  ;;  %8281 = vpow2.f32 %v4560_v3  ;;  %v4576_v7 = vmul.f32 %v8278_v57, %v10310_v11 }
 0x868   : > { %v4640_v22 = vsub.f32 %v4598_v33, %v4638_v31  ;;  %v4648_v30 = vsub.f32 %v4615_v42, %v4638_v31  ;;  %8283 = vpow2.f32 %v4572_v39  ;;  %v4726_v59 = vmax.f32 %v4687_v63, %v10285_v25 }
 0x869   : > { %8285 = vpow2.f32 %v4641_v54  ;;  %v4660_v9 = vsub.f32 %v4632_v5, %v4638_v31  ;;  %v4574_v35 = vadd.f32 %v8278_v57, %v4562_v1  ;;  %v4566_v44 = vadd.f32 %v4564_v48, %v4554_v32 }
 0x86a   : > { %v4643_v20 = vmul.f32 1.442695, %v4640_v22  ;;  %v4651_v0 = vmul.f32 1.442695, %v4648_v30  ;;  %v4728_v60 = vmax.f32 %v4726_v59, %v10287_v6 }
 0x86b   : > { %v4663_v40 = vmul.f32 1.442695, %v4660_v9  ;;  %v4723_v28 = vpop.f32.mrf.mxu2  ;;  %v4578_v34 = vadd.f32 %v4576_v7, %v4566_v44 }
 0x86c   : > { %v8280_v52 = vpop.eup %8279  ;;  %8287 = vpow2.f32 %v4643_v20  ;;  %v4730_v37 = vsub.f32 %v4687_v63, %v4728_v60  ;;  %v4738_v47 = vsub.f32 %v10285_v25, %v4728_v60 }
 0x86d   : > { %v8282_v29 = vpop.eup %8281  ;;  %8289 = vpow2.f32 %v4651_v0  ;;  %v4555_v18 = vmul.f32 %v8280_v52, %v10295_v43 }
 0x86e   : > { %8291 = vpow2.f32 %v4649_v49  ;;  %v4563_v10 = vadd.f32 %v8282_v29, %v8280_v52  ;;  %v8284_v33 = vpop.eup %8283  ;;  %v4565_v51 = vmul.f32 %v8282_v29, %v10301_v62  ;;  %v4732_v27 = vmul.f32 1.442695, %v4730_v37 }
 0x86f   : > { %v4689_v46 = vpop.f32.mrf.mxu1  ;;  %8293 = vrcp.f32 %v4574_v35  ;;  %v8286_v26 = vpop.eup %8285  ;;  %v4577_v56 = vmul.f32 %v8284_v33, %v10313_v17  ;;  %v4740_v0 = vmul.f32 1.442695, %v4738_v47  ;;  %v4750_v52 = vsub.f32 %v10287_v6, %v4728_v60 }
 0x870   : > { %v4727_v42 = vmax.f32 %v4689_v46, %v4706_v19  ;;  %v4575_v12 = vadd.f32 %v8284_v33, %v4563_v10  ;;  %v4567_v24 = vadd.f32 %v4565_v51, %v4555_v18  ;;  %v4645_v32 = vmul.f32 %v8286_v26, %v10292_v36 }
 0x871   : > { %v4752_v10 = vmul.f32 1.442695, %v4750_v52 }
 0x872   : > { %v4729_v2 = vmax.f32 %v4727_v42, %v4723_v28  ;;  %v8288_v15 = vpop.eup %8287  ;;  %8295 = vrcp.f32 %v4575_v12  ;;  %v4579_v39 = vadd.f32 %v4577_v56, %v4567_v24 }
 0x873   : > { %v8290_v53 = vpop.eup %8289  ;;  %8297 = vpow2.f32 %v4663_v40  ;;  %v4646_v25 = vmul.f32 %v8288_v15, %v10295_v43 }
 0x874   : > { %v8292_v23 = vpop.eup %8291  ;;  %v4731_v8 = vsub.f32 %v4689_v46, %v4729_v2  ;;  %8299 = vpow2.f32 %v4661_v45  ;;  %v4739_v3 = vsub.f32 %v4706_v19, %v4729_v2  ;;  %v4654_v13 = vadd.f32 %v8290_v53, %v8288_v15 }
 0x875   : > { %v8294_v5 = vpop.eup %8293  ;;  %v4653_v14 = vadd.f32 %v8292_v23, %v8286_v26  ;;  %8301 = vpow2.f32 %v4732_v27  ;;  %v4751_v59 = vsub.f32 %v4723_v28, %v4729_v2  ;;  %v4656_v35 = vmul.f32 %v8290_v53, %v10301_v62 }
 0x876   : > { %v4734_v54 = vmul.f32 1.442695, %v4731_v8  ;;  %v4582_v63 = vmul.f32 %v8294_v5, %v4578_v34  ;;  %v4742_v30 = vmul.f32 1.442695, %v4739_v3  ;;  %v4655_v21 = vmul.f32 %v8292_v23, %v10298_v61 }
 0x877   : > { %v4754_v29 = vmul.f32 1.442695, %v4751_v59  ;;  %v4658_v19 = vadd.f32 %v4656_v35, %v4646_v25 }
 0x878   : > { %v8296_v31 = vpop.eup %8295  ;;  %8303 = vpow2.f32 %v4734_v54  ;;  %v4657_v60 = vadd.f32 %v4655_v21, %v4645_v32 }
 0x879   : > { %v8298_v1 = vpop.eup %8297  ;;  %v4583_v22 = vmul.f32 %v8296_v31, %v4579_v39  ;;  %8305 = vpow2.f32 %v4742_v30 }
 0x87a   : > { %v4666_v49 = vadd.f32 %v8298_v1, %v4654_v13  ;;  %v8300_v20 = vpop.eup %8299  ;;  %v4668_v6 = vmul.f32 %v8298_v1, %v10313_v17 }
 0x87b   : > { %v4783_v57 = vpack.c.bf16 %v4583_v22, %v4582_v63  ;;  %v4665_v9 = vadd.f32 %v8300_v20, %v4653_v14  ;;  %v8302_v48 = vpop.eup %8301  ;;  %v4667_v40 = vmul.f32 %v8300_v20, %v10310_v11 }
 0x87c   : > { %8307 = vrcp.f32 %v4666_v49  ;;  %v4670_v42 = vadd.f32 %v4668_v6, %v4658_v19  ;;  %v4736_v56 = vmul.f32 %v8302_v48, %v10292_v36  ;;  %v8145_v36 = vld [vmem:[%s11015_s13 + $0x1] ss:$0 sm:$0xff] }
 0x87d   : > { %4847 = vmatmul.bf16.vlgmr.msrb.gmra.mxu3 %v4783_v57  ;;  %8309 = vpow2.f32 %v4740_v0  ;;  %v4669_v26 = vadd.f32 %v4667_v40, %v4657_v60 }
 0x87e   : > { %8311 = vrcp.f32 %v4665_v9  ;;  %v8304_v46 = vpop.eup %8303 }
 0x87f   : > { %v8306_v33 = vpop.eup %8305  ;;  %8313 = vpow2.f32 %v4754_v29  ;;  %v4737_v8 = vmul.f32 %v8304_v46, %v10295_v43 }
 0x880   : > { %8315 = vpow2.f32 %v4752_v10  ;;  %v4745_v28 = vadd.f32 %v8306_v33, %v8304_v46  ;;  %v4747_v7 = vmul.f32 %v8306_v33, %v10301_v62 }
 0x882   : > { %v8308_v18 = vpop.eup %8307  ;;  %v4749_v5 = vadd.f32 %v4747_v7, %v4737_v8  ;;  %v7963_v8 = vld [vmem:[#allocation11 + $0x1e4] sm:$0xf]  ;;  %v7501_v7 = vld [vmem:[#allocation11 + $0x1f0] sm:$0xf0] }
 0x883   : > { %v8310_v51 = vpop.eup %8309  ;;  %v4674_v45 = vmul.f32 %v8308_v18, %v4670_v42 }
 0x884   : > { %v8312_v12 = vpop.eup %8311  ;;  %v4744_v2 = vadd.f32 %v8310_v51, %v8302_v48  ;;  %v4746_v3 = vmul.f32 %v8310_v51, %v10298_v61 }
 0x885   : > { %v8314_v15 = vpop.eup %8313  ;;  %v4673_v53 = vmul.f32 %v8312_v12, %v4669_v26 }
 0x886   : > { %v4757_v44 = vadd.f32 %v8314_v15, %v4745_v28  ;;  %v8316_v24 = vpop.eup %8315  ;;  %v4748_v13 = vadd.f32 %v4746_v3, %v4736_v56  ;;  %v4759_v34 = vmul.f32 %v8314_v15, %v10313_v17  ;;  %v7504_v3 = vor.u32 %v7963_v8, %v7501_v7  ;;  %v7943_v8 = vld [vmem:[#allocation11 + $0x144] sm:$0xf] }
 0x887   : > { %v4784_v37 = vpack.c.bf16 %v4674_v45, %v4673_v53  ;;  %v4756_v23 = vadd.f32 %v8316_v24, %v4744_v2  ;;  %v4758_v27 = vmul.f32 %v8316_v24, %v10310_v11  ;;  %v7964_v53 = vld [vmem:[#allocation11 + $0x1ec] sm:$0xf]  ;;  %v7499_v24 = vld [vmem:[#allocation11 + $0x1e0] sm:$0xf] }
 0x888   : > { %8317 = vrcp.f32 %v4757_v44  ;;  %v4761_v47 = vadd.f32 %v4759_v34, %v4749_v5  ;;  %v7509_v44 = vld [vmem:[#allocation11 + $0x1f8] sm:$0xf0]  ;;  %v7507_v5 = vld [vmem:[#allocation11 + $0x1e8] sm:$0xf]  ;;  %5242 = vmatpush.bf16.msra.mxu0 %v7504_v3 }
 0x889   : > { %8319 = vrcp.f32 %v4756_v23  ;;  %v4760_v14 = vadd.f32 %v4758_v27, %v4748_v13  ;;  %v7965_v23 = vld [vmem:[#allocation11 + $0x1ec] sm:$0xf0]  ;;  %v7966_v13 = vld [vmem:[#allocation11 + $0x1f4] sm:$0xf0]  ;;  %v7493_v27 = vld [vmem:[#allocation11 + $0x1d8] sm:$0xf0] }
 0x88a   : > { %v7500_v56 = vor.u32 %v7965_v23, %v7499_v24  ;;  %v7508_v34 = vor.u32 %v7966_v13, %v7507_v5  ;;  %v7945_v23 = vld [vmem:[#allocation11 + $0x14c] sm:$0xf0]  ;;  %v7427_v3 = vld [vmem:[#allocation11 + $0x148] sm:$0xf]  ;;  %v7946_v5 = vld [vmem:[#allocation11 + $0x154] sm:$0xf0] }
 0x88c   : > { %5218 = vmatpush.bf16.msra.mxu1 %v7500_v56  ;;  %5266 = vmatpush.bf16.msra.mxu2 %v7508_v34  ;;  %v7421_v56 = vld [vmem:[#allocation11 + $0x150] sm:$0xf0]  ;;  %v7428_v34 = vor.u32 %v7946_v5, %v7427_v3 }
 0x88d   : > { %4852 = vmatmul.bf16.gmra.mxu3 %v4784_v37  ;;  %v7512_v37 = vor.u32 %v7964_v53, %v7509_v44  ;;  %v7948_v53 = vld [vmem:[#allocation11 + $0x16c] sm:$0xf]  ;;  %v7445_v44 = vld [vmem:[#allocation11 + $0x178] sm:$0xf0]  ;;  %v7424_v13 = vor.u32 %v7943_v8, %v7421_v56 }
 0x88e   : > { %v8318_v39 = vpop.eup %8317  ;;  %v7448_v24 = vor.u32 %v7948_v53, %v7445_v44 }
 0x88f   : > { %v8320_v31 = vpop.eup %8319  ;;  %v4765_v43 = vmul.f32 %v8318_v39, %v4761_v47  ;;  %5290 = vmatpush.bf16.msra.mxu3 %v7512_v37  ;;  %v7960_v39 = vld [vmem:[#allocation11 + $0x1cc] sm:$0xf]  ;;  %v7483_v47 = vld [vmem:[#allocation11 + $0x1c0] sm:$0xf] }
 0x890   : > { %v4764_v54 = vmul.f32 %v8320_v31, %v4760_v14  ;;  %v7496_v31 = vor.u32 %v7960_v39, %v7493_v27  ;;  %v7961_v14 = vld [vmem:[#allocation11 + $0x1cc] sm:$0xf0]  ;;  %v7419_v37 = vld [vmem:[#allocation11 + $0x140] sm:$0xf]  ;;  %v7944_v39 = vld [vmem:[#allocation11 + $0x14c] sm:$0xf] }
 0x891   : > { %v7420_v7 = vor.u32 %v7945_v23, %v7419_v37  ;;  %v7429_v27 = vld [vmem:[#allocation11 + $0x158] sm:$0xf0] }
 0x892   : > { %v4785_v1 = vpack.c.bf16 %v4765_v43, %v4764_v54  ;;  %v7959_v43 = vld [vmem:[#allocation11 + $0x1c4] sm:$0xf]  ;;  %v7485_v54 = vld [vmem:[#allocation11 + $0x1d0] sm:$0xf0] }
 0x893   : > { %5291 = vmatpush.bf16.msra.mxu3 %v7496_v31  ;;  %v7432_v31 = vor.u32 %v7944_v39, %v7429_v27  ;;  %v10383_v27 = vld [vmem:[%s11017_s10 + $0x1] ss:$0 sm:$0xff] }
 0x89d   : > { %4857 = vmatmul.bf16.gmra.mxu3 %v4785_v1  ;;  %v7484_v1 = vor.u32 %v7961_v14, %v7483_v47 }
 0x89f   : > { %5219 = vmatpush.bf16.msra.mxu1 %v7484_v1  ;;  %v7939_v1 = vld [vmem:[#allocation11 + $0x124] sm:$0xf] }
 0x900   : > { %v4848_v61 = vpop.f32.mrf.mxu3 }
 0x901   : > { %v4849_v62 = vadd.f32 %v8145_v36, %v4848_v61  ;;  %v7491_v61 = vld [vmem:[#allocation11 + $0x1c8] sm:$0xf] }
 0x903   : > { %v4863_v63 = vadd.f32 %v4849_v62, %v10187_v4  ;;  %v7962_v62 = vld [vmem:[#allocation11 + $0x1d4] sm:$0xf0] }
 0x905   : > { %4873 = vadd.xlane.f32.xlu2 %v4863_v63 }
 0x908   : > { %v4850_v17 = vpop.f32.mrf.mxu3 }
 0x909   : > { %v4851_v22 = vadd.f32 %v8145_v36, %v4850_v17  ;;  %v7956_v17 = vld [vmem:[#allocation11 + $0x1ac] sm:$0xf] }
 0x90b   : > { %v4864_v11 = vadd.f32 %v4851_v22, %v10190_v38  ;;  %v7477_v22 = vld [vmem:[#allocation11 + $0x1b8] sm:$0xf0] }
 0x90d   : > { %4875 = vadd.xlane.f32.xlu0 %v4864_v11 }
 0x910   : > { %v4853_v30 = vpop.f32.mrf.mxu3 }
 0x911   : > { %v4854_v49 = vadd.f32 %v8145_v36, %v4853_v30  ;;  %v7480_v30 = vor.u32 %v7956_v17, %v7477_v22 }
 0x913   : > { %v4865_v20 = vadd.f32 %v4854_v49, %v10232_v16  ;;  %v7957_v49 = vld [vmem:[#allocation11 + $0x1ac] sm:$0xf0]  ;;  %5292 = vmatpush.bf16.msra.mxu3 %v7480_v30  ;;  %v7940_v30 = vld [vmem:[#allocation11 + $0x12c] sm:$0xf] }
 0x915   : > { %4877 = vadd.xlane.f32.xlu1 %v4865_v20 }
 0x918   : > { %v4855_v0 = vpop.f32.mrf.mxu3 }
 0x919   : > { %v4856_v59 = vadd.f32 %v8145_v36, %v4855_v0  ;;  %v7469_v0 = vld [vmem:[#allocation11 + $0x1b0] sm:$0xf0] }
 0x91b   : > { %v4866_v57 = vadd.f32 %v4856_v59, %v10235_v50 }
 0x91d   : > { %4879 = vadd.xlane.f32.xlu2 %v4866_v57 }
 0x920   : > { %v4858_v9 = vpop.f32.mrf.mxu3 }
 0x921   : > { %v4859_v52 = vadd.f32 %v8145_v36, %v4858_v9  ;;  %v7475_v9 = vld [vmem:[#allocation11 + $0x1a8] sm:$0xf] }
 0x923   : > { %v4867_v4 = vadd.f32 %v4859_v52, %v10249_v41  ;;  %v7958_v52 = vld [vmem:[#allocation11 + $0x1b4] sm:$0xf0] }
 0x925   : > { %4881 = vadd.xlane.f32.xlu0 %v4867_v4 }
 0x928   : > { %v4860_v25 = vpop.f32.mrf.mxu3 }
 0x929   : > { %v4861_v35 = vadd.f32 %v8145_v36, %v4860_v25  ;;  %v7488_v36 = vor.u32 %v7959_v43, %v7485_v54  ;;  %v7451_v25 = vld [vmem:[#allocation11 + $0x180] sm:$0xf]  ;;  %v7941_v54 = vld [vmem:[#allocation11 + $0x12c] sm:$0xf0] }
 0x92a   : > { %v7403_v43 = vld [vmem:[#allocation11 + $0x120] sm:$0xf] }
 0x92b   : > { %v4868_v38 = vadd.f32 %v4861_v35, %v10252_v55  ;;  %5243 = vmatpush.bf16.msra.mxu0 %v7488_v36  ;;  %v7953_v35 = vld [vmem:[#allocation11 + $0x18c] sm:$0xf0]  ;;  %v7404_v36 = vor.u32 %v7941_v54, %v7403_v43 }
 0x92d   : > { %4883 = vadd.xlane.f32.xlu1 %v4868_v38 }
 0x978   : > { %v4874_v29 = vpop.xlane.xlu2 %4873 }
 0x979   : > { %v4885_v32 = vmul.f32 %v4874_v29, %v9792_v58  ;;  %v7452_v29 = vor.u32 %v7953_v35, %v7451_v25  ;;  %v7938_v25 = vld [vmem:[#allocation11 + $0x114] sm:$0xf0] }
 0x97b   : > { %v10341_v16 = vsub.f32 %v4863_v63, %v4885_v32  ;;  %v7492_v63 = vor.u32 %v7962_v62, %v7491_v61  ;;  %v7453_v32 = vld [vmem:[#allocation11 + $0x190] sm:$0xf0]  ;;  %v7411_v62 = vld [vmem:[#allocation11 + $0x128] sm:$0xf] }
 0x97c   : > { %v7405_v61 = vld [vmem:[#allocation11 + $0x130] sm:$0xf0] }
 0x97d   : > { %v4897_v21 = vmul.f32 %v10341_v16, %v10341_v16  ;;  %5267 = vmatpush.bf16.msra.mxu2 %v7492_v63  ;;  %v7942_v63 = vld [vmem:[#allocation11 + $0x134] sm:$0xf0]  ;;  %v7408_v22 = vor.u32 %v7939_v1, %v7405_v61 }
 0x97f   : > { %4903 = vadd.xlane.f32.xlu2 %v4897_v21  ;;  %v7459_v21 = vld [vmem:[#allocation11 + $0x188] sm:$0xf] }
 0x980   : > { %v4876_v50 = vpop.xlane.xlu0 %4875 }
 0x981   : > { %v4886_v48 = vmul.f32 %v4876_v50, %v9792_v58  ;;  %v7954_v50 = vld [vmem:[#allocation11 + $0x194] sm:$0xf0] }
 0x983   : > { %v10346_v10 = vsub.f32 %v4864_v11, %v4886_v48  ;;  %v7467_v11 = vld [vmem:[#allocation11 + $0x1a0] sm:$0xf] }
 0x984   : > { %v7468_v59 = vor.u32 %v7957_v49, %v7467_v11  ;;  %v7412_v11 = vor.u32 %v7942_v63, %v7411_v62  ;;  %v7413_v49 = vld [vmem:[#allocation11 + $0x138] sm:$0xf0] }
 0x985   : > { %v4898_v41 = vmul.f32 %v10346_v10, %v10346_v10 }
 0x986   : > { %5220 = vmatpush.bf16.msra.mxu1 %v7468_v59  ;;  %v7937_v59 = vld [vmem:[#allocation11 + $0x10c] sm:$0xf0] }
 0x987   : > { %4905 = vadd.xlane.f32.xlu0 %v4898_v41  ;;  %v7460_v41 = vor.u32 %v7954_v50, %v7459_v21 }
 0x988   : > { %v4878_v55 = vpop.xlane.xlu1 %4877 }
 0x989   : > { %v4887_v19 = vmul.f32 %v4878_v55, %v9792_v58  ;;  %v7952_v55 = vld [vmem:[#allocation11 + $0x18c] sm:$0xf] }
 0x98a   : > { %5221 = vmatpush.bf16.msra.mxu1 %v7452_v29  ;;  %v7936_v29 = vld [vmem:[#allocation11 + $0x10c] sm:$0xf] }
 0x98b   : > { %v10351_v46 = vsub.f32 %v4865_v20, %v4887_v19  ;;  %v7955_v20 = vld [vmem:[#allocation11 + $0x1a4] sm:$0xf]  ;;  %v7461_v19 = vld [vmem:[#allocation11 + $0x198] sm:$0xf0] }
 0x98d   : > { %v4899_v33 = vmul.f32 %v10351_v46, %v10351_v46 }
 0x98f   : > { %4907 = vadd.xlane.f32.xlu1 %v4899_v33  ;;  %v7464_v33 = vor.u32 %v7952_v55, %v7461_v19 }
 0x990   : > { %v4880_v6 = vpop.xlane.xlu2 %4879 }
 0x991   : > { %v4888_v60 = vmul.f32 %v4880_v6, %v9792_v58  ;;  %v7435_v6 = vld [vmem:[#allocation11 + $0x160] sm:$0xf]  ;;  %5293 = vmatpush.bf16.msra.mxu3 %v7464_v33 }
 0x993   : > { %v10356_v18 = vsub.f32 %v4866_v57, %v4888_v60  ;;  %v7472_v57 = vor.u32 %v7955_v20, %v7469_v0  ;;  %v7949_v60 = vld [vmem:[#allocation11 + $0x16c] sm:$0xf0]  ;;  %v7416_v20 = vor.u32 %v7940_v30, %v7413_v49  ;;  %v7387_v0 = vld [vmem:[#allocation11 + $0x100] sm:$0xf] }
 0x995   : > { %v4900_v51 = vmul.f32 %v10356_v18, %v10356_v18  ;;  %5244 = vmatpush.bf16.msra.mxu0 %v7472_v57  ;;  %5294 = vmatpush.bf16.msra.mxu3 %v7448_v24  ;;  %v7935_v57 = vld [vmem:[#allocation11 + $0x104] sm:$0xf] }
 0x997   : > { %4909 = vadd.xlane.f32.xlu2 %v4900_v51  ;;  %v7947_v51 = vld [vmem:[#allocation11 + $0x164] sm:$0xf] }
 0x998   : > { %v4882_v40 = vpop.xlane.xlu0 %4881 }
 0x999   : > { %v4889_v42 = vmul.f32 %v4882_v40, %v9792_v58  ;;  %v7436_v40 = vor.u32 %v7949_v60, %v7435_v6  ;;  %5295 = vmatpush.bf16.msra.mxu3 %v7432_v31 }
 0x99b   : > { %v10361_v12 = vsub.f32 %v4867_v4, %v4889_v42  ;;  %v7476_v4 = vor.u32 %v7958_v52, %v7475_v9  ;;  %v7437_v42 = vld [vmem:[#allocation11 + $0x170] sm:$0xf0]  ;;  %5222 = vmatpush.bf16.msra.mxu1 %v7436_v40  ;;  %v7388_v9 = vor.u32 %v7937_v59, %v7387_v0  ;;  %v7974_v0 = vld [vmem:[#allocation13 + $0x138] sm:$0xff] }
 0x99c   : > { %v7389_v52 = vld [vmem:[#allocation11 + $0x110] sm:$0xf0] }
 0x99d   : > { %v4901_v28 = vmul.f32 %v10361_v12, %v10361_v12  ;;  %5268 = vmatpush.bf16.msra.mxu2 %v7476_v4  ;;  %5296 = vmatpush.bf16.msra.mxu3 %v7416_v20  ;;  %v7395_v4 = vld [vmem:[#allocation11 + $0x108] sm:$0xf]  ;;  %v7392_v35 = vor.u32 %v7935_v57, %v7389_v52 }
 0x99f   : > { %4911 = vadd.xlane.f32.xlu0 %v4901_v28  ;;  %v7443_v28 = vld [vmem:[#allocation11 + $0x168] sm:$0xf]  ;;  %5223 = vmatpush.bf16.msra.mxu1 %v7420_v7  ;;  %v10377_v7 = vld [vmem:[%s11016_s3 + $0x1] ss:$0 sm:$0xff]  ;;  %s6057_s3 = scalar_lea.sflag [#allocation4], %s8957_s14 }
 0x9a0   : > { %v4884_v26 = vpop.xlane.xlu1 %4883 }
 0x9a1   : > { %v4890_v45 = vmul.f32 %v4884_v26, %v9792_v58  ;;  %5269 = vmatpush.bf16.msra.mxu2 %v7460_v41  ;;  %v7950_v26 = vld [vmem:[#allocation11 + $0x174] sm:$0xf0] }
 0x9a3   : > { %v10366_v2 = vsub.f32 %v4868_v38, %v4890_v45  ;;  %v7951_v38 = vld [vmem:[#allocation11 + $0x184] sm:$0xf]  ;;  %v7440_v45 = vor.u32 %v7947_v51, %v7437_v42  ;;  %5224 = vmatpush.bf16.msra.mxu1 %v7404_v36 }
 0x9a4   : > { %v7456_v48 = vor.u32 %v7951_v38, %v7453_v32  ;;  %v7396_v38 = vor.u32 %v7938_v25, %v7395_v4  ;;  %v7397_v32 = vld [vmem:[#allocation11 + $0x118] sm:$0xf0] }
 0x9a5   : > { %v4902_v15 = vmul.f32 %v10366_v2, %v10366_v2  ;;  %v7400_v50 = vor.u32 %v7936_v29, %v7397_v32 }
 0x9a6   : > { %5245 = vmatpush.bf16.msra.mxu0 %v7456_v48 }
 0x9a7   : > { %4913 = vadd.xlane.f32.xlu1 %v4902_v15  ;;  %v7444_v15 = vor.u32 %v7950_v26, %v7443_v28  ;;  %5225 = vmatpush.bf16.msra.mxu1 %v7388_v9  ;;  %v7973_v9 = vld [vmem:[#allocation13 + $0x130] sm:$0xff] }
 0x9a8   : > { %5297 = vmatpush.bf16.msra.mxu3 %v7400_v50 }
 0x9a9   : > { %5270 = vmatpush.bf16.msra.mxu2 %v7444_v15 }
 0x9aa   : > { %5246 = vmatpush.bf16.msra.mxu0 %v7440_v45 }
 0x9ab   : > { %5804 = vmatpush.bf16.msrb.mxu1 %v7974_v0  ;;  %v7976_v0 = vld [vmem:[#allocation13 + $0x148] sm:$0xff] }
 0x9ad   : > { %5271 = vmatpush.bf16.msra.mxu2 %v7428_v34 }
 0x9ae   : > { %5247 = vmatpush.bf16.msra.mxu0 %v7424_v13 }
 0x9af   : > { %5805 = vmatpush.bf16.msrb.mxu1 %v7973_v9 }
 0x9b1   : > { %5272 = vmatpush.bf16.msra.mxu2 %v7412_v11 }
 0x9b2   : > { %5248 = vmatpush.bf16.msra.mxu0 %v7408_v22 }
 0x9b5   : > { %5273 = vmatpush.bf16.msra.mxu2 %v7396_v38 }
 0x9b6   : > { %5249 = vmatpush.bf16.msra.mxu0 %v7392_v35 }
 0x9f2   : > { %v4904_v47 = vpop.xlane.xlu2 %4903 }
 0x9f3   : > { %v4915_v14 = vmul.f32 %v4904_v47, %v9792_v58 }
 0x9f5   : > { %v4921_v17 = vadd.f32 1e-05, %v4915_v14 }
 0x9f7   : > { %8321 = vrsqrt.f32 %v4921_v17  ;;  %vm4933_vm6 = vweird.f32 %v4921_v17 }
 0x9fa   : > { %v4906_v21 = vpop.xlane.xlu0 %4905 }
 0x9fb   : > { %v4916_v48 = vmul.f32 %v4906_v21, %v9792_v58 }
 0x9fd   : > { %v8322_v41 = vpop.eup %8321  ;;  %v4922_v55 = vadd.f32 1e-05, %v4916_v48 }
 0x9fe   : > { %v4928_v19 = vmul.f32 %v8322_v41, %v4921_v17  ;;  %vm4934_vm5 = vweird.f32 %v8322_v41 }
 0x9ff   : > { %8323 = vrsqrt.f32 %v4922_v55  ;;  %vm4935_vm7 = vmor %vm4933_vm6, %vm4934_vm5  ;;  %vm4943_vm9 = vweird.f32 %v4922_v55 }
 0xa00   : > { %v4929_v33 = vmul.f32 %v8322_v41, %v4928_v19 }
 0xa02   : > { %v4930_v6 = vmul.f32 0.5, %v4929_v33  ;;  %v4908_v60 = vpop.xlane.xlu1 %4907 }
 0xa03   : > { %v4917_v51 = vmul.f32 %v4908_v60, %v9792_v58 }
 0xa04   : > { %v4931_v40 = vsub.f32 1.5, %v4930_v6 }
 0xa05   : > { %v8324_v42 = vpop.eup %8323  ;;  %v4923_v28 = vadd.f32 1e-05, %v4917_v51 }
 0xa06   : > { %v4932_v26 = vmul.f32 %v8322_v41, %v4931_v40  ;;  %v4938_v45 = vmul.f32 %v8324_v42, %v4922_v55  ;;  %vm4944_vm8 = vweird.f32 %v8324_v42 }
 0xa07   : > { %8325 = vrsqrt.f32 %v4923_v28  ;;  %vm4945_vm10 = vmor %vm4943_vm9, %vm4944_vm8  ;;  %vm4953_vm12 = vweird.f32 %v4923_v28 }
 0xa08   : > { %v4939_v15 = vmul.f32 %v8324_v42, %v4938_v45  ;;  %v4936_v53 = vsel %vm4935_vm7, %v8322_v41, %v4932_v26 }
 0xa09   : > { %v4987_v56 = vmul.f32 %v4936_v53, %v10341_v16 }
 0xa0a   : > { %v4940_v44 = vmul.f32 0.5, %v4939_v15  ;;  %v4910_v24 = vpop.xlane.xlu2 %4909 }
 0xa0b   : > { %v4918_v37 = vmul.f32 %v4910_v24, %v9792_v58  ;;  %v4996_v47 = vmul.f32 %v10377_v7, %v4987_v56  ;;  %v7990_v56 = vld [vmem:[#allocation13 + $0x1b8] sm:$0xff] }
 0xa0c   : > { %v4941_v23 = vsub.f32 1.5, %v4940_v44  ;;  %5852 = vmatpush.bf16.msrb.mxu2 %v7990_v56 }
 0xa0d   : > { %v8326_v8 = vpop.eup %8325  ;;  %v4924_v3 = vadd.f32 1e-05, %v4918_v37  ;;  %v10390_v61 = vadd.f32 %v10383_v27, %v4996_v47  ;;  %v7978_v47 = vld [vmem:[#allocation13 + $0x158] sm:$0xff] }
 0xa0e   : > { %v4942_v5 = vmul.f32 %v8324_v42, %v4941_v23  ;;  %v4948_v13 = vmul.f32 %v8326_v8, %v4923_v28  ;;  %vm4954_vm11 = vweird.f32 %v8326_v8 }
 0xa0f   : > { %8327 = vrsqrt.f32 %v4924_v3  ;;  %vm4955_vm13 = vmor %vm4953_vm12, %vm4954_vm11  ;;  %vm4963_vm15 = vweird.f32 %v4924_v3 }
 0xa10   : > { %v4946_v34 = vsel %vm4945_vm10, %v8324_v42, %v4942_v5  ;;  %v4949_v39 = vmul.f32 %v8326_v8, %v4948_v13  ;;  %v7989_v5 = vld [vmem:[#allocation13 + $0x1b0] sm:$0xff]  ;;  %v7971_v13 = vld [vmem:[#allocation13 + $0x120] sm:$0xff] }
 0xa11   : > { %v4988_v31 = vmul.f32 %v4946_v34, %v10346_v10  ;;  %5853 = vmatpush.bf16.msrb.mxu2 %v7989_v5  ;;  %v7979_v34 = vld [vmem:[#allocation13 + $0x160] sm:$0xff] }
 0xa12   : > { %v4950_v14 = vmul.f32 0.5, %v4949_v39  ;;  %v4912_v43 = vpop.xlane.xlu0 %4911  ;;  %v7988_v39 = vld [vmem:[#allocation13 + $0x1a8] sm:$0xff] }
 0xa13   : > { %v4997_v16 = vmul.f32 %v10377_v7, %v4988_v31  ;;  %v4919_v54 = vmul.f32 %v4912_v43, %v9792_v58  ;;  %v7987_v31 = vld [vmem:[#allocation13 + $0x1a0] sm:$0xff]  ;;  %v7969_v43 = vld [vmem:[#allocation13 + $0x110] sm:$0xff] }
 0xa14   : > { %v4951_v1 = vsub.f32 1.5, %v4950_v14  ;;  %v10425_v14 = vld [vmem:[%s11018_s12 + $0x4] sm:$0xf] }
 0xa15   : > { %v8328_v36 = vpop.eup %8327  ;;  %v10393_v62 = vadd.f32 %v10383_v27, %v4997_v16  ;;  %v4925_v63 = vadd.f32 1e-05, %v4919_v54  ;;  %5854 = vmatpush.bf16.msrb.mxu2 %v7988_v39  ;;  %v10428_v16 = vperm.slane %v10425_v14, 0  ;;  %v10431_v54 = vperm.slane %v10425_v14, 1 }
 0xa16   : > { %v4952_v17 = vmul.f32 %v8326_v8, %v4951_v1  ;;  %v4958_v22 = vmul.f32 %v8328_v36, %v4924_v3  ;;  %vm4964_vm14 = vweird.f32 %v8328_v36  ;;  %v7972_v3 = vld [vmem:[#allocation13 + $0x128] sm:$0xff]  ;;  %v7998_v1 = vld [vmem:[#allocation13 + $0x1f8] sm:$0xff] }
 0xa17   : > { %8329 = vrsqrt.f32 %v4925_v63  ;;  %v5044_v10 = vpack.c.bf16 %v10393_v62, %v10390_v61  ;;  %vm4965_vm0 = vmor %vm4963_vm15, %vm4964_vm14  ;;  %vm4973_vm2 = vweird.f32 %v4925_v63  ;;  %5806 = vmatpush.bf16.msrb.mxu1 %v7972_v3  ;;  %8000 = vmatpush.bf16.msrb.mxu3 %v7998_v1 }
 0xa18   : > { %v4959_v11 = vmul.f32 %v8328_v36, %v4958_v22  ;;  %v4956_v30 = vsel %vm4955_vm13, %v8326_v8, %v4952_v17 }
 0xa19   : > { %5226 = vmatmul.bf16.vlgmr.msra.gmra.mxu1 %v5044_v10  ;;  %5250 = vmatmul.bf16.vlgmr.msra.gmra.mxu0 %v5044_v10  ;;  %v4989_v4 = vmul.f32 %v4956_v30, %v10351_v46 }
 0xa1a   : > { %v4960_v49 = vmul.f32 0.5, %v4959_v11  ;;  %5274 = vmatmul.bf16.vlgmr.msra.gmra.mxu2 %v5044_v10  ;;  %5298 = vmatmul.bf16.vlgmr.msra.gmra.mxu3 %v5044_v10  ;;  %v4914_v20 = vpop.xlane.xlu1 %4913  ;;  %v7986_v11 = vld [vmem:[#allocation13 + $0x198] sm:$0xff] }
 0xa1b   : > { %v4920_v59 = vmul.f32 %v4914_v20, %v9792_v58  ;;  %v4998_v50 = vmul.f32 %v10377_v7, %v4989_v4  ;;  %5807 = vmatpush.bf16.msrb.mxu1 %v7971_v13  ;;  %5855 = vmatpush.bf16.msrb.mxu2 %v7987_v31  ;;  %v7968_v20 = vld [vmem:[#allocation13 + $0x108] sm:$0xff]  ;;  %v7985_v4 = vld [vmem:[#allocation13 + $0x190] sm:$0xff]  ;;  %v10470_v13 = vperm.slane %v10425_v14, 3 }
 0xa1c   : > { %v4961_v57 = vsub.f32 1.5, %v4960_v49 }
 0xa1d   : > { %v8330_v52 = vpop.eup %8329  ;;  %v4926_v25 = vadd.f32 1e-05, %v4920_v59  ;;  %v10403_v46 = vadd.f32 %v10383_v27, %v4998_v50  ;;  %v10444_v59 = vperm.slane %v10425_v14, 2 }
 0xa1e   : > { %v4962_v35 = vmul.f32 %v8328_v36, %v4961_v57  ;;  %v4968_v38 = vmul.f32 %v8330_v52, %v4925_v63  ;;  %vm4974_vm1 = vweird.f32 %v8330_v52 }
 0xa1f   : > { %8331 = vrsqrt.f32 %v4926_v25  ;;  %vm4975_vm3 = vmor %vm4973_vm2, %vm4974_vm1  ;;  %vm4983_vm5 = vweird.f32 %v4926_v25  ;;  %5856 = vmatpush.bf16.msrb.mxu2 %v7986_v11 }
 0xa20   : > { %v4966_v29 = vsel %vm4965_vm0, %v8328_v36, %v4962_v35  ;;  %v4969_v32 = vmul.f32 %v8330_v52, %v4968_v38  ;;  %v7977_v36 = vld [vmem:[#allocation13 + $0x150] sm:$0xff] }
 0xa21   : > { %v4990_v21 = vmul.f32 %v4966_v29, %v10356_v18 }
 0xa22   : > { %v4970_v48 = vmul.f32 0.5, %v4969_v32  ;;  %v7967_v32 = vld [vmem:[#allocation13 + $0x100] sm:$0xff] }
 0xa23   : > { %v4999_v41 = vmul.f32 %v10377_v7, %v4990_v21  ;;  %5857 = vmatpush.bf16.msrb.mxu2 %v7985_v4  ;;  %v7975_v21 = vld [vmem:[#allocation13 + $0x140] sm:$0xff] }
 0xa24   : > { %v4971_v55 = vsub.f32 1.5, %v4970_v48 }
 0xa25   : > { %v8332_v19 = vpop.eup %8331  ;;  %v10406_v33 = vadd.f32 %v10383_v27, %v4999_v41 }
 0xa26   : > { %v4972_v6 = vmul.f32 %v8330_v52, %v4971_v55  ;;  %v4978_v60 = vmul.f32 %v8332_v19, %v4926_v25  ;;  %vm4984_vm4 = vweird.f32 %v8332_v19 }
 0xa27   : > { %v5045_v51 = vpack.c.bf16 %v10406_v33, %v10403_v46  ;;  %vm4985_vm6 = vmor %vm4983_vm5, %vm4984_vm4 }
 0xa28   : > { %v4979_v18 = vmul.f32 %v8332_v19, %v4978_v60  ;;  %v4976_v40 = vsel %vm4975_vm3, %v8330_v52, %v4972_v6  ;;  %v7997_v52 = vld [vmem:[#allocation13 + $0x1f0] sm:$0xff] }
 0xa29   : > { %5231 = vmatmul.bf16.gmra.mxu1 %v5045_v51  ;;  %5255 = vmatmul.bf16.gmra.mxu0 %v5045_v51  ;;  %v4991_v26 = vmul.f32 %v4976_v40, %v10361_v12  ;;  %v7982_v12 = vld [vmem:[#allocation13 + $0x178] sm:$0xff] }
 0xa2a   : > { %v4980_v42 = vmul.f32 0.5, %v4979_v18  ;;  %5279 = vmatmul.bf16.gmra.mxu2 %v5045_v51  ;;  %5303 = vmatmul.bf16.gmra.mxu3 %v5045_v51  ;;  %v7996_v51 = vld [vmem:[#allocation13 + $0x1e8] sm:$0xff] }
 0xa2b   : > { %v5000_v44 = vmul.f32 %v10377_v7, %v4991_v26  ;;  %5828 = vmatpush.bf16.msrb.mxu0 %v7982_v12  ;;  %8001 = vmatpush.bf16.msrb.mxu3 %v7997_v52  ;;  %v7984_v18 = vld [vmem:[#allocation13 + $0x188] sm:$0xff] }
 0xa2c   : > { %v4981_v28 = vsub.f32 1.5, %v4980_v42  ;;  %5858 = vmatpush.bf16.msrb.mxu2 %v7984_v18 }
 0xa2d   : > { %v10415_v37 = vadd.f32 %v10383_v27, %v5000_v44 }
 0xa2e   : > { %v4982_v45 = vmul.f32 %v8332_v19, %v4981_v28 }
 0xa2f   : > { %8002 = vmatpush.bf16.msrb.mxu3 %v7996_v51 }
 0xa30   : > { %v4986_v15 = vsel %vm4985_vm6, %v8332_v19, %v4982_v45 }
 0xa31   : > { %v4992_v53 = vmul.f32 %v4986_v15, %v10366_v2  ;;  %v7981_v2 = vld [vmem:[#allocation13 + $0x170] sm:$0xff] }
 0xa32   : > { %5829 = vmatpush.bf16.msrb.mxu0 %v7981_v2 }
 0xa33   : > { %v5001_v24 = vmul.f32 %v10377_v7, %v4992_v53  ;;  %v7980_v7 = vld [vmem:[#allocation13 + $0x168] sm:$0xff] }
 0xa35   : > { %v10418_v23 = vadd.f32 %v10383_v27, %v5001_v24  ;;  %v7970_v27 = vld [vmem:[#allocation13 + $0x118] sm:$0xff]  ;;  %v7983_v24 = vld [vmem:[#allocation13 + $0x180] sm:$0xff] }
 0xa36   : > { %5830 = vmatpush.bf16.msrb.mxu0 %v7980_v7  ;;  %5808 = vmatpush.bf16.msrb.mxu1 %v7970_v27 }
 0xa37   : > { %v5046_v8 = vpack.c.bf16 %v10418_v23, %v10415_v37  ;;  %5859 = vmatpush.bf16.msrb.mxu2 %v7983_v24 }
 0xa39   : > { %5236 = vmatmul.bf16.gmra.mxu1 %v5046_v8  ;;  %5260 = vmatmul.bf16.gmra.mxu0 %v5046_v8 }
 0xa3a   : > { %5284 = vmatmul.bf16.gmra.mxu2 %v5046_v8  ;;  %5308 = vmatmul.bf16.gmra.mxu3 %v5046_v8  ;;  %v7995_v8 = vld [vmem:[#allocation13 + $0x1e0] sm:$0xff] }
 0xa3b   : > { %5831 = vmatpush.bf16.msrb.mxu0 %v7979_v34  ;;  %5809 = vmatpush.bf16.msrb.mxu1 %v7969_v43 }
 0xa3c   : > { %8003 = vmatpush.bf16.msrb.mxu3 %v7995_v8 }
 0xa3f   : > { %5832 = vmatpush.bf16.msrb.mxu0 %v7978_v47  ;;  %5810 = vmatpush.bf16.msrb.mxu1 %v7968_v20 }
 0xa43   : > { %5833 = vmatpush.bf16.msrb.mxu0 %v7977_v36  ;;  %5811 = vmatpush.bf16.msrb.mxu1 %v7967_v32  ;;  %v7994_v36 = vld [vmem:[#allocation13 + $0x1d8] sm:$0xff] }
 0xa44   : > { %8004 = vmatpush.bf16.msrb.mxu3 %v7994_v36 }
 0xa47   : > { %5834 = vmatpush.bf16.msrb.mxu0 %v7976_v0  ;;  %5876 = vmatpush.bf16.msra.mxu1 %v7998_v1 }
 0xa4b   : > { %5835 = vmatpush.bf16.msrb.mxu0 %v7975_v21  ;;  %5877 = vmatpush.bf16.msra.mxu1 %v7997_v52 }
 0xa4f   : > { %5878 = vmatpush.bf16.msra.mxu1 %v7996_v51 }
 0xa53   : > { %5879 = vmatpush.bf16.msra.mxu1 %v7995_v8 }
 0xa57   : > { %5880 = vmatpush.bf16.msra.mxu1 %v7994_v36 }
 0xa96   : > { %v5227_v63 = vpop.f32.mrf.mxu1  ;;  %v5251_v17 = vpop.f32.mrf.mxu0 }
 0xa97   : > { %v10434_v22 = vadd.f32 %v5227_v63, %v10428_v16  ;;  %v10437_v10 = vadd.f32 %v5251_v17, %v10431_v54 }
 0xa99   : > { %v5314_v30 = vmul.f32 %v10434_v22, %v10434_v22  ;;  %v5315_v49 = vmul.f32 %v10437_v10, %v10437_v10 }
 0xa9b   : > { %v5338_v57 = vmul.f32 %v5314_v30, %v10434_v22  ;;  %v5339_v9 = vmul.f32 %v5315_v49, %v10437_v10 }
 0xa9d   : > { %v5362_v25 = vmul.f32 0.044715, %v5338_v57  ;;  %v5363_v35 = vmul.f32 0.044715, %v5339_v9  ;;  %v5275_v38 = vpop.f32.mrf.mxu2  ;;  %v5299_v29 = vpop.f32.mrf.mxu3 }
 0xa9e   : > { %v10449_v50 = vadd.f32 %v5275_v38, %v10444_v59  ;;  %v5229_v48 = vpop.f32.mrf.mxu1  ;;  %v5253_v41 = vpop.f32.mrf.mxu0  ;;  %v10490_v57 = vadd.f32 %v5299_v29, %v10470_v13  ;;  %v7993_v38 = vld [vmem:[#allocation13 + $0x1d0] sm:$0xff] }
 0xa9f   : > { %v5386_v55 = vadd.f32 %v5362_v25, %v10434_v22  ;;  %v5387_v19 = vadd.f32 %v5363_v35, %v10437_v10  ;;  %v10454_v6 = vadd.f32 %v5229_v48, %v10428_v16  ;;  %v10457_v60 = vadd.f32 %v5253_v41, %v10431_v54  ;;  %8005 = vmatpush.bf16.msrb.mxu3 %v7993_v38 }
 0xaa0   : > { %v5316_v40 = vmul.f32 %v10449_v50, %v10449_v50  ;;  %5881 = vmatpush.bf16.msra.mxu1 %v7993_v38 }
 0xaa1   : > { %v5410_v42 = vmul.f32 0.7978846, %v5386_v55  ;;  %v5411_v28 = vmul.f32 0.7978846, %v5387_v19  ;;  %v5318_v26 = vmul.f32 %v10454_v6, %v10454_v6  ;;  %v5319_v45 = vmul.f32 %v10457_v60, %v10457_v60 }
 0xaa2   : > { %v5340_v15 = vmul.f32 %v5316_v40, %v10449_v50 }
 0xaa3   : > { %8333 = vtanh.f32 %v5410_v42  ;;  %v5342_v53 = vmul.f32 %v5318_v26, %v10454_v6  ;;  %v5343_v44 = vmul.f32 %v5319_v45, %v10457_v60  ;;  %v5317_v42 = vmul.f32 %v10490_v57, %v10490_v57  ;;  %v7992_v45 = vld [vmem:[#allocation13 + $0x1c8] sm:$0xff] }
 0xaa4   : > { %8335 = vtanh.f32 %v5411_v28  ;;  %v5364_v12 = vmul.f32 0.044715, %v5340_v15  ;;  %8006 = vmatpush.bf16.msrb.mxu3 %v7992_v45  ;;  %5882 = vmatpush.bf16.msra.mxu1 %v7992_v45 }
 0xaa5   : > { %v5366_v2 = vmul.f32 0.044715, %v5342_v53  ;;  %v5367_v56 = vmul.f32 0.044715, %v5343_v44  ;;  %v5277_v3 = vpop.f32.mrf.mxu2  ;;  %v5301_v7 = vpop.f32.mrf.mxu3 }
 0xaa6   : > { %v5388_v5 = vadd.f32 %v5364_v12, %v10449_v50  ;;  %v10473_v34 = vadd.f32 %v5277_v3, %v10444_v59  ;;  %v5232_v39 = vpop.f32.mrf.mxu1  ;;  %v5256_v27 = vpop.f32.mrf.mxu0  ;;  %v10494_v4 = vadd.f32 %v5301_v7, %v10470_v13 }
 0xaa7   : > { %v5390_v47 = vadd.f32 %v5366_v2, %v10454_v6  ;;  %v5391_v31 = vadd.f32 %v5367_v56, %v10457_v60  ;;  %v10478_v43 = vadd.f32 %v5232_v39, %v10428_v16  ;;  %v10481_v1 = vadd.f32 %v5256_v27, %v10431_v54 }
 0xaa8   : > { %v5412_v63 = vmul.f32 0.7978846, %v5388_v5  ;;  %v5320_v14 = vmul.f32 %v10473_v34, %v10473_v34  ;;  %v5321_v28 = vmul.f32 %v10494_v4, %v10494_v4 }
 0xaa9   : > { %v8334_v17 = vpop.eup %8333  ;;  %v5414_v11 = vmul.f32 0.7978846, %v5390_v47  ;;  %v5415_v30 = vmul.f32 0.7978846, %v5391_v31  ;;  %v5322_v49 = vmul.f32 %v10478_v43, %v10478_v43  ;;  %v5323_v20 = vmul.f32 %v10481_v1, %v10481_v1 }
 0xaaa   : > { %v8336_v0 = vpop.eup %8335  ;;  %8337 = vtanh.f32 %v5412_v63  ;;  %v5344_v9 = vmul.f32 %v5320_v14, %v10473_v34  ;;  %v5458_v52 = vadd.f32 1.0, %v8334_v17  ;;  %v10522_v31 = vmul.f32 %v5317_v42, %v10490_v57 }
 0xaab   : > { %v5346_v25 = vmul.f32 %v5322_v49, %v10478_v43  ;;  %v5347_v35 = vmul.f32 %v5323_v20, %v10481_v1  ;;  %8339 = vtanh.f32 %v5414_v11  ;;  %v5459_v21 = vadd.f32 1.0, %v8336_v0 }
 0xaac   : > { %v5368_v32 = vmul.f32 0.044715, %v5344_v9  ;;  %8341 = vtanh.f32 %v5415_v30  ;;  %v5482_v40 = vmul.f32 0.5, %v5458_v52  ;;  %v5345_v63 = vmul.f32 %v5321_v28, %v10494_v4  ;;  %v7991_v28 = vld [vmem:[#allocation13 + $0x1c0] sm:$0xff] }
 0xaad   : > { %v5370_v48 = vmul.f32 0.044715, %v5346_v25  ;;  %v5371_v41 = vmul.f32 0.044715, %v5347_v35  ;;  %v5280_v29 = vpop.f32.mrf.mxu2  ;;  %v5304_v55 = vpop.f32.mrf.mxu3  ;;  %v5483_v2 = vmul.f32 0.5, %v5459_v21  ;;  %8007 = vmatpush.bf16.msrb.mxu3 %v7991_v28  ;;  %5883 = vmatpush.bf16.msra.mxu1 %v7991_v28 }
 0xaae   : > { %v5392_v19 = vadd.f32 %v5368_v32, %v10473_v34  ;;  %v10500_v51 = vadd.f32 %v5280_v29, %v10444_v59  ;;  %v5234_v18 = vpop.f32.mrf.mxu1  ;;  %v10507_v26 = vadd.f32 %v5304_v55, %v10470_v13  ;;  %v5258_v12 = vpop.f32.mrf.mxu0  ;;  %v5506_v17 = vmul.f32 %v5482_v40, %v10434_v22 }
 0xaaf   : > { %v5394_v44 = vadd.f32 %v5370_v48, %v10478_v43  ;;  %v10513_v8 = vadd.f32 %v5234_v18, %v10428_v16  ;;  %v5395_v56 = vadd.f32 %v5371_v41, %v10481_v1  ;;  %v5507_v20 = vmul.f32 %v5483_v2, %v10437_v10 }
 0xab0   : > { %v8338_v15 = vpop.eup %8337  ;;  %v5416_v53 = vmul.f32 0.7978846, %v5392_v19  ;;  %v5324_v24 = vmul.f32 %v10500_v51, %v10500_v51  ;;  %v5325_v3 = vmul.f32 %v10507_v26, %v10507_v26  ;;  %v10533_v55 = vadd.f32 %v5258_v12, %v10431_v54 }
 0xab1   : > { %v8340_v7 = vpop.eup %8339  ;;  %v5460_v5 = vadd.f32 1.0, %v8338_v15  ;;  %v5326_v27 = vmul.f32 %v10513_v8, %v10513_v8  ;;  %v5418_v30 = vmul.f32 0.7978846, %v5394_v44  ;;  %v5419_v9 = vmul.f32 0.7978846, %v5395_v56 }
 0xab2   : > { %8343 = vtanh.f32 %v5416_v53  ;;  %v5348_v39 = vmul.f32 %v5324_v24, %v10500_v51  ;;  %v8342_v47 = vpop.eup %8341  ;;  %v5462_v36 = vadd.f32 1.0, %v8340_v7  ;;  %v5349_v14 = vmul.f32 %v5325_v3, %v10507_v26 }
 0xab3   : > { %v5463_v11 = vadd.f32 1.0, %v8342_v47  ;;  %v5484_v32 = vmul.f32 0.5, %v5460_v5  ;;  %v5350_v41 = vmul.f32 %v5326_v27, %v10513_v8  ;;  %8345 = vtanh.f32 %v5418_v30 }
 0xab4   : > { %v5372_v49 = vmul.f32 0.044715, %v5348_v39  ;;  %v5486_v0 = vmul.f32 0.5, %v5462_v36  ;;  %v5373_v52 = vmul.f32 0.044715, %v5349_v14  ;;  %v5327_v44 = vmul.f32 %v10533_v55, %v10533_v55 }
 0xab5   : > { %v5282_v25 = vpop.f32.mrf.mxu2  ;;  %v5306_v35 = vpop.f32.mrf.mxu3  ;;  %v5487_v21 = vmul.f32 0.5, %v5463_v11  ;;  %v5374_v18 = vmul.f32 0.044715, %v5350_v41  ;;  %v5508_v24 = vmul.f32 %v5484_v32, %v10449_v50 }
 0xab6   : > { %v5396_v48 = vadd.f32 %v5372_v49, %v10500_v51  ;;  %v5510_v29 = vmul.f32 %v5486_v0, %v10454_v6  ;;  %v5397_v22 = vadd.f32 %v5373_v52, %v10507_v26  ;;  %v10536_v10 = vadd.f32 %v5282_v25, %v10444_v59  ;;  %v5237_v42 = vpop.f32.mrf.mxu1  ;;  %v5261_v56 = vpop.f32.mrf.mxu0 }
 0xab7   : > { %v5511_v19 = vmul.f32 %v5487_v21, %v10457_v60  ;;  %v10540_v40 = vadd.f32 %v5306_v35, %v10470_v13  ;;  %v5398_v60 = vadd.f32 %v5374_v18, %v10513_v8  ;;  %v5351_v7 = vmul.f32 %v5327_v44, %v10533_v55 }
 0xab8   : > { %v8344_v38 = vpop.eup %8343  ;;  %v5595_v6 = vpack.c.bf16 %v5510_v29, %v5506_v17  ;;  %v5421_v53 = vmul.f32 0.7978846, %v5397_v22  ;;  %v5420_v2 = vmul.f32 0.7978846, %v5396_v48  ;;  %v5328_v45 = vmul.f32 %v10536_v10, %v10536_v10 }
 0xab9   : > { %v5464_v15 = vadd.f32 1.0, %v8344_v38  ;;  %v5596_v12 = vpack.c.bf16 %v5511_v19, %v5507_v20  ;;  %v5422_v5 = vmul.f32 0.7978846, %v5398_v60  ;;  %v5329_v39 = vmul.f32 %v10540_v40, %v10540_v40  ;;  %v8346_v30 = vpop.eup %8345 }
 0xaba   : > { %8347 = vtanh.f32 %v5421_v53  ;;  %5812 = vmatmul.bf16.vlgmr.msrb.gmra.mxu1 %v5595_v6  ;;  %v10552_v50 = vadd.f32 %v5237_v42, %v10428_v16  ;;  %v5375_v47 = vmul.f32 0.044715, %v5351_v7  ;;  %v5352_v36 = vmul.f32 %v5328_v45, %v10536_v10 }
 0xabb   : > { %v5488_v3 = vmul.f32 0.5, %v5464_v15  ;;  %8349 = vtanh.f32 %v5419_v9  ;;  %5836 = vmatmul.bf16.vlgmr.msrb.gmra.mxu0 %v5596_v12  ;;  %v10557_v14 = vadd.f32 %v5261_v56, %v10431_v54  ;;  %v10559_v49 = vmul.f32 0.044715, %v5345_v63 }
 0xabc   : > { %8351 = vtanh.f32 %v5420_v2  ;;  %v5353_v20 = vmul.f32 %v5329_v39, %v10540_v40  ;;  %v5330_v0 = vmul.f32 %v10552_v50, %v10552_v50  ;;  %v5376_v52 = vmul.f32 0.044715, %v5352_v36 }
 0xabd   : > { %v5512_v27 = vmul.f32 %v5488_v3, %v10473_v34  ;;  %v5285_v17 = vpop.f32.mrf.mxu2  ;;  %v5309_v11 = vpop.f32.mrf.mxu3  ;;  %v5399_v34 = vadd.f32 %v5375_v47, %v10533_v55  ;;  %v5331_v25 = vmul.f32 %v10557_v14, %v10557_v14  ;;  %8353 = vtanh.f32 %v5422_v5 }
 0xabe   : > { %v5377_v35 = vmul.f32 0.044715, %v5353_v20  ;;  %v5354_v32 = vmul.f32 %v5330_v0, %v10552_v50  ;;  %v10569_v63 = vadd.f32 %v5285_v17, %v10444_v59  ;;  %v5400_v41 = vadd.f32 %v5376_v52, %v10536_v10  ;;  %v5239_v6 = vpop.f32.mrf.mxu1  ;;  %v5263_v3 = vpop.f32.mrf.mxu0 }
 0xabf   : > { %v5597_v9 = vpack.c.bf16 %v5512_v27, %v5508_v24  ;;  %v5423_v48 = vmul.f32 0.7978846, %v5399_v34  ;;  %v5355_v29 = vmul.f32 %v5331_v25, %v10557_v14  ;;  %v10574_v22 = vadd.f32 %v5309_v11, %v10470_v13 }
 0xac0   : > { %v8348_v21 = vpop.eup %8347  ;;  %v5401_v18 = vadd.f32 %v5377_v35, %v10540_v40  ;;  %v5378_v42 = vmul.f32 0.044715, %v5354_v32  ;;  %v5332_v28 = vmul.f32 %v10569_v63, %v10569_v63  ;;  %v5424_v15 = vmul.f32 0.7978846, %v5400_v41 }
 0xac1   : > { %5860 = vmatmul.bf16.vlgmr.msrb.gmra.mxu2 %v5597_v9  ;;  %v10576_v38 = vpop.eup %8349  ;;  %v5469_v19 = vadd.f32 1.0, %v8348_v21  ;;  %8355 = vtanh.f32 %v5423_v48  ;;  %v5379_v53 = vmul.f32 0.044715, %v5355_v29  ;;  %v5333_v44 = vmul.f32 %v10574_v22, %v10574_v22 }
 0xac2   : > { %v10583_v24 = vpop.eup %8351  ;;  %v5425_v2 = vmul.f32 0.7978846, %v5401_v18  ;;  %v5402_v60 = vadd.f32 %v5378_v42, %v10552_v50  ;;  %v5356_v56 = vmul.f32 %v5332_v28, %v10569_v63  ;;  %8357 = vtanh.f32 %v5424_v15 }
 0xac3   : > { %v5493_v12 = vmul.f32 0.5, %v5469_v19  ;;  %v5403_v7 = vadd.f32 %v5379_v53, %v10557_v14  ;;  %v5357_v45 = vmul.f32 %v5333_v44, %v10574_v22  ;;  %v10590_v5 = vadd.f32 %v5239_v6, %v10428_v16  ;;  %v8354_v47 = vpop.eup %8353 }
 0xac4   : > { %8359 = vtanh.f32 %v5425_v2  ;;  %v5426_v17 = vmul.f32 0.7978846, %v5402_v60  ;;  %v5380_v11 = vmul.f32 0.044715, %v5356_v56  ;;  %v10598_v34 = vadd.f32 %v5263_v3, %v10431_v54 }
 0xac5   : > { %v5287_v39 = vpop.f32.mrf.mxu2  ;;  %v5311_v27 = vpop.f32.mrf.mxu3  ;;  %v10593_v36 = vmul.f32 %v5493_v12, %v10507_v26  ;;  %v5427_v20 = vmul.f32 0.7978846, %v5403_v7  ;;  %v5381_v0 = vmul.f32 0.044715, %v5357_v45  ;;  %v5334_v9 = vmul.f32 %v10590_v5, %v10590_v5 }
 0xac6   : > { %8361 = vtanh.f32 %v5426_v17  ;;  %v5404_v16 = vadd.f32 %v5380_v11, %v10569_v63  ;;  %v10602_v52 = vadd.f32 %v5287_v39, %v10444_v59  ;;  %v10605_v26 = vadd.f32 %v5311_v27, %v10470_v13 }
 0xac7   : > { %v8356_v25 = vpop.eup %8355  ;;  %8363 = vtanh.f32 %v5427_v20  ;;  %v5405_v35 = vadd.f32 %v5381_v0, %v10574_v22  ;;  %v5358_v32 = vmul.f32 %v5334_v9, %v10590_v5  ;;  %v5335_v21 = vmul.f32 %v10598_v34, %v10598_v34 }
 0xac8   : > { %v5428_v54 = vmul.f32 0.7978846, %v5404_v16  ;;  %v5336_v48 = vmul.f32 %v10602_v52, %v10602_v52  ;;  %v5337_v59 = vmul.f32 %v10605_v26, %v10605_v26  ;;  %v5466_v41 = vadd.f32 1.0, %v8346_v30  ;;  %v8358_v29 = vpop.eup %8357 }
 0xac9   : > { %v5429_v13 = vmul.f32 0.7978846, %v5405_v35  ;;  %v5382_v19 = vmul.f32 0.044715, %v5358_v32  ;;  %v5359_v18 = vmul.f32 %v5335_v21, %v10598_v34  ;;  %v5470_v42 = vadd.f32 1.0, %v8354_v47 }
 0xaca   : > { %v8360_v28 = vpop.eup %8359  ;;  %8365 = vtanh.f32 %v5428_v54  ;;  %v5360_v6 = vmul.f32 %v5336_v48, %v10602_v52  ;;  %v5361_v15 = vmul.f32 %v5337_v59, %v10605_v26  ;;  %v5490_v53 = vmul.f32 0.5, %v5466_v41 }
 0xacb   : > { %v5473_v44 = vadd.f32 1.0, %v8360_v28  ;;  %8367 = vtanh.f32 %v5429_v13  ;;  %v5406_v12 = vadd.f32 %v5382_v19, %v10590_v5  ;;  %v5383_v2 = vmul.f32 0.044715, %v5359_v18 }
 0xacc   : > { %v8362_v60 = vpop.eup %8361  ;;  %v5384_v30 = vmul.f32 0.044715, %v5360_v6  ;;  %v5385_v56 = vmul.f32 0.044715, %v5361_v15  ;;  %v5494_v3 = vmul.f32 0.5, %v5470_v42  ;;  %v5514_v7 = vmul.f32 %v5490_v53, %v10478_v43 }
 0xacd   : > { %v8364_v45 = vpop.eup %8363  ;;  %v5497_v39 = vmul.f32 0.5, %v5473_v44  ;;  %v5430_v27 = vmul.f32 0.7978846, %v5406_v12  ;;  %v5407_v47 = vadd.f32 %v5383_v2, %v10598_v34  ;;  %v5467_v17 = vadd.f32 1.0, %v10576_v38 }
 0xace   : > { %v5408_v11 = vadd.f32 %v5384_v30, %v10602_v52  ;;  %v5409_v20 = vadd.f32 %v5385_v56, %v10605_v26  ;;  %v5518_v0 = vmul.f32 %v5494_v3, %v10513_v8  ;;  %v5471_v9 = vadd.f32 1.0, %v8356_v25 }
 0xacf   : > { %v5521_v16 = vmul.f32 %v5497_v39, %v10540_v40  ;;  %8369 = vtanh.f32 %v5430_v27  ;;  %v5431_v35 = vmul.f32 0.7978846, %v5407_v47  ;;  %v5491_v32 = vmul.f32 0.5, %v5467_v17 }
 0xad0   : > { %v8366_v43 = vpop.eup %8365  ;;  %v5432_v21 = vmul.f32 0.7978846, %v5408_v11  ;;  %v5433_v54 = vmul.f32 0.7978846, %v5409_v20  ;;  %v5599_v48 = vpack.c.bf16 %v5518_v0, %v5514_v7  ;;  %v5495_v59 = vmul.f32 0.5, %v5471_v9 }
 0xad1   : > { %v8368_v41 = vpop.eup %8367  ;;  %v5365_v38 = vmul.f32 0.044715, %v10522_v31  ;;  %v5602_v13 = vpack.c.bf16 %v5521_v16, %v10593_v36  ;;  %8371 = vtanh.f32 %v5431_v35  ;;  %v5468_v19 = vadd.f32 1.0, %v10583_v24 }
 0xad2   : > { %8373 = vtanh.f32 %v5432_v21  ;;  %5817 = vmatmul.bf16.gmra.mxu1 %v5599_v48  ;;  %v5515_v8 = vmul.f32 %v5491_v32, %v10481_v1  ;;  %v5519_v40 = vmul.f32 %v5495_v59, %v10533_v55  ;;  %v5472_v25 = vadd.f32 1.0, %v8358_v29 }
 0xad3   : > { %v5393_v18 = vadd.f32 %v10559_v49, %v10494_v4  ;;  %8375 = vtanh.f32 %v5433_v54  ;;  %v5492_v42 = vmul.f32 0.5, %v5468_v19  ;;  %5889 = vmatmul.bf16.vlgmr.msrb.gmra.mxu3 %v5602_v13  ;;  %v5474_v6 = vadd.f32 1.0, %v8362_v60 }
 0xad4   : > { %v5600_v28 = vpack.c.bf16 %v5519_v40, %v5515_v8  ;;  %v5496_v31 = vmul.f32 0.5, %v5472_v25  ;;  %v5389_v15 = vadd.f32 %v5365_v38, %v10490_v57  ;;  %v5477_v24 = vadd.f32 1.0, %v8368_v41 }
 0xad5   : > { %v8370_v36 = vpop.eup %8369  ;;  %v5516_v53 = vmul.f32 %v5492_v42, %v10500_v51  ;;  %v5417_v44 = vmul.f32 0.7978846, %v5393_v18  ;;  %v5475_v12 = vadd.f32 1.0, %v8364_v45  ;;  %v5498_v30 = vmul.f32 0.5, %v5474_v6  ;;  %v8148_v6 = vld [vmem:[%s11019_s25 + $0x1] ss:$0 sm:$0xff] }
 0xad6   : > { %5841 = vmatmul.bf16.gmra.mxu0 %v5600_v28  ;;  %v5520_v1 = vmul.f32 %v5496_v31, %v10536_v10  ;;  %v5478_v55 = vadd.f32 1.0, %v8370_v36  ;;  %v5413_v60 = vmul.f32 0.7978846, %v5389_v15  ;;  %v5501_v39 = vmul.f32 0.5, %v5477_v24 }
 0xad7   : > { %v8372_v29 = vpop.eup %8371  ;;  %8377 = vtanh.f32 %v5417_v44  ;;  %v5522_v10 = vmul.f32 %v5498_v30, %v10552_v50  ;;  %v5499_v11 = vmul.f32 0.5, %v5475_v12  ;;  %v5476_v20 = vadd.f32 1.0, %v8366_v43 }
 0xad8   : > { %v8374_v49 = vpop.eup %8373  ;;  %v5601_v2 = vpack.c.bf16 %v5520_v1, %v5516_v53  ;;  %v5502_v56 = vmul.f32 0.5, %v5478_v55  ;;  %v5479_v3 = vadd.f32 1.0, %v8372_v29  ;;  %8379 = vtanh.f32 %v5413_v60 }
 0xad9   : > { %v8376_v7 = vpop.eup %8375  ;;  %v5480_v17 = vadd.f32 1.0, %v8374_v49  ;;  %v5525_v0 = vmul.f32 %v5501_v39, %v10574_v22  ;;  %v5500_v21 = vmul.f32 0.5, %v5476_v20 }
 0xada   : > { %5865 = vmatmul.bf16.gmra.mxu2 %v5601_v2  ;;  %v5526_v27 = vmul.f32 %v5502_v56, %v10590_v5  ;;  %v5503_v47 = vmul.f32 0.5, %v5479_v3  ;;  %v5481_v51 = vadd.f32 1.0, %v8376_v7  ;;  %v5523_v5 = vmul.f32 %v5499_v11, %v10557_v14 }
 0xadb   : > { %v5504_v35 = vmul.f32 0.5, %v5480_v17  ;;  %v5524_v22 = vmul.f32 %v5500_v21, %v10569_v63 }
 0xadc   : > { %v5505_v45 = vmul.f32 0.5, %v5481_v51  ;;  %v5603_v9 = vpack.c.bf16 %v5526_v27, %v5522_v10  ;;  %v5527_v16 = vmul.f32 %v5503_v47, %v10598_v34 }
 0xadd   : > { %v8378_v48 = vpop.eup %8377  ;;  %v5528_v50 = vmul.f32 %v5504_v35, %v10602_v52 }
 0xade   : > { %v5529_v32 = vmul.f32 %v5505_v45, %v10605_v26  ;;  %v5604_v59 = vpack.c.bf16 %v5527_v16, %v5523_v5  ;;  %v8380_v43 = vpop.eup %8379  ;;  %v5465_v41 = vadd.f32 1.0, %v8378_v48 }
 0xadf   : > { %v5461_v38 = vadd.f32 1.0, %v8380_v43  ;;  %v5605_v34 = vpack.c.bf16 %v5528_v50, %v5524_v22 }
 0xae0   : > { %v5606_v54 = vpack.c.bf16 %v5529_v32, %v5525_v0  ;;  %v5489_v13 = vmul.f32 0.5, %v5465_v41 }
 0xae1   : > { %v5485_v19 = vmul.f32 0.5, %v5461_v38 }
 0xae2   : > { %5822 = vmatmul.bf16.gmra.mxu1 %v5603_v9  ;;  %v5513_v14 = vmul.f32 %v5489_v13, %v10494_v4 }
 0xae3   : > { %5894 = vmatmul.bf16.gmra.mxu3 %v5606_v54  ;;  %v5509_v26 = vmul.f32 %v5485_v19, %v10490_v57 }
 0xae5   : > { %v5598_v8 = vpack.c.bf16 %v5513_v14, %v5509_v26 }
 0xae6   : > { %5846 = vmatmul.bf16.gmra.mxu0 %v5604_v59 }
 0xaea   : > { %5870 = vmatmul.bf16.gmra.mxu2 %v5605_v34 }
 0xaf2   : > { %5884 = vmatmul.bf16.vlgmr.msra.gmra.mxu1 %v5598_v8 }
 0xb37   : > { %v5813_v40 = vpop.f32.mrf.mxu1 }
 0xb38   : > { %v5837_v25 = vpop.f32.mrf.mxu0  ;;  %v5814_v30 = vadd.f32 %v8148_v6, %v5813_v40 }
 0xb3a   : > { %v5838_v3 = vadd.f32 %v5837_v25, %v5814_v30 }
 0xb3f   : > { %v5815_v52 = vpop.f32.mrf.mxu1 }
 0xb40   : > { %v5839_v42 = vpop.f32.mrf.mxu0  ;;  %v5816_v17 = vadd.f32 %v8148_v6, %v5815_v52 }
 0xb42   : > { %v5840_v0 = vadd.f32 %v5839_v42, %v5816_v17 }
 0xb44   : > { %v5861_v18 = vpop.f32.mrf.mxu2 }
 0xb45   : > { %v5862_v27 = vadd.f32 %v5861_v18, %v5838_v3 }
 0xb4c   : > { %v5863_v31 = vpop.f32.mrf.mxu2 }
 0xb4d   : > { %v5864_v32 = vadd.f32 %v5863_v31, %v5840_v0 }
 0xb4f   : > { %v5818_v28 = vpop.f32.mrf.mxu1 }
 0xb50   : > { %v5819_v15 = vadd.f32 %v8148_v6, %v5818_v28 }
 0xb53   : > { %v5842_v63 = vpop.f32.mrf.mxu0 }
 0xb54   : > { %v5843_v4 = vadd.f32 %v5842_v63, %v5819_v15 }
 0xb56   : > { %v5890_v24 = vpop.f32.mrf.mxu3 }
 0xb57   : > { %v5820_v36 = vpop.f32.mrf.mxu1 }
 0xb58   : > { %v5821_v7 = vadd.f32 %v8148_v6, %v5820_v36 }
 0xb5b   : > { %v5844_v1 = vpop.f32.mrf.mxu0 }
 0xb5c   : > { %v5845_v11 = vadd.f32 %v5844_v1, %v5821_v7 }
 0xb5d   : > { %v5866_v53 = vpop.f32.mrf.mxu2 }
 0xb5e   : > { %v5867_v57 = vadd.f32 %v5866_v53, %v5843_v4  ;;  %v5892_v12 = vpop.f32.mrf.mxu3 }
 0xb5f   : > { %v5823_v55 = vpop.f32.mrf.mxu1 }
 0xb60   : > { %v5891_v29 = vadd.f32 %v5890_v24, %v5867_v57  ;;  %v5824_v9 = vadd.f32 %v8148_v6, %v5823_v55 }
 0xb62   : > { %v5902_v44 = vadd.f32 %v5891_v29, %v10403_v46 }
 0xb63   : > { %v5847_v56 = vpop.f32.mrf.mxu0 }
 0xb64   : > { %5914 = vadd.xlane.f32.xlu1 %v5902_v44  ;;  %v5848_v59 = vadd.f32 %v5847_v56, %v5824_v9 }
 0xb65   : > { %v5868_v49 = vpop.f32.mrf.mxu2 }
 0xb66   : > { %v5895_v39 = vpop.f32.mrf.mxu3  ;;  %v5869_v45 = vadd.f32 %v5868_v49, %v5845_v11 }
 0xb67   : > { %v5825_v2 = vpop.f32.mrf.mxu1 }
 0xb68   : > { %v5826_v51 = vadd.f32 %v8148_v6, %v5825_v2  ;;  %v5893_v21 = vadd.f32 %v5892_v12, %v5869_v45 }
 0xb6a   : > { %v5903_v38 = vadd.f32 %v5893_v21, %v10406_v33 }
 0xb6b   : > { %v5849_v46 = vpop.f32.mrf.mxu0 }
 0xb6c   : > { %v5850_v16 = vadd.f32 %v5849_v46, %v5826_v51 }
 0xb6d   : > { %v5871_v60 = vpop.f32.mrf.mxu2 }
 0xb6e   : > { %v5897_v54 = vpop.f32.mrf.mxu3  ;;  %v5872_v41 = vadd.f32 %v5871_v60, %v5848_v59 }
 0xb6f   : > { %v5885_v47 = vpop.f32.mrf.mxu1 }
 0xb70   : > { %v5886_v10 = vadd.f32 %v5885_v47, %v5862_v27  ;;  %v5896_v34 = vadd.f32 %v5895_v39, %v5872_v41 }
 0xb72   : > { %v5900_v20 = vadd.f32 %v5886_v10, %v10390_v61  ;;  %v5904_v13 = vadd.f32 %v5896_v34, %v10415_v37 }
 0xb74   : > { %5910 = vadd.xlane.f32.xlu2 %v5900_v20 }
 0xb75   : > { %v5873_v35 = vpop.f32.mrf.mxu2 }
 0xb76   : > { %v5874_v5 = vadd.f32 %v5873_v35, %v5850_v16 }
 0xb77   : > { %v5887_v48 = vpop.f32.mrf.mxu1 }
 0xb78   : > { %v5898_v50 = vadd.f32 %v5897_v54, %v5874_v5  ;;  %v5888_v43 = vadd.f32 %v5887_v48, %v5864_v32 }
 0xb7a   : > { %v5905_v22 = vadd.f32 %v5898_v50, %v10418_v23  ;;  %v5901_v61 = vadd.f32 %v5888_v43, %v10393_v62 }
 0xb7c   : > { %5920 = vadd.xlane.f32.xlu1 %v5905_v22  ;;  %5912 = vadd.xlane.f32.xlu0 %v5901_v61 }
 0xb7d   : > { %5916 = vadd.xlane.f32.xlu2 %v5903_v38 }
 0xb84   : > { %5918 = vadd.xlane.f32.xlu0 %v5904_v13 }
 0xbd7   : > { %v5915_v19 = vpop.xlane.xlu1 %5914 }
 0xbd8   : > { %v5924_v14 = vmul.f32 %v5915_v19, %v9792_v58 }
 0xbda   : > { %v10656_v26 = vsub.f32 %v5902_v44, %v5924_v14 }
 0xbdc   : > { %v5936_v8 = vmul.f32 %v10656_v26, %v10656_v26 }
 0xbde   : > { %5944 = vadd.xlane.f32.xlu1 %v5936_v8 }
 0xbe7   : > { %v5911_v23 = vpop.xlane.xlu2 %5910 }
 0xbe8   : > { %v5922_v62 = vmul.f32 %v5911_v23, %v9792_v58 }
 0xbea   : > { %v10661_v33 = vsub.f32 %v5900_v20, %v5922_v62 }
 0xbec   : > { %v5934_v40 = vmul.f32 %v10661_v33, %v10661_v33 }
 0xbee   : > { %5940 = vadd.xlane.f32.xlu2 %v5934_v40 }
 0xbef   : > { %v5921_v37 = vpop.xlane.xlu1 %5920  ;;  %v5913_v25 = vpop.xlane.xlu0 %5912 }
 0xbf0   : > { %v5927_v52 = vmul.f32 %v5921_v37, %v9792_v58  ;;  %v5923_v18 = vmul.f32 %v5913_v25, %v9792_v58  ;;  %v5917_v42 = vpop.xlane.xlu2 %5916 }
 0xbf1   : > { %v5925_v28 = vmul.f32 %v5917_v42, %v9792_v58 }
 0xbf2   : > { %v10668_v31 = vsub.f32 %v5905_v22, %v5927_v52  ;;  %v10670_v63 = vsub.f32 %v5901_v61, %v5923_v18 }
 0xbf3   : > { %v10672_v6 = vsub.f32 %v5903_v38, %v5925_v28 }
 0xbf4   : > { %v5939_v36 = vmul.f32 %v10668_v31, %v10668_v31  ;;  %v5935_v15 = vmul.f32 %v10670_v63, %v10670_v63 }
 0xbf5   : > { %v5937_v24 = vmul.f32 %v10672_v6, %v10672_v6 }
 0xbf6   : > { %5950 = vadd.xlane.f32.xlu1 %v5939_v36  ;;  %5942 = vadd.xlane.f32.xlu0 %v5935_v15 }
 0xbf7   : > { %5946 = vadd.xlane.f32.xlu2 %v5937_v24  ;;  %v5919_v4 = vpop.xlane.xlu0 %5918 }
 0xbf8   : > { %v5926_v53 = vmul.f32 %v5919_v4, %v9792_v58 }
 0xbfa   : > { %v10681_v57 = vsub.f32 %v5904_v13, %v5926_v53 }
 0xbfc   : > { %v5938_v1 = vmul.f32 %v10681_v57, %v10681_v57 }
 0xbfe   : > { %5948 = vadd.xlane.f32.xlu0 %v5938_v1 }
 0xc51   : > { %v5945_v55 = vpop.xlane.xlu1 %5944 }
 0xc52   : > { %v5954_v29 = vmul.f32 %v5945_v55, %v9792_v58 }
 0xc54   : > { %v5960_v44 = vadd.f32 1e-05, %v5954_v29  ;;  %v8149_v29 = vld [vmem:[%s11020_s15 + $0x1] ss:$0 sm:$0xff] }
 0xc56   : > { %8381 = vrsqrt.f32 %v5960_v44  ;;  %vm5990_vm10 = vweird.f32 %v5960_v44 }
 0xc5c   : > { %v10687_v30 = vpop.eup %8381 }
 0xc5d   : > { %v5985_v7 = vmul.f32 %v10687_v30, %v5960_v44  ;;  %vm5991_vm8 = vweird.f32 %v10687_v30 }
 0xc5e   : > { %vm10706_vm15 = vmor %vm5990_vm10, %vm5991_vm8 }
 0xc5f   : > { %v5986_v45 = vmul.f32 %v10687_v30, %v5985_v7 }
 0xc61   : > { %v5941_v12 = vpop.xlane.xlu2 %5940  ;;  %v5987_v16 = vmul.f32 0.5, %v5986_v45 }
 0xc62   : > { %v5952_v49 = vmul.f32 %v5941_v12, %v9792_v58 }
 0xc63   : > { %v5988_v50 = vsub.f32 1.5, %v5987_v16 }
 0xc64   : > { %v5958_v2 = vadd.f32 1e-05, %v5952_v49 }
 0xc66   : > { %8383 = vrsqrt.f32 %v5958_v2  ;;  %vm5970_vm9 = vweird.f32 %v5958_v2 }
 0xc69   : > { %v5951_v56 = vpop.xlane.xlu1 %5950  ;;  %v5943_v3 = vpop.xlane.xlu0 %5942 }
 0xc6a   : > { %v5957_v60 = vmul.f32 %v5951_v56, %v9792_v58  ;;  %v5947_v39 = vpop.xlane.xlu2 %5946  ;;  %v5953_v27 = vmul.f32 %v5943_v3, %v9792_v58 }
 0xc6b   : > { %v5955_v47 = vmul.f32 %v5947_v39, %v9792_v58 }
 0xc6c   : > { %v8384_v17 = vpop.eup %8383  ;;  %v5963_v51 = vadd.f32 1e-05, %v5957_v60  ;;  %v5959_v10 = vadd.f32 1e-05, %v5953_v27 }
 0xc6d   : > { %v5965_v11 = vmul.f32 %v8384_v17, %v5958_v2  ;;  %v5961_v20 = vadd.f32 1e-05, %v5955_v47  ;;  %vm5971_vm7 = vweird.f32 %v8384_v17 }
 0xc6e   : > { %8385 = vrsqrt.f32 %v5963_v51  ;;  %vm10700_vm11 = vmor %vm5970_vm9, %vm5971_vm7  ;;  %vm6020_vm13 = vweird.f32 %v5963_v51  ;;  %vm5980_vm4 = vweird.f32 %v5959_v10 }
 0xc6f   : > { %v5966_v46 = vmul.f32 %v8384_v17, %v5965_v11  ;;  %8387 = vrsqrt.f32 %v5961_v20  ;;  %vm6000_vm2 = vweird.f32 %v5961_v20 }
 0xc70   : > { %8389 = vrsqrt.f32 %v5959_v10 }
 0xc71   : > { %v5967_v0 = vmul.f32 0.5, %v5966_v46  ;;  %v5949_v9 = vpop.xlane.xlu0 %5948 }
 0xc72   : > { %v5956_v35 = vmul.f32 %v5949_v9, %v9792_v58  ;;  %v5989_v58 = vmul.f32 %v10687_v30, %v5988_v50 }
 0xc73   : > { %v5968_v5 = vsub.f32 1.5, %v5967_v0 }
 0xc74   : > { %v8386_v32 = vpop.eup %8385  ;;  %v10695_v21 = vadd.f32 1e-05, %v5956_v35  ;;  %v5993_v28 = vsel %vm10706_vm15, %v10687_v30, %v5989_v58 }
 0xc75   : > { %v8388_v54 = vpop.eup %8387  ;;  %v6015_v48 = vmul.f32 %v8386_v32, %v5963_v51  ;;  %v5969_v61 = vmul.f32 %v8384_v17, %v5968_v5  ;;  %vm6021_vm12 = vweird.f32 %v8386_v32  ;;  %v6026_v2 = vmul.f32 %v5993_v28, %v10656_v26 }
 0xc76   : > { %v8390_v59 = vpop.eup %8389  ;;  %v5995_v43 = vmul.f32 %v8388_v54, %v5961_v20  ;;  %8391 = vrsqrt.f32 %v10695_v21  ;;  %vm6001_vm14 = vweird.f32 %v8388_v54  ;;  %vm6022_vm1 = vmor %vm6020_vm13, %vm6021_vm12  ;;  %vm6010_vm7 = vweird.f32 %v10695_v21 }
 0xc77   : > { %v6016_v41 = vmul.f32 %v8386_v32, %v6015_v48  ;;  %v5975_v22 = vmul.f32 %v8390_v59, %v5959_v10  ;;  %v5973_v40 = vsel %vm10700_vm11, %v8384_v17, %v5969_v61  ;;  %vm5981_vm0 = vweird.f32 %v8390_v59  ;;  %vm6002_vm3 = vmor %vm6000_vm2, %vm6001_vm14 }
 0xc78   : > { %v5996_v38 = vmul.f32 %v8388_v54, %v5995_v43  ;;  %v6024_v53 = vmul.f32 %v5973_v40, %v10661_v33  ;;  %vm5982_vm5 = vmor %vm5980_vm4, %vm5981_vm0  ;;  %v8150_v33 = vld [vmem:[%s11021_s18 + $0x1] ss:$0 sm:$0xff]  ;;  %v6035_v27 = vmul.f32 %v8149_v29, %v6026_v2 }
 0xc79   : > { %v6017_v34 = vmul.f32 0.5, %v6016_v41  ;;  %v5976_v13 = vmul.f32 %v8390_v59, %v5975_v22 }
 0xc7a   : > { %v5997_v19 = vmul.f32 0.5, %v5996_v38  ;;  %v6033_v3 = vmul.f32 %v8149_v29, %v6024_v53  ;;  %v6044_v11 = vadd.f32 %v8150_v33, %v6035_v27 }
 0xc7b   : > { %v6018_v8 = vsub.f32 1.5, %v6017_v34  ;;  %v5977_v23 = vmul.f32 0.5, %v5976_v13 }
 0xc7c   : > { %v8392_v62 = vpop.eup %8391  ;;  %v5998_v37 = vsub.f32 1.5, %v5997_v19 }
 0xc7d   : > { %v6019_v52 = vmul.f32 %v8386_v32, %v6018_v8  ;;  %v5978_v18 = vsub.f32 1.5, %v5977_v23  ;;  %v6005_v42 = vmul.f32 %v8392_v62, %v10695_v21  ;;  %vm6011_vm6 = vweird.f32 %v8392_v62 }
 0xc7e   : > { %v5999_v36 = vmul.f32 %v8388_v54, %v5998_v37  ;;  %vm6012_vm8 = vmor %vm6010_vm7, %vm6011_vm6 }
 0xc7f   : > { %v6023_v15 = vsel %vm6022_vm1, %v8386_v32, %v6019_v52  ;;  %v5979_v24 = vmul.f32 %v8390_v59, %v5978_v18  ;;  %v6006_v4 = vmul.f32 %v8392_v62, %v6005_v42 }
 0xc80   : > { %v6029_v1 = vmul.f32 %v6023_v15, %v10668_v31  ;;  %v6003_v55 = vsel %vm6002_vm3, %v8388_v54, %v5999_v36 }
 0xc81   : > { %v6027_v44 = vmul.f32 %v6003_v55, %v10672_v6  ;;  %v5983_v12 = vsel %vm5982_vm5, %v8390_v59, %v5979_v24  ;;  %v6007_v49 = vmul.f32 0.5, %v6006_v4 }
 0xc82   : > { %v6025_v30 = vmul.f32 %v5983_v12, %v10670_v63  ;;  %v6038_v7 = vmul.f32 %v8149_v29, %v6029_v1  ;;  %v6042_v63 = vadd.f32 %v8150_v33, %v6033_v3 }
 0xc83   : > { %v6036_v31 = vmul.f32 %v8149_v29, %v6027_v44  ;;  %v6008_v56 = vsub.f32 1.5, %v6007_v49 }
 0xc84   : > { %v6034_v60 = vmul.f32 %v8149_v29, %v6025_v30  ;;  %v6047_v17 = vadd.f32 %v8150_v33, %v6038_v7  ;;  %v6048_v46 = vadd.f32 %v6044_v11, %v6042_v63 }
 0xc85   : > { %v6045_v39 = vadd.f32 %v8150_v33, %v6036_v31  ;;  %v6009_v6 = vmul.f32 %v8392_v62, %v6008_v56 }
 0xc86   : > { %v6043_v47 = vadd.f32 %v8150_v33, %v6034_v60 }
 0xc87   : > { %v6013_v26 = vsel %vm6012_vm8, %v8392_v62, %v6009_v6 }
 0xc88   : > { %v6049_v51 = vadd.f32 %v6045_v39, %v6043_v47  ;;  %v6028_v10 = vmul.f32 %v6013_v26, %v10681_v57 }
 0xc8a   : > { %v6051_v20 = vadd.f32 %v6049_v51, %v6047_v17  ;;  %v6037_v45 = vmul.f32 %v8149_v29, %v6028_v10 }
 0xc8c   : > { %v6053_v0 = vmul.f32 0.33333334, %v6051_v20  ;;  %v6046_v9 = vadd.f32 %v8150_v33, %v6037_v45 }
 0xc8e   : > { %v6050_v16 = vadd.f32 %v6048_v46, %v6046_v9  ;;  %6055 = vst [vmem:[%s765_s27 + $0x8] sm:$0xff] %v6053_v0 }
 0xc90   : > { %v6052_v57 = vmul.f32 0.33333334, %v6050_v16 }
 0xc92   : > { %6054 = vst [vmem:[%s765_s27] sm:$0xff] %v6052_v57 }
 0xc93   : > { %8646 = shalt.err (!%p8643_p10)
}
 0xc94   : > { %s8716_s14 = smov 128   ;;  %s8717_s27 = smov 8  }
 0xc95   : > { %8037 = dma.vmem_to_hbm [thread:$0]  (%p8928_p4), %s6070_s30, 256, %s6072_s16, %s6057_s3, %s8716_s14, %s8716_s14, %s8717_s27  }
 0xc96 PF: > { %s6086_s7 = sand.u32 1, %s8685_s1   ;;  %p11027_p11 = scmp.ge.s32.totalorder %s8697_s24, 2 }
 0xc97   : > { %s6087_s5 = scalar_lea.sflag [#allocation4], %s6086_s7 }
 0xc98   : > { %p8063_p13 = pnand %p11027_p11, %p8932_p6 }
 0xc9a   : > { %p8064_p0 = pneg %p8063_p13 }
 0xc9c   : > { %8680 = dma.done.wait (%p8064_p0), %s6087_s5, 256  }
 0xc9d   : > { %8682 = vsyncadd (%p8064_p0), %s6087_s5, 4294967040  ;;  %p36_p2 = scmp.ge.s32.totalorder %s8906_s26, 4   ;;  %s11028_s1 = smov %s8689_s22 }
 0xc9e   : > { %s11029_s22 = smov %s8693_s23  ;;  %s11030_s23 = smov %s8917_s8 }
 0xc9f   : > { %s11031_s24 = smov %s8906_s26  ;;  %38 = sbr.rel (!%p36_p2) target bundleno = 29 (0x1d), region = 184 }
 0xca4   :  { %6093 = vsyncpa [#allocation3], 1 }
 0xca5   :  { %6095 = vsyncpa [#allocation3 + $0x1], 1 }
 0xca6   :  { %6096 = vsyncpa [#allocation6], 1 }
 0xca7   :  { %6097 = vsyncpa [#allocation9], 1 }
 0xca8   :  { %6098 = vsyncpa [#allocation12], 1 }
 0xca9   :  { %6099 = vsyncpa [#allocation4], 1 }
 0xcaa   :  { %6101 = vsyncpa [#allocation4 + $0x1], 1 }

</bundles_post_ra>
